<compile_context>
chip_gen: v5e
topology: v5e:2x2
jax: 0.10.0
libtpu: 0.0.40
codegen_flags: <defaults>
</compile_context>

<pallas_src>
import math
import jax
import jax.numpy as jnp
from jax.experimental import pallas as pl
from jax.experimental.pallas import tpu as pltpu

# Hyperparameters implied by the module.
NO_SEQ = 4        # hp.NO_SEQ (frame-stack "channels")
HEIGHT = 16       # hp.HEIGHT
WIDTH = 16        # hp.WIDTH
NO_ACTIONS = 6    # Pong action space
BN_EPS = 1e-5
K = 5             # conv kernel size
S = 2             # conv stride
P = 2             # conv padding


def _conv_out(n):
    return (n + 2 * P - K) // S + 1


H1, W1 = _conv_out(HEIGHT), _conv_out(WIDTH)   # 8, 8
H2, W2 = _conv_out(H1), _conv_out(W1)          # 4, 4
H3, W3 = _conv_out(H2), _conv_out(W2)          # 2, 2
C1, C2, C3 = 16, 32, 64
FEAT = H3 * W3 * C3                            # 256 = ceil(16/8)*ceil(16/8)*64


def _round8(n):
    return -(-n // 8) * 8


# Sublane-aligned output-column tile per conv stage (keeps every
# (B, Ho, Wop, C) <-> (B*Ho*Wop, C) reshape a no-op relayout) and a padded
# scratch wide enough for the furthest strided read (K-1 + S*(Wop-1)).
WOP1, WOP2, WOP3 = _round8(W1), _round8(W2), _round8(W3)          # 8, 8, 8


def _wp(w, wop):
    return max(w + 2 * P, (K - 1) + S * (wop - 1) + 1)


HP1, WP1 = HEIGHT + 2 * P, _wp(WIDTH, WOP1)   # 20, 20
HP2, WP2 = H1 + 2 * P, _wp(W1, WOP2)          # 12, 19
HP3, WP3 = H2 + 2 * P, _wp(W2, WOP3)          # 8, 19


def _vmem():
    # Whole array resident in VMEM (shapes are tiny; no tiling needed).
    return pl.BlockSpec(memory_space=pltpu.MemorySpace.VMEM)


def _conv_bn_relu(src_ref, patch_ref, w_ref, gamma_ref, beta_ref,
                  *, B, Ho, Wo, Wop, Cin):
    """Fused Conv2d(k=5,s=2,p=2) + BatchNorm2d(train-mode stats) + ReLU.

    src_ref:   zero-padded activation scratch (B, Hp, Wp, Cin), f32, VMEM.
    patch_ref: (B*Ho*Wop, K*K*Cin) f32 im2col scratch, fully overwritten here.
    w_ref:     (K*K*Cin, Cout) bf16 weight (row (kh*K+kw)*Cin + c).
    Returns f32 (B*Ho*Wop, Cout); rows with (row % Wop) >= Wo are alignment
    padding, excluded from BN statistics and never stored onward.
    """
    Cout = w_ref.shape[-1]
    Rp = B * Ho * Wop

    # im2col assembly: one strided tap slab per (kh, kw), written into its
    # Cin-wide column band of the patch scratch.  All 25*Cin columns and all
    # Rp rows are covered, so the scratch is never read uninitialized.
    for kh in range(K):
        for kw in range(K):
            slab = src_ref[:, pl.ds(kh, Ho, stride=S),
                           pl.ds(kw, Wop, stride=S), :]
            col = (kh * K + kw) * Cin
            patch_ref[:, col:col + Cin] = slab.reshape(Rp, Cin)

    # Single bf16 cast of the assembled patch, single deep MXU matmul.
    patch = patch_ref[...].astype(jnp.bfloat16)
    acc = jnp.dot(patch, w_ref[...], preferred_element_type=jnp.float32)

    # BatchNorm2d training-mode statistics over the B*Ho*Wo valid rows
    # (two-pass, biased variance, eps=1e-5).  The conv bias is omitted from
    # compute: a pre-BN per-channel constant is exactly cancelled by the mean
    # subtraction under batch-statistics normalization.
    n = float(B * Ho * Wo)
    if Wo == Wop:
        mean = jnp.sum(acc, axis=0, keepdims=True) * (1.0 / n)
        d = acc - mean
        var = jnp.sum(d * d, axis=0, keepdims=True) * (1.0 / n)
    else:
        rows = jax.lax.broadcasted_iota(jnp.int32, (Rp, 1), 0)
        valid = ((rows % Wop) < Wo).astype(jnp.float32)
        mean = jnp.sum(acc * valid, axis=0, keepdims=True) * (1.0 / n)
        d = acc - mean
        var = jnp.sum(d * d * valid, axis=0, keepdims=True) * (1.0 / n)

    y = (acc - mean) * jax.lax.rsqrt(var + BN_EPS)
    return jnp.maximum(y * gamma_ref[...] + beta_ref[...], 0.0)


def _store_interior(dst_ref, y, *, B, Ho, Wo, Wop, C):
    """One-shot store of the valid activations into the interior of the next
    stage's zero-padded scratch: dst[:, P:P+Ho, P:P+Wo, :] = y."""
    y4 = y.reshape(B, Ho, Wop, C)
    dst_ref[:, P:P + Ho, P:P + Wo, :] = y4[:, :, :Wo, :]


def dqn_kernel(x_ref,
               w1_ref, g1_ref, b1_ref,
               w2_ref, g2_ref, b2_ref,
               w3_ref, g3_ref, b3_ref,
               wh_ref, bh_ref,
               o_ref,
               pad1_ref, pad2_ref, pad3_ref,
               patch1_ref, patch2_ref, patch3_ref, feat_ref):
    B = x_ref.shape[0]

    # conv1 + bn1 + relu
    pad1_ref[...] = jnp.zeros(pad1_ref.shape, pad1_ref.dtype)
    pad1_ref[:, P:P + HEIGHT, P:P + WIDTH, :] = x_ref[...]
    y1 = _conv_bn_relu(pad1_ref, patch1_ref, w1_ref, g1_ref, b1_ref,
                       B=B, Ho=H1, Wo=W1, Wop=WOP1, Cin=NO_SEQ)

    # conv2 + bn2 + relu
    pad2_ref[...] = jnp.zeros(pad2_ref.shape, pad2_ref.dtype)
    _store_interior(pad2_ref, y1, B=B, Ho=H1, Wo=W1, Wop=WOP1, C=C1)
    y2 = _conv_bn_relu(pad2_ref, patch2_ref, w2_ref, g2_ref, b2_ref,
                       B=B, Ho=H2, Wo=W2, Wop=WOP2, Cin=C1)

    # conv3 + bn3 + relu
    pad3_ref[...] = jnp.zeros(pad3_ref.shape, pad3_ref.dtype)
    _store_interior(pad3_ref, y2, B=B, Ho=H2, Wo=W2, Wop=WOP2, C=C2)
    y3 = _conv_bn_relu(pad3_ref, patch3_ref, w3_ref, g3_ref, b3_ref,
                       B=B, Ho=H3, Wo=W3, Wop=WOP3, Cin=C2)

    # Head (Linear) as ONE matmul.  Pack the H3*W3 valid positions into a
    # lane-dense (B, FEAT) buffer in (h, w, c) order; the PyTorch NCHW
    # x.view(B, -1) ordering is folded into wh at init.
    y3p = y3.reshape(B, H3, WOP3, C3)
    for h in range(H3):
        for w in range(W3):
            f = (h * W3 + w) * C3
            feat_ref[:, f:f + C3] = y3p[:, h, w, :]
    q = jnp.dot(feat_ref[...].astype(jnp.bfloat16), wh_ref[...],
                preferred_element_type=jnp.float32)
    o_ref[...] = q + bh_ref[...]


def dqn_forward(params, x_nchw):
    B = x_nchw.shape[0]
    # Sole host-side layout op: NCHW -> NHWC of the tiny input.  Padding,
    # im2col, all three conv+BN+ReLU stages and the head run in one kernel.
    x = jnp.transpose(x_nchw, (0, 2, 3, 1)).astype(jnp.float32)
    return pl.pallas_call(
        dqn_kernel,
        out_shape=jax.ShapeDtypeStruct((B, NO_ACTIONS), jnp.float32),
        in_specs=[_vmem()] * 12,
        out_specs=_vmem(),
        scratch_shapes=[
            # zero-padded activations
            pltpu.VMEM((B, HP1, WP1, NO_SEQ), jnp.float32),
            pltpu.VMEM((B, HP2, WP2, C1), jnp.float32),
            pltpu.VMEM((B, HP3, WP3, C2), jnp.float32),
            # im2col patch matrices (one deep matmul per stage)
            pltpu.VMEM((B * H1 * WOP1, K * K * NO_SEQ), jnp.float32),
            pltpu.VMEM((B * H2 * WOP2, K * K * C1), jnp.float32),
            pltpu.VMEM((B * H3 * WOP3, K * K * C2), jnp.float32),
            # lane-dense head features
            pltpu.VMEM((B, FEAT), jnp.float32),
        ],
    )(x,
      params["conv1_w"], params["bn1_gamma"], params["bn1_beta"],
      params["conv2_w"], params["bn2_gamma"], params["bn2_beta"],
      params["conv3_w"], params["bn3_gamma"], params["bn3_beta"],
      params["head_w"], params["head_b"])


def init_params(key):
    """Deterministic synthetic parameters matching the nn.Module shapes.

    Conv weights are stored as (K*K*Cin, Cout) bf16 (PyTorch (Cout,Cin,K,K)
    permuted so row (kh*K+kw)*Cin + c matches the kernel's patch columns).
    The head weight is permuted so the kernel's (h, w, c) feature order
    matches PyTorch's NCHW x.view(B, -1) ordering.
    """
    def conv_layer(k_, cin, cout):
        fan_in = cin * K * K
        bound = 1.0 / math.sqrt(fan_in)
        kw_, kb_ = jax.random.split(k_)
        w = jax.random.uniform(kw_, (K, K, cin, cout), jnp.float32,
                               -bound, bound)
        b = jax.random.uniform(kb_, (cout,), jnp.float32, -bound, bound)
        return w.reshape(K * K * cin, cout).astype(jnp.bfloat16), b

    keys = jax.random.split(key, 4)
    params = {}
    params["conv1_w"], params["conv1_b"] = conv_layer(keys[0], NO_SEQ, C1)
    params["conv2_w"], params["conv2_b"] = conv_layer(keys[1], C1, C2)
    params["conv3_w"], params["conv3_b"] = conv_layer(keys[2], C2, C3)
    # conv*_b kept only for shape fidelity with nn.Conv2d; they are not fed to
    # the kernel because a pre-BN per-channel bias is cancelled exactly by
    # BatchNorm's batch-mean subtraction.
    for i, c in ((1, C1), (2, C2), (3, C3)):
        params[f"bn{i}_gamma"] = jnp.ones((1, c), jnp.float32)
        params[f"bn{i}_beta"] = jnp.zeros((1, c), jnp.float32)

    bound = 1.0 / math.sqrt(FEAT)
    kw_, kb_ = jax.random.split(keys[3])
    head_w = jax.random.uniform(kw_, (FEAT, NO_ACTIONS), jnp.float32,
                                -bound, bound)   # rows in PyTorch (c,h,w) order
    head_b = jax.random.uniform(kb_, (NO_ACTIONS,), jnp.float32, -bound, bound)
    # Fold the NCHW-flatten permutation into the weight once at init:
    # wh[(h*W3 + w)*C3 + c, a] = head_w[c*H3*W3 + h*W3 + w, a].
    params["head_w"] = jnp.transpose(
        head_w.reshape(C3, H3, W3, NO_ACTIONS), (1, 2, 0, 3)
    ).reshape(H3 * W3 * C3, NO_ACTIONS).astype(jnp.bfloat16)
    params["head_b"] = head_b.reshape(1, NO_ACTIONS)
    # TODO(synk): BatchNorm running-stat buffer updates (training side effect)
    # are not modeled; forward uses batch statistics as nn.BatchNorm2d in
    # train mode does.
    return params


if __name__ == "__main__":
    key = jax.random.PRNGKey(0)
    pkey, xkey = jax.random.split(key)
    params = init_params(pkey)
    # NCHW input, as PyTorch would provide: (batch=2, NO_SEQ=4, 16, 16)
    x = jax.random.normal(xkey, (2, NO_SEQ, HEIGHT, WIDTH), jnp.float32)
    out = jax.jit(dqn_forward)(params, x)
    jax.block_until_ready(out)
    assert out.shape == (2, NO_ACTIONS), out.shape
    assert out.dtype == jnp.float32
    assert bool(jnp.all(jnp.isfinite(out)))
    print("KERNEL_OK")
</pallas_src>

<mosaic_0001>
module attributes {stable_mosaic.version = 11 : i64} {
  func.func @dqn_kernel(%arg0: memref<2x16x16x4xf32, #tpu.memory_space<vmem>>, %arg1: memref<100x16xbf16, #tpu.memory_space<vmem>>, %arg2: memref<1x16xf32, #tpu.memory_space<vmem>>, %arg3: memref<1x16xf32, #tpu.memory_space<vmem>>, %arg4: memref<400x32xbf16, #tpu.memory_space<vmem>>, %arg5: memref<1x32xf32, #tpu.memory_space<vmem>>, %arg6: memref<1x32xf32, #tpu.memory_space<vmem>>, %arg7: memref<800x64xbf16, #tpu.memory_space<vmem>>, %arg8: memref<1x64xf32, #tpu.memory_space<vmem>>, %arg9: memref<1x64xf32, #tpu.memory_space<vmem>>, %arg10: memref<256x6xbf16, #tpu.memory_space<vmem>>, %arg11: memref<1x6xf32, #tpu.memory_space<vmem>>, %arg12: memref<2x6xf32, #tpu.memory_space<vmem>>, %arg13: memref<2x20x20x4xf32, #tpu.memory_space<vmem>>, %arg14: memref<2x12x19x16xf32, #tpu.memory_space<vmem>>, %arg15: memref<2x8x19x32xf32, #tpu.memory_space<vmem>>, %arg16: memref<128x100xf32, #tpu.memory_space<vmem>>, %arg17: memref<64x400xf32, #tpu.memory_space<vmem>>, %arg18: memref<32x800xf32, #tpu.memory_space<vmem>>, %arg19: memref<2x256xf32, #tpu.memory_space<vmem>>) attributes {dimension_semantics = [], scalar_prefetch = 0 : i64, scratch_operands = 7 : i64, tpu.core_type = #tpu.core_type<tc>} {
    %cst = arith.constant 0.000000e+00 : f32
    %0 = vector.broadcast %cst : f32 to vector<2x20x20x4xf32>
    %c0 = arith.constant 0 : index
    %c0_0 = arith.constant 0 : index
    %c0_1 = arith.constant 0 : index
    %c0_2 = arith.constant 0 : index
    %1 = vector.load %arg13[%c0, %c0_0, %c0_1, %c0_2] : memref<2x20x20x4xf32, #tpu.memory_space<vmem>>, vector<2x20x20x4xf32>
    tpu.vector_store %arg13[%c0, %c0_0, %c0_1, %c0_2], %0 {strides = array<i32>} : memref<2x20x20x4xf32, #tpu.memory_space<vmem>>, vector<2x20x20x4xf32>,
    %c0_3 = arith.constant 0 : index
    %c0_4 = arith.constant 0 : index
    %c0_5 = arith.constant 0 : index
    %c0_6 = arith.constant 0 : index
    %2 = vector.load %arg0[%c0_3, %c0_4, %c0_5, %c0_6] : memref<2x16x16x4xf32, #tpu.memory_space<vmem>>, vector<2x16x16x4xf32>
    %c0_7 = arith.constant 0 : index
    %c2 = arith.constant 2 : index
    %c2_8 = arith.constant 2 : index
    %c0_9 = arith.constant 0 : index
    %3 = vector.load %arg13[%c0_7, %c2, %c2_8, %c0_9] : memref<2x20x20x4xf32, #tpu.memory_space<vmem>>, vector<2x16x16x4xf32>
    tpu.vector_store %arg13[%c0_7, %c2, %c2_8, %c0_9], %2 {strides = array<i32>} : memref<2x20x20x4xf32, #tpu.memory_space<vmem>>, vector<2x16x16x4xf32>,
    %c0_10 = arith.constant 0 : index
    %c0_11 = arith.constant 0 : index
    %c0_12 = arith.constant 0 : index
    %c0_13 = arith.constant 0 : index
    %4 = tpu.strided_load %arg13[%c0_10, %c0_11, %c0_12, %c0_13] {strides = array<i32: 1, 2, 2, 1>} : memref<2x20x20x4xf32, #tpu.memory_space<vmem>>, vector<2x8x8x4xf32>
    %5 = vector.shape_cast %4 : vector<2x8x8x4xf32> to vector<128x4xf32>
    %c0_14 = arith.constant 0 : index
    %c0_15 = arith.constant 0 : index
    %6 = vector.load %arg16[%c0_14, %c0_15] : memref<128x100xf32, #tpu.memory_space<vmem>>, vector<128x4xf32>
    tpu.vector_store %arg16[%c0_14, %c0_15], %5 {strides = array<i32>} : memref<128x100xf32, #tpu.memory_space<vmem>>, vector<128x4xf32>,
    %c0_16 = arith.constant 0 : index
    %c0_17 = arith.constant 0 : index
    %c1 = arith.constant 1 : index
    %c0_18 = arith.constant 0 : index
    %7 = tpu.strided_load %arg13[%c0_16, %c0_17, %c1, %c0_18] {strides = array<i32: 1, 2, 2, 1>} : memref<2x20x20x4xf32, #tpu.memory_space<vmem>>, vector<2x8x8x4xf32>
    %8 = vector.shape_cast %7 : vector<2x8x8x4xf32> to vector<128x4xf32>
    %c0_19 = arith.constant 0 : index
    %c4 = arith.constant 4 : index
    %9 = vector.load %arg16[%c0_19, %c4] : memref<128x100xf32, #tpu.memory_space<vmem>>, vector<128x4xf32>
    tpu.vector_store %arg16[%c0_19, %c4], %8 {strides = array<i32>} : memref<128x100xf32, #tpu.memory_space<vmem>>, vector<128x4xf32>,
    %c0_20 = arith.constant 0 : index
    %c0_21 = arith.constant 0 : index
    %c2_22 = arith.constant 2 : index
    %c0_23 = arith.constant 0 : index
    %10 = tpu.strided_load %arg13[%c0_20, %c0_21, %c2_22, %c0_23] {strides = array<i32: 1, 2, 2, 1>} : memref<2x20x20x4xf32, #tpu.memory_space<vmem>>, vector<2x8x8x4xf32>
    %11 = vector.shape_cast %10 : vector<2x8x8x4xf32> to vector<128x4xf32>
    %c0_24 = arith.constant 0 : index
    %c8 = arith.constant 8 : index
    %12 = vector.load %arg16[%c0_24, %c8] : memref<128x100xf32, #tpu.memory_space<vmem>>, vector<128x4xf32>
    tpu.vector_store %arg16[%c0_24, %c8], %11 {strides = array<i32>} : memref<128x100xf32, #tpu.memory_space<vmem>>, vector<128x4xf32>,
    %c0_25 = arith.constant 0 : index
    %c0_26 = arith.constant 0 : index
    %c3 = arith.constant 3 : index
    %c0_27 = arith.constant 0 : index
    %13 = tpu.strided_load %arg13[%c0_25, %c0_26, %c3, %c0_27] {strides = array<i32: 1, 2, 2, 1>} : memref<2x20x20x4xf32, #tpu.memory_space<vmem>>, vector<2x8x8x4xf32>
    %14 = vector.shape_cast %13 : vector<2x8x8x4xf32> to vector<128x4xf32>
    %c0_28 = arith.constant 0 : index
    %c12 = arith.constant 12 : index
    %15 = vector.load %arg16[%c0_28, %c12] : memref<128x100xf32, #tpu.memory_space<vmem>>, vector<128x4xf32>
    tpu.vector_store %arg16[%c0_28, %c12], %14 {strides = array<i32>} : memref<128x100xf32, #tpu.memory_space<vmem>>, vector<128x4xf32>,
    %c0_29 = arith.constant 0 : index
    %c0_30 = arith.constant 0 : index
    %c4_31 = arith.constant 4 : index
    %c0_32 = arith.constant 0 : index
    %16 = tpu.strided_load %arg13[%c0_29, %c0_30, %c4_31, %c0_32] {strides = array<i32: 1, 2, 2, 1>} : memref<2x20x20x4xf32, #tpu.memory_space<vmem>>, vector<2x8x8x4xf32>
    %17 = vector.shape_cast %16 : vector<2x8x8x4xf32> to vector<128x4xf32>
    %c0_33 = arith.constant 0 : index
    %c16 = arith.constant 16 : index
    %18 = vector.load %arg16[%c0_33, %c16] : memref<128x100xf32, #tpu.memory_space<vmem>>, vector<128x4xf32>
    tpu.vector_store %arg16[%c0_33, %c16], %17 {strides = array<i32>} : memref<128x100xf32, #tpu.memory_space<vmem>>, vector<128x4xf32>,
    %c0_34 = arith.constant 0 : index
    %c1_35 = arith.constant 1 : index
    %c0_36 = arith.constant 0 : index
    %c0_37 = arith.constant 0 : index
    %19 = tpu.strided_load %arg13[%c0_34, %c1_35, %c0_36, %c0_37] {strides = array<i32: 1, 2, 2, 1>} : memref<2x20x20x4xf32, #tpu.memory_space<vmem>>, vector<2x8x8x4xf32>
    %20 = vector.shape_cast %19 : vector<2x8x8x4xf32> to vector<128x4xf32>
    %c0_38 = arith.constant 0 : index
    %c20 = arith.constant 20 : index
    %21 = vector.load %arg16[%c0_38, %c20] : memref<128x100xf32, #tpu.memory_space<vmem>>, vector<128x4xf32>
    tpu.vector_store %arg16[%c0_38, %c20], %20 {strides = array<i32>} : memref<128x100xf32, #tpu.memory_space<vmem>>, vector<128x4xf32>,
    %c0_39 = arith.constant 0 : index
    %c1_40 = arith.constant 1 : index
    %c1_41 = arith.constant 1 : index
    %c0_42 = arith.constant 0 : index
    %22 = tpu.strided_load %arg13[%c0_39, %c1_40, %c1_41, %c0_42] {strides = array<i32: 1, 2, 2, 1>} : memref<2x20x20x4xf32, #tpu.memory_space<vmem>>, vector<2x8x8x4xf32>
    %23 = vector.shape_cast %22 : vector<2x8x8x4xf32> to vector<128x4xf32>
    %c0_43 = arith.constant 0 : index
    %c24 = arith.constant 24 : index
    %24 = vector.load %arg16[%c0_43, %c24] : memref<128x100xf32, #tpu.memory_space<vmem>>, vector<128x4xf32>
    tpu.vector_store %arg16[%c0_43, %c24], %23 {strides = array<i32>} : memref<128x100xf32, #tpu.memory_space<vmem>>, vector<128x4xf32>,
    %c0_44 = arith.constant 0 : index
    %c1_45 = arith.constant 1 : index
    %c2_46 = arith.constant 2 : index
    %c0_47 = arith.constant 0 : index
    %25 = tpu.strided_load %arg13[%c0_44, %c1_45, %c2_46, %c0_47] {strides = array<i32: 1, 2, 2, 1>} : memref<2x20x20x4xf32, #tpu.memory_space<vmem>>, vector<2x8x8x4xf32>
    %26 = vector.shape_cast %25 : vector<2x8x8x4xf32> to vector<128x4xf32>
    %c0_48 = arith.constant 0 : index
    %c28 = arith.constant 28 : index
    %27 = vector.load %arg16[%c0_48, %c28] : memref<128x100xf32, #tpu.memory_space<vmem>>, vector<128x4xf32>
    tpu.vector_store %arg16[%c0_48, %c28], %26 {strides = array<i32>} : memref<128x100xf32, #tpu.memory_space<vmem>>, vector<128x4xf32>,
    %c0_49 = arith.constant 0 : index
    %c1_50 = arith.constant 1 : index
    %c3_51 = arith.constant 3 : index
    %c0_52 = arith.constant 0 : index
    %28 = tpu.strided_load %arg13[%c0_49, %c1_50, %c3_51, %c0_52] {strides = array<i32: 1, 2, 2, 1>} : memref<2x20x20x4xf32, #tpu.memory_space<vmem>>, vector<2x8x8x4xf32>
    %29 = vector.shape_cast %28 : vector<2x8x8x4xf32> to vector<128x4xf32>
    %c0_53 = arith.constant 0 : index
    %c32 = arith.constant 32 : index
    %30 = vector.load %arg16[%c0_53, %c32] : memref<128x100xf32, #tpu.memory_space<vmem>>, vector<128x4xf32>
    tpu.vector_store %arg16[%c0_53, %c32], %29 {strides = array<i32>} : memref<128x100xf32, #tpu.memory_space<vmem>>, vector<128x4xf32>,
    %c0_54 = arith.constant 0 : index
    %c1_55 = arith.constant 1 : index
    %c4_56 = arith.constant 4 : index
    %c0_57 = arith.constant 0 : index
    %31 = tpu.strided_load %arg13[%c0_54, %c1_55, %c4_56, %c0_57] {strides = array<i32: 1, 2, 2, 1>} : memref<2x20x20x4xf32, #tpu.memory_space<vmem>>, vector<2x8x8x4xf32>
    %32 = vector.shape_cast %31 : vector<2x8x8x4xf32> to vector<128x4xf32>
    %c0_58 = arith.constant 0 : index
    %c36 = arith.constant 36 : index
    %33 = vector.load %arg16[%c0_58, %c36] : memref<128x100xf32, #tpu.memory_space<vmem>>, vector<128x4xf32>
    tpu.vector_store %arg16[%c0_58, %c36], %32 {strides = array<i32>} : memref<128x100xf32, #tpu.memory_space<vmem>>, vector<128x4xf32>,
    %c0_59 = arith.constant 0 : index
    %c2_60 = arith.constant 2 : index
    %c0_61 = arith.constant 0 : index
    %c0_62 = arith.constant 0 : index
    %34 = tpu.strided_load %arg13[%c0_59, %c2_60, %c0_61, %c0_62] {strides = array<i32: 1, 2, 2, 1>} : memref<2x20x20x4xf32, #tpu.memory_space<vmem>>, vector<2x8x8x4xf32>
    %35 = vector.shape_cast %34 : vector<2x8x8x4xf32> to vector<128x4xf32>
    %c0_63 = arith.constant 0 : index
    %c40 = arith.constant 40 : index
    %36 = vector.load %arg16[%c0_63, %c40] : memref<128x100xf32, #tpu.memory_space<vmem>>, vector<128x4xf32>
    tpu.vector_store %arg16[%c0_63, %c40], %35 {strides = array<i32>} : memref<128x100xf32, #tpu.memory_space<vmem>>, vector<128x4xf32>,
    %c0_64 = arith.constant 0 : index
    %c2_65 = arith.constant 2 : index
    %c1_66 = arith.constant 1 : index
    %c0_67 = arith.constant 0 : index
    %37 = tpu.strided_load %arg13[%c0_64, %c2_65, %c1_66, %c0_67] {strides = array<i32: 1, 2, 2, 1>} : memref<2x20x20x4xf32, #tpu.memory_space<vmem>>, vector<2x8x8x4xf32>
    %38 = vector.shape_cast %37 : vector<2x8x8x4xf32> to vector<128x4xf32>
    %c0_68 = arith.constant 0 : index
    %c44 = arith.constant 44 : index
    %39 = vector.load %arg16[%c0_68, %c44] : memref<128x100xf32, #tpu.memory_space<vmem>>, vector<128x4xf32>
    tpu.vector_store %arg16[%c0_68, %c44], %38 {strides = array<i32>} : memref<128x100xf32, #tpu.memory_space<vmem>>, vector<128x4xf32>,
    %c0_69 = arith.constant 0 : index
    %c2_70 = arith.constant 2 : index
    %c2_71 = arith.constant 2 : index
    %c0_72 = arith.constant 0 : index
    %40 = tpu.strided_load %arg13[%c0_69, %c2_70, %c2_71, %c0_72] {strides = array<i32: 1, 2, 2, 1>} : memref<2x20x20x4xf32, #tpu.memory_space<vmem>>, vector<2x8x8x4xf32>
    %41 = vector.shape_cast %40 : vector<2x8x8x4xf32> to vector<128x4xf32>
    %c0_73 = arith.constant 0 : index
    %c48 = arith.constant 48 : index
    %42 = vector.load %arg16[%c0_73, %c48] : memref<128x100xf32, #tpu.memory_space<vmem>>, vector<128x4xf32>
    tpu.vector_store %arg16[%c0_73, %c48], %41 {strides = array<i32>} : memref<128x100xf32, #tpu.memory_space<vmem>>, vector<128x4xf32>,
    %c0_74 = arith.constant 0 : index
    %c2_75 = arith.constant 2 : index
    %c3_76 = arith.constant 3 : index
    %c0_77 = arith.constant 0 : index
    %43 = tpu.strided_load %arg13[%c0_74, %c2_75, %c3_76, %c0_77] {strides = array<i32: 1, 2, 2, 1>} : memref<2x20x20x4xf32, #tpu.memory_space<vmem>>, vector<2x8x8x4xf32>
    %44 = vector.shape_cast %43 : vector<2x8x8x4xf32> to vector<128x4xf32>
    %c0_78 = arith.constant 0 : index
    %c52 = arith.constant 52 : index
    %45 = vector.load %arg16[%c0_78, %c52] : memref<128x100xf32, #tpu.memory_space<vmem>>, vector<128x4xf32>
    tpu.vector_store %arg16[%c0_78, %c52], %44 {strides = array<i32>} : memref<128x100xf32, #tpu.memory_space<vmem>>, vector<128x4xf32>,
    %c0_79 = arith.constant 0 : index
    %c2_80 = arith.constant 2 : index
    %c4_81 = arith.constant 4 : index
    %c0_82 = arith.constant 0 : index
    %46 = tpu.strided_load %arg13[%c0_79, %c2_80, %c4_81, %c0_82] {strides = array<i32: 1, 2, 2, 1>} : memref<2x20x20x4xf32, #tpu.memory_space<vmem>>, vector<2x8x8x4xf32>
    %47 = vector.shape_cast %46 : vector<2x8x8x4xf32> to vector<128x4xf32>
    %c0_83 = arith.constant 0 : index
    %c56 = arith.constant 56 : index
    %48 = vector.load %arg16[%c0_83, %c56] : memref<128x100xf32, #tpu.memory_space<vmem>>, vector<128x4xf32>
    tpu.vector_store %arg16[%c0_83, %c56], %47 {strides = array<i32>} : memref<128x100xf32, #tpu.memory_space<vmem>>, vector<128x4xf32>,
    %c0_84 = arith.constant 0 : index
    %c3_85 = arith.constant 3 : index
    %c0_86 = arith.constant 0 : index
    %c0_87 = arith.constant 0 : index
    %49 = tpu.strided_load %arg13[%c0_84, %c3_85, %c0_86, %c0_87] {strides = array<i32: 1, 2, 2, 1>} : memref<2x20x20x4xf32, #tpu.memory_space<vmem>>, vector<2x8x8x4xf32>
    %50 = vector.shape_cast %49 : vector<2x8x8x4xf32> to vector<128x4xf32>
    %c0_88 = arith.constant 0 : index
    %c60 = arith.constant 60 : index
    %51 = vector.load %arg16[%c0_88, %c60] : memref<128x100xf32, #tpu.memory_space<vmem>>, vector<128x4xf32>
    tpu.vector_store %arg16[%c0_88, %c60], %50 {strides = array<i32>} : memref<128x100xf32, #tpu.memory_space<vmem>>, vector<128x4xf32>,
    %c0_89 = arith.constant 0 : index
    %c3_90 = arith.constant 3 : index
    %c1_91 = arith.constant 1 : index
    %c0_92 = arith.constant 0 : index
    %52 = tpu.strided_load %arg13[%c0_89, %c3_90, %c1_91, %c0_92] {strides = array<i32: 1, 2, 2, 1>} : memref<2x20x20x4xf32, #tpu.memory_space<vmem>>, vector<2x8x8x4xf32>
    %53 = vector.shape_cast %52 : vector<2x8x8x4xf32> to vector<128x4xf32>
    %c0_93 = arith.constant 0 : index
    %c64 = arith.constant 64 : index
    %54 = vector.load %arg16[%c0_93, %c64] : memref<128x100xf32, #tpu.memory_space<vmem>>, vector<128x4xf32>
    tpu.vector_store %arg16[%c0_93, %c64], %53 {strides = array<i32>} : memref<128x100xf32, #tpu.memory_space<vmem>>, vector<128x4xf32>,
    %c0_94 = arith.constant 0 : index
    %c3_95 = arith.constant 3 : index
    %c2_96 = arith.constant 2 : index
    %c0_97 = arith.constant 0 : index
    %55 = tpu.strided_load %arg13[%c0_94, %c3_95, %c2_96, %c0_97] {strides = array<i32: 1, 2, 2, 1>} : memref<2x20x20x4xf32, #tpu.memory_space<vmem>>, vector<2x8x8x4xf32>
    %56 = vector.shape_cast %55 : vector<2x8x8x4xf32> to vector<128x4xf32>
    %c0_98 = arith.constant 0 : index
    %c68 = arith.constant 68 : index
    %57 = vector.load %arg16[%c0_98, %c68] : memref<128x100xf32, #tpu.memory_space<vmem>>, vector<128x4xf32>
    tpu.vector_store %arg16[%c0_98, %c68], %56 {strides = array<i32>} : memref<128x100xf32, #tpu.memory_space<vmem>>, vector<128x4xf32>,
    %c0_99 = arith.constant 0 : index
    %c3_100 = arith.constant 3 : index
    %c3_101 = arith.constant 3 : index
    %c0_102 = arith.constant 0 : index
    %58 = tpu.strided_load %arg13[%c0_99, %c3_100, %c3_101, %c0_102] {strides = array<i32: 1, 2, 2, 1>} : memref<2x20x20x4xf32, #tpu.memory_space<vmem>>, vector<2x8x8x4xf32>
    %59 = vector.shape_cast %58 : vector<2x8x8x4xf32> to vector<128x4xf32>
    %c0_103 = arith.constant 0 : index
    %c72 = arith.constant 72 : index
    %60 = vector.load %arg16[%c0_103, %c72] : memref<128x100xf32, #tpu.memory_space<vmem>>, vector<128x4xf32>
    tpu.vector_store %arg16[%c0_103, %c72], %59 {strides = array<i32>} : memref<128x100xf32, #tpu.memory_space<vmem>>, vector<128x4xf32>,
    %c0_104 = arith.constant 0 : index
    %c3_105 = arith.constant 3 : index
    %c4_106 = arith.constant 4 : index
    %c0_107 = arith.constant 0 : index
    %61 = tpu.strided_load %arg13[%c0_104, %c3_105, %c4_106, %c0_107] {strides = array<i32: 1, 2, 2, 1>} : memref<2x20x20x4xf32, #tpu.memory_space<vmem>>, vector<2x8x8x4xf32>
    %62 = vector.shape_cast %61 : vector<2x8x8x4xf32> to vector<128x4xf32>
    %c0_108 = arith.constant 0 : index
    %c76 = arith.constant 76 : index
    %63 = vector.load %arg16[%c0_108, %c76] : memref<128x100xf32, #tpu.memory_space<vmem>>, vector<128x4xf32>
    tpu.vector_store %arg16[%c0_108, %c76], %62 {strides = array<i32>} : memref<128x100xf32, #tpu.memory_space<vmem>>, vector<128x4xf32>,
    %c0_109 = arith.constant 0 : index
    %c4_110 = arith.constant 4 : index
    %c0_111 = arith.constant 0 : index
    %c0_112 = arith.constant 0 : index
    %64 = tpu.strided_load %arg13[%c0_109, %c4_110, %c0_111, %c0_112] {strides = array<i32: 1, 2, 2, 1>} : memref<2x20x20x4xf32, #tpu.memory_space<vmem>>, vector<2x8x8x4xf32>
    %65 = vector.shape_cast %64 : vector<2x8x8x4xf32> to vector<128x4xf32>
    %c0_113 = arith.constant 0 : index
    %c80 = arith.constant 80 : index
    %66 = vector.load %arg16[%c0_113, %c80] : memref<128x100xf32, #tpu.memory_space<vmem>>, vector<128x4xf32>
    tpu.vector_store %arg16[%c0_113, %c80], %65 {strides = array<i32>} : memref<128x100xf32, #tpu.memory_space<vmem>>, vector<128x4xf32>,
    %c0_114 = arith.constant 0 : index
    %c4_115 = arith.constant 4 : index
    %c1_116 = arith.constant 1 : index
    %c0_117 = arith.constant 0 : index
    %67 = tpu.strided_load %arg13[%c0_114, %c4_115, %c1_116, %c0_117] {strides = array<i32: 1, 2, 2, 1>} : memref<2x20x20x4xf32, #tpu.memory_space<vmem>>, vector<2x8x8x4xf32>
    %68 = vector.shape_cast %67 : vector<2x8x8x4xf32> to vector<128x4xf32>
    %c0_118 = arith.constant 0 : index
    %c84 = arith.constant 84 : index
    %69 = vector.load %arg16[%c0_118, %c84] : memref<128x100xf32, #tpu.memory_space<vmem>>, vector<128x4xf32>
    tpu.vector_store %arg16[%c0_118, %c84], %68 {strides = array<i32>} : memref<128x100xf32, #tpu.memory_space<vmem>>, vector<128x4xf32>,
    %c0_119 = arith.constant 0 : index
    %c4_120 = arith.constant 4 : index
    %c2_121 = arith.constant 2 : index
    %c0_122 = arith.constant 0 : index
    %70 = tpu.strided_load %arg13[%c0_119, %c4_120, %c2_121, %c0_122] {strides = array<i32: 1, 2, 2, 1>} : memref<2x20x20x4xf32, #tpu.memory_space<vmem>>, vector<2x8x8x4xf32>
    %71 = vector.shape_cast %70 : vector<2x8x8x4xf32> to vector<128x4xf32>
    %c0_123 = arith.constant 0 : index
    %c88 = arith.constant 88 : index
    %72 = vector.load %arg16[%c0_123, %c88] : memref<128x100xf32, #tpu.memory_space<vmem>>, vector<128x4xf32>
    tpu.vector_store %arg16[%c0_123, %c88], %71 {strides = array<i32>} : memref<128x100xf32, #tpu.memory_space<vmem>>, vector<128x4xf32>,
    %c0_124 = arith.constant 0 : index
    %c4_125 = arith.constant 4 : index
    %c3_126 = arith.constant 3 : index
    %c0_127 = arith.constant 0 : index
    %73 = tpu.strided_load %arg13[%c0_124, %c4_125, %c3_126, %c0_127] {strides = array<i32: 1, 2, 2, 1>} : memref<2x20x20x4xf32, #tpu.memory_space<vmem>>, vector<2x8x8x4xf32>
    %74 = vector.shape_cast %73 : vector<2x8x8x4xf32> to vector<128x4xf32>
    %c0_128 = arith.constant 0 : index
    %c92 = arith.constant 92 : index
    %75 = vector.load %arg16[%c0_128, %c92] : memref<128x100xf32, #tpu.memory_space<vmem>>, vector<128x4xf32>
    tpu.vector_store %arg16[%c0_128, %c92], %74 {strides = array<i32>} : memref<128x100xf32, #tpu.memory_space<vmem>>, vector<128x4xf32>,
    %c0_129 = arith.constant 0 : index
    %c4_130 = arith.constant 4 : index
    %c4_131 = arith.constant 4 : index
    %c0_132 = arith.constant 0 : index
    %76 = tpu.strided_load %arg13[%c0_129, %c4_130, %c4_131, %c0_132] {strides = array<i32: 1, 2, 2, 1>} : memref<2x20x20x4xf32, #tpu.memory_space<vmem>>, vector<2x8x8x4xf32>
    %77 = vector.shape_cast %76 : vector<2x8x8x4xf32> to vector<128x4xf32>
    %c0_133 = arith.constant 0 : index
    %c96 = arith.constant 96 : index
    %78 = vector.load %arg16[%c0_133, %c96] : memref<128x100xf32, #tpu.memory_space<vmem>>, vector<128x4xf32>
    tpu.vector_store %arg16[%c0_133, %c96], %77 {strides = array<i32>} : memref<128x100xf32, #tpu.memory_space<vmem>>, vector<128x4xf32>,
    %c0_134 = arith.constant 0 : index
    %c0_135 = arith.constant 0 : index
    %79 = vector.load %arg16[%c0_134, %c0_135] : memref<128x100xf32, #tpu.memory_space<vmem>>, vector<128x100xf32>
    %80 = arith.truncf %79 : vector<128x100xf32> to vector<128x100xbf16>
    %c0_136 = arith.constant 0 : index
    %c0_137 = arith.constant 0 : index
    %81 = vector.load %arg1[%c0_136, %c0_137] : memref<100x16xbf16, #tpu.memory_space<vmem>>, vector<100x16xbf16>
    %cst_138 = arith.constant dense<0.000000e+00> : vector<128x16xf32>
    %82 = tpu.matmul %80, %81, %cst_138 {dimension_numbers = #tpu.dot_dimension_numbers<[1], [0], [0], [1], [0, 0, 1, 1], [], []>} : vector<128x100xbf16>, vector<100x16xbf16>, vector<128x16xf32> -> vector<128x16xf32>
    %cst_139 = arith.constant dense<0.000000e+00> : vector<16xf32>
    %83 = vector.multi_reduction <add>, %82, %cst_139 [0] : vector<128x16xf32> to vector<16xf32>
    %84 = vector.shape_cast %83 : vector<16xf32> to vector<1x16xf32>
    %cst_140 = arith.constant 7.812500e-03 : f32
    %85 = vector.broadcast %cst_140 : f32 to vector<1x16xf32>
    %86 = arith.mulf %84, %85 : vector<1x16xf32>
    %87 = vector.broadcast %86 : vector<1x16xf32> to vector<128x16xf32>
    %88 = arith.subf %82, %87 : vector<128x16xf32>
    %89 = arith.mulf %88, %88 : vector<128x16xf32>
    %cst_141 = arith.constant dense<0.000000e+00> : vector<16xf32>
    %90 = vector.multi_reduction <add>, %89, %cst_141 [0] : vector<128x16xf32> to vector<16xf32>
    %91 = vector.shape_cast %90 : vector<16xf32> to vector<1x16xf32>
    %cst_142 = arith.constant 7.812500e-03 : f32
    %92 = vector.broadcast %cst_142 : f32 to vector<1x16xf32>
    %93 = arith.mulf %91, %92 : vector<1x16xf32>
    %94 = vector.broadcast %86 : vector<1x16xf32> to vector<128x16xf32>
    %95 = arith.subf %82, %94 : vector<128x16xf32>
    %cst_143 = arith.constant 9.99999974E-6 : f32
    %96 = vector.broadcast %cst_143 : f32 to vector<1x16xf32>
    %97 = arith.addf %93, %96 : vector<1x16xf32>
    %98 = math.rsqrt %97 : vector<1x16xf32>
    %99 = vector.broadcast %98 : vector<1x16xf32> to vector<128x16xf32>
    %100 = arith.mulf %95, %99 : vector<128x16xf32>
    %c0_144 = arith.constant 0 : index
    %c0_145 = arith.constant 0 : index
    %101 = vector.load %arg2[%c0_144, %c0_145] : memref<1x16xf32, #tpu.memory_space<vmem>>, vector<1x16xf32>
    %102 = vector.broadcast %101 : vector<1x16xf32> to vector<128x16xf32>
    %103 = arith.mulf %100, %102 : vector<128x16xf32>
    %c0_146 = arith.constant 0 : index
    %c0_147 = arith.constant 0 : index
    %104 = vector.load %arg3[%c0_146, %c0_147] : memref<1x16xf32, #tpu.memory_space<vmem>>, vector<1x16xf32>
    %105 = vector.broadcast %104 : vector<1x16xf32> to vector<128x16xf32>
    %106 = arith.addf %103, %105 : vector<128x16xf32>
    %cst_148 = arith.constant 0.000000e+00 : f32
    %107 = vector.broadcast %cst_148 : f32 to vector<128x16xf32>
    %108 = arith.maximumf %106, %107 : vector<128x16xf32>
    %cst_149 = arith.constant 0.000000e+00 : f32
    %109 = vector.broadcast %cst_149 : f32 to vector<2x12x19x16xf32>
    %c0_150 = arith.constant 0 : index
    %c0_151 = arith.constant 0 : index
    %c0_152 = arith.constant 0 : index
    %c0_153 = arith.constant 0 : index
    %110 = vector.load %arg14[%c0_150, %c0_151, %c0_152, %c0_153] : memref<2x12x19x16xf32, #tpu.memory_space<vmem>>, vector<2x12x19x16xf32>
    tpu.vector_store %arg14[%c0_150, %c0_151, %c0_152, %c0_153], %109 {strides = array<i32>} : memref<2x12x19x16xf32, #tpu.memory_space<vmem>>, vector<2x12x19x16xf32>,
    %111 = vector.shape_cast %108 : vector<128x16xf32> to vector<2x8x8x16xf32>
    %c0_154 = arith.constant 0 : index
    %c2_155 = arith.constant 2 : index
    %c2_156 = arith.constant 2 : index
    %c0_157 = arith.constant 0 : index
    %112 = vector.load %arg14[%c0_154, %c2_155, %c2_156, %c0_157] : memref<2x12x19x16xf32, #tpu.memory_space<vmem>>, vector<2x8x8x16xf32>
    tpu.vector_store %arg14[%c0_154, %c2_155, %c2_156, %c0_157], %111 {strides = array<i32>} : memref<2x12x19x16xf32, #tpu.memory_space<vmem>>, vector<2x8x8x16xf32>,
    %c0_158 = arith.constant 0 : index
    %c0_159 = arith.constant 0 : index
    %c0_160 = arith.constant 0 : index
    %c0_161 = arith.constant 0 : index
    %113 = tpu.strided_load %arg14[%c0_158, %c0_159, %c0_160, %c0_161] {strides = array<i32: 1, 2, 2, 1>} : memref<2x12x19x16xf32, #tpu.memory_space<vmem>>, vector<2x4x8x16xf32>
    %114 = vector.shape_cast %113 : vector<2x4x8x16xf32> to vector<64x16xf32>
    %c0_162 = arith.constant 0 : index
    %c0_163 = arith.constant 0 : index
    %115 = vector.load %arg17[%c0_162, %c0_163] : memref<64x400xf32, #tpu.memory_space<vmem>>, vector<64x16xf32>
    tpu.vector_store %arg17[%c0_162, %c0_163], %114 {strides = array<i32>} : memref<64x400xf32, #tpu.memory_space<vmem>>, vector<64x16xf32>,
    %c0_164 = arith.constant 0 : index
    %c0_165 = arith.constant 0 : index
    %c1_166 = arith.constant 1 : index
    %c0_167 = arith.constant 0 : index
    %116 = tpu.strided_load %arg14[%c0_164, %c0_165, %c1_166, %c0_167] {strides = array<i32: 1, 2, 2, 1>} : memref<2x12x19x16xf32, #tpu.memory_space<vmem>>, vector<2x4x8x16xf32>
    %117 = vector.shape_cast %116 : vector<2x4x8x16xf32> to vector<64x16xf32>
    %c0_168 = arith.constant 0 : index
    %c16_169 = arith.constant 16 : index
    %118 = vector.load %arg17[%c0_168, %c16_169] : memref<64x400xf32, #tpu.memory_space<vmem>>, vector<64x16xf32>
    tpu.vector_store %arg17[%c0_168, %c16_169], %117 {strides = array<i32>} : memref<64x400xf32, #tpu.memory_space<vmem>>, vector<64x16xf32>,
    %c0_170 = arith.constant 0 : index
    %c0_171 = arith.constant 0 : index
    %c2_172 = arith.constant 2 : index
    %c0_173 = arith.constant 0 : index
    %119 = tpu.strided_load %arg14[%c0_170, %c0_171, %c2_172, %c0_173] {strides = array<i32: 1, 2, 2, 1>} : memref<2x12x19x16xf32, #tpu.memory_space<vmem>>, vector<2x4x8x16xf32>
    %120 = vector.shape_cast %119 : vector<2x4x8x16xf32> to vector<64x16xf32>
    %c0_174 = arith.constant 0 : index
    %c32_175 = arith.constant 32 : index
    %121 = vector.load %arg17[%c0_174, %c32_175] : memref<64x400xf32, #tpu.memory_space<vmem>>, vector<64x16xf32>
    tpu.vector_store %arg17[%c0_174, %c32_175], %120 {strides = array<i32>} : memref<64x400xf32, #tpu.memory_space<vmem>>, vector<64x16xf32>,
    %c0_176 = arith.constant 0 : index
    %c0_177 = arith.constant 0 : index
    %c3_178 = arith.constant 3 : index
    %c0_179 = arith.constant 0 : index
    %122 = tpu.strided_load %arg14[%c0_176, %c0_177, %c3_178, %c0_179] {strides = array<i32: 1, 2, 2, 1>} : memref<2x12x19x16xf32, #tpu.memory_space<vmem>>, vector<2x4x8x16xf32>
    %123 = vector.shape_cast %122 : vector<2x4x8x16xf32> to vector<64x16xf32>
    %c0_180 = arith.constant 0 : index
    %c48_181 = arith.constant 48 : index
    %124 = vector.load %arg17[%c0_180, %c48_181] : memref<64x400xf32, #tpu.memory_space<vmem>>, vector<64x16xf32>
    tpu.vector_store %arg17[%c0_180, %c48_181], %123 {strides = array<i32>} : memref<64x400xf32, #tpu.memory_space<vmem>>, vector<64x16xf32>,
    %c0_182 = arith.constant 0 : index
    %c0_183 = arith.constant 0 : index
    %c4_184 = arith.constant 4 : index
    %c0_185 = arith.constant 0 : index
    %125 = tpu.strided_load %arg14[%c0_182, %c0_183, %c4_184, %c0_185] {strides = array<i32: 1, 2, 2, 1>} : memref<2x12x19x16xf32, #tpu.memory_space<vmem>>, vector<2x4x8x16xf32>
    %126 = vector.shape_cast %125 : vector<2x4x8x16xf32> to vector<64x16xf32>
    %c0_186 = arith.constant 0 : index
    %c64_187 = arith.constant 64 : index
    %127 = vector.load %arg17[%c0_186, %c64_187] : memref<64x400xf32, #tpu.memory_space<vmem>>, vector<64x16xf32>
    tpu.vector_store %arg17[%c0_186, %c64_187], %126 {strides = array<i32>} : memref<64x400xf32, #tpu.memory_space<vmem>>, vector<64x16xf32>,
    %c0_188 = arith.constant 0 : index
    %c1_189 = arith.constant 1 : index
    %c0_190 = arith.constant 0 : index
    %c0_191 = arith.constant 0 : index
    %128 = tpu.strided_load %arg14[%c0_188, %c1_189, %c0_190, %c0_191] {strides = array<i32: 1, 2, 2, 1>} : memref<2x12x19x16xf32, #tpu.memory_space<vmem>>, vector<2x4x8x16xf32>
    %129 = vector.shape_cast %128 : vector<2x4x8x16xf32> to vector<64x16xf32>
    %c0_192 = arith.constant 0 : index
    %c80_193 = arith.constant 80 : index
    %130 = vector.load %arg17[%c0_192, %c80_193] : memref<64x400xf32, #tpu.memory_space<vmem>>, vector<64x16xf32>
    tpu.vector_store %arg17[%c0_192, %c80_193], %129 {strides = array<i32>} : memref<64x400xf32, #tpu.memory_space<vmem>>, vector<64x16xf32>,
    %c0_194 = arith.constant 0 : index
    %c1_195 = arith.constant 1 : index
    %c1_196 = arith.constant 1 : index
    %c0_197 = arith.constant 0 : index
    %131 = tpu.strided_load %arg14[%c0_194, %c1_195, %c1_196, %c0_197] {strides = array<i32: 1, 2, 2, 1>} : memref<2x12x19x16xf32, #tpu.memory_space<vmem>>, vector<2x4x8x16xf32>
    %132 = vector.shape_cast %131 : vector<2x4x8x16xf32> to vector<64x16xf32>
    %c0_198 = arith.constant 0 : index
    %c96_199 = arith.constant 96 : index
    %133 = vector.load %arg17[%c0_198, %c96_199] : memref<64x400xf32, #tpu.memory_space<vmem>>, vector<64x16xf32>
    tpu.vector_store %arg17[%c0_198, %c96_199], %132 {strides = array<i32>} : memref<64x400xf32, #tpu.memory_space<vmem>>, vector<64x16xf32>,
    %c0_200 = arith.constant 0 : index
    %c1_201 = arith.constant 1 : index
    %c2_202 = arith.constant 2 : index
    %c0_203 = arith.constant 0 : index
    %134 = tpu.strided_load %arg14[%c0_200, %c1_201, %c2_202, %c0_203] {strides = array<i32: 1, 2, 2, 1>} : memref<2x12x19x16xf32, #tpu.memory_space<vmem>>, vector<2x4x8x16xf32>
    %135 = vector.shape_cast %134 : vector<2x4x8x16xf32> to vector<64x16xf32>
    %c0_204 = arith.constant 0 : index
    %c112 = arith.constant 112 : index
    %136 = vector.load %arg17[%c0_204, %c112] : memref<64x400xf32, #tpu.memory_space<vmem>>, vector<64x16xf32>
    tpu.vector_store %arg17[%c0_204, %c112], %135 {strides = array<i32>} : memref<64x400xf32, #tpu.memory_space<vmem>>, vector<64x16xf32>,
    %c0_205 = arith.constant 0 : index
    %c1_206 = arith.constant 1 : index
    %c3_207 = arith.constant 3 : index
    %c0_208 = arith.constant 0 : index
    %137 = tpu.strided_load %arg14[%c0_205, %c1_206, %c3_207, %c0_208] {strides = array<i32: 1, 2, 2, 1>} : memref<2x12x19x16xf32, #tpu.memory_space<vmem>>, vector<2x4x8x16xf32>
    %138 = vector.shape_cast %137 : vector<2x4x8x16xf32> to vector<64x16xf32>
    %c0_209 = arith.constant 0 : index
    %c128 = arith.constant 128 : index
    %139 = vector.load %arg17[%c0_209, %c128] : memref<64x400xf32, #tpu.memory_space<vmem>>, vector<64x16xf32>
    tpu.vector_store %arg17[%c0_209, %c128], %138 {strides = array<i32>} : memref<64x400xf32, #tpu.memory_space<vmem>>, vector<64x16xf32>,
    %c0_210 = arith.constant 0 : index
    %c1_211 = arith.constant 1 : index
    %c4_212 = arith.constant 4 : index
    %c0_213 = arith.constant 0 : index
    %140 = tpu.strided_load %arg14[%c0_210, %c1_211, %c4_212, %c0_213] {strides = array<i32: 1, 2, 2, 1>} : memref<2x12x19x16xf32, #tpu.memory_space<vmem>>, vector<2x4x8x16xf32>
    %141 = vector.shape_cast %140 : vector<2x4x8x16xf32> to vector<64x16xf32>
    %c0_214 = arith.constant 0 : index
    %c144 = arith.constant 144 : index
    %142 = vector.load %arg17[%c0_214, %c144] : memref<64x400xf32, #tpu.memory_space<vmem>>, vector<64x16xf32>
    tpu.vector_store %arg17[%c0_214, %c144], %141 {strides = array<i32>} : memref<64x400xf32, #tpu.memory_space<vmem>>, vector<64x16xf32>,
    %c0_215 = arith.constant 0 : index
    %c2_216 = arith.constant 2 : index
    %c0_217 = arith.constant 0 : index
    %c0_218 = arith.constant 0 : index
    %143 = tpu.strided_load %arg14[%c0_215, %c2_216, %c0_217, %c0_218] {strides = array<i32: 1, 2, 2, 1>} : memref<2x12x19x16xf32, #tpu.memory_space<vmem>>, vector<2x4x8x16xf32>
    %144 = vector.shape_cast %143 : vector<2x4x8x16xf32> to vector<64x16xf32>
    %c0_219 = arith.constant 0 : index
    %c160 = arith.constant 160 : index
    %145 = vector.load %arg17[%c0_219, %c160] : memref<64x400xf32, #tpu.memory_space<vmem>>, vector<64x16xf32>
    tpu.vector_store %arg17[%c0_219, %c160], %144 {strides = array<i32>} : memref<64x400xf32, #tpu.memory_space<vmem>>, vector<64x16xf32>,
    %c0_220 = arith.constant 0 : index
    %c2_221 = arith.constant 2 : index
    %c1_222 = arith.constant 1 : index
    %c0_223 = arith.constant 0 : index
    %146 = tpu.strided_load %arg14[%c0_220, %c2_221, %c1_222, %c0_223] {strides = array<i32: 1, 2, 2, 1>} : memref<2x12x19x16xf32, #tpu.memory_space<vmem>>, vector<2x4x8x16xf32>
    %147 = vector.shape_cast %146 : vector<2x4x8x16xf32> to vector<64x16xf32>
    %c0_224 = arith.constant 0 : index
    %c176 = arith.constant 176 : index
    %148 = vector.load %arg17[%c0_224, %c176] : memref<64x400xf32, #tpu.memory_space<vmem>>, vector<64x16xf32>
    tpu.vector_store %arg17[%c0_224, %c176], %147 {strides = array<i32>} : memref<64x400xf32, #tpu.memory_space<vmem>>, vector<64x16xf32>,
    %c0_225 = arith.constant 0 : index
    %c2_226 = arith.constant 2 : index
    %c2_227 = arith.constant 2 : index
    %c0_228 = arith.constant 0 : index
    %149 = tpu.strided_load %arg14[%c0_225, %c2_226, %c2_227, %c0_228] {strides = array<i32: 1, 2, 2, 1>} : memref<2x12x19x16xf32, #tpu.memory_space<vmem>>, vector<2x4x8x16xf32>
    %150 = vector.shape_cast %149 : vector<2x4x8x16xf32> to vector<64x16xf32>
    %c0_229 = arith.constant 0 : index
    %c192 = arith.constant 192 : index
    %151 = vector.load %arg17[%c0_229, %c192] : memref<64x400xf32, #tpu.memory_space<vmem>>, vector<64x16xf32>
    tpu.vector_store %arg17[%c0_229, %c192], %150 {strides = array<i32>} : memref<64x400xf32, #tpu.memory_space<vmem>>, vector<64x16xf32>,
    %c0_230 = arith.constant 0 : index
    %c2_231 = arith.constant 2 : index
    %c3_232 = arith.constant 3 : index
    %c0_233 = arith.constant 0 : index
    %152 = tpu.strided_load %arg14[%c0_230, %c2_231, %c3_232, %c0_233] {strides = array<i32: 1, 2, 2, 1>} : memref<2x12x19x16xf32, #tpu.memory_space<vmem>>, vector<2x4x8x16xf32>
    %153 = vector.shape_cast %152 : vector<2x4x8x16xf32> to vector<64x16xf32>
    %c0_234 = arith.constant 0 : index
    %c208 = arith.constant 208 : index
    %154 = vector.load %arg17[%c0_234, %c208] : memref<64x400xf32, #tpu.memory_space<vmem>>, vector<64x16xf32>
    tpu.vector_store %arg17[%c0_234, %c208], %153 {strides = array<i32>} : memref<64x400xf32, #tpu.memory_space<vmem>>, vector<64x16xf32>,
    %c0_235 = arith.constant 0 : index
    %c2_236 = arith.constant 2 : index
    %c4_237 = arith.constant 4 : index
    %c0_238 = arith.constant 0 : index
    %155 = tpu.strided_load %arg14[%c0_235, %c2_236, %c4_237, %c0_238] {strides = array<i32: 1, 2, 2, 1>} : memref<2x12x19x16xf32, #tpu.memory_space<vmem>>, vector<2x4x8x16xf32>
    %156 = vector.shape_cast %155 : vector<2x4x8x16xf32> to vector<64x16xf32>
    %c0_239 = arith.constant 0 : index
    %c224 = arith.constant 224 : index
    %157 = vector.load %arg17[%c0_239, %c224] : memref<64x400xf32, #tpu.memory_space<vmem>>, vector<64x16xf32>
    tpu.vector_store %arg17[%c0_239, %c224], %156 {strides = array<i32>} : memref<64x400xf32, #tpu.memory_space<vmem>>, vector<64x16xf32>,
    %c0_240 = arith.constant 0 : index
    %c3_241 = arith.constant 3 : index
    %c0_242 = arith.constant 0 : index
    %c0_243 = arith.constant 0 : index
    %158 = tpu.strided_load %arg14[%c0_240, %c3_241, %c0_242, %c0_243] {strides = array<i32: 1, 2, 2, 1>} : memref<2x12x19x16xf32, #tpu.memory_space<vmem>>, vector<2x4x8x16xf32>
    %159 = vector.shape_cast %158 : vector<2x4x8x16xf32> to vector<64x16xf32>
    %c0_244 = arith.constant 0 : index
    %c240 = arith.constant 240 : index
    %160 = vector.load %arg17[%c0_244, %c240] : memref<64x400xf32, #tpu.memory_space<vmem>>, vector<64x16xf32>
    tpu.vector_store %arg17[%c0_244, %c240], %159 {strides = array<i32>} : memref<64x400xf32, #tpu.memory_space<vmem>>, vector<64x16xf32>,
    %c0_245 = arith.constant 0 : index
    %c3_246 = arith.constant 3 : index
    %c1_247 = arith.constant 1 : index
    %c0_248 = arith.constant 0 : index
    %161 = tpu.strided_load %arg14[%c0_245, %c3_246, %c1_247, %c0_248] {strides = array<i32: 1, 2, 2, 1>} : memref<2x12x19x16xf32, #tpu.memory_space<vmem>>, vector<2x4x8x16xf32>
    %162 = vector.shape_cast %161 : vector<2x4x8x16xf32> to vector<64x16xf32>
    %c0_249 = arith.constant 0 : index
    %c256 = arith.constant 256 : index
    %163 = vector.load %arg17[%c0_249, %c256] : memref<64x400xf32, #tpu.memory_space<vmem>>, vector<64x16xf32>
    tpu.vector_store %arg17[%c0_249, %c256], %162 {strides = array<i32>} : memref<64x400xf32, #tpu.memory_space<vmem>>, vector<64x16xf32>,
    %c0_250 = arith.constant 0 : index
    %c3_251 = arith.constant 3 : index
    %c2_252 = arith.constant 2 : index
    %c0_253 = arith.constant 0 : index
    %164 = tpu.strided_load %arg14[%c0_250, %c3_251, %c2_252, %c0_253] {strides = array<i32: 1, 2, 2, 1>} : memref<2x12x19x16xf32, #tpu.memory_space<vmem>>, vector<2x4x8x16xf32>
    %165 = vector.shape_cast %164 : vector<2x4x8x16xf32> to vector<64x16xf32>
    %c0_254 = arith.constant 0 : index
    %c272 = arith.constant 272 : index
    %166 = vector.load %arg17[%c0_254, %c272] : memref<64x400xf32, #tpu.memory_space<vmem>>, vector<64x16xf32>
    tpu.vector_store %arg17[%c0_254, %c272], %165 {strides = array<i32>} : memref<64x400xf32, #tpu.memory_space<vmem>>, vector<64x16xf32>,
    %c0_255 = arith.constant 0 : index
    %c3_256 = arith.constant 3 : index
    %c3_257 = arith.constant 3 : index
    %c0_258 = arith.constant 0 : index
    %167 = tpu.strided_load %arg14[%c0_255, %c3_256, %c3_257, %c0_258] {strides = array<i32: 1, 2, 2, 1>} : memref<2x12x19x16xf32, #tpu.memory_space<vmem>>, vector<2x4x8x16xf32>
    %168 = vector.shape_cast %167 : vector<2x4x8x16xf32> to vector<64x16xf32>
    %c0_259 = arith.constant 0 : index
    %c288 = arith.constant 288 : index
    %169 = vector.load %arg17[%c0_259, %c288] : memref<64x400xf32, #tpu.memory_space<vmem>>, vector<64x16xf32>
    tpu.vector_store %arg17[%c0_259, %c288], %168 {strides = array<i32>} : memref<64x400xf32, #tpu.memory_space<vmem>>, vector<64x16xf32>,
    %c0_260 = arith.constant 0 : index
    %c3_261 = arith.constant 3 : index
    %c4_262 = arith.constant 4 : index
    %c0_263 = arith.constant 0 : index
    %170 = tpu.strided_load %arg14[%c0_260, %c3_261, %c4_262, %c0_263] {strides = array<i32: 1, 2, 2, 1>} : memref<2x12x19x16xf32, #tpu.memory_space<vmem>>, vector<2x4x8x16xf32>
    %171 = vector.shape_cast %170 : vector<2x4x8x16xf32> to vector<64x16xf32>
    %c0_264 = arith.constant 0 : index
    %c304 = arith.constant 304 : index
    %172 = vector.load %arg17[%c0_264, %c304] : memref<64x400xf32, #tpu.memory_space<vmem>>, vector<64x16xf32>
    tpu.vector_store %arg17[%c0_264, %c304], %171 {strides = array<i32>} : memref<64x400xf32, #tpu.memory_space<vmem>>, vector<64x16xf32>,
    %c0_265 = arith.constant 0 : index
    %c4_266 = arith.constant 4 : index
    %c0_267 = arith.constant 0 : index
    %c0_268 = arith.constant 0 : index
    %173 = tpu.strided_load %arg14[%c0_265, %c4_266, %c0_267, %c0_268] {strides = array<i32: 1, 2, 2, 1>} : memref<2x12x19x16xf32, #tpu.memory_space<vmem>>, vector<2x4x8x16xf32>
    %174 = vector.shape_cast %173 : vector<2x4x8x16xf32> to vector<64x16xf32>
    %c0_269 = arith.constant 0 : index
    %c320 = arith.constant 320 : index
    %175 = vector.load %arg17[%c0_269, %c320] : memref<64x400xf32, #tpu.memory_space<vmem>>, vector<64x16xf32>
    tpu.vector_store %arg17[%c0_269, %c320], %174 {strides = array<i32>} : memref<64x400xf32, #tpu.memory_space<vmem>>, vector<64x16xf32>,
    %c0_270 = arith.constant 0 : index
    %c4_271 = arith.constant 4 : index
    %c1_272 = arith.constant 1 : index
    %c0_273 = arith.constant 0 : index
    %176 = tpu.strided_load %arg14[%c0_270, %c4_271, %c1_272, %c0_273] {strides = array<i32: 1, 2, 2, 1>} : memref<2x12x19x16xf32, #tpu.memory_space<vmem>>, vector<2x4x8x16xf32>
    %177 = vector.shape_cast %176 : vector<2x4x8x16xf32> to vector<64x16xf32>
    %c0_274 = arith.constant 0 : index
    %c336 = arith.constant 336 : index
    %178 = vector.load %arg17[%c0_274, %c336] : memref<64x400xf32, #tpu.memory_space<vmem>>, vector<64x16xf32>
    tpu.vector_store %arg17[%c0_274, %c336], %177 {strides = array<i32>} : memref<64x400xf32, #tpu.memory_space<vmem>>, vector<64x16xf32>,
    %c0_275 = arith.constant 0 : index
    %c4_276 = arith.constant 4 : index
    %c2_277 = arith.constant 2 : index
    %c0_278 = arith.constant 0 : index
    %179 = tpu.strided_load %arg14[%c0_275, %c4_276, %c2_277, %c0_278] {strides = array<i32: 1, 2, 2, 1>} : memref<2x12x19x16xf32, #tpu.memory_space<vmem>>, vector<2x4x8x16xf32>
    %180 = vector.shape_cast %179 : vector<2x4x8x16xf32> to vector<64x16xf32>
    %c0_279 = arith.constant 0 : index
    %c352 = arith.constant 352 : index
    %181 = vector.load %arg17[%c0_279, %c352] : memref<64x400xf32, #tpu.memory_space<vmem>>, vector<64x16xf32>
    tpu.vector_store %arg17[%c0_279, %c352], %180 {strides = array<i32>} : memref<64x400xf32, #tpu.memory_space<vmem>>, vector<64x16xf32>,
    %c0_280 = arith.constant 0 : index
    %c4_281 = arith.constant 4 : index
    %c3_282 = arith.constant 3 : index
    %c0_283 = arith.constant 0 : index
    %182 = tpu.strided_load %arg14[%c0_280, %c4_281, %c3_282, %c0_283] {strides = array<i32: 1, 2, 2, 1>} : memref<2x12x19x16xf32, #tpu.memory_space<vmem>>, vector<2x4x8x16xf32>
    %183 = vector.shape_cast %182 : vector<2x4x8x16xf32> to vector<64x16xf32>
    %c0_284 = arith.constant 0 : index
    %c368 = arith.constant 368 : index
    %184 = vector.load %arg17[%c0_284, %c368] : memref<64x400xf32, #tpu.memory_space<vmem>>, vector<64x16xf32>
    tpu.vector_store %arg17[%c0_284, %c368], %183 {strides = array<i32>} : memref<64x400xf32, #tpu.memory_space<vmem>>, vector<64x16xf32>,
    %c0_285 = arith.constant 0 : index
    %c4_286 = arith.constant 4 : index
    %c4_287 = arith.constant 4 : index
    %c0_288 = arith.constant 0 : index
    %185 = tpu.strided_load %arg14[%c0_285, %c4_286, %c4_287, %c0_288] {strides = array<i32: 1, 2, 2, 1>} : memref<2x12x19x16xf32, #tpu.memory_space<vmem>>, vector<2x4x8x16xf32>
    %186 = vector.shape_cast %185 : vector<2x4x8x16xf32> to vector<64x16xf32>
    %c0_289 = arith.constant 0 : index
    %c384 = arith.constant 384 : index
    %187 = vector.load %arg17[%c0_289, %c384] : memref<64x400xf32, #tpu.memory_space<vmem>>, vector<64x16xf32>
    tpu.vector_store %arg17[%c0_289, %c384], %186 {strides = array<i32>} : memref<64x400xf32, #tpu.memory_space<vmem>>, vector<64x16xf32>,
    %c0_290 = arith.constant 0 : index
    %c0_291 = arith.constant 0 : index
    %188 = vector.load %arg17[%c0_290, %c0_291] : memref<64x400xf32, #tpu.memory_space<vmem>>, vector<64x400xf32>
    %189 = arith.truncf %188 : vector<64x400xf32> to vector<64x400xbf16>
    %c0_292 = arith.constant 0 : index
    %c0_293 = arith.constant 0 : index
    %190 = vector.load %arg4[%c0_292, %c0_293] : memref<400x32xbf16, #tpu.memory_space<vmem>>, vector<400x32xbf16>
    %cst_294 = arith.constant dense<0.000000e+00> : vector<64x32xf32>
    %191 = tpu.matmul %189, %190, %cst_294 {dimension_numbers = #tpu.dot_dimension_numbers<[1], [0], [0], [1], [0, 0, 1, 1], [], []>} : vector<64x400xbf16>, vector<400x32xbf16>, vector<64x32xf32> -> vector<64x32xf32>
    %192 = tpu.iota {dimensions = array<i32: 0>} : vector<64x1xi32>
    %c8_i32 = arith.constant 8 : i32
    %c0_i32 = arith.constant 0 : i32
    %193 = arith.cmpi eq, %c8_i32, %c0_i32 : i32
    %c1_i32 = arith.constant 1 : i32
    %194 = arith.select %193, %c1_i32, %c8_i32 : i32
    %195 = vector.broadcast %194 : i32 to vector<64x1xi32>
    %196 = arith.remsi %192, %195 : vector<64x1xi32>
    %c0_i32_295 = arith.constant 0 : i32
    %197 = vector.broadcast %c0_i32_295 : i32 to vector<64x1xi32>
    %198 = arith.cmpi ne, %196, %197 : vector<64x1xi32>
    %c0_i32_296 = arith.constant 0 : i32
    %199 = vector.broadcast %c0_i32_296 : i32 to vector<64x1xi32>
    %200 = arith.cmpi slt, %196, %199 : vector<64x1xi32>
    %c0_i32_297 = arith.constant 0 : i32
    %201 = arith.cmpi slt, %194, %c0_i32_297 : i32
    %202 = vector.broadcast %201 : i1 to vector<64x1xi1>
    %203 = vector.broadcast %202 : vector<64x1xi1> to vector<64x1xi1>
    %204 = arith.xori %200, %203 : vector<64x1xi1>
    %205 = arith.andi %204, %198 : vector<64x1xi1>
    %206 = vector.broadcast %194 : i32 to vector<64x1xi32>
    %207 = arith.addi %196, %206 : vector<64x1xi32>
    %208 = arith.select %205, %207, %196 : vector<64x1xi1>, vector<64x1xi32>
    %c4_i32 = arith.constant 4 : i32
    %209 = vector.broadcast %c4_i32 : i32 to vector<64x1xi32>
    %210 = arith.cmpi slt, %208, %209 : vector<64x1xi32>
    %211 = arith.extui %210 : vector<64x1xi1> to vector<64x1xi32>
    %212 = arith.sitofp %211 : vector<64x1xi32> to vector<64x1xf32>
    %213 = vector.broadcast %212 : vector<64x1xf32> to vector<64x32xf32>
    %214 = arith.mulf %191, %213 : vector<64x32xf32>
    %cst_298 = arith.constant dense<0.000000e+00> : vector<32xf32>
    %215 = vector.multi_reduction <add>, %214, %cst_298 [0] : vector<64x32xf32> to vector<32xf32>
    %216 = vector.shape_cast %215 : vector<32xf32> to vector<1x32xf32>
    %cst_299 = arith.constant 3.125000e-02 : f32
    %217 = vector.broadcast %cst_299 : f32 to vector<1x32xf32>
    %218 = arith.mulf %216, %217 : vector<1x32xf32>
    %219 = vector.broadcast %218 : vector<1x32xf32> to vector<64x32xf32>
    %220 = arith.subf %191, %219 : vector<64x32xf32>
    %221 = arith.mulf %220, %220 : vector<64x32xf32>
    %222 = vector.broadcast %212 : vector<64x1xf32> to vector<64x32xf32>
    %223 = arith.mulf %221, %222 : vector<64x32xf32>
    %cst_300 = arith.constant dense<0.000000e+00> : vector<32xf32>
    %224 = vector.multi_reduction <add>, %223, %cst_300 [0] : vector<64x32xf32> to vector<32xf32>
    %225 = vector.shape_cast %224 : vector<32xf32> to vector<1x32xf32>
    %cst_301 = arith.constant 3.125000e-02 : f32
    %226 = vector.broadcast %cst_301 : f32 to vector<1x32xf32>
    %227 = arith.mulf %225, %226 : vector<1x32xf32>
    %228 = vector.broadcast %218 : vector<1x32xf32> to vector<64x32xf32>
    %229 = arith.subf %191, %228 : vector<64x32xf32>
    %cst_302 = arith.constant 9.99999974E-6 : f32
    %230 = vector.broadcast %cst_302 : f32 to vector<1x32xf32>
    %231 = arith.addf %227, %230 : vector<1x32xf32>
    %232 = math.rsqrt %231 : vector<1x32xf32>
    %233 = vector.broadcast %232 : vector<1x32xf32> to vector<64x32xf32>
    %234 = arith.mulf %229, %233 : vector<64x32xf32>
    %c0_303 = arith.constant 0 : index
    %c0_304 = arith.constant 0 : index
    %235 = vector.load %arg5[%c0_303, %c0_304] : memref<1x32xf32, #tpu.memory_space<vmem>>, vector<1x32xf32>
    %236 = vector.broadcast %235 : vector<1x32xf32> to vector<64x32xf32>
    %237 = arith.mulf %234, %236 : vector<64x32xf32>
    %c0_305 = arith.constant 0 : index
    %c0_306 = arith.constant 0 : index
    %238 = vector.load %arg6[%c0_305, %c0_306] : memref<1x32xf32, #tpu.memory_space<vmem>>, vector<1x32xf32>
    %239 = vector.broadcast %238 : vector<1x32xf32> to vector<64x32xf32>
    %240 = arith.addf %237, %239 : vector<64x32xf32>
    %cst_307 = arith.constant 0.000000e+00 : f32
    %241 = vector.broadcast %cst_307 : f32 to vector<64x32xf32>
    %242 = arith.maximumf %240, %241 : vector<64x32xf32>
    %cst_308 = arith.constant 0.000000e+00 : f32
    %243 = vector.broadcast %cst_308 : f32 to vector<2x8x19x32xf32>
    %c0_309 = arith.constant 0 : index
    %c0_310 = arith.constant 0 : index
    %c0_311 = arith.constant 0 : index
    %c0_312 = arith.constant 0 : index
    %244 = vector.load %arg15[%c0_309, %c0_310, %c0_311, %c0_312] : memref<2x8x19x32xf32, #tpu.memory_space<vmem>>, vector<2x8x19x32xf32>
    tpu.vector_store %arg15[%c0_309, %c0_310, %c0_311, %c0_312], %243 {strides = array<i32>} : memref<2x8x19x32xf32, #tpu.memory_space<vmem>>, vector<2x8x19x32xf32>,
    %245 = vector.shape_cast %242 : vector<64x32xf32> to vector<2x4x8x32xf32>
    %246 = vector.extract_strided_slice %245 {offsets = [0, 0, 0, 0], sizes = [2, 4, 4, 32], strides = [1, 1, 1, 1]} : vector<2x4x8x32xf32> to vector<2x4x4x32xf32>
    %c0_313 = arith.constant 0 : index
    %c2_314 = arith.constant 2 : index
    %c2_315 = arith.constant 2 : index
    %c0_316 = arith.constant 0 : index
    %247 = vector.load %arg15[%c0_313, %c2_314, %c2_315, %c0_316] : memref<2x8x19x32xf32, #tpu.memory_space<vmem>>, vector<2x4x4x32xf32>
    tpu.vector_store %arg15[%c0_313, %c2_314, %c2_315, %c0_316], %246 {strides = array<i32>} : memref<2x8x19x32xf32, #tpu.memory_space<vmem>>, vector<2x4x4x32xf32>,
    %c0_317 = arith.constant 0 : index
    %c0_318 = arith.constant 0 : index
    %c0_319 = arith.constant 0 : index
    %c0_320 = arith.constant 0 : index
    %248 = tpu.strided_load %arg15[%c0_317, %c0_318, %c0_319, %c0_320] {strides = array<i32: 1, 2, 2, 1>} : memref<2x8x19x32xf32, #tpu.memory_space<vmem>>, vector<2x2x8x32xf32>
    %249 = vector.shape_cast %248 : vector<2x2x8x32xf32> to vector<32x32xf32>
    %c0_321 = arith.constant 0 : index
    %c0_322 = arith.constant 0 : index
    %250 = vector.load %arg18[%c0_321, %c0_322] : memref<32x800xf32, #tpu.memory_space<vmem>>, vector<32x32xf32>
    tpu.vector_store %arg18[%c0_321, %c0_322], %249 {strides = array<i32>} : memref<32x800xf32, #tpu.memory_space<vmem>>, vector<32x32xf32>,
    %c0_323 = arith.constant 0 : index
    %c0_324 = arith.constant 0 : index
    %c1_325 = arith.constant 1 : index
    %c0_326 = arith.constant 0 : index
    %251 = tpu.strided_load %arg15[%c0_323, %c0_324, %c1_325, %c0_326] {strides = array<i32: 1, 2, 2, 1>} : memref<2x8x19x32xf32, #tpu.memory_space<vmem>>, vector<2x2x8x32xf32>
    %252 = vector.shape_cast %251 : vector<2x2x8x32xf32> to vector<32x32xf32>
    %c0_327 = arith.constant 0 : index
    %c32_328 = arith.constant 32 : index
    %253 = vector.load %arg18[%c0_327, %c32_328] : memref<32x800xf32, #tpu.memory_space<vmem>>, vector<32x32xf32>
    tpu.vector_store %arg18[%c0_327, %c32_328], %252 {strides = array<i32>} : memref<32x800xf32, #tpu.memory_space<vmem>>, vector<32x32xf32>,
    %c0_329 = arith.constant 0 : index
    %c0_330 = arith.constant 0 : index
    %c2_331 = arith.constant 2 : index
    %c0_332 = arith.constant 0 : index
    %254 = tpu.strided_load %arg15[%c0_329, %c0_330, %c2_331, %c0_332] {strides = array<i32: 1, 2, 2, 1>} : memref<2x8x19x32xf32, #tpu.memory_space<vmem>>, vector<2x2x8x32xf32>
    %255 = vector.shape_cast %254 : vector<2x2x8x32xf32> to vector<32x32xf32>
    %c0_333 = arith.constant 0 : index
    %c64_334 = arith.constant 64 : index
    %256 = vector.load %arg18[%c0_333, %c64_334] : memref<32x800xf32, #tpu.memory_space<vmem>>, vector<32x32xf32>
    tpu.vector_store %arg18[%c0_333, %c64_334], %255 {strides = array<i32>} : memref<32x800xf32, #tpu.memory_space<vmem>>, vector<32x32xf32>,
    %c0_335 = arith.constant 0 : index
    %c0_336 = arith.constant 0 : index
    %c3_337 = arith.constant 3 : index
    %c0_338 = arith.constant 0 : index
    %257 = tpu.strided_load %arg15[%c0_335, %c0_336, %c3_337, %c0_338] {strides = array<i32: 1, 2, 2, 1>} : memref<2x8x19x32xf32, #tpu.memory_space<vmem>>, vector<2x2x8x32xf32>
    %258 = vector.shape_cast %257 : vector<2x2x8x32xf32> to vector<32x32xf32>
    %c0_339 = arith.constant 0 : index
    %c96_340 = arith.constant 96 : index
    %259 = vector.load %arg18[%c0_339, %c96_340] : memref<32x800xf32, #tpu.memory_space<vmem>>, vector<32x32xf32>
    tpu.vector_store %arg18[%c0_339, %c96_340], %258 {strides = array<i32>} : memref<32x800xf32, #tpu.memory_space<vmem>>, vector<32x32xf32>,
    %c0_341 = arith.constant 0 : index
    %c0_342 = arith.constant 0 : index
    %c4_343 = arith.constant 4 : index
    %c0_344 = arith.constant 0 : index
    %260 = tpu.strided_load %arg15[%c0_341, %c0_342, %c4_343, %c0_344] {strides = array<i32: 1, 2, 2, 1>} : memref<2x8x19x32xf32, #tpu.memory_space<vmem>>, vector<2x2x8x32xf32>
    %261 = vector.shape_cast %260 : vector<2x2x8x32xf32> to vector<32x32xf32>
    %c0_345 = arith.constant 0 : index
    %c128_346 = arith.constant 128 : index
    %262 = vector.load %arg18[%c0_345, %c128_346] : memref<32x800xf32, #tpu.memory_space<vmem>>, vector<32x32xf32>
    tpu.vector_store %arg18[%c0_345, %c128_346], %261 {strides = array<i32>} : memref<32x800xf32, #tpu.memory_space<vmem>>, vector<32x32xf32>,
    %c0_347 = arith.constant 0 : index
    %c1_348 = arith.constant 1 : index
    %c0_349 = arith.constant 0 : index
    %c0_350 = arith.constant 0 : index
    %263 = tpu.strided_load %arg15[%c0_347, %c1_348, %c0_349, %c0_350] {strides = array<i32: 1, 2, 2, 1>} : memref<2x8x19x32xf32, #tpu.memory_space<vmem>>, vector<2x2x8x32xf32>
    %264 = vector.shape_cast %263 : vector<2x2x8x32xf32> to vector<32x32xf32>
    %c0_351 = arith.constant 0 : index
    %c160_352 = arith.constant 160 : index
    %265 = vector.load %arg18[%c0_351, %c160_352] : memref<32x800xf32, #tpu.memory_space<vmem>>, vector<32x32xf32>
    tpu.vector_store %arg18[%c0_351, %c160_352], %264 {strides = array<i32>} : memref<32x800xf32, #tpu.memory_space<vmem>>, vector<32x32xf32>,
    %c0_353 = arith.constant 0 : index
    %c1_354 = arith.constant 1 : index
    %c1_355 = arith.constant 1 : index
    %c0_356 = arith.constant 0 : index
    %266 = tpu.strided_load %arg15[%c0_353, %c1_354, %c1_355, %c0_356] {strides = array<i32: 1, 2, 2, 1>} : memref<2x8x19x32xf32, #tpu.memory_space<vmem>>, vector<2x2x8x32xf32>
    %267 = vector.shape_cast %266 : vector<2x2x8x32xf32> to vector<32x32xf32>
    %c0_357 = arith.constant 0 : index
    %c192_358 = arith.constant 192 : index
    %268 = vector.load %arg18[%c0_357, %c192_358] : memref<32x800xf32, #tpu.memory_space<vmem>>, vector<32x32xf32>
    tpu.vector_store %arg18[%c0_357, %c192_358], %267 {strides = array<i32>} : memref<32x800xf32, #tpu.memory_space<vmem>>, vector<32x32xf32>,
    %c0_359 = arith.constant 0 : index
    %c1_360 = arith.constant 1 : index
    %c2_361 = arith.constant 2 : index
    %c0_362 = arith.constant 0 : index
    %269 = tpu.strided_load %arg15[%c0_359, %c1_360, %c2_361, %c0_362] {strides = array<i32: 1, 2, 2, 1>} : memref<2x8x19x32xf32, #tpu.memory_space<vmem>>, vector<2x2x8x32xf32>
    %270 = vector.shape_cast %269 : vector<2x2x8x32xf32> to vector<32x32xf32>
    %c0_363 = arith.constant 0 : index
    %c224_364 = arith.constant 224 : index
    %271 = vector.load %arg18[%c0_363, %c224_364] : memref<32x800xf32, #tpu.memory_space<vmem>>, vector<32x32xf32>
    tpu.vector_store %arg18[%c0_363, %c224_364], %270 {strides = array<i32>} : memref<32x800xf32, #tpu.memory_space<vmem>>, vector<32x32xf32>,
    %c0_365 = arith.constant 0 : index
    %c1_366 = arith.constant 1 : index
    %c3_367 = arith.constant 3 : index
    %c0_368 = arith.constant 0 : index
    %272 = tpu.strided_load %arg15[%c0_365, %c1_366, %c3_367, %c0_368] {strides = array<i32: 1, 2, 2, 1>} : memref<2x8x19x32xf32, #tpu.memory_space<vmem>>, vector<2x2x8x32xf32>
    %273 = vector.shape_cast %272 : vector<2x2x8x32xf32> to vector<32x32xf32>
    %c0_369 = arith.constant 0 : index
    %c256_370 = arith.constant 256 : index
    %274 = vector.load %arg18[%c0_369, %c256_370] : memref<32x800xf32, #tpu.memory_space<vmem>>, vector<32x32xf32>
    tpu.vector_store %arg18[%c0_369, %c256_370], %273 {strides = array<i32>} : memref<32x800xf32, #tpu.memory_space<vmem>>, vector<32x32xf32>,
    %c0_371 = arith.constant 0 : index
    %c1_372 = arith.constant 1 : index
    %c4_373 = arith.constant 4 : index
    %c0_374 = arith.constant 0 : index
    %275 = tpu.strided_load %arg15[%c0_371, %c1_372, %c4_373, %c0_374] {strides = array<i32: 1, 2, 2, 1>} : memref<2x8x19x32xf32, #tpu.memory_space<vmem>>, vector<2x2x8x32xf32>
    %276 = vector.shape_cast %275 : vector<2x2x8x32xf32> to vector<32x32xf32>
    %c0_375 = arith.constant 0 : index
    %c288_376 = arith.constant 288 : index
    %277 = vector.load %arg18[%c0_375, %c288_376] : memref<32x800xf32, #tpu.memory_space<vmem>>, vector<32x32xf32>
    tpu.vector_store %arg18[%c0_375, %c288_376], %276 {strides = array<i32>} : memref<32x800xf32, #tpu.memory_space<vmem>>, vector<32x32xf32>,
    %c0_377 = arith.constant 0 : index
    %c2_378 = arith.constant 2 : index
    %c0_379 = arith.constant 0 : index
    %c0_380 = arith.constant 0 : index
    %278 = tpu.strided_load %arg15[%c0_377, %c2_378, %c0_379, %c0_380] {strides = array<i32: 1, 2, 2, 1>} : memref<2x8x19x32xf32, #tpu.memory_space<vmem>>, vector<2x2x8x32xf32>
    %279 = vector.shape_cast %278 : vector<2x2x8x32xf32> to vector<32x32xf32>
    %c0_381 = arith.constant 0 : index
    %c320_382 = arith.constant 320 : index
    %280 = vector.load %arg18[%c0_381, %c320_382] : memref<32x800xf32, #tpu.memory_space<vmem>>, vector<32x32xf32>
    tpu.vector_store %arg18[%c0_381, %c320_382], %279 {strides = array<i32>} : memref<32x800xf32, #tpu.memory_space<vmem>>, vector<32x32xf32>,
    %c0_383 = arith.constant 0 : index
    %c2_384 = arith.constant 2 : index
    %c1_385 = arith.constant 1 : index
    %c0_386 = arith.constant 0 : index
    %281 = tpu.strided_load %arg15[%c0_383, %c2_384, %c1_385, %c0_386] {strides = array<i32: 1, 2, 2, 1>} : memref<2x8x19x32xf32, #tpu.memory_space<vmem>>, vector<2x2x8x32xf32>
    %282 = vector.shape_cast %281 : vector<2x2x8x32xf32> to vector<32x32xf32>
    %c0_387 = arith.constant 0 : index
    %c352_388 = arith.constant 352 : index
    %283 = vector.load %arg18[%c0_387, %c352_388] : memref<32x800xf32, #tpu.memory_space<vmem>>, vector<32x32xf32>
    tpu.vector_store %arg18[%c0_387, %c352_388], %282 {strides = array<i32>} : memref<32x800xf32, #tpu.memory_space<vmem>>, vector<32x32xf32>,
    %c0_389 = arith.constant 0 : index
    %c2_390 = arith.constant 2 : index
    %c2_391 = arith.constant 2 : index
    %c0_392 = arith.constant 0 : index
    %284 = tpu.strided_load %arg15[%c0_389, %c2_390, %c2_391, %c0_392] {strides = array<i32: 1, 2, 2, 1>} : memref<2x8x19x32xf32, #tpu.memory_space<vmem>>, vector<2x2x8x32xf32>
    %285 = vector.shape_cast %284 : vector<2x2x8x32xf32> to vector<32x32xf32>
    %c0_393 = arith.constant 0 : index
    %c384_394 = arith.constant 384 : index
    %286 = vector.load %arg18[%c0_393, %c384_394] : memref<32x800xf32, #tpu.memory_space<vmem>>, vector<32x32xf32>
    tpu.vector_store %arg18[%c0_393, %c384_394], %285 {strides = array<i32>} : memref<32x800xf32, #tpu.memory_space<vmem>>, vector<32x32xf32>,
    %c0_395 = arith.constant 0 : index
    %c2_396 = arith.constant 2 : index
    %c3_397 = arith.constant 3 : index
    %c0_398 = arith.constant 0 : index
    %287 = tpu.strided_load %arg15[%c0_395, %c2_396, %c3_397, %c0_398] {strides = array<i32: 1, 2, 2, 1>} : memref<2x8x19x32xf32, #tpu.memory_space<vmem>>, vector<2x2x8x32xf32>
    %288 = vector.shape_cast %287 : vector<2x2x8x32xf32> to vector<32x32xf32>
    %c0_399 = arith.constant 0 : index
    %c416 = arith.constant 416 : index
    %289 = vector.load %arg18[%c0_399, %c416] : memref<32x800xf32, #tpu.memory_space<vmem>>, vector<32x32xf32>
    tpu.vector_store %arg18[%c0_399, %c416], %288 {strides = array<i32>} : memref<32x800xf32, #tpu.memory_space<vmem>>, vector<32x32xf32>,
    %c0_400 = arith.constant 0 : index
    %c2_401 = arith.constant 2 : index
    %c4_402 = arith.constant 4 : index
    %c0_403 = arith.constant 0 : index
    %290 = tpu.strided_load %arg15[%c0_400, %c2_401, %c4_402, %c0_403] {strides = array<i32: 1, 2, 2, 1>} : memref<2x8x19x32xf32, #tpu.memory_space<vmem>>, vector<2x2x8x32xf32>
    %291 = vector.shape_cast %290 : vector<2x2x8x32xf32> to vector<32x32xf32>
    %c0_404 = arith.constant 0 : index
    %c448 = arith.constant 448 : index
    %292 = vector.load %arg18[%c0_404, %c448] : memref<32x800xf32, #tpu.memory_space<vmem>>, vector<32x32xf32>
    tpu.vector_store %arg18[%c0_404, %c448], %291 {strides = array<i32>} : memref<32x800xf32, #tpu.memory_space<vmem>>, vector<32x32xf32>,
    %c0_405 = arith.constant 0 : index
    %c3_406 = arith.constant 3 : index
    %c0_407 = arith.constant 0 : index
    %c0_408 = arith.constant 0 : index
    %293 = tpu.strided_load %arg15[%c0_405, %c3_406, %c0_407, %c0_408] {strides = array<i32: 1, 2, 2, 1>} : memref<2x8x19x32xf32, #tpu.memory_space<vmem>>, vector<2x2x8x32xf32>
    %294 = vector.shape_cast %293 : vector<2x2x8x32xf32> to vector<32x32xf32>
    %c0_409 = arith.constant 0 : index
    %c480 = arith.constant 480 : index
    %295 = vector.load %arg18[%c0_409, %c480] : memref<32x800xf32, #tpu.memory_space<vmem>>, vector<32x32xf32>
    tpu.vector_store %arg18[%c0_409, %c480], %294 {strides = array<i32>} : memref<32x800xf32, #tpu.memory_space<vmem>>, vector<32x32xf32>,
    %c0_410 = arith.constant 0 : index
    %c3_411 = arith.constant 3 : index
    %c1_412 = arith.constant 1 : index
    %c0_413 = arith.constant 0 : index
    %296 = tpu.strided_load %arg15[%c0_410, %c3_411, %c1_412, %c0_413] {strides = array<i32: 1, 2, 2, 1>} : memref<2x8x19x32xf32, #tpu.memory_space<vmem>>, vector<2x2x8x32xf32>
    %297 = vector.shape_cast %296 : vector<2x2x8x32xf32> to vector<32x32xf32>
    %c0_414 = arith.constant 0 : index
    %c512 = arith.constant 512 : index
    %298 = vector.load %arg18[%c0_414, %c512] : memref<32x800xf32, #tpu.memory_space<vmem>>, vector<32x32xf32>
    tpu.vector_store %arg18[%c0_414, %c512], %297 {strides = array<i32>} : memref<32x800xf32, #tpu.memory_space<vmem>>, vector<32x32xf32>,
    %c0_415 = arith.constant 0 : index
    %c3_416 = arith.constant 3 : index
    %c2_417 = arith.constant 2 : index
    %c0_418 = arith.constant 0 : index
    %299 = tpu.strided_load %arg15[%c0_415, %c3_416, %c2_417, %c0_418] {strides = array<i32: 1, 2, 2, 1>} : memref<2x8x19x32xf32, #tpu.memory_space<vmem>>, vector<2x2x8x32xf32>
    %300 = vector.shape_cast %299 : vector<2x2x8x32xf32> to vector<32x32xf32>
    %c0_419 = arith.constant 0 : index
    %c544 = arith.constant 544 : index
    %301 = vector.load %arg18[%c0_419, %c544] : memref<32x800xf32, #tpu.memory_space<vmem>>, vector<32x32xf32>
    tpu.vector_store %arg18[%c0_419, %c544], %300 {strides = array<i32>} : memref<32x800xf32, #tpu.memory_space<vmem>>, vector<32x32xf32>,
    %c0_420 = arith.constant 0 : index
    %c3_421 = arith.constant 3 : index
    %c3_422 = arith.constant 3 : index
    %c0_423 = arith.constant 0 : index
    %302 = tpu.strided_load %arg15[%c0_420, %c3_421, %c3_422, %c0_423] {strides = array<i32: 1, 2, 2, 1>} : memref<2x8x19x32xf32, #tpu.memory_space<vmem>>, vector<2x2x8x32xf32>
    %303 = vector.shape_cast %302 : vector<2x2x8x32xf32> to vector<32x32xf32>
    %c0_424 = arith.constant 0 : index
    %c576 = arith.constant 576 : index
    %304 = vector.load %arg18[%c0_424, %c576] : memref<32x800xf32, #tpu.memory_space<vmem>>, vector<32x32xf32>
    tpu.vector_store %arg18[%c0_424, %c576], %303 {strides = array<i32>} : memref<32x800xf32, #tpu.memory_space<vmem>>, vector<32x32xf32>,
    %c0_425 = arith.constant 0 : index
    %c3_426 = arith.constant 3 : index
    %c4_427 = arith.constant 4 : index
    %c0_428 = arith.constant 0 : index
    %305 = tpu.strided_load %arg15[%c0_425, %c3_426, %c4_427, %c0_428] {strides = array<i32: 1, 2, 2, 1>} : memref<2x8x19x32xf32, #tpu.memory_space<vmem>>, vector<2x2x8x32xf32>
    %306 = vector.shape_cast %305 : vector<2x2x8x32xf32> to vector<32x32xf32>
    %c0_429 = arith.constant 0 : index
    %c608 = arith.constant 608 : index
    %307 = vector.load %arg18[%c0_429, %c608] : memref<32x800xf32, #tpu.memory_space<vmem>>, vector<32x32xf32>
    tpu.vector_store %arg18[%c0_429, %c608], %306 {strides = array<i32>} : memref<32x800xf32, #tpu.memory_space<vmem>>, vector<32x32xf32>,
    %c0_430 = arith.constant 0 : index
    %c4_431 = arith.constant 4 : index
    %c0_432 = arith.constant 0 : index
    %c0_433 = arith.constant 0 : index
    %308 = tpu.strided_load %arg15[%c0_430, %c4_431, %c0_432, %c0_433] {strides = array<i32: 1, 2, 2, 1>} : memref<2x8x19x32xf32, #tpu.memory_space<vmem>>, vector<2x2x8x32xf32>
    %309 = vector.shape_cast %308 : vector<2x2x8x32xf32> to vector<32x32xf32>
    %c0_434 = arith.constant 0 : index
    %c640 = arith.constant 640 : index
    %310 = vector.load %arg18[%c0_434, %c640] : memref<32x800xf32, #tpu.memory_space<vmem>>, vector<32x32xf32>
    tpu.vector_store %arg18[%c0_434, %c640], %309 {strides = array<i32>} : memref<32x800xf32, #tpu.memory_space<vmem>>, vector<32x32xf32>,
    %c0_435 = arith.constant 0 : index
    %c4_436 = arith.constant 4 : index
    %c1_437 = arith.constant 1 : index
    %c0_438 = arith.constant 0 : index
    %311 = tpu.strided_load %arg15[%c0_435, %c4_436, %c1_437, %c0_438] {strides = array<i32: 1, 2, 2, 1>} : memref<2x8x19x32xf32, #tpu.memory_space<vmem>>, vector<2x2x8x32xf32>
    %312 = vector.shape_cast %311 : vector<2x2x8x32xf32> to vector<32x32xf32>
    %c0_439 = arith.constant 0 : index
    %c672 = arith.constant 672 : index
    %313 = vector.load %arg18[%c0_439, %c672] : memref<32x800xf32, #tpu.memory_space<vmem>>, vector<32x32xf32>
    tpu.vector_store %arg18[%c0_439, %c672], %312 {strides = array<i32>} : memref<32x800xf32, #tpu.memory_space<vmem>>, vector<32x32xf32>,
    %c0_440 = arith.constant 0 : index
    %c4_441 = arith.constant 4 : index
    %c2_442 = arith.constant 2 : index
    %c0_443 = arith.constant 0 : index
    %314 = tpu.strided_load %arg15[%c0_440, %c4_441, %c2_442, %c0_443] {strides = array<i32: 1, 2, 2, 1>} : memref<2x8x19x32xf32, #tpu.memory_space<vmem>>, vector<2x2x8x32xf32>
    %315 = vector.shape_cast %314 : vector<2x2x8x32xf32> to vector<32x32xf32>
    %c0_444 = arith.constant 0 : index
    %c704 = arith.constant 704 : index
    %316 = vector.load %arg18[%c0_444, %c704] : memref<32x800xf32, #tpu.memory_space<vmem>>, vector<32x32xf32>
    tpu.vector_store %arg18[%c0_444, %c704], %315 {strides = array<i32>} : memref<32x800xf32, #tpu.memory_space<vmem>>, vector<32x32xf32>,
    %c0_445 = arith.constant 0 : index
    %c4_446 = arith.constant 4 : index
    %c3_447 = arith.constant 3 : index
    %c0_448 = arith.constant 0 : index
    %317 = tpu.strided_load %arg15[%c0_445, %c4_446, %c3_447, %c0_448] {strides = array<i32: 1, 2, 2, 1>} : memref<2x8x19x32xf32, #tpu.memory_space<vmem>>, vector<2x2x8x32xf32>
    %318 = vector.shape_cast %317 : vector<2x2x8x32xf32> to vector<32x32xf32>
    %c0_449 = arith.constant 0 : index
    %c736 = arith.constant 736 : index
    %319 = vector.load %arg18[%c0_449, %c736] : memref<32x800xf32, #tpu.memory_space<vmem>>, vector<32x32xf32>
    tpu.vector_store %arg18[%c0_449, %c736], %318 {strides = array<i32>} : memref<32x800xf32, #tpu.memory_space<vmem>>, vector<32x32xf32>,
    %c0_450 = arith.constant 0 : index
    %c4_451 = arith.constant 4 : index
    %c4_452 = arith.constant 4 : index
    %c0_453 = arith.constant 0 : index
    %320 = tpu.strided_load %arg15[%c0_450, %c4_451, %c4_452, %c0_453] {strides = array<i32: 1, 2, 2, 1>} : memref<2x8x19x32xf32, #tpu.memory_space<vmem>>, vector<2x2x8x32xf32>
    %321 = vector.shape_cast %320 : vector<2x2x8x32xf32> to vector<32x32xf32>
    %c0_454 = arith.constant 0 : index
    %c768 = arith.constant 768 : index
    %322 = vector.load %arg18[%c0_454, %c768] : memref<32x800xf32, #tpu.memory_space<vmem>>, vector<32x32xf32>
    tpu.vector_store %arg18[%c0_454, %c768], %321 {strides = array<i32>} : memref<32x800xf32, #tpu.memory_space<vmem>>, vector<32x32xf32>,
    %c0_455 = arith.constant 0 : index
    %c0_456 = arith.constant 0 : index
    %323 = vector.load %arg18[%c0_455, %c0_456] : memref<32x800xf32, #tpu.memory_space<vmem>>, vector<32x800xf32>
    %324 = arith.truncf %323 : vector<32x800xf32> to vector<32x800xbf16>
    %c0_457 = arith.constant 0 : index
    %c0_458 = arith.constant 0 : index
    %325 = vector.load %arg7[%c0_457, %c0_458] : memref<800x64xbf16, #tpu.memory_space<vmem>>, vector<800x64xbf16>
    %cst_459 = arith.constant dense<0.000000e+00> : vector<32x64xf32>
    %326 = tpu.matmul %324, %325, %cst_459 {dimension_numbers = #tpu.dot_dimension_numbers<[1], [0], [0], [1], [0, 0, 1, 1], [], []>} : vector<32x800xbf16>, vector<800x64xbf16>, vector<32x64xf32> -> vector<32x64xf32>
    %327 = tpu.iota {dimensions = array<i32: 0>} : vector<32x1xi32>
    %c8_i32_460 = arith.constant 8 : i32
    %c0_i32_461 = arith.constant 0 : i32
    %328 = arith.cmpi eq, %c8_i32_460, %c0_i32_461 : i32
    %c1_i32_462 = arith.constant 1 : i32
    %329 = arith.select %328, %c1_i32_462, %c8_i32_460 : i32
    %330 = vector.broadcast %329 : i32 to vector<32x1xi32>
    %331 = arith.remsi %327, %330 : vector<32x1xi32>
    %c0_i32_463 = arith.constant 0 : i32
    %332 = vector.broadcast %c0_i32_463 : i32 to vector<32x1xi32>
    %333 = arith.cmpi ne, %331, %332 : vector<32x1xi32>
    %c0_i32_464 = arith.constant 0 : i32
    %334 = vector.broadcast %c0_i32_464 : i32 to vector<32x1xi32>
    %335 = arith.cmpi slt, %331, %334 : vector<32x1xi32>
    %c0_i32_465 = arith.constant 0 : i32
    %336 = arith.cmpi slt, %329, %c0_i32_465 : i32
    %337 = vector.broadcast %336 : i1 to vector<32x1xi1>
    %338 = vector.broadcast %337 : vector<32x1xi1> to vector<32x1xi1>
    %339 = arith.xori %335, %338 : vector<32x1xi1>
    %340 = arith.andi %339, %333 : vector<32x1xi1>
    %341 = vector.broadcast %329 : i32 to vector<32x1xi32>
    %342 = arith.addi %331, %341 : vector<32x1xi32>
    %343 = arith.select %340, %342, %331 : vector<32x1xi1>, vector<32x1xi32>
    %c2_i32 = arith.constant 2 : i32
    %344 = vector.broadcast %c2_i32 : i32 to vector<32x1xi32>
    %345 = arith.cmpi slt, %343, %344 : vector<32x1xi32>
    %346 = arith.extui %345 : vector<32x1xi1> to vector<32x1xi32>
    %347 = arith.sitofp %346 : vector<32x1xi32> to vector<32x1xf32>
    %348 = vector.broadcast %347 : vector<32x1xf32> to vector<32x64xf32>
    %349 = arith.mulf %326, %348 : vector<32x64xf32>
    %cst_466 = arith.constant dense<0.000000e+00> : vector<64xf32>
    %350 = vector.multi_reduction <add>, %349, %cst_466 [0] : vector<32x64xf32> to vector<64xf32>
    %351 = vector.shape_cast %350 : vector<64xf32> to vector<1x64xf32>
    %cst_467 = arith.constant 1.250000e-01 : f32
    %352 = vector.broadcast %cst_467 : f32 to vector<1x64xf32>
    %353 = arith.mulf %351, %352 : vector<1x64xf32>
    %354 = vector.broadcast %353 : vector<1x64xf32> to vector<32x64xf32>
    %355 = arith.subf %326, %354 : vector<32x64xf32>
    %356 = arith.mulf %355, %355 : vector<32x64xf32>
    %357 = vector.broadcast %347 : vector<32x1xf32> to vector<32x64xf32>
    %358 = arith.mulf %356, %357 : vector<32x64xf32>
    %cst_468 = arith.constant dense<0.000000e+00> : vector<64xf32>
    %359 = vector.multi_reduction <add>, %358, %cst_468 [0] : vector<32x64xf32> to vector<64xf32>
    %360 = vector.shape_cast %359 : vector<64xf32> to vector<1x64xf32>
    %cst_469 = arith.constant 1.250000e-01 : f32
    %361 = vector.broadcast %cst_469 : f32 to vector<1x64xf32>
    %362 = arith.mulf %360, %361 : vector<1x64xf32>
    %363 = vector.broadcast %353 : vector<1x64xf32> to vector<32x64xf32>
    %364 = arith.subf %326, %363 : vector<32x64xf32>
    %cst_470 = arith.constant 9.99999974E-6 : f32
    %365 = vector.broadcast %cst_470 : f32 to vector<1x64xf32>
    %366 = arith.addf %362, %365 : vector<1x64xf32>
    %367 = math.rsqrt %366 : vector<1x64xf32>
    %368 = vector.broadcast %367 : vector<1x64xf32> to vector<32x64xf32>
    %369 = arith.mulf %364, %368 : vector<32x64xf32>
    %c0_471 = arith.constant 0 : index
    %c0_472 = arith.constant 0 : index
    %370 = vector.load %arg8[%c0_471, %c0_472] : memref<1x64xf32, #tpu.memory_space<vmem>>, vector<1x64xf32>
    %371 = vector.broadcast %370 : vector<1x64xf32> to vector<32x64xf32>
    %372 = arith.mulf %369, %371 : vector<32x64xf32>
    %c0_473 = arith.constant 0 : index
    %c0_474 = arith.constant 0 : index
    %373 = vector.load %arg9[%c0_473, %c0_474] : memref<1x64xf32, #tpu.memory_space<vmem>>, vector<1x64xf32>
    %374 = vector.broadcast %373 : vector<1x64xf32> to vector<32x64xf32>
    %375 = arith.addf %372, %374 : vector<32x64xf32>
    %cst_475 = arith.constant 0.000000e+00 : f32
    %376 = vector.broadcast %cst_475 : f32 to vector<32x64xf32>
    %377 = arith.maximumf %375, %376 : vector<32x64xf32>
    %378 = vector.shape_cast %377 : vector<32x64xf32> to vector<2x2x8x64xf32>
    %379 = vector.extract_strided_slice %378 {offsets = [0, 0, 0, 0], sizes = [2, 1, 1, 64], strides = [1, 1, 1, 1]} : vector<2x2x8x64xf32> to vector<2x1x1x64xf32>
    %380 = vector.shape_cast %379 : vector<2x1x1x64xf32> to vector<2x64xf32>
    %c0_476 = arith.constant 0 : index
    %c0_477 = arith.constant 0 : index
    %381 = vector.load %arg19[%c0_476, %c0_477] : memref<2x256xf32, #tpu.memory_space<vmem>>, vector<2x64xf32>
    tpu.vector_store %arg19[%c0_476, %c0_477], %380 {strides = array<i32>} : memref<2x256xf32, #tpu.memory_space<vmem>>, vector<2x64xf32>,
    %382 = vector.extract_strided_slice %378 {offsets = [0, 0, 1, 0], sizes = [2, 1, 1, 64], strides = [1, 1, 1, 1]} : vector<2x2x8x64xf32> to vector<2x1x1x64xf32>
    %383 = vector.shape_cast %382 : vector<2x1x1x64xf32> to vector<2x64xf32>
    %c0_478 = arith.constant 0 : index
    %c64_479 = arith.constant 64 : index
    %384 = vector.load %arg19[%c0_478, %c64_479] : memref<2x256xf32, #tpu.memory_space<vmem>>, vector<2x64xf32>
    tpu.vector_store %arg19[%c0_478, %c64_479], %383 {strides = array<i32>} : memref<2x256xf32, #tpu.memory_space<vmem>>, vector<2x64xf32>,
    %385 = vector.extract_strided_slice %378 {offsets = [0, 1, 0, 0], sizes = [2, 1, 1, 64], strides = [1, 1, 1, 1]} : vector<2x2x8x64xf32> to vector<2x1x1x64xf32>
    %386 = vector.shape_cast %385 : vector<2x1x1x64xf32> to vector<2x64xf32>
    %c0_480 = arith.constant 0 : index
    %c128_481 = arith.constant 128 : index
    %387 = vector.load %arg19[%c0_480, %c128_481] : memref<2x256xf32, #tpu.memory_space<vmem>>, vector<2x64xf32>
    tpu.vector_store %arg19[%c0_480, %c128_481], %386 {strides = array<i32>} : memref<2x256xf32, #tpu.memory_space<vmem>>, vector<2x64xf32>,
    %388 = vector.extract_strided_slice %378 {offsets = [0, 1, 1, 0], sizes = [2, 1, 1, 64], strides = [1, 1, 1, 1]} : vector<2x2x8x64xf32> to vector<2x1x1x64xf32>
    %389 = vector.shape_cast %388 : vector<2x1x1x64xf32> to vector<2x64xf32>
    %c0_482 = arith.constant 0 : index
    %c192_483 = arith.constant 192 : index
    %390 = vector.load %arg19[%c0_482, %c192_483] : memref<2x256xf32, #tpu.memory_space<vmem>>, vector<2x64xf32>
    tpu.vector_store %arg19[%c0_482, %c192_483], %389 {strides = array<i32>} : memref<2x256xf32, #tpu.memory_space<vmem>>, vector<2x64xf32>,
    %c0_484 = arith.constant 0 : index
    %c0_485 = arith.constant 0 : index
    %391 = vector.load %arg19[%c0_484, %c0_485] : memref<2x256xf32, #tpu.memory_space<vmem>>, vector<2x256xf32>
    %392 = arith.truncf %391 : vector<2x256xf32> to vector<2x256xbf16>
    %c0_486 = arith.constant 0 : index
    %c0_487 = arith.constant 0 : index
    %393 = vector.load %arg10[%c0_486, %c0_487] : memref<256x6xbf16, #tpu.memory_space<vmem>>, vector<256x6xbf16>
    %cst_488 = arith.constant dense<0.000000e+00> : vector<2x6xf32>
    %394 = tpu.matmul %392, %393, %cst_488 {dimension_numbers = #tpu.dot_dimension_numbers<[1], [0], [0], [1], [0, 0, 1, 1], [], []>} : vector<2x256xbf16>, vector<256x6xbf16>, vector<2x6xf32> -> vector<2x6xf32>
    %c0_489 = arith.constant 0 : index
    %c0_490 = arith.constant 0 : index
    %395 = vector.load %arg11[%c0_489, %c0_490] : memref<1x6xf32, #tpu.memory_space<vmem>>, vector<1x6xf32>
    %396 = vector.broadcast %395 : vector<1x6xf32> to vector<2x6xf32>
    %397 = arith.addf %394, %396 : vector<2x6xf32>
    %c0_491 = arith.constant 0 : index
    %c0_492 = arith.constant 0 : index
    %398 = vector.load %arg12[%c0_491, %c0_492] : memref<2x6xf32, #tpu.memory_space<vmem>>, vector<2x6xf32>
    tpu.vector_store %arg12[%c0_491, %c0_492], %397 {strides = array<i32>} : memref<2x6xf32, #tpu.memory_space<vmem>>, vector<2x6xf32>,
    return
  }
}

</mosaic_0001>

<bundles_post_ra>
// kernel: dqn_forward.1
= control target key start
LH: loop header
LB: loop body
LE: loop exit
PB: predicated region body
PF: predicated region fallthrough
CT: control target
= control target key end

     0   :  { %vm43_vm0 = vcmask 31744   ;;  %v8081_v0 = vmov 0.0   ;;  %s10927_s0 = inlined_call_operand.vmem [shape: f32[2,16,16,4], index: 0, kind: input, shape index: {}]   ;;  %s10928_s1 = inlined_call_operand.vmem [shape: bf16[100,16], index: 1, kind: input, shape index: {}]   ;;  %s10929_s2 = inlined_call_operand.vmem [shape: f32[1,16], index: 2, kind: input, shape index: {}]   ;;  %s10930_s3 = inlined_call_operand.vmem [shape: f32[1,16], index: 3, kind: input, shape index: {}]   ;;  %s10931_s4 = inlined_call_operand.vmem [shape: bf16[400,32], index: 4, kind: input, shape index: {}]   ;;  %s10932_s5 = inlined_call_operand.vmem [shape: f32[1,32], index: 5, kind: input, shape index: {}]   ;;  %s10933_s6 = inlined_call_operand.vmem [shape: f32[1,32], index: 6, kind: input, shape index: {}]   ;;  %s10934_s7 = inlined_call_operand.vmem [shape: bf16[800,64], index: 7, kind: input, shape index: {}]   ;;  %s10935_s8 = inlined_call_operand.vmem [shape: f32[1,64], index: 8, kind: input, shape index: {}]   ;;  %s10936_s9 = inlined_call_operand.vmem [shape: f32[1,64], index: 9, kind: input, shape index: {}]   ;;  %s10937_s10 = inlined_call_operand.vmem [shape: bf16[256,6], index: 10, kind: input, shape index: {}]   ;;  %s10938_s11 = inlined_call_operand.vmem [shape: f32[1,6], index: 11, kind: input, shape index: {}]   ;;  %s10939_s12 = inlined_call_operand.hbm [shape: f32[2,6], index: 12, kind: output, shape index: {}]  }
   0x1   :  { %44 = vst.msk [vmem:[#allocation2] sm:$0xff] %vm43_vm0, %v8081_v0 }
   0x2   :  { %45 = vst.msk [vmem:[#allocation2 + $0x8] sm:$0xff] %vm43_vm0, %v8081_v0 }
   0x3   :  { %48 = vst.msk [vmem:[#allocation2 + $0x18] sm:$0xff] %vm43_vm0, %v8081_v0 }
   0x4   :  { %49 = vst.msk [vmem:[#allocation2 + $0x20] sm:$0xff] %vm43_vm0, %v8081_v0 }
   0x5   :  { %17 = vsyncpa [#allocation10], 0  ;;  %51 = vst.msk [vmem:[#allocation2 + $0x30] sm:$0xff] %vm43_vm0, %v8081_v0  ;;  %s8082_s21 = smov 4   ;;  %vm46_vm1 = vcmask 27648   ;;  %v169_v2 = vld [vmem:[%s10927_s0 + $0x20] sm:$0xff] }
   0x6   :  { %52 = vst.msk [vmem:[#allocation2 + $0x38] sm:$0xff] %vm43_vm0, %v8081_v0  ;;  %v170_v3 = vld [vmem:[%s10927_s0 + $0x28] sm:$0xff]  ;;  %v165_v5 = vld [vmem:[%s10927_s0] sm:$0xff]  ;;  %s8083_s27 = smov 8   ;;  %vm437_vm2 = vcmask 64544   ;;  %s8085_s28 = smov 16  }
   0x7   :  { %54 = vst.msk [vmem:[#allocation2 + $0x48] sm:$0xff] %vm43_vm0, %v8081_v0  ;;  %v166_v6 = vld [vmem:[%s10927_s0 + $0x8] sm:$0xff]  ;;  %v173_v7 = vld [vmem:[%s10927_s0 + $0x40] sm:$0xff]  ;;  %vm550_vm3 = vcmask 97344   ;;  %s8086_s17 = smov 20   ;;  %vm663_vm4 = vcmask 130144  }
   0x8   :  { %55 = vst.msk [vmem:[#allocation2 + $0x50] sm:$0xff] %vm43_vm0, %v8081_v0  ;;  %v174_v8 = vld [vmem:[%s10927_s0 + $0x48] sm:$0xff]  ;;  %v185_v9 = vld [vmem:[%s10927_s0 + $0xa0] sm:$0xff]  ;;  %s8087_s18 = smov 24   ;;  %vm776_vm5 = vcmask 162944   ;;  %vm889_vm6 = vcmask 195744  }
   0x9   :  { %v342_v1 = vld [vmem:[#allocation2 + $0x1] ss:$2 sm:$0xff]  ;;  %57 = vst.msk [vmem:[#allocation2 + $0x60] sm:$0xff] %vm43_vm0, %v8081_v0  ;;  %v189_v11 = vld [vmem:[%s10927_s0 + $0xc0] sm:$0xff]  ;;  %v294_v61 = vld [vmem:[#allocation2] ss:$2 sm:$0xff] }
   0xa   :  { %389 = vrot.lane.b32.xlu0 %v342_v1, %s8082_s21  ;;  %58 = vst.msk [vmem:[#allocation2 + $0x68] sm:$0xff] %vm43_vm0, %v8081_v0  ;;  %v186_v10 = vld [vmem:[%s10927_s0 + $0xa8] sm:$0xff]  ;;  %v197_v13 = vld [vmem:[%s10927_s0 + $0x100] sm:$0xff]  ;;  %s10940_s19 = smov 32   ;;  %vm1002_vm7 = vcmask 228544   ;;  %s8090_s20 = smov 36  }
   0xb   :  { %60 = vst.msk [vmem:[#allocation2 + $0x78] sm:$0xff] %vm43_vm0, %v8081_v0  ;;  %v190_v12 = vld [vmem:[%s10927_s0 + $0xc8] sm:$0xff]  ;;  %v177_v15 = vld [vmem:[%s10927_s0 + $0x60] sm:$0xff]  ;;  %vm1115_vm8 = vcmask 261344   ;;  %s8091_s26 = smov 40   ;;  %vm1228_vm9 = vcmask 294144  }
   0xc   :  { %61 = vst.msk [vmem:[#allocation2 + $0x80] sm:$0xff] %vm43_vm0, %v8081_v0  ;;  %v198_v14 = vld [vmem:[%s10927_s0 + $0x108] sm:$0xff]  ;;  %v201_v18 = vld [vmem:[%s10927_s0 + $0x120] sm:$0xff]  ;;  %s8092_s13 = smov 44   ;;  %vm1341_vm10 = vcmask 326944   ;;  %s8093_s14 = smov 48  }
   0xd   :  { %63 = vst.msk [vmem:[#allocation2 + $0x90] sm:$0xff] %vm43_vm0, %v8081_v0  ;;  %v178_v17 = vld [vmem:[%s10927_s0 + $0x68] sm:$0xff]  ;;  %v209_v21 = vld [vmem:[%s10927_s0 + $0x160] sm:$0xff]  ;;  %s8094_s15 = smov 52   ;;  %s8095_s16 = smov 56   ;;  %vm1453_vm11 = vcmask 359744  }
   0xe   :  { %64 = vst.msk [vmem:[#allocation2 + $0x98] sm:$0xff] %vm43_vm0, %v8081_v0  ;;  %v202_v20 = vld [vmem:[%s10927_s0 + $0x128] sm:$0xff]  ;;  %v181_v23 = vld [vmem:[%s10927_s0 + $0x80] sm:$0xff]  ;;  %s8099_s22 = smov 72   ;;  %s8100_s23 = smov 76   ;;  %vm1566_vm12 = vcmask 392544  }
   0xf   :  { %66 = vst.msk [vmem:[#allocation2 + $0xa8] sm:$0xff] %vm43_vm0, %v8081_v0  ;;  %v210_v22 = vld [vmem:[%s10927_s0 + $0x168] sm:$0xff]  ;;  %v213_v26 = vld [vmem:[%s10927_s0 + $0x180] sm:$0xff]  ;;  %s8101_s24 = smov 80   ;;  %s8102_s25 = smov 84   ;;  %vm1679_vm13 = vcmask 425344  }
  0x10   :  { %67 = vst.msk [vmem:[#allocation2 + $0xb0] sm:$0xff] %vm43_vm0, %v8081_v0  ;;  %v182_v25 = vld [vmem:[%s10927_s0 + $0x88] sm:$0xff]  ;;  %v221_v29 = vld [vmem:[%s10927_s0 + $0x1c0] sm:$0xff]  ;;  %vm1792_vm14 = vcmask 458144   ;;  %vm1905_vm15 = vcmask 490944  }
  0x11   :  { %69 = vst.msk [vmem:[#allocation2 + $0xc0] sm:$0xff] %vm43_vm0, %v8081_v0  ;;  %v214_v28 = vld [vmem:[%s10927_s0 + $0x188] sm:$0xff]  ;;  %v205_v32 = vld [vmem:[%s10927_s0 + $0x140] sm:$0xff] }
  0x12   :  { %70 = vst.msk [vmem:[#allocation2 + $0xc8] sm:$0xff] %vm43_vm0, %v8081_v0  ;;  %v222_v31 = vld [vmem:[%s10927_s0 + $0x1c8] sm:$0xff]  ;;  %v217_v34 = vld [vmem:[%s10927_s0 + $0x1a0] sm:$0xff] }
  0x13   :  { %72 = vst.msk [vmem:[#allocation2 + $0xd8] sm:$0xff] %vm43_vm0, %v8081_v0  ;;  %v206_v33 = vld [vmem:[%s10927_s0 + $0x148] sm:$0xff] }
  0x14   :  { %73 = vst.msk [vmem:[#allocation2 + $0xe0] sm:$0xff] %vm43_vm0, %v8081_v0  ;;  %v218_v36 = vld [vmem:[%s10927_s0 + $0x1a8] sm:$0xff] }
  0x15   :  { %75 = vst.msk [vmem:[#allocation2 + $0xf0] sm:$0xff] %vm43_vm0, %v8081_v0 }
  0x16   :  { %76 = vst.msk [vmem:[#allocation2 + $0xf8] sm:$0xff] %vm43_vm0, %v8081_v0 }
  0x17   :  { %78 = vst.msk [vmem:[#allocation2 + $0x108] sm:$0xff] %vm43_vm0, %v8081_v0 }
  0x18   :  { %79 = vst.msk [vmem:[#allocation2 + $0x110] sm:$0xff] %vm43_vm0, %v8081_v0 }
  0x19   :  { %81 = vst.msk [vmem:[#allocation2 + $0x120] sm:$0xff] %vm43_vm0, %v8081_v0 }
  0x1a   :  { %82 = vst.msk [vmem:[#allocation2 + $0x128] sm:$0xff] %vm43_vm0, %v8081_v0 }
  0x1b   :  { %84 = vst.msk [vmem:[#allocation2 + $0x138] sm:$0xff] %vm43_vm0, %v8081_v0 }
  0x1c   :  { %85 = vst.msk [vmem:[#allocation2 + $0x140] sm:$0xff] %vm43_vm0, %v8081_v0 }
  0x1d   :  { %87 = vst.msk [vmem:[#allocation2 + $0x150] sm:$0xff] %vm43_vm0, %v8081_v0 }
  0x1e   :  { %88 = vst.msk [vmem:[#allocation2 + $0x158] sm:$0xff] %vm43_vm0, %v8081_v0 }
  0x1f   :  { %90 = vst.msk [vmem:[#allocation2 + $0x168] sm:$0xff] %vm43_vm0, %v8081_v0 }
  0x20   :  { %91 = vst.msk [vmem:[#allocation2 + $0x170] sm:$0xff] %vm43_vm0, %v8081_v0 }
  0x21   :  { %93 = vst.msk [vmem:[#allocation2 + $0x180] sm:$0xff] %vm43_vm0, %v8081_v0 }
  0x22   :  { %94 = vst.msk [vmem:[#allocation2 + $0x188] sm:$0xff] %vm43_vm0, %v8081_v0 }
  0x23   :  { %96 = vst.msk [vmem:[#allocation2 + $0x198] sm:$0xff] %vm43_vm0, %v8081_v0 }
  0x24   :  { %97 = vst.msk [vmem:[#allocation2 + $0x1a0] sm:$0xff] %vm43_vm0, %v8081_v0 }
  0x25   :  { %99 = vst.msk [vmem:[#allocation2 + $0x1b0] sm:$0xff] %vm43_vm0, %v8081_v0 }
  0x26   :  { %100 = vst.msk [vmem:[#allocation2 + $0x1b8] sm:$0xff] %vm43_vm0, %v8081_v0 }
  0x27   :  { %105 = vst.msk [vmem:[#allocation2 + $0x1e0] sm:$0xff] %vm43_vm0, %v8081_v0 }
  0x28   :  { %106 = vst.msk [vmem:[#allocation2 + $0x1e8] sm:$0xff] %vm43_vm0, %v8081_v0 }
  0x29   :  { %108 = vst.msk [vmem:[#allocation2 + $0x1f8] sm:$0xff] %vm43_vm0, %v8081_v0 }
  0x2a   :  { %109 = vst.msk [vmem:[#allocation2 + $0x200] sm:$0xff] %vm43_vm0, %v8081_v0 }
  0x2b   :  { %111 = vst.msk [vmem:[#allocation2 + $0x210] sm:$0xff] %vm43_vm0, %v8081_v0 }
  0x2c   :  { %112 = vst.msk [vmem:[#allocation2 + $0x218] sm:$0xff] %vm43_vm0, %v8081_v0 }
  0x2d   :  { %114 = vst.msk [vmem:[#allocation2 + $0x228] sm:$0xff] %vm43_vm0, %v8081_v0 }
  0x2e   :  { %115 = vst.msk [vmem:[#allocation2 + $0x230] sm:$0xff] %vm43_vm0, %v8081_v0 }
  0x2f   :  { %117 = vst.msk [vmem:[#allocation2 + $0x240] sm:$0xff] %vm43_vm0, %v8081_v0  ;;  %v358_v41 = vld [vmem:[#allocation2 + $0x1e1] ss:$2 sm:$0xff] }
  0x30   :  { %118 = vst.msk [vmem:[#allocation2 + $0x248] sm:$0xff] %vm43_vm0, %v8081_v0 }
  0x31   :  { %120 = vst.msk [vmem:[#allocation2 + $0x258] sm:$0xff] %vm43_vm0, %v8081_v0 }
  0x32   :  { %121 = vst.msk [vmem:[#allocation2 + $0x260] sm:$0xff] %vm43_vm0, %v8081_v0 }
  0x33   :  { %123 = vst.msk [vmem:[#allocation2 + $0x270] sm:$0xff] %vm43_vm0, %v8081_v0 }
  0x34   :  { %124 = vst.msk [vmem:[#allocation2 + $0x278] sm:$0xff] %vm43_vm0, %v8081_v0 }
  0x35   :  { %126 = vst.msk [vmem:[#allocation2 + $0x288] sm:$0xff] %vm43_vm0, %v8081_v0 }
  0x36   :  { %127 = vst.msk [vmem:[#allocation2 + $0x290] sm:$0xff] %vm43_vm0, %v8081_v0 }
  0x37   :  { %129 = vst.msk [vmem:[#allocation2 + $0x2a0] sm:$0xff] %vm43_vm0, %v8081_v0 }
  0x38   :  { %130 = vst.msk [vmem:[#allocation2 + $0x2a8] sm:$0xff] %vm43_vm0, %v8081_v0 }
  0x39   :  { %132 = vst.msk [vmem:[#allocation2 + $0x2b8] sm:$0xff] %vm43_vm0, %v8081_v0 }
  0x3a   :  { %133 = vst.msk [vmem:[#allocation2 + $0x2c0] sm:$0xff] %vm43_vm0, %v8081_v0 }
  0x3b   :  { %135 = vst.msk [vmem:[#allocation2 + $0x2d0] sm:$0xff] %vm43_vm0, %v8081_v0 }
  0x3c   :  { %136 = vst.msk [vmem:[#allocation2 + $0x2d8] sm:$0xff] %vm43_vm0, %v8081_v0 }
  0x3d   :  { %138 = vst.msk [vmem:[#allocation2 + $0x2e8] sm:$0xff] %vm43_vm0, %v8081_v0 }
  0x3e   :  { %139 = vst.msk [vmem:[#allocation2 + $0x2f0] sm:$0xff] %vm43_vm0, %v8081_v0 }
  0x3f   :  { %141 = vst.msk [vmem:[#allocation2 + $0x300] sm:$0xff] %vm43_vm0, %v8081_v0 }
  0x40   :  { %142 = vst.msk [vmem:[#allocation2 + $0x308] sm:$0xff] %vm43_vm0, %v8081_v0 }
  0x41   :  { %144 = vst.msk [vmem:[#allocation2 + $0x318] sm:$0xff] %vm43_vm0, %v8081_v0 }
  0x42   :  { %145 = vst.msk [vmem:[#allocation2 + $0x320] sm:$0xff] %vm43_vm0, %v8081_v0 }
  0x43   :  { %147 = vst.msk [vmem:[#allocation2 + $0x330] sm:$0xff] %vm43_vm0, %v8081_v0 }
  0x44   :  { %148 = vst.msk [vmem:[#allocation2 + $0x338] sm:$0xff] %vm43_vm0, %v8081_v0 }
  0x45   :  { %150 = vst.msk [vmem:[#allocation2 + $0x348] sm:$0xff] %vm43_vm0, %v8081_v0 }
  0x46   :  { %151 = vst.msk [vmem:[#allocation2 + $0x350] sm:$0xff] %vm43_vm0, %v8081_v0 }
  0x47   :  { %153 = vst.msk [vmem:[#allocation2 + $0x360] sm:$0xff] %vm43_vm0, %v8081_v0 }
  0x48   :  { %154 = vst.msk [vmem:[#allocation2 + $0x368] sm:$0xff] %vm43_vm0, %v8081_v0 }
  0x49   :  { %156 = vst.msk [vmem:[#allocation2 + $0x378] sm:$0xff] %vm43_vm0, %v8081_v0 }
  0x4a   :  { %157 = vst.msk [vmem:[#allocation2 + $0x380] sm:$0xff] %vm43_vm0, %v8081_v0 }
  0x4b   :  { %159 = vst.msk [vmem:[#allocation2 + $0x390] sm:$0xff] %vm43_vm0, %v8081_v0 }
  0x4c   :  { %160 = vst.msk [vmem:[#allocation2 + $0x398] sm:$0xff] %vm43_vm0, %v8081_v0 }
  0x4d   :  { %59 = vst.msk [vmem:[#allocation2 + $0x70] sm:$0xf] %vm46_vm1, %v8081_v0 }
  0x4e   :  { %234 = vst.msk [vmem:[#allocation2 + $0x62] sm:$0xff] %vm43_vm0, %v169_v2 }
  0x4f   :  { %235 = vst.msk [vmem:[#allocation2 + $0x6a] sm:$0xff] %vm43_vm0, %v170_v3 }
  0x50   :  { %47 = vst.msk [vmem:[#allocation2 + $0x10] sm:$0xf] %vm46_vm1, %v8081_v0 }
  0x51   :  { %50 = vst.msk [vmem:[#allocation2 + $0x28] sm:$0xf] %vm46_vm1, %v8081_v0 }
  0x52   :  { %53 = vst.msk [vmem:[#allocation2 + $0x40] sm:$0xf] %vm46_vm1, %v8081_v0 }
  0x53   :  { %56 = vst.msk [vmem:[#allocation2 + $0x58] sm:$0xf] %vm46_vm1, %v8081_v0 }
  0x54   :  { %62 = vst.msk [vmem:[#allocation2 + $0x88] sm:$0xf] %vm46_vm1, %v8081_v0 }
  0x55   :  { %65 = vst.msk [vmem:[#allocation2 + $0xa0] sm:$0xf] %vm46_vm1, %v8081_v0 }
  0x56   :  { %v346_v4 = vld [vmem:[#allocation2 + $0x61] ss:$2 sm:$0xff]  ;;  %68 = vst.msk [vmem:[#allocation2 + $0xb8] sm:$0xf] %vm46_vm1, %v8081_v0  ;;  %v459_v45 = vld [vmem:[#allocation2 + $0x62] ss:$2 sm:$0xff] }
  0x57   :  { %393 = vrot.lane.b32.xlu1 %v346_v4, %s8082_s21  ;;  %71 = vst.msk [vmem:[#allocation2 + $0xd0] sm:$0xf] %vm46_vm1, %v8081_v0  ;;  %v455_v43 = vld [vmem:[#allocation2 + $0x2] ss:$2 sm:$0xff]  ;;  %v572_v3 = vld [vmem:[#allocation2 + $0x63] ss:$2 sm:$0xff] }
  0x58   :  { %74 = vst.msk [vmem:[#allocation2 + $0xe8] sm:$0xf] %vm46_vm1, %v8081_v0  ;;  %v298_v63 = vld [vmem:[#allocation2 + $0x60] ss:$2 sm:$0xff] }
  0x59   :  { %77 = vst.msk [vmem:[#allocation2 + $0x100] sm:$0xf] %vm46_vm1, %v8081_v0 }
  0x5a   :  { %80 = vst.msk [vmem:[#allocation2 + $0x118] sm:$0xf] %vm46_vm1, %v8081_v0 }
  0x5b   :  { %83 = vst.msk [vmem:[#allocation2 + $0x130] sm:$0xf] %vm46_vm1, %v8081_v0 }
  0x5c   :  { %86 = vst.msk [vmem:[#allocation2 + $0x148] sm:$0xf] %vm46_vm1, %v8081_v0 }
  0x5d   :  { %89 = vst.msk [vmem:[#allocation2 + $0x160] sm:$0xf] %vm46_vm1, %v8081_v0 }
  0x5e   :  { %92 = vst.msk [vmem:[#allocation2 + $0x178] sm:$0xf] %vm46_vm1, %v8081_v0 }
  0x5f   :  { %95 = vst.msk [vmem:[#allocation2 + $0x190] sm:$0xf] %vm46_vm1, %v8081_v0 }
  0x60   :  { %98 = vst.msk [vmem:[#allocation2 + $0x1a8] sm:$0xf] %vm46_vm1, %v8081_v0 }
  0x61   :  { %101 = vst.msk [vmem:[#allocation2 + $0x1c0] sm:$0xf] %vm46_vm1, %v8081_v0 }
  0x62   :  { %107 = vst.msk [vmem:[#allocation2 + $0x1f0] sm:$0xf] %vm46_vm1, %v8081_v0 }
  0x63   :  { %110 = vst.msk [vmem:[#allocation2 + $0x208] sm:$0xf] %vm46_vm1, %v8081_v0 }
  0x64   :  { %113 = vst.msk [vmem:[#allocation2 + $0x220] sm:$0xf] %vm46_vm1, %v8081_v0 }
  0x65   :  { %116 = vst.msk [vmem:[#allocation2 + $0x238] sm:$0xf] %vm46_vm1, %v8081_v0 }
  0x66   :  { %119 = vst.msk [vmem:[#allocation2 + $0x250] sm:$0xf] %vm46_vm1, %v8081_v0 }
  0x67   :  { %122 = vst.msk [vmem:[#allocation2 + $0x268] sm:$0xf] %vm46_vm1, %v8081_v0 }
  0x68   :  { %125 = vst.msk [vmem:[#allocation2 + $0x280] sm:$0xf] %vm46_vm1, %v8081_v0 }
  0x69   :  { %128 = vst.msk [vmem:[#allocation2 + $0x298] sm:$0xf] %vm46_vm1, %v8081_v0  ;;  %v471_v51 = vld [vmem:[#allocation2 + $0x1e2] ss:$2 sm:$0xff] }
  0x6a   :  { %131 = vst.msk [vmem:[#allocation2 + $0x2b0] sm:$0xf] %vm46_vm1, %v8081_v0 }
  0x6b   :  { %134 = vst.msk [vmem:[#allocation2 + $0x2c8] sm:$0xf] %vm46_vm1, %v8081_v0 }
  0x6c   :  { %137 = vst.msk [vmem:[#allocation2 + $0x2e0] sm:$0xf] %vm46_vm1, %v8081_v0 }
  0x6d   :  { %140 = vst.msk [vmem:[#allocation2 + $0x2f8] sm:$0xf] %vm46_vm1, %v8081_v0 }
  0x6e   :  { %143 = vst.msk [vmem:[#allocation2 + $0x310] sm:$0xf] %vm46_vm1, %v8081_v0 }
  0x6f   :  { %146 = vst.msk [vmem:[#allocation2 + $0x328] sm:$0xf] %vm46_vm1, %v8081_v0 }
  0x70   :  { %149 = vst.msk [vmem:[#allocation2 + $0x340] sm:$0xf] %vm46_vm1, %v8081_v0 }
  0x71   :  { %152 = vst.msk [vmem:[#allocation2 + $0x358] sm:$0xf] %vm46_vm1, %v8081_v0 }
  0x72   :  { %155 = vst.msk [vmem:[#allocation2 + $0x370] sm:$0xf] %vm46_vm1, %v8081_v0 }
  0x73   :  { %158 = vst.msk [vmem:[#allocation2 + $0x388] sm:$0xf] %vm46_vm1, %v8081_v0 }
  0x74   :  { %161 = vst.msk [vmem:[#allocation2 + $0x3a0] sm:$0xf] %vm46_vm1, %v8081_v0  ;;  %vm2018_vm1 = vcmask 523744  }
  0x75   :  { %230 = vst.msk [vmem:[#allocation2 + $0x32] sm:$0xff] %vm43_vm0, %v165_v5 }
  0x76   :  { %231 = vst.msk [vmem:[#allocation2 + $0x3a] sm:$0xff] %vm43_vm0, %v166_v6 }
  0x77   :  { %238 = vst.msk [vmem:[#allocation2 + $0x92] sm:$0xff] %vm43_vm0, %v173_v7 }
  0x78   :  { %239 = vst.msk [vmem:[#allocation2 + $0x9a] sm:$0xff] %vm43_vm0, %v174_v8 }
  0x79   :  { %250 = vst.msk [vmem:[#allocation2 + $0x122] sm:$0xff] %vm43_vm0, %v185_v9 }
  0x7a   :  { %251 = vst.msk [vmem:[#allocation2 + $0x12a] sm:$0xff] %vm43_vm0, %v186_v10  ;;  %v568_v10 = vld [vmem:[#allocation2 + $0x3] ss:$2 sm:$0xff] }
  0x7b   :  { %254 = vst.msk [vmem:[#allocation2 + $0x152] sm:$0xff] %vm43_vm0, %v189_v11 }
  0x7c   :  { %255 = vst.msk [vmem:[#allocation2 + $0x15a] sm:$0xff] %vm43_vm0, %v190_v12  ;;  %v390_v60 = vpop.permute.xlu0 %389  ;;  %v310_v12 = vld [vmem:[#allocation2 + $0x1e0] ss:$2 sm:$0xff] }
  0x7d   :  { %v344_v16 = vld [vmem:[#allocation2 + $0x31] ss:$2 sm:$0xff]  ;;  %262 = vst.msk [vmem:[#allocation2 + $0x212] sm:$0xff] %vm43_vm0, %v197_v13  ;;  %v457_v50 = vld [vmem:[#allocation2 + $0x32] ss:$2 sm:$0xff] }
  0x7e   :  { %391 = vrot.lane.b32.xlu0 %v344_v16, %s8082_s21  ;;  %263 = vst.msk [vmem:[#allocation2 + $0x21a] sm:$0xff] %vm43_vm0, %v198_v14  ;;  %v570_v2 = vld [vmem:[#allocation2 + $0x33] ss:$2 sm:$0xff]  ;;  %v296_v5 = vld [vmem:[#allocation2 + $0x30] ss:$2 sm:$0xff] }
  0x7f   :  { %v348_v19 = vld [vmem:[#allocation2 + $0x91] ss:$2 sm:$0xff]  ;;  %242 = vst.msk [vmem:[#allocation2 + $0xc2] sm:$0xff] %vm43_vm0, %v177_v15  ;;  %v461_v46 = vld [vmem:[#allocation2 + $0x92] ss:$2 sm:$0xff] }
  0x80   :  { %395 = vrot.lane.b32.xlu1 %v348_v19, %s8082_s21  ;;  %243 = vst.msk [vmem:[#allocation2 + $0xca] sm:$0xff] %vm43_vm0, %v178_v17  ;;  %v300_v7 = vld [vmem:[#allocation2 + $0x90] ss:$2 sm:$0xff]  ;;  %v584_v15 = vld [vmem:[#allocation2 + $0x1e3] ss:$2 sm:$0xff] }
  0x81   :  { %266 = vst.msk [vmem:[#allocation2 + $0x242] sm:$0xff] %vm43_vm0, %v201_v18  ;;  %v354_v24 = vld [vmem:[#allocation2 + $0x121] ss:$2 sm:$0xff]  ;;  %v467_v49 = vld [vmem:[#allocation2 + $0x122] ss:$2 sm:$0xff] }
  0x82   :  { %267 = vst.msk [vmem:[#allocation2 + $0x24a] sm:$0xff] %vm43_vm0, %v202_v20  ;;  %v306_v11 = vld [vmem:[#allocation2 + $0x120] ss:$2 sm:$0xff]  ;;  %v574_v16 = vld [vmem:[#allocation2 + $0x93] ss:$2 sm:$0xff] }
  0x83   :  { %274 = vst.msk [vmem:[#allocation2 + $0x2a2] sm:$0xff] %vm43_vm0, %v209_v21  ;;  %v356_v27 = vld [vmem:[#allocation2 + $0x151] ss:$2 sm:$0xff]  ;;  %v469_v56 = vld [vmem:[#allocation2 + $0x152] ss:$2 sm:$0xff] }
  0x84   :  { %275 = vst.msk [vmem:[#allocation2 + $0x2aa] sm:$0xff] %vm43_vm0, %v210_v22  ;;  %v308_v13 = vld [vmem:[#allocation2 + $0x150] ss:$2 sm:$0xff]  ;;  %v582_v14 = vld [vmem:[#allocation2 + $0x153] ss:$2 sm:$0xff] }
  0x85   :  { %246 = vst.msk [vmem:[#allocation2 + $0xf2] sm:$0xff] %vm43_vm0, %v181_v23  ;;  %v360_v35 = vld [vmem:[#allocation2 + $0x211] ss:$2 sm:$0xff]  ;;  %v473_v52 = vld [vmem:[#allocation2 + $0x212] ss:$2 sm:$0xff] }
  0x86   :  { %401 = vrot.lane.b32.xlu0 %v354_v24, %s8082_s21  ;;  %247 = vst.msk [vmem:[#allocation2 + $0xfa] sm:$0xff] %vm43_vm0, %v182_v25  ;;  %v312_v17 = vld [vmem:[#allocation2 + $0x210] ss:$2 sm:$0xff]  ;;  %v580_v23 = vld [vmem:[#allocation2 + $0x123] ss:$2 sm:$0xff] }
  0x87   :  { %v350_v30 = vld [vmem:[#allocation2 + $0xc1] ss:$2 sm:$0xff]  ;;  %278 = vst.msk [vmem:[#allocation2 + $0x2d2] sm:$0xff] %vm43_vm0, %v213_v26  ;;  %v463_v53 = vld [vmem:[#allocation2 + $0xc2] ss:$2 sm:$0xff] }
  0x88   :  { %403 = vrot.lane.b32.xlu1 %v356_v27, %s8082_s21  ;;  %397 = vrot.lane.b32.xlu2 %v350_v30, %s8082_s21  ;;  %279 = vst.msk [vmem:[#allocation2 + $0x2da] sm:$0xff] %vm43_vm0, %v214_v28  ;;  %v302_v62 = vld [vmem:[#allocation2 + $0xc0] ss:$2 sm:$0xff]  ;;  %v576_v8 = vld [vmem:[#allocation2 + $0xc3] ss:$2 sm:$0xff] }
  0x89   :  { %286 = vst.msk [vmem:[#allocation2 + $0x332] sm:$0xff] %vm43_vm0, %v221_v29  ;;  %v362_v37 = vld [vmem:[#allocation2 + $0x241] ss:$2 sm:$0xff]  ;;  %v475_v59 = vld [vmem:[#allocation2 + $0x242] ss:$2 sm:$0xff] }
  0x8a   :  { %287 = vst.msk [vmem:[#allocation2 + $0x33a] sm:$0xff] %vm43_vm0, %v222_v31  ;;  %v314_v19 = vld [vmem:[#allocation2 + $0x240] ss:$2 sm:$0xff]  ;;  %v588_v21 = vld [vmem:[#allocation2 + $0x243] ss:$2 sm:$0xff] }
  0x8b   :  { %270 = vst.msk [vmem:[#allocation2 + $0x272] sm:$0xff] %vm43_vm0, %v205_v32  ;;  %v366_v39 = vld [vmem:[#allocation2 + $0x2a1] ss:$2 sm:$0xff]  ;;  %v479_v55 = vld [vmem:[#allocation2 + $0x2a2] ss:$2 sm:$0xff] }
  0x8c   :  { %271 = vst.msk [vmem:[#allocation2 + $0x27a] sm:$0xff] %vm43_vm0, %v206_v33  ;;  %v318_v24 = vld [vmem:[#allocation2 + $0x2a0] ss:$2 sm:$0xff]  ;;  %v586_v30 = vld [vmem:[#allocation2 + $0x213] ss:$2 sm:$0xff] }
  0x8d   :  { %v352_v38 = vld [vmem:[#allocation2 + $0xf1] ss:$2 sm:$0xff]  ;;  %282 = vst.msk [vmem:[#allocation2 + $0x302] sm:$0xff] %vm43_vm0, %v217_v34  ;;  %v465_v48 = vld [vmem:[#allocation2 + $0xf2] ss:$2 sm:$0xff] }
  0x8e   :  { %407 = vrot.lane.b32.xlu0 %v360_v35, %s8082_s21  ;;  %283 = vst.msk [vmem:[#allocation2 + $0x30a] sm:$0xff] %vm43_vm0, %v218_v36  ;;  %v304_v6 = vld [vmem:[#allocation2 + $0xf0] ss:$2 sm:$0xff]  ;;  %v578_v9 = vld [vmem:[#allocation2 + $0xf3] ss:$2 sm:$0xff] }
  0x8f   :  { %v368_v40 = vld [vmem:[#allocation2 + $0x2d1] ss:$2 sm:$0xff]  ;;  %325 = vst.msk [vmem:[#allocation5] sm:$0xff] %vm43_vm0, %v294_v61  ;;  %v481_v4 = vld [vmem:[#allocation2 + $0x2d2] ss:$2 sm:$0xff] }
  0x90   :  { %409 = vrot.lane.b32.xlu1 %v362_v37, %s8082_s21  ;;  %399 = vrot.lane.b32.xlu2 %v352_v38, %s8082_s21  ;;  %438 = vst.msk [vmem:[#allocation5] sm:$0xff] %vm437_vm2, %v390_v60  ;;  %v320_v26 = vld [vmem:[#allocation2 + $0x2d0] ss:$2 sm:$0xff]  ;;  %v594_v28 = vld [vmem:[#allocation2 + $0x2d3] ss:$2 sm:$0xff] }
  0x91   :  { %v372_v42 = vld [vmem:[#allocation2 + $0x331] ss:$2 sm:$0xff]  ;;  %v485_v58 = vld [vmem:[#allocation2 + $0x332] ss:$2 sm:$0xff]  ;;  %329 = vst.msk [vmem:[#allocation5 + $0x20] sm:$0xff] %vm43_vm0, %v302_v62 }
  0x92   :  { %327 = vst.msk [vmem:[#allocation5 + $0x10] sm:$0xff] %vm43_vm0, %v298_v63  ;;  %v324_v32 = vld [vmem:[#allocation2 + $0x330] ss:$2 sm:$0xff]  ;;  %v592_v37 = vld [vmem:[#allocation2 + $0x2a3] ss:$2 sm:$0xff] }
  0x93   :  { %v364_v44 = vld [vmem:[#allocation2 + $0x271] ss:$2 sm:$0xff]  ;;  %v477_v54 = vld [vmem:[#allocation2 + $0x272] ss:$2 sm:$0xff]  ;;  %326 = vst.msk [vmem:[#allocation5 + $0x8] sm:$0xff] %vm43_vm0, %v296_v5 }
  0x94   :  { %330 = vst.msk [vmem:[#allocation5 + $0x28] sm:$0xff] %vm43_vm0, %v304_v6  ;;  %v316_v18 = vld [vmem:[#allocation2 + $0x270] ss:$2 sm:$0xff]  ;;  %v590_v22 = vld [vmem:[#allocation2 + $0x273] ss:$2 sm:$0xff]  ;;  %v199_v6 = vld [vmem:[%s10927_s0 + $0x110] sm:$0xff] }
  0x95   :  { %v370_v47 = vld [vmem:[#allocation2 + $0x301] ss:$2 sm:$0xff]  ;;  %v483_v57 = vld [vmem:[#allocation2 + $0x302] ss:$2 sm:$0xff]  ;;  %328 = vst.msk [vmem:[#allocation5 + $0x18] sm:$0xff] %vm43_vm0, %v300_v7 }
  0x96   :  { %413 = vrot.lane.b32.xlu0 %v366_v39, %s8082_s21  ;;  %331 = vst.msk [vmem:[#allocation5 + $0x30] sm:$0xff] %vm43_vm0, %v306_v11  ;;  %v322_v25 = vld [vmem:[#allocation2 + $0x300] ss:$2 sm:$0xff]  ;;  %v596_v29 = vld [vmem:[#allocation2 + $0x303] ss:$2 sm:$0xff] }
  0x97   :  { %333 = vst.msk [vmem:[#allocation5 + $0x40] sm:$0xff] %vm43_vm0, %v310_v12  ;;  %v681_v35 = vld [vmem:[#allocation2 + $0x4] ss:$2 sm:$0xff]  ;;  %v683_v36 = vld [vmem:[#allocation2 + $0x34] ss:$2 sm:$0xff] }
  0x98   :  { %415 = vrot.lane.b32.xlu1 %v368_v40, %s8082_s21  ;;  %405 = vrot.lane.b32.xlu2 %v358_v41, %s8082_s21  ;;  %332 = vst.msk [vmem:[#allocation5 + $0x38] sm:$0xff] %vm43_vm0, %v308_v13  ;;  %v687_v41 = vld [vmem:[#allocation2 + $0x94] ss:$2 sm:$0xff]  ;;  %v701_v62 = vld [vmem:[#allocation2 + $0x244] ss:$2 sm:$0xff] }
  0x99   :  { %334 = vst.msk [vmem:[#allocation5 + $0x48] sm:$0xff] %vm43_vm0, %v312_v17  ;;  %v188_v60 = vld [vmem:[%s10927_s0 + $0xb8] sm:$0xff]  ;;  %v207_v11 = vld [vmem:[%s10927_s0 + $0x150] sm:$0xff] }
  0x9a   :  { %336 = vst.msk [vmem:[#allocation5 + $0x58] sm:$0xff] %vm43_vm0, %v316_v18  ;;  %v699_v61 = vld [vmem:[#allocation2 + $0x214] ss:$2 sm:$0xff]  ;;  %v705_v7 = vld [vmem:[#allocation2 + $0x2a4] ss:$2 sm:$0xff] }
  0x9b   :  { %335 = vst.msk [vmem:[#allocation5 + $0x50] sm:$0xff] %vm43_vm0, %v314_v19  ;;  %v691_v63 = vld [vmem:[#allocation2 + $0xf4] ss:$2 sm:$0xff]  ;;  %v179_v13 = vld [vmem:[%s10927_s0 + $0x70] sm:$0xff] }
  0x9c   :  { %337 = vst.msk [vmem:[#allocation5 + $0x60] sm:$0xff] %vm43_vm0, %v318_v24  ;;  %v208_v12 = vld [vmem:[%s10927_s0 + $0x158] sm:$0xff]  ;;  %v211_v19 = vld [vmem:[%s10927_s0 + $0x170] sm:$0xff] }
  0x9d   :  { %339 = vst.msk [vmem:[#allocation5 + $0x70] sm:$0xff] %vm43_vm0, %v322_v25  ;;  %v180_v17 = vld [vmem:[%s10927_s0 + $0x78] sm:$0xff] }
  0x9e   :  { %419 = vrot.lane.b32.xlu0 %v372_v42, %s8082_s21  ;;  %338 = vst.msk [vmem:[#allocation5 + $0x68] sm:$0xff] %vm43_vm0, %v320_v26  ;;  %v689_v42 = vld [vmem:[#allocation2 + $0xc4] ss:$2 sm:$0xff]  ;;  %v711_v18 = vld [vmem:[#allocation2 + $0x334] ss:$2 sm:$0xff] }
  0x9f   :  { %340 = vst.msk [vmem:[#allocation5 + $0x78] sm:$0xff] %vm43_vm0, %v324_v32  ;;  %v220_v24 = vld [vmem:[%s10927_s0 + $0x1b8] sm:$0xff] }
  0xa0   :  { %502 = vrot.lane.b32.xlu1 %v455_v43, %s8083_s27  ;;  %411 = vrot.lane.b32.xlu2 %v364_v44, %s8082_s21  ;;  %v598_v43 = vld [vmem:[#allocation2 + $0x333] ss:$2 sm:$0xff]  ;;  %v171_v44 = vld [vmem:[%s10927_s0 + $0x30] sm:$0xff]  ;;  %253 = vst.msk [vmem:[#allocation2 + $0x142] sm:$0xff] %vm43_vm0, %v188_v60 }
  0xa1   :  { %236 = vst.msk [vmem:[#allocation2 + $0x7a] sm:$0xff] %vm43_vm0, %v171_v44  ;;  %v216_v44 = vld [vmem:[%s10927_s0 + $0x198] sm:$0xff] }
  0xa2   :  { %264 = vst.msk [vmem:[#allocation2 + $0x22a] sm:$0xff] %vm43_vm0, %v199_v6 }
  0xa3   :  { %272 = vst.msk [vmem:[#allocation2 + $0x28a] sm:$0xff] %vm43_vm0, %v207_v11  ;;  %v907_v11 = vld [vmem:[#allocation2 + $0x19] ss:$2 sm:$0xff] }
  0xa4   :  { %273 = vst.msk [vmem:[#allocation2 + $0x292] sm:$0xff] %vm43_vm0, %v208_v12 }
  0xa5   :  { %244 = vst.msk [vmem:[#allocation2 + $0xda] sm:$0xff] %vm43_vm0, %v179_v13 }
  0xa6   :  { %506 = vrot.lane.b32.xlu0 %v459_v45, %s8083_s27  ;;  %v172_v45 = vld [vmem:[%s10927_s0 + $0x38] sm:$0xff]  ;;  %245 = vst.msk [vmem:[#allocation2 + $0xe2] sm:$0xff] %vm43_vm0, %v180_v17 }
  0xa7   :  { %237 = vst.msk [vmem:[#allocation2 + $0x82] sm:$0xff] %vm43_vm0, %v172_v45 }
  0xa8   :  { %508 = vrot.lane.b32.xlu1 %v461_v46, %s8083_s27  ;;  %417 = vrot.lane.b32.xlu2 %v370_v47, %s8082_s21  ;;  %s8084_s21 = smov 12   ;;  %v175_v46 = vld [vmem:[%s10927_s0 + $0x50] sm:$0xff]  ;;  %276 = vst.msk [vmem:[#allocation2 + $0x2ba] sm:$0xff] %vm43_vm0, %v211_v19 }
  0xa9   :  { %240 = vst.msk [vmem:[#allocation2 + $0xaa] sm:$0xff] %vm43_vm0, %v175_v46 }
  0xaa   :  { %285 = vst.msk [vmem:[#allocation2 + $0x322] sm:$0xff] %vm43_vm0, %v220_v24 }
  0xab   :  { %281 = vst.msk [vmem:[#allocation2 + $0x2f2] sm:$0xff] %vm43_vm0, %v216_v44 }
  0xae   :  { %512 = vrot.lane.b32.xlu0 %v465_v48, %s8083_s27 }
  0xb0   :  { %514 = vrot.lane.b32.xlu1 %v467_v49, %s8083_s27  ;;  %504 = vrot.lane.b32.xlu2 %v457_v50, %s8083_s27  ;;  %v176_v50 = vld [vmem:[%s10927_s0 + $0x58] sm:$0xff] }
  0xb1   :  { %241 = vst.msk [vmem:[#allocation2 + $0xb2] sm:$0xff] %vm43_vm0, %v176_v50  ;;  %v802_v50 = vld [vmem:[#allocation2 + $0xd8] ss:$2 sm:$0xff] }
  0xb6   :  { %518 = vrot.lane.b32.xlu0 %v471_v51, %s8083_s27  ;;  %v693_v51 = vld [vmem:[#allocation2 + $0x124] ss:$2 sm:$0xff] }
  0xb8   :  { %520 = vrot.lane.b32.xlu1 %v473_v52, %s8083_s27  ;;  %510 = vrot.lane.b32.xlu2 %v463_v53, %s8083_s27  ;;  %v695_v52 = vld [vmem:[#allocation2 + $0x154] ss:$2 sm:$0xff]  ;;  %v685_v53 = vld [vmem:[#allocation2 + $0x64] ss:$2 sm:$0xff]  ;;  %v913_v17 = vld [vmem:[#allocation2 + $0xa9] ss:$2 sm:$0xff] }
  0xb9   :  { %v800_v32 = vld [vmem:[#allocation2 + $0xa8] ss:$2 sm:$0xff] }
  0xbe   :  { %524 = vrot.lane.b32.xlu0 %v477_v54, %s8083_s27  ;;  %v183_v54 = vld [vmem:[%s10927_s0 + $0x90] sm:$0xff] }
  0xbf   :  { %248 = vst.msk [vmem:[#allocation2 + $0x10a] sm:$0xff] %vm43_vm0, %v183_v54  ;;  %v816_v54 = vld [vmem:[#allocation2 + $0x288] ss:$2 sm:$0xff] }
  0xc0   :  { %526 = vrot.lane.b32.xlu1 %v479_v55, %s8083_s27  ;;  %516 = vrot.lane.b32.xlu2 %v469_v56, %s8083_s27  ;;  %v184_v55 = vld [vmem:[%s10927_s0 + $0x98] sm:$0xff]  ;;  %v187_v56 = vld [vmem:[%s10927_s0 + $0xb0] sm:$0xff] }
  0xc1   :  { %249 = vst.msk [vmem:[#allocation2 + $0x112] sm:$0xff] %vm43_vm0, %v184_v55 }
  0xc2   :  { %252 = vst.msk [vmem:[#allocation2 + $0x13a] sm:$0xff] %vm43_vm0, %v187_v56 }
  0xc6   :  { %530 = vrot.lane.b32.xlu0 %v483_v57, %s8083_s27 }
  0xc8   :  { %532 = vrot.lane.b32.xlu1 %v485_v58, %s8083_s27  ;;  %522 = vrot.lane.b32.xlu2 %v475_v59, %s8083_s27 }
  0xc9   :  { %v394_v1 = vpop.permute.xlu1 %393 }
  0xca   :  { %440 = vst.msk [vmem:[#allocation5 + $0x10] sm:$0xff] %vm437_vm2, %v394_v1  ;;  %v167_v1 = vld [vmem:[%s10927_s0 + $0x10] sm:$0xff] }
  0xcb   :  { %232 = vst.msk [vmem:[#allocation2 + $0x4a] sm:$0xff] %vm43_vm0, %v167_v1 }
  0xce   :  { %617 = vrot.lane.b32.xlu0 %v570_v2, %s8084_s21  ;;  %v168_v2 = vld [vmem:[%s10927_s0 + $0x18] sm:$0xff] }
  0xcf   :  { %233 = vst.msk [vmem:[#allocation2 + $0x52] sm:$0xff] %vm43_vm0, %v168_v2 }
  0xd0   :  { %619 = vrot.lane.b32.xlu1 %v572_v3, %s8084_s21  ;;  %528 = vrot.lane.b32.xlu2 %v481_v4, %s8083_s27  ;;  %s8104_s27 = smov 92  }
  0xd6   :  { %623 = vrot.lane.b32.xlu0 %v576_v8, %s8084_s21  ;;  %v200_v8 = vld [vmem:[%s10927_s0 + $0x118] sm:$0xff] }
  0xd7   :  { %265 = vst.msk [vmem:[#allocation2 + $0x232] sm:$0xff] %vm43_vm0, %v200_v8 }
  0xd8   :  { %625 = vrot.lane.b32.xlu1 %v578_v9, %s8084_s21  ;;  %615 = vrot.lane.b32.xlu2 %v568_v10, %s8084_s21  ;;  %v707_v9 = vld [vmem:[#allocation2 + $0x2d4] ss:$2 sm:$0xff]  ;;  %v697_v10 = vld [vmem:[#allocation2 + $0x1e4] ss:$2 sm:$0xff] }
  0xde   :  { %629 = vrot.lane.b32.xlu0 %v582_v14, %s8084_s21 }
  0xe0   :  { %631 = vrot.lane.b32.xlu1 %v584_v15, %s8084_s21  ;;  %621 = vrot.lane.b32.xlu2 %v574_v16, %s8084_s21 }
  0xe2   :  { %v398_v20 = vpop.permute.xlu2 %397 }
  0xe3   :  { %442 = vst.msk [vmem:[#allocation5 + $0x20] sm:$0xff] %vm437_vm2, %v398_v20  ;;  %v212_v20 = vld [vmem:[%s10927_s0 + $0x178] sm:$0xff] }
  0xe4   :  { %277 = vst.msk [vmem:[#allocation2 + $0x2c2] sm:$0xff] %vm43_vm0, %v212_v20 }
  0xe6   :  { %635 = vrot.lane.b32.xlu0 %v588_v21, %s8084_s21  ;;  %v794_v21 = vld [vmem:[#allocation2 + $0x18] ss:$2 sm:$0xff] }
  0xe8   :  { %637 = vrot.lane.b32.xlu1 %v590_v22, %s8084_s21  ;;  %627 = vrot.lane.b32.xlu2 %v580_v23, %s8084_s21  ;;  %v703_v22 = vld [vmem:[#allocation2 + $0x274] ss:$2 sm:$0xff]  ;;  %v219_v23 = vld [vmem:[%s10927_s0 + $0x1b0] sm:$0xff] }
  0xe9   :  { %284 = vst.msk [vmem:[#allocation2 + $0x31a] sm:$0xff] %vm43_vm0, %v219_v23  ;;  %v919_v23 = vld [vmem:[#allocation2 + $0x139] ss:$2 sm:$0xff] }
  0xea   :  { %v400_v27 = vpop.permute.xlu2 %399 }
  0xeb   :  { %443 = vst.msk [vmem:[#allocation5 + $0x28] sm:$0xff] %vm437_vm2, %v400_v27  ;;  %v818_v55 = vld [vmem:[#allocation2 + $0x2b8] ss:$2 sm:$0xff] }
  0xee   :  { %641 = vrot.lane.b32.xlu0 %v594_v28, %s8084_s21  ;;  %v191_v28 = vld [vmem:[%s10927_s0 + $0xd0] sm:$0xff] }
  0xef   :  { %256 = vst.msk [vmem:[#allocation2 + $0x16a] sm:$0xff] %vm43_vm0, %v191_v28 }
  0xf0   :  { %643 = vrot.lane.b32.xlu1 %v596_v29, %s8084_s21  ;;  %v392_v31 = vpop.permute.xlu0 %391  ;;  %633 = vrot.lane.b32.xlu2 %v586_v30, %s8084_s21  ;;  %v798_v29 = vld [vmem:[#allocation2 + $0x78] ss:$2 sm:$0xff]  ;;  %v192_v30 = vld [vmem:[%s10927_s0 + $0xd8] sm:$0xff]  ;;  %v935_v28 = vld [vmem:[#allocation2 + $0x319] ss:$2 sm:$0xff] }
  0xf1   :  { %439 = vst.msk [vmem:[#allocation5 + $0x8] sm:$0xff] %vm437_vm2, %v392_v31  ;;  %v223_v31 = vld [vmem:[%s10927_s0 + $0x1d0] sm:$0xff]  ;;  %v822_v60 = vld [vmem:[#allocation2 + $0x318] ss:$2 sm:$0xff] }
  0xf2   :  { %v396_v33 = vpop.permute.xlu1 %395  ;;  %v406_v34 = vpop.permute.xlu2 %405  ;;  %257 = vst.msk [vmem:[#allocation2 + $0x172] sm:$0xff] %vm43_vm0, %v192_v30 }
  0xf3   :  { %441 = vst.msk [vmem:[#allocation5 + $0x18] sm:$0xff] %vm437_vm2, %v396_v33  ;;  %v709_v33 = vld [vmem:[#allocation2 + $0x304] ss:$2 sm:$0xff] }
  0xf4   :  { %446 = vst.msk [vmem:[#allocation5 + $0x40] sm:$0xff] %vm437_vm2, %v406_v34  ;;  %v224_v34 = vld [vmem:[%s10927_s0 + $0x1d8] sm:$0xff] }
  0xf5   :  { %288 = vst.msk [vmem:[#allocation2 + $0x34a] sm:$0xff] %vm43_vm0, %v223_v31 }
  0xf6   :  { %728 = vrot.lane.b32.xlu0 %v681_v35, %s8085_s28  ;;  %v203_v35 = vld [vmem:[%s10927_s0 + $0x130] sm:$0xff]  ;;  %289 = vst.msk [vmem:[#allocation2 + $0x352] sm:$0xff] %vm43_vm0, %v224_v34 }
  0xf7   :  { %268 = vst.msk [vmem:[#allocation2 + $0x25a] sm:$0xff] %vm43_vm0, %v203_v35  ;;  %v1022_v34 = vld [vmem:[#allocation2 + $0x4a] ss:$2 sm:$0xff]  ;;  %v931_v35 = vld [vmem:[#allocation2 + $0x2b9] ss:$2 sm:$0xff] }
  0xf8   :  { %730 = vrot.lane.b32.xlu1 %v683_v36, %s8085_s28  ;;  %v402_v38 = vpop.permute.xlu0 %401  ;;  %639 = vrot.lane.b32.xlu2 %v592_v37, %s8084_s21 }
  0xf9   :  { %444 = vst.msk [vmem:[#allocation5 + $0x30] sm:$0xff] %vm437_vm2, %v402_v38  ;;  %v808_v56 = vld [vmem:[#allocation2 + $0x168] ss:$2 sm:$0xff] }
  0xfa   :  { %v404_v39 = vpop.permute.xlu1 %403  ;;  %v412_v40 = vpop.permute.xlu2 %411 }
  0xfb   :  { %445 = vst.msk [vmem:[#allocation5 + $0x38] sm:$0xff] %vm437_vm2, %v404_v39  ;;  %v204_v39 = vld [vmem:[%s10927_s0 + $0x138] sm:$0xff] }
  0xfc   :  { %449 = vst.msk [vmem:[#allocation5 + $0x58] sm:$0xff] %vm437_vm2, %v412_v40  ;;  %v804_v40 = vld [vmem:[#allocation2 + $0x108] ss:$2 sm:$0xff] }
  0xfd   :  { %269 = vst.msk [vmem:[#allocation2 + $0x262] sm:$0xff] %vm43_vm0, %v204_v39  ;;  %v1026_v39 = vld [vmem:[#allocation2 + $0xaa] ss:$2 sm:$0xff] }
  0xfe   :  { %734 = vrot.lane.b32.xlu0 %v687_v41, %s8085_s28  ;;  %v806_v41 = vld [vmem:[#allocation2 + $0x138] ss:$2 sm:$0xff] }
 0x100   :  { %736 = vrot.lane.b32.xlu1 %v689_v42, %s8085_s28  ;;  %v408_v47 = vpop.permute.xlu0 %407  ;;  %645 = vrot.lane.b32.xlu2 %v598_v43, %s8084_s21  ;;  %v796_v42 = vld [vmem:[#allocation2 + $0x48] ss:$2 sm:$0xff]  ;;  %s8105_s21 = smov 96  }
 0x101   :  { %447 = vst.msk [vmem:[#allocation5 + $0x48] sm:$0xff] %vm437_vm2, %v408_v47  ;;  %v215_v43 = vld [vmem:[%s10927_s0 + $0x190] sm:$0xff] }
 0x102   :  { %v410_v48 = vpop.permute.xlu1 %409  ;;  %v418_v49 = vpop.permute.xlu2 %417  ;;  %280 = vst.msk [vmem:[#allocation2 + $0x2ea] sm:$0xff] %vm43_vm0, %v215_v43 }
 0x103   :  { %448 = vst.msk [vmem:[#allocation5 + $0x50] sm:$0xff] %vm437_vm2, %v410_v48  ;;  %v810_v48 = vld [vmem:[#allocation2 + $0x1f8] ss:$2 sm:$0xff] }
 0x104   :  { %452 = vst.msk [vmem:[#allocation5 + $0x70] sm:$0xff] %vm437_vm2, %v418_v49  ;;  %v812_v49 = vld [vmem:[#allocation2 + $0x228] ss:$2 sm:$0xff] }
 0x106   :  { %740 = vrot.lane.b32.xlu0 %v693_v51, %s8085_s28 }
 0x108   :  { %742 = vrot.lane.b32.xlu1 %v695_v52, %s8085_s28  ;;  %v414_v57 = vpop.permute.xlu0 %413  ;;  %732 = vrot.lane.b32.xlu2 %v685_v53, %s8085_s28 }
 0x109   :  { %450 = vst.msk [vmem:[#allocation5 + $0x60] sm:$0xff] %vm437_vm2, %v414_v57 }
 0x10a   :  { %v416_v58 = vpop.permute.xlu1 %415  ;;  %v505_v59 = vpop.permute.xlu2 %504 }
 0x10b   :  { %451 = vst.msk [vmem:[#allocation5 + $0x68] sm:$0xff] %vm437_vm2, %v416_v58 }
 0x10c   :  { %552 = vst.msk [vmem:[#allocation5 + $0x8] sm:$0xff] %vm550_vm3, %v505_v59 }
 0x10e   :  { %746 = vrot.lane.b32.xlu0 %v699_v61, %s8085_s28  ;;  %v824_v61 = vld [vmem:[#allocation2 + $0x348] ss:$2 sm:$0xff] }
 0x110   :  { %748 = vrot.lane.b32.xlu1 %v701_v62, %s8085_s28  ;;  %v420_v3 = vpop.permute.xlu0 %419  ;;  %738 = vrot.lane.b32.xlu2 %v691_v63, %s8085_s28  ;;  %v814_v62 = vld [vmem:[#allocation2 + $0x258] ss:$2 sm:$0xff] }
 0x111   :  { %453 = vst.msk [vmem:[#allocation5 + $0x78] sm:$0xff] %vm437_vm2, %v420_v3  ;;  %v909_v3 = vld [vmem:[#allocation2 + $0x49] ss:$2 sm:$0xff]  ;;  %vm2131_vm2 = vcmask 556544  }
 0x112   :  { %v503_v4 = vpop.permute.xlu1 %502  ;;  %v511_v5 = vpop.permute.xlu2 %510 }
 0x113   :  { %551 = vst.msk [vmem:[#allocation5] sm:$0xff] %vm550_vm3, %v503_v4  ;;  %v911_v4 = vld [vmem:[#allocation2 + $0x79] ss:$2 sm:$0xff] }
 0x114   :  { %555 = vst.msk [vmem:[#allocation5 + $0x20] sm:$0xff] %vm550_vm3, %v511_v5  ;;  %v820_v5 = vld [vmem:[#allocation2 + $0x2e8] ss:$2 sm:$0xff] }
 0x116   :  { %752 = vrot.lane.b32.xlu0 %v705_v7, %s8085_s28 }
 0x118   :  { %754 = vrot.lane.b32.xlu1 %v707_v9, %s8085_s28  ;;  %v507_v14 = vpop.permute.xlu0 %506  ;;  %744 = vrot.lane.b32.xlu2 %v697_v10, %s8085_s28  ;;  %v915_v9 = vld [vmem:[#allocation2 + $0xd9] ss:$2 sm:$0xff]  ;;  %v917_v10 = vld [vmem:[#allocation2 + $0x109] ss:$2 sm:$0xff] }
 0x119   :  { %553 = vst.msk [vmem:[#allocation5 + $0x10] sm:$0xff] %vm550_vm3, %v507_v14 }
 0x11a   :  { %v509_v15 = vpop.permute.xlu1 %508  ;;  %v517_v16 = vpop.permute.xlu2 %516 }
 0x11b   :  { %554 = vst.msk [vmem:[#allocation5 + $0x18] sm:$0xff] %vm550_vm3, %v509_v15  ;;  %v921_v15 = vld [vmem:[#allocation2 + $0x169] ss:$2 sm:$0xff] }
 0x11c   :  { %558 = vst.msk [vmem:[#allocation5 + $0x38] sm:$0xff] %vm550_vm3, %v517_v16  ;;  %v923_v16 = vld [vmem:[#allocation2 + $0x1f9] ss:$2 sm:$0xff] }
 0x11e   :  { %758 = vrot.lane.b32.xlu0 %v711_v18, %s8085_s28 }
 0x120   :  { %841 = vrot.lane.b32.xlu1 %v794_v21, %s8086_s17  ;;  %v513_v25 = vpop.permute.xlu0 %512  ;;  %750 = vrot.lane.b32.xlu2 %v703_v22, %s8085_s28  ;;  %v927_v21 = vld [vmem:[#allocation2 + $0x259] ss:$2 sm:$0xff]  ;;  %v929_v22 = vld [vmem:[#allocation2 + $0x289] ss:$2 sm:$0xff] }
 0x121   :  { %556 = vst.msk [vmem:[#allocation5 + $0x28] sm:$0xff] %vm550_vm3, %v513_v25 }
 0x122   :  { %v515_v26 = vpop.permute.xlu1 %514  ;;  %v523_v27 = vpop.permute.xlu2 %522 }
 0x123   :  { %557 = vst.msk [vmem:[#allocation5 + $0x30] sm:$0xff] %vm550_vm3, %v515_v26 }
 0x124   :  { %561 = vst.msk [vmem:[#allocation5 + $0x50] sm:$0xff] %vm550_vm3, %v523_v27  ;;  %v933_v27 = vld [vmem:[#allocation2 + $0x2e9] ss:$2 sm:$0xff] }
 0x126   :  { %845 = vrot.lane.b32.xlu0 %v798_v29, %s8086_s17  ;;  %v925_v29 = vld [vmem:[#allocation2 + $0x229] ss:$2 sm:$0xff] }
 0x128   :  { %847 = vrot.lane.b32.xlu1 %v800_v32, %s8086_s17  ;;  %v519_v36 = vpop.permute.xlu0 %518  ;;  %756 = vrot.lane.b32.xlu2 %v709_v33, %s8085_s28  ;;  %v1020_v33 = vld [vmem:[#allocation2 + $0x1a] ss:$2 sm:$0xff] }
 0x129   :  { %559 = vst.msk [vmem:[#allocation5 + $0x40] sm:$0xff] %vm550_vm3, %v519_v36 }
 0x12a   :  { %v521_v37 = vpop.permute.xlu1 %520  ;;  %v529_v38 = vpop.permute.xlu2 %528 }
 0x12b   :  { %560 = vst.msk [vmem:[#allocation5 + $0x48] sm:$0xff] %vm550_vm3, %v521_v37 }
 0x12c   :  { %564 = vst.msk [vmem:[#allocation5 + $0x68] sm:$0xff] %vm550_vm3, %v529_v38 }
 0x12e   :  { %851 = vrot.lane.b32.xlu0 %v804_v40, %s8086_s17  ;;  %v1028_v40 = vld [vmem:[#allocation2 + $0xda] ss:$2 sm:$0xff] }
 0x130   :  { %853 = vrot.lane.b32.xlu1 %v806_v41, %s8086_s17  ;;  %v525_v45 = vpop.permute.xlu0 %524  ;;  %843 = vrot.lane.b32.xlu2 %v796_v42, %s8086_s17  ;;  %v937_v41 = vld [vmem:[#allocation2 + $0x349] ss:$2 sm:$0xff] }
 0x131   :  { %562 = vst.msk [vmem:[#allocation5 + $0x58] sm:$0xff] %vm550_vm3, %v525_v45  ;;  %v1032_v45 = vld [vmem:[#allocation2 + $0x13a] ss:$2 sm:$0xff] }
 0x132   :  { %v527_v46 = vpop.permute.xlu1 %526  ;;  %v616_v47 = vpop.permute.xlu2 %615 }
 0x133   :  { %563 = vst.msk [vmem:[#allocation5 + $0x60] sm:$0xff] %vm550_vm3, %v527_v46  ;;  %v1034_v46 = vld [vmem:[#allocation2 + $0x16a] ss:$2 sm:$0xff] }
 0x134   :  { %664 = vst.msk [vmem:[#allocation5] sm:$0xff] %vm663_vm4, %v616_v47  ;;  %v1024_v47 = vld [vmem:[#allocation2 + $0x7a] ss:$2 sm:$0xff] }
 0x136   :  { %857 = vrot.lane.b32.xlu0 %v810_v48, %s8086_s17 }
 0x138   :  { %859 = vrot.lane.b32.xlu1 %v812_v49, %s8086_s17  ;;  %v531_v51 = vpop.permute.xlu0 %530  ;;  %849 = vrot.lane.b32.xlu2 %v802_v50, %s8086_s17 }
 0x139   :  { %565 = vst.msk [vmem:[#allocation5 + $0x70] sm:$0xff] %vm550_vm3, %v531_v51  ;;  %v1038_v51 = vld [vmem:[#allocation2 + $0x22a] ss:$2 sm:$0xff] }
 0x13a   :  { %v533_v52 = vpop.permute.xlu1 %532  ;;  %v622_v53 = vpop.permute.xlu2 %621 }
 0x13b   :  { %566 = vst.msk [vmem:[#allocation5 + $0x78] sm:$0xff] %vm550_vm3, %v533_v52  ;;  %v1040_v52 = vld [vmem:[#allocation2 + $0x25a] ss:$2 sm:$0xff]  ;;  %vm3153_vm3 = vcmask 1041408  }
 0x13c   :  { %667 = vst.msk [vmem:[#allocation5 + $0x18] sm:$0xff] %vm663_vm4, %v622_v53  ;;  %v1030_v53 = vld [vmem:[#allocation2 + $0x10a] ss:$2 sm:$0xff] }
 0x13e   :  { %863 = vrot.lane.b32.xlu0 %v816_v54, %s8086_s17 }
 0x140   :  { %865 = vrot.lane.b32.xlu1 %v818_v55, %s8086_s17  ;;  %v618_v57 = vpop.permute.xlu0 %617  ;;  %855 = vrot.lane.b32.xlu2 %v808_v56, %s8086_s17 }
 0x141   :  { %665 = vst.msk [vmem:[#allocation5 + $0x8] sm:$0xff] %vm663_vm4, %v618_v57  ;;  %v1044_v57 = vld [vmem:[#allocation2 + $0x2ba] ss:$2 sm:$0xff] }
 0x142   :  { %v620_v58 = vpop.permute.xlu1 %619  ;;  %v628_v59 = vpop.permute.xlu2 %627 }
 0x143   :  { %666 = vst.msk [vmem:[#allocation5 + $0x10] sm:$0xff] %vm663_vm4, %v620_v58  ;;  %v1046_v58 = vld [vmem:[#allocation2 + $0x2ea] ss:$2 sm:$0xff] }
 0x144   :  { %670 = vst.msk [vmem:[#allocation5 + $0x30] sm:$0xff] %vm663_vm4, %v628_v59  ;;  %v1036_v59 = vld [vmem:[#allocation2 + $0x1fa] ss:$2 sm:$0xff] }
 0x146   :  { %869 = vrot.lane.b32.xlu0 %v822_v60, %s8086_s17 }
 0x148   :  { %871 = vrot.lane.b32.xlu1 %v824_v61, %s8086_s17  ;;  %v624_v63 = vpop.permute.xlu0 %623  ;;  %861 = vrot.lane.b32.xlu2 %v814_v62, %s8086_s17 }
 0x149   :  { %668 = vst.msk [vmem:[#allocation5 + $0x20] sm:$0xff] %vm663_vm4, %v624_v63  ;;  %v1050_v63 = vld [vmem:[#allocation2 + $0x34a] ss:$2 sm:$0xff] }
 0x14a   :  { %v626_v1 = vpop.permute.xlu1 %625  ;;  %v634_v2 = vpop.permute.xlu2 %633 }
 0x14b   :  { %669 = vst.msk [vmem:[#allocation5 + $0x28] sm:$0xff] %vm663_vm4, %v626_v1  ;;  %v1133_v1 = vld [vmem:[#allocation2 + $0x1b] ss:$2 sm:$0xff] }
 0x14c   :  { %673 = vst.msk [vmem:[#allocation5 + $0x48] sm:$0xff] %vm663_vm4, %v634_v2  ;;  %v1042_v2 = vld [vmem:[#allocation2 + $0x28a] ss:$2 sm:$0xff] }
 0x14e   :  { %956 = vrot.lane.b32.xlu0 %v909_v3, %s8087_s18 }
 0x150   :  { %958 = vrot.lane.b32.xlu1 %v911_v4, %s8087_s18  ;;  %v630_v6 = vpop.permute.xlu0 %629  ;;  %867 = vrot.lane.b32.xlu2 %v820_v5, %s8086_s17  ;;  %s8088_s17 = smov 28  }
 0x151   :  { %671 = vst.msk [vmem:[#allocation5 + $0x38] sm:$0xff] %vm663_vm4, %v630_v6  ;;  %v1137_v6 = vld [vmem:[#allocation2 + $0x7b] ss:$2 sm:$0xff] }
 0x152   :  { %v632_v7 = vpop.permute.xlu1 %631  ;;  %v640_v8 = vpop.permute.xlu2 %639 }
 0x153   :  { %672 = vst.msk [vmem:[#allocation5 + $0x40] sm:$0xff] %vm663_vm4, %v632_v7  ;;  %v1139_v7 = vld [vmem:[#allocation2 + $0xab] ss:$2 sm:$0xff] }
 0x154   :  { %676 = vst.msk [vmem:[#allocation5 + $0x60] sm:$0xff] %vm663_vm4, %v640_v8  ;;  %v1048_v8 = vld [vmem:[#allocation2 + $0x31a] ss:$2 sm:$0xff] }
 0x156   :  { %962 = vrot.lane.b32.xlu0 %v915_v9, %s8087_s18 }
 0x158   :  { %964 = vrot.lane.b32.xlu1 %v917_v10, %s8087_s18  ;;  %v636_v12 = vpop.permute.xlu0 %635  ;;  %954 = vrot.lane.b32.xlu2 %v907_v11, %s8087_s18 }
 0x159   :  { %674 = vst.msk [vmem:[#allocation5 + $0x50] sm:$0xff] %vm663_vm4, %v636_v12  ;;  %v1143_v12 = vld [vmem:[#allocation2 + $0x10b] ss:$2 sm:$0xff] }
 0x15a   :  { %v638_v13 = vpop.permute.xlu1 %637  ;;  %v646_v14 = vpop.permute.xlu2 %645 }
 0x15b   :  { %675 = vst.msk [vmem:[#allocation5 + $0x58] sm:$0xff] %vm663_vm4, %v638_v13  ;;  %v1145_v13 = vld [vmem:[#allocation2 + $0x13b] ss:$2 sm:$0xff] }
 0x15c   :  { %679 = vst.msk [vmem:[#allocation5 + $0x78] sm:$0xff] %vm663_vm4, %v646_v14  ;;  %v1135_v14 = vld [vmem:[#allocation2 + $0x4b] ss:$2 sm:$0xff] }
 0x15e   :  { %968 = vrot.lane.b32.xlu0 %v921_v15, %s8087_s18 }
 0x160   :  { %970 = vrot.lane.b32.xlu1 %v923_v16, %s8087_s18  ;;  %v642_v18 = vpop.permute.xlu0 %641  ;;  %960 = vrot.lane.b32.xlu2 %v913_v17, %s8087_s18 }
 0x161   :  { %677 = vst.msk [vmem:[#allocation5 + $0x68] sm:$0xff] %vm663_vm4, %v642_v18  ;;  %v1149_v18 = vld [vmem:[#allocation2 + $0x1fb] ss:$2 sm:$0xff] }
 0x162   :  { %v644_v19 = vpop.permute.xlu1 %643  ;;  %v733_v20 = vpop.permute.xlu2 %732 }
 0x163   :  { %678 = vst.msk [vmem:[#allocation5 + $0x70] sm:$0xff] %vm663_vm4, %v644_v19  ;;  %v1151_v19 = vld [vmem:[#allocation2 + $0x22b] ss:$2 sm:$0xff]  ;;  %vm2244_vm4 = vcmask 589344  }
 0x164   :  { %779 = vst.msk [vmem:[#allocation5 + $0x10] sm:$0xff] %vm776_vm5, %v733_v20  ;;  %v1141_v20 = vld [vmem:[#allocation2 + $0xdb] ss:$2 sm:$0xff] }
 0x166   :  { %974 = vrot.lane.b32.xlu0 %v927_v21, %s8087_s18 }
 0x168   :  { %976 = vrot.lane.b32.xlu1 %v929_v22, %s8087_s18  ;;  %v729_v24 = vpop.permute.xlu0 %728  ;;  %966 = vrot.lane.b32.xlu2 %v919_v23, %s8087_s18 }
 0x169   :  { %777 = vst.msk [vmem:[#allocation5] sm:$0xff] %vm776_vm5, %v729_v24  ;;  %v1155_v24 = vld [vmem:[#allocation2 + $0x28b] ss:$2 sm:$0xff] }
 0x16a   :  { %v731_v25 = vpop.permute.xlu1 %730  ;;  %v739_v26 = vpop.permute.xlu2 %738 }
 0x16b   :  { %778 = vst.msk [vmem:[#allocation5 + $0x8] sm:$0xff] %vm776_vm5, %v731_v25  ;;  %v1157_v25 = vld [vmem:[#allocation2 + $0x2bb] ss:$2 sm:$0xff] }
 0x16c   :  { %782 = vst.msk [vmem:[#allocation5 + $0x28] sm:$0xff] %vm776_vm5, %v739_v26  ;;  %v1147_v26 = vld [vmem:[#allocation2 + $0x16b] ss:$2 sm:$0xff] }
 0x16e   :  { %980 = vrot.lane.b32.xlu0 %v933_v27, %s8087_s18 }
 0x170   :  { %982 = vrot.lane.b32.xlu1 %v935_v28, %s8087_s18  ;;  %v735_v30 = vpop.permute.xlu0 %734  ;;  %972 = vrot.lane.b32.xlu2 %v925_v29, %s8087_s18 }
 0x171   :  { %780 = vst.msk [vmem:[#allocation5 + $0x18] sm:$0xff] %vm776_vm5, %v735_v30  ;;  %v1161_v30 = vld [vmem:[#allocation2 + $0x31b] ss:$2 sm:$0xff] }
 0x172   :  { %v737_v31 = vpop.permute.xlu1 %736  ;;  %v745_v32 = vpop.permute.xlu2 %744 }
 0x173   :  { %781 = vst.msk [vmem:[#allocation5 + $0x20] sm:$0xff] %vm776_vm5, %v737_v31  ;;  %v1163_v31 = vld [vmem:[#allocation2 + $0x34b] ss:$2 sm:$0xff] }
 0x174   :  { %785 = vst.msk [vmem:[#allocation5 + $0x40] sm:$0xff] %vm776_vm5, %v745_v32  ;;  %v1153_v32 = vld [vmem:[#allocation2 + $0x25b] ss:$2 sm:$0xff] }
 0x176   :  { %1067 = vrot.lane.b32.xlu0 %v1020_v33, %s8088_s17 }
 0x178   :  { %1069 = vrot.lane.b32.xlu1 %v1022_v34, %s8088_s17  ;;  %v741_v36 = vpop.permute.xlu0 %740  ;;  %978 = vrot.lane.b32.xlu2 %v931_v35, %s8087_s18 }
 0x179   :  { %783 = vst.msk [vmem:[#allocation5 + $0x30] sm:$0xff] %vm776_vm5, %v741_v36  ;;  %v1248_v36 = vld [vmem:[#allocation2 + $0x4c] ss:$2 sm:$0xff] }
 0x17a   :  { %v743_v37 = vpop.permute.xlu1 %742  ;;  %v751_v38 = vpop.permute.xlu2 %750 }
 0x17b   :  { %784 = vst.msk [vmem:[#allocation5 + $0x38] sm:$0xff] %vm776_vm5, %v743_v37  ;;  %v1250_v37 = vld [vmem:[#allocation2 + $0x7c] ss:$2 sm:$0xff] }
 0x17c   :  { %788 = vst.msk [vmem:[#allocation5 + $0x58] sm:$0xff] %vm776_vm5, %v751_v38  ;;  %v1159_v38 = vld [vmem:[#allocation2 + $0x2eb] ss:$2 sm:$0xff] }
 0x17e   :  { %1073 = vrot.lane.b32.xlu0 %v1026_v39, %s8088_s17 }
 0x180   :  { %1075 = vrot.lane.b32.xlu1 %v1028_v40, %s8088_s17  ;;  %v747_v42 = vpop.permute.xlu0 %746  ;;  %984 = vrot.lane.b32.xlu2 %v937_v41, %s8087_s18  ;;  %s8096_s18 = smov 60  }
 0x181   :  { %786 = vst.msk [vmem:[#allocation5 + $0x48] sm:$0xff] %vm776_vm5, %v747_v42  ;;  %v1254_v42 = vld [vmem:[#allocation2 + $0xdc] ss:$2 sm:$0xff] }
 0x182   :  { %v749_v43 = vpop.permute.xlu1 %748  ;;  %v757_v44 = vpop.permute.xlu2 %756 }
 0x183   :  { %787 = vst.msk [vmem:[#allocation5 + $0x50] sm:$0xff] %vm776_vm5, %v749_v43  ;;  %v1256_v43 = vld [vmem:[#allocation2 + $0x10c] ss:$2 sm:$0xff] }
 0x184   :  { %791 = vst.msk [vmem:[#allocation5 + $0x70] sm:$0xff] %vm776_vm5, %v757_v44  ;;  %v1246_v44 = vld [vmem:[#allocation2 + $0x1c] ss:$2 sm:$0xff] }
 0x186   :  { %1079 = vrot.lane.b32.xlu0 %v1032_v45, %s8088_s17 }
 0x188   :  { %1081 = vrot.lane.b32.xlu1 %v1034_v46, %s8088_s17  ;;  %v753_v48 = vpop.permute.xlu0 %752  ;;  %1071 = vrot.lane.b32.xlu2 %v1024_v47, %s8088_s17 }
 0x189   :  { %789 = vst.msk [vmem:[#allocation5 + $0x60] sm:$0xff] %vm776_vm5, %v753_v48  ;;  %v1260_v48 = vld [vmem:[#allocation2 + $0x16c] ss:$2 sm:$0xff] }
 0x18a   :  { %v755_v49 = vpop.permute.xlu1 %754  ;;  %v844_v50 = vpop.permute.xlu2 %843 }
 0x18b   :  { %790 = vst.msk [vmem:[#allocation5 + $0x68] sm:$0xff] %vm776_vm5, %v755_v49  ;;  %v1262_v49 = vld [vmem:[#allocation2 + $0x1fc] ss:$2 sm:$0xff] }
 0x18c   :  { %891 = vst.msk [vmem:[#allocation5 + $0x8] sm:$0xff] %vm889_vm6, %v844_v50  ;;  %v1252_v50 = vld [vmem:[#allocation2 + $0xac] ss:$2 sm:$0xff] }
 0x18e   :  { %1085 = vrot.lane.b32.xlu0 %v1038_v51, %s8088_s17  ;;  %v193_v51 = vld [vmem:[%s10927_s0 + $0xe0] sm:$0xff] }
 0x18f   :  { %258 = vst.msk [vmem:[#allocation2 + $0x182] sm:$0xff] %vm43_vm0, %v193_v51  ;;  %v1473_v51 = vld [vmem:[#allocation2 + $0x61] ss:$2 sm:$0xff] }
 0x190   :  { %1087 = vrot.lane.b32.xlu1 %v1040_v52, %s8088_s17  ;;  %v759_v54 = vpop.permute.xlu0 %758  ;;  %1077 = vrot.lane.b32.xlu2 %v1030_v53, %s8088_s17  ;;  %v194_v52 = vld [vmem:[%s10927_s0 + $0xe8] sm:$0xff] }
 0x191   :  { %792 = vst.msk [vmem:[#allocation5 + $0x78] sm:$0xff] %vm776_vm5, %v759_v54  ;;  %vm2357_vm5 = vcmask 622144  }
 0x192   :  { %v842_v55 = vpop.permute.xlu1 %841  ;;  %v850_v56 = vpop.permute.xlu2 %849  ;;  %259 = vst.msk [vmem:[#allocation2 + $0x18a] sm:$0xff] %vm43_vm0, %v194_v52 }
 0x193   :  { %890 = vst.msk [vmem:[#allocation5] sm:$0xff] %vm889_vm6, %v842_v55 }
 0x194   :  { %894 = vst.msk [vmem:[#allocation5 + $0x20] sm:$0xff] %vm889_vm6, %v850_v56  ;;  %v1266_v56 = vld [vmem:[#allocation2 + $0x25c] ss:$2 sm:$0xff] }
 0x196   :  { %1091 = vrot.lane.b32.xlu0 %v1044_v57, %s8088_s17  ;;  %v1268_v57 = vld [vmem:[#allocation2 + $0x28c] ss:$2 sm:$0xff] }
 0x198   :  { %1093 = vrot.lane.b32.xlu1 %v1046_v58, %s8088_s17  ;;  %v846_v60 = vpop.permute.xlu0 %845  ;;  %1083 = vrot.lane.b32.xlu2 %v1036_v59, %s8088_s17  ;;  %v1258_v58 = vld [vmem:[#allocation2 + $0x13c] ss:$2 sm:$0xff] }
 0x199   :  { %892 = vst.msk [vmem:[#allocation5 + $0x10] sm:$0xff] %vm889_vm6, %v846_v60 }
 0x19a   :  { %v848_v61 = vpop.permute.xlu1 %847  ;;  %v856_v62 = vpop.permute.xlu2 %855 }
 0x19b   :  { %893 = vst.msk [vmem:[#allocation5 + $0x18] sm:$0xff] %vm889_vm6, %v848_v61 }
 0x19c   :  { %897 = vst.msk [vmem:[#allocation5 + $0x38] sm:$0xff] %vm889_vm6, %v856_v62  ;;  %v1272_v62 = vld [vmem:[#allocation2 + $0x2ec] ss:$2 sm:$0xff] }
 0x19e   :  { %1097 = vrot.lane.b32.xlu0 %v1050_v63, %s8088_s17  ;;  %v1274_v63 = vld [vmem:[#allocation2 + $0x31c] ss:$2 sm:$0xff] }
 0x1a0   :  { %1180 = vrot.lane.b32.xlu1 %v1133_v1, %s10940_s19  ;;  %v852_v3 = vpop.permute.xlu0 %851  ;;  %1089 = vrot.lane.b32.xlu2 %v1042_v2, %s8088_s17  ;;  %v1264_v1 = vld [vmem:[#allocation2 + $0x22c] ss:$2 sm:$0xff] }
 0x1a1   :  { %895 = vst.msk [vmem:[#allocation5 + $0x28] sm:$0xff] %vm889_vm6, %v852_v3 }
 0x1a2   :  { %v854_v4 = vpop.permute.xlu1 %853  ;;  %v862_v5 = vpop.permute.xlu2 %861 }
 0x1a3   :  { %896 = vst.msk [vmem:[#allocation5 + $0x30] sm:$0xff] %vm889_vm6, %v854_v4 }
 0x1a4   :  { %900 = vst.msk [vmem:[#allocation5 + $0x50] sm:$0xff] %vm889_vm6, %v862_v5  ;;  %v1358_v5 = vld [vmem:[#allocation2 + $0x30] ss:$2 sm:$0xff] }
 0x1a6   :  { %1184 = vrot.lane.b32.xlu0 %v1137_v6, %s10940_s19  ;;  %v1360_v6 = vld [vmem:[#allocation2 + $0x60] ss:$2 sm:$0xff] }
 0x1a8   :  { %1186 = vrot.lane.b32.xlu1 %v1139_v7, %s10940_s19  ;;  %v858_v9 = vpop.permute.xlu0 %857  ;;  %1095 = vrot.lane.b32.xlu2 %v1048_v8, %s8088_s17  ;;  %v1270_v7 = vld [vmem:[#allocation2 + $0x2bc] ss:$2 sm:$0xff]  ;;  %s8097_s17 = smov 64  }
 0x1a9   :  { %898 = vst.msk [vmem:[#allocation5 + $0x40] sm:$0xff] %vm889_vm6, %v858_v9  ;;  %v225_v8 = vld [vmem:[%s10927_s0 + $0x1e0] sm:$0xff]  ;;  %v226_v9 = vld [vmem:[%s10927_s0 + $0x1e8] sm:$0xff] }
 0x1aa   :  { %v860_v10 = vpop.permute.xlu1 %859  ;;  %v868_v11 = vpop.permute.xlu2 %867  ;;  %290 = vst.msk [vmem:[#allocation2 + $0x362] sm:$0xff] %vm43_vm0, %v225_v8 }
 0x1ab   :  { %899 = vst.msk [vmem:[#allocation5 + $0x48] sm:$0xff] %vm889_vm6, %v860_v10 }
 0x1ac   :  { %903 = vst.msk [vmem:[#allocation5 + $0x68] sm:$0xff] %vm889_vm6, %v868_v11 }
 0x1ad   :  { %291 = vst.msk [vmem:[#allocation2 + $0x36a] sm:$0xff] %vm43_vm0, %v226_v9 }
 0x1ae   :  { %1190 = vrot.lane.b32.xlu0 %v1143_v12, %s10940_s19 }
 0x1b0   :  { %1192 = vrot.lane.b32.xlu1 %v1145_v13, %s10940_s19  ;;  %v864_v15 = vpop.permute.xlu0 %863  ;;  %1182 = vrot.lane.b32.xlu2 %v1135_v14, %s10940_s19  ;;  %v1364_v13 = vld [vmem:[#allocation2 + $0xc0] ss:$2 sm:$0xff]  ;;  %v1366_v14 = vld [vmem:[#allocation2 + $0xf0] ss:$2 sm:$0xff] }
 0x1b1   :  { %901 = vst.msk [vmem:[#allocation5 + $0x58] sm:$0xff] %vm889_vm6, %v864_v15  ;;  %v1276_v15 = vld [vmem:[#allocation2 + $0x34c] ss:$2 sm:$0xff] }
 0x1b2   :  { %v866_v16 = vpop.permute.xlu1 %865  ;;  %v955_v17 = vpop.permute.xlu2 %954 }
 0x1b3   :  { %902 = vst.msk [vmem:[#allocation5 + $0x60] sm:$0xff] %vm889_vm6, %v866_v16 }
 0x1b4   :  { %1003 = vst.msk [vmem:[#allocation5] sm:$0xff] %vm1002_vm7, %v955_v17 }
 0x1b6   :  { %1196 = vrot.lane.b32.xlu0 %v1149_v18, %s10940_s19 }
 0x1b8   :  { %1198 = vrot.lane.b32.xlu1 %v1151_v19, %s10940_s19  ;;  %v870_v21 = vpop.permute.xlu0 %869  ;;  %1188 = vrot.lane.b32.xlu2 %v1141_v20, %s10940_s19  ;;  %v1370_v19 = vld [vmem:[#allocation2 + $0x150] ss:$2 sm:$0xff]  ;;  %v1372_v20 = vld [vmem:[#allocation2 + $0x180] ss:$2 sm:$0xff] }
 0x1b9   :  { %904 = vst.msk [vmem:[#allocation5 + $0x70] sm:$0xff] %vm889_vm6, %v870_v21  ;;  %v1362_v21 = vld [vmem:[#allocation2 + $0x90] ss:$2 sm:$0xff] }
 0x1ba   :  { %v872_v22 = vpop.permute.xlu1 %871  ;;  %v961_v23 = vpop.permute.xlu2 %960 }
 0x1bb   :  { %905 = vst.msk [vmem:[#allocation5 + $0x78] sm:$0xff] %vm889_vm6, %v872_v22  ;;  %vm2470_vm6 = vcmask 654944  }
 0x1bc   :  { %1006 = vst.msk [vmem:[#allocation5 + $0x18] sm:$0xff] %vm1002_vm7, %v961_v23 }
 0x1be   :  { %1202 = vrot.lane.b32.xlu0 %v1155_v24, %s10940_s19 }
 0x1c0   :  { %1204 = vrot.lane.b32.xlu1 %v1157_v25, %s10940_s19  ;;  %v957_v27 = vpop.permute.xlu0 %956  ;;  %1194 = vrot.lane.b32.xlu2 %v1147_v26, %s10940_s19  ;;  %v1376_v25 = vld [vmem:[#allocation2 + $0x240] ss:$2 sm:$0xff]  ;;  %v1378_v26 = vld [vmem:[#allocation2 + $0x270] ss:$2 sm:$0xff] }
 0x1c1   :  { %1004 = vst.msk [vmem:[#allocation5 + $0x8] sm:$0xff] %vm1002_vm7, %v957_v27  ;;  %v1368_v27 = vld [vmem:[#allocation2 + $0x120] ss:$2 sm:$0xff] }
 0x1c2   :  { %v959_v28 = vpop.permute.xlu1 %958  ;;  %v967_v29 = vpop.permute.xlu2 %966 }
 0x1c3   :  { %1005 = vst.msk [vmem:[#allocation5 + $0x10] sm:$0xff] %vm1002_vm7, %v959_v28 }
 0x1c4   :  { %1009 = vst.msk [vmem:[#allocation5 + $0x30] sm:$0xff] %vm1002_vm7, %v967_v29 }
 0x1c6   :  { %1208 = vrot.lane.b32.xlu0 %v1161_v30, %s10940_s19 }
 0x1c8   :  { %1210 = vrot.lane.b32.xlu1 %v1163_v31, %s10940_s19  ;;  %v963_v33 = vpop.permute.xlu0 %962  ;;  %1200 = vrot.lane.b32.xlu2 %v1153_v32, %s10940_s19  ;;  %v1382_v31 = vld [vmem:[#allocation2 + $0x2d0] ss:$2 sm:$0xff]  ;;  %v1384_v32 = vld [vmem:[#allocation2 + $0x300] ss:$2 sm:$0xff] }
 0x1c9   :  { %1007 = vst.msk [vmem:[#allocation5 + $0x20] sm:$0xff] %vm1002_vm7, %v963_v33  ;;  %v1374_v33 = vld [vmem:[#allocation2 + $0x210] ss:$2 sm:$0xff] }
 0x1ca   :  { %v965_v34 = vpop.permute.xlu1 %964  ;;  %v973_v35 = vpop.permute.xlu2 %972 }
 0x1cb   :  { %1008 = vst.msk [vmem:[#allocation5 + $0x28] sm:$0xff] %vm1002_vm7, %v965_v34 }
 0x1cc   :  { %1012 = vst.msk [vmem:[#allocation5 + $0x48] sm:$0xff] %vm1002_vm7, %v973_v35 }
 0x1ce   :  { %1295 = vrot.lane.b32.xlu0 %v1248_v36, %s8090_s20 }
 0x1d0   :  { %1297 = vrot.lane.b32.xlu1 %v1250_v37, %s8090_s20  ;;  %v969_v39 = vpop.permute.xlu0 %968  ;;  %1206 = vrot.lane.b32.xlu2 %v1159_v38, %s10940_s19  ;;  %v1388_v37 = vld [vmem:[#allocation2 + $0x360] ss:$2 sm:$0xff]  ;;  %v1471_v38 = vld [vmem:[#allocation2 + $0x31] ss:$2 sm:$0xff] }
 0x1d1   :  { %1010 = vst.msk [vmem:[#allocation5 + $0x38] sm:$0xff] %vm1002_vm7, %v969_v39  ;;  %v1380_v39 = vld [vmem:[#allocation2 + $0x2a0] ss:$2 sm:$0xff] }
 0x1d2   :  { %v971_v40 = vpop.permute.xlu1 %970  ;;  %v979_v41 = vpop.permute.xlu2 %978 }
 0x1d3   :  { %1011 = vst.msk [vmem:[#allocation5 + $0x40] sm:$0xff] %vm1002_vm7, %v971_v40 }
 0x1d4   :  { %1015 = vst.msk [vmem:[#allocation5 + $0x60] sm:$0xff] %vm1002_vm7, %v979_v41 }
 0x1d6   :  { %1301 = vrot.lane.b32.xlu0 %v1254_v42, %s8090_s20 }
 0x1d8   :  { %1303 = vrot.lane.b32.xlu1 %v1256_v43, %s8090_s20  ;;  %v975_v45 = vpop.permute.xlu0 %974  ;;  %1293 = vrot.lane.b32.xlu2 %v1246_v44, %s8090_s20  ;;  %v1475_v43 = vld [vmem:[#allocation2 + $0x91] ss:$2 sm:$0xff]  ;;  %v1477_v44 = vld [vmem:[#allocation2 + $0xc1] ss:$2 sm:$0xff] }
 0x1d9   :  { %1013 = vst.msk [vmem:[#allocation5 + $0x50] sm:$0xff] %vm1002_vm7, %v975_v45  ;;  %v1386_v45 = vld [vmem:[#allocation2 + $0x330] ss:$2 sm:$0xff] }
 0x1da   :  { %v977_v46 = vpop.permute.xlu1 %976  ;;  %v985_v47 = vpop.permute.xlu2 %984 }
 0x1db   :  { %1014 = vst.msk [vmem:[#allocation5 + $0x58] sm:$0xff] %vm1002_vm7, %v977_v46 }
 0x1dc   :  { %1018 = vst.msk [vmem:[#allocation5 + $0x78] sm:$0xff] %vm1002_vm7, %v985_v47 }
 0x1de   :  { %1307 = vrot.lane.b32.xlu0 %v1260_v48, %s8090_s20 }
 0x1e0   :  { %1309 = vrot.lane.b32.xlu1 %v1262_v49, %s8090_s20  ;;  %v981_v53 = vpop.permute.xlu0 %980  ;;  %1299 = vrot.lane.b32.xlu2 %v1252_v50, %s8090_s20  ;;  %v1481_v49 = vld [vmem:[#allocation2 + $0x121] ss:$2 sm:$0xff]  ;;  %v1483_v50 = vld [vmem:[#allocation2 + $0x151] ss:$2 sm:$0xff] }
 0x1e1   :  { %1016 = vst.msk [vmem:[#allocation5 + $0x68] sm:$0xff] %vm1002_vm7, %v981_v53 }
 0x1e2   :  { %v983_v54 = vpop.permute.xlu1 %982  ;;  %v1072_v55 = vpop.permute.xlu2 %1071 }
 0x1e3   :  { %1017 = vst.msk [vmem:[#allocation5 + $0x70] sm:$0xff] %vm1002_vm7, %v983_v54  ;;  %vm2583_vm7 = vcmask 687744  }
 0x1e4   :  { %1118 = vst.msk [vmem:[#allocation5 + $0x10] sm:$0xff] %vm1115_vm8, %v1072_v55  ;;  %v1487_v55 = vld [vmem:[#allocation2 + $0x211] ss:$2 sm:$0xff] }
 0x1e6   :  { %1313 = vrot.lane.b32.xlu0 %v1266_v56, %s8090_s20  ;;  %v1489_v56 = vld [vmem:[#allocation2 + $0x241] ss:$2 sm:$0xff] }
 0x1e8   :  { %1315 = vrot.lane.b32.xlu1 %v1268_v57, %s8090_s20  ;;  %v1068_v59 = vpop.permute.xlu0 %1067  ;;  %1305 = vrot.lane.b32.xlu2 %v1258_v58, %s8090_s20  ;;  %v1479_v57 = vld [vmem:[#allocation2 + $0xf1] ss:$2 sm:$0xff] }
 0x1e9   :  { %1116 = vst.msk [vmem:[#allocation5] sm:$0xff] %vm1115_vm8, %v1068_v59 }
 0x1ea   :  { %v1070_v60 = vpop.permute.xlu1 %1069  ;;  %v1078_v61 = vpop.permute.xlu2 %1077 }
 0x1eb   :  { %1117 = vst.msk [vmem:[#allocation5 + $0x8] sm:$0xff] %vm1115_vm8, %v1070_v60 }
 0x1ec   :  { %1121 = vst.msk [vmem:[#allocation5 + $0x28] sm:$0xff] %vm1115_vm8, %v1078_v61  ;;  %v1493_v61 = vld [vmem:[#allocation2 + $0x2a1] ss:$2 sm:$0xff] }
 0x1ee   :  { %1319 = vrot.lane.b32.xlu0 %v1272_v62, %s8090_s20  ;;  %v1495_v62 = vld [vmem:[#allocation2 + $0x2d1] ss:$2 sm:$0xff] }
 0x1f0   :  { %1321 = vrot.lane.b32.xlu1 %v1274_v63, %s8090_s20  ;;  %v1074_v2 = vpop.permute.xlu0 %1073  ;;  %1311 = vrot.lane.b32.xlu2 %v1264_v1, %s8090_s20  ;;  %v1485_v63 = vld [vmem:[#allocation2 + $0x181] ss:$2 sm:$0xff] }
 0x1f1   :  { %1119 = vst.msk [vmem:[#allocation5 + $0x18] sm:$0xff] %vm1115_vm8, %v1074_v2 }
 0x1f2   :  { %v1076_v3 = vpop.permute.xlu1 %1075  ;;  %v1084_v4 = vpop.permute.xlu2 %1083 }
 0x1f3   :  { %1120 = vst.msk [vmem:[#allocation5 + $0x20] sm:$0xff] %vm1115_vm8, %v1076_v3 }
 0x1f4   :  { %1124 = vst.msk [vmem:[#allocation5 + $0x40] sm:$0xff] %vm1115_vm8, %v1084_v4  ;;  %v1499_v4 = vld [vmem:[#allocation2 + $0x331] ss:$2 sm:$0xff] }
 0x1f6   :  { %1405 = vrot.lane.b32.xlu0 %v1358_v5, %s8091_s26  ;;  %v1501_v5 = vld [vmem:[#allocation2 + $0x361] ss:$2 sm:$0xff] }
 0x1f8   :  { %1407 = vrot.lane.b32.xlu1 %v1360_v6, %s8091_s26  ;;  %v1080_v10 = vpop.permute.xlu0 %1079  ;;  %1317 = vrot.lane.b32.xlu2 %v1270_v7, %s8090_s20  ;;  %v1491_v6 = vld [vmem:[#allocation2 + $0x271] ss:$2 sm:$0xff] }
 0x1f9   :  { %1122 = vst.msk [vmem:[#allocation5 + $0x30] sm:$0xff] %vm1115_vm8, %v1080_v10  ;;  %v1586_v10 = vld [vmem:[#allocation2 + $0x62] ss:$2 sm:$0xff] }
 0x1fa   :  { %v1082_v11 = vpop.permute.xlu1 %1081  ;;  %v1090_v12 = vpop.permute.xlu2 %1089 }
 0x1fb   :  { %1123 = vst.msk [vmem:[#allocation5 + $0x38] sm:$0xff] %vm1115_vm8, %v1082_v11  ;;  %v1697_v11 = vld [vmem:[#allocation2 + $0x33] ss:$2 sm:$0xff] }
 0x1fc   :  { %1127 = vst.msk [vmem:[#allocation5 + $0x58] sm:$0xff] %vm1115_vm8, %v1090_v12  ;;  %v1497_v12 = vld [vmem:[#allocation2 + $0x301] ss:$2 sm:$0xff] }
 0x1fe   :  { %1411 = vrot.lane.b32.xlu0 %v1364_v13, %s8091_s26 }
 0x200   :  { %1413 = vrot.lane.b32.xlu1 %v1366_v14, %s8091_s26  ;;  %v1086_v16 = vpop.permute.xlu0 %1085  ;;  %1323 = vrot.lane.b32.xlu2 %v1276_v15, %s8090_s20  ;;  %s8098_s20 = smov 68  }
 0x201   :  { %1125 = vst.msk [vmem:[#allocation5 + $0x48] sm:$0xff] %vm1115_vm8, %v1086_v16  ;;  %v1810_v16 = vld [vmem:[#allocation2 + $0x34] ss:$2 sm:$0xff] }
 0x202   :  { %v1088_v17 = vpop.permute.xlu1 %1087  ;;  %v1096_v18 = vpop.permute.xlu2 %1095 }
 0x203   :  { %1126 = vst.msk [vmem:[#allocation5 + $0x50] sm:$0xff] %vm1115_vm8, %v1088_v17  ;;  %v1812_v17 = vld [vmem:[#allocation2 + $0x64] ss:$2 sm:$0xff] }
 0x204   :  { %1130 = vst.msk [vmem:[#allocation5 + $0x70] sm:$0xff] %vm1115_vm8, %v1096_v18  ;;  %v1584_v18 = vld [vmem:[#allocation2 + $0x32] ss:$2 sm:$0xff] }
 0x206   :  { %1417 = vrot.lane.b32.xlu0 %v1370_v19, %s8091_s26 }
 0x208   :  { %1419 = vrot.lane.b32.xlu1 %v1372_v20, %s8091_s26  ;;  %v1092_v22 = vpop.permute.xlu0 %1091  ;;  %1409 = vrot.lane.b32.xlu2 %v1362_v21, %s8091_s26 }
 0x209   :  { %1128 = vst.msk [vmem:[#allocation5 + $0x60] sm:$0xff] %vm1115_vm8, %v1092_v22  ;;  %v1925_v22 = vld [vmem:[#allocation2 + $0x78] ss:$2 sm:$0xff] }
 0x20a   :  { %v1094_v23 = vpop.permute.xlu1 %1093  ;;  %v1183_v24 = vpop.permute.xlu2 %1182 }
 0x20b   :  { %1129 = vst.msk [vmem:[#allocation5 + $0x68] sm:$0xff] %vm1115_vm8, %v1094_v23  ;;  %v2036_v23 = vld [vmem:[#allocation2 + $0x49] ss:$2 sm:$0xff] }
 0x20c   :  { %1230 = vst.msk [vmem:[#allocation5 + $0x8] sm:$0xff] %vm1228_vm9, %v1183_v24  ;;  %v1699_v24 = vld [vmem:[#allocation2 + $0x63] ss:$2 sm:$0xff] }
 0x20e   :  { %1423 = vrot.lane.b32.xlu0 %v1376_v25, %s8091_s26 }
 0x210   :  { %1425 = vrot.lane.b32.xlu1 %v1378_v26, %s8091_s26  ;;  %v1098_v28 = vpop.permute.xlu0 %1097  ;;  %1415 = vrot.lane.b32.xlu2 %v1368_v27, %s8091_s26 }
 0x211   :  { %1131 = vst.msk [vmem:[#allocation5 + $0x78] sm:$0xff] %vm1115_vm8, %v1098_v28  ;;  %v2149_v28 = vld [vmem:[#allocation2 + $0x4a] ss:$2 sm:$0xff]  ;;  %vm2696_vm8 = vcmask 720544  }
 0x212   :  { %v1181_v29 = vpop.permute.xlu1 %1180  ;;  %v1189_v30 = vpop.permute.xlu2 %1188 }
 0x213   :  { %1229 = vst.msk [vmem:[#allocation5] sm:$0xff] %vm1228_vm9, %v1181_v29  ;;  %v2151_v29 = vld [vmem:[#allocation2 + $0x7a] ss:$2 sm:$0xff] }
 0x214   :  { %1233 = vst.msk [vmem:[#allocation5 + $0x20] sm:$0xff] %vm1228_vm9, %v1189_v30  ;;  %v1923_v30 = vld [vmem:[#allocation2 + $0x48] ss:$2 sm:$0xff] }
 0x216   :  { %1429 = vrot.lane.b32.xlu0 %v1382_v31, %s8091_s26 }
 0x218   :  { %1431 = vrot.lane.b32.xlu1 %v1384_v32, %s8091_s26  ;;  %v1185_v34 = vpop.permute.xlu0 %1184  ;;  %1421 = vrot.lane.b32.xlu2 %v1374_v33, %s8091_s26 }
 0x219   :  { %1231 = vst.msk [vmem:[#allocation5 + $0x10] sm:$0xff] %vm1228_vm9, %v1185_v34  ;;  %v2264_v34 = vld [vmem:[#allocation2 + $0x7b] ss:$2 sm:$0xff] }
 0x21a   :  { %v1187_v35 = vpop.permute.xlu1 %1186  ;;  %v1195_v36 = vpop.permute.xlu2 %1194 }
 0x21b   :  { %1232 = vst.msk [vmem:[#allocation5 + $0x18] sm:$0xff] %vm1228_vm9, %v1187_v35  ;;  %v2375_v35 = vld [vmem:[#allocation2 + $0x4c] ss:$2 sm:$0xff] }
 0x21c   :  { %1236 = vst.msk [vmem:[#allocation5 + $0x38] sm:$0xff] %vm1228_vm9, %v1195_v36  ;;  %v2038_v36 = vld [vmem:[#allocation2 + $0x79] ss:$2 sm:$0xff] }
 0x21e   :  { %1435 = vrot.lane.b32.xlu0 %v1388_v37, %s8091_s26 }
 0x220   :  { %1518 = vrot.lane.b32.xlu1 %v1471_v38, %s8092_s13  ;;  %v1191_v40 = vpop.permute.xlu0 %1190  ;;  %1427 = vrot.lane.b32.xlu2 %v1380_v39, %s8091_s26 }
 0x221   :  { %1234 = vst.msk [vmem:[#allocation5 + $0x28] sm:$0xff] %vm1228_vm9, %v1191_v40  ;;  %v2488_v40 = vld [vmem:[#allocation2 + $0x60] ss:$2 sm:$0xff] }
 0x222   :  { %v1193_v41 = vpop.permute.xlu1 %1192  ;;  %v1201_v42 = vpop.permute.xlu2 %1200 }
 0x223   :  { %1235 = vst.msk [vmem:[#allocation5 + $0x30] sm:$0xff] %vm1228_vm9, %v1193_v41  ;;  %v2490_v41 = vld [vmem:[#allocation2 + $0x90] ss:$2 sm:$0xff] }
 0x224   :  { %1239 = vst.msk [vmem:[#allocation5 + $0x50] sm:$0xff] %vm1228_vm9, %v1201_v42  ;;  %v2262_v42 = vld [vmem:[#allocation2 + $0x4b] ss:$2 sm:$0xff] }
 0x226   :  { %1522 = vrot.lane.b32.xlu0 %v1475_v43, %s8092_s13 }
 0x228   :  { %1524 = vrot.lane.b32.xlu1 %v1477_v44, %s8092_s13  ;;  %v1197_v46 = vpop.permute.xlu0 %1196  ;;  %1433 = vrot.lane.b32.xlu2 %v1386_v45, %s8091_s26  ;;  %s8103_s26 = smov 88  }
 0x229   :  { %1237 = vst.msk [vmem:[#allocation5 + $0x40] sm:$0xff] %vm1228_vm9, %v1197_v46  ;;  %v2603_v46 = vld [vmem:[#allocation2 + $0x91] ss:$2 sm:$0xff] }
 0x22a   :  { %v1199_v47 = vpop.permute.xlu1 %1198  ;;  %v1207_v48 = vpop.permute.xlu2 %1206 }
 0x22b   :  { %1238 = vst.msk [vmem:[#allocation5 + $0x48] sm:$0xff] %vm1228_vm9, %v1199_v47  ;;  %v2714_v47 = vld [vmem:[#allocation2 + $0x62] ss:$2 sm:$0xff] }
 0x22c   :  { %1242 = vst.msk [vmem:[#allocation5 + $0x68] sm:$0xff] %vm1228_vm9, %v1207_v48  ;;  %v2377_v48 = vld [vmem:[#allocation2 + $0x7c] ss:$2 sm:$0xff] }
 0x22e   :  { %1528 = vrot.lane.b32.xlu0 %v1481_v49, %s8092_s13 }
 0x230   :  { %1530 = vrot.lane.b32.xlu1 %v1483_v50, %s8092_s13  ;;  %v1203_v52 = vpop.permute.xlu0 %1202  ;;  %1520 = vrot.lane.b32.xlu2 %v1473_v51, %s8092_s13 }
 0x231   :  { %1240 = vst.msk [vmem:[#allocation5 + $0x58] sm:$0xff] %vm1228_vm9, %v1203_v52  ;;  %v2827_v52 = vld [vmem:[#allocation2 + $0x63] ss:$2 sm:$0xff] }
 0x232   :  { %v1205_v53 = vpop.permute.xlu1 %1204  ;;  %v1294_v54 = vpop.permute.xlu2 %1293 }
 0x233   :  { %1241 = vst.msk [vmem:[#allocation5 + $0x60] sm:$0xff] %vm1228_vm9, %v1205_v53  ;;  %v2829_v53 = vld [vmem:[#allocation2 + $0x93] ss:$2 sm:$0xff] }
 0x234   :  { %1342 = vst.msk [vmem:[#allocation5] sm:$0xff] %vm1341_vm10, %v1294_v54  ;;  %v2601_v54 = vld [vmem:[#allocation2 + $0x61] ss:$2 sm:$0xff] }
 0x236   :  { %1534 = vrot.lane.b32.xlu0 %v1487_v55, %s8092_s13 }
 0x238   :  { %1536 = vrot.lane.b32.xlu1 %v1489_v56, %s8092_s13  ;;  %v1209_v58 = vpop.permute.xlu0 %1208  ;;  %1526 = vrot.lane.b32.xlu2 %v1479_v57, %s8092_s13 }
 0x239   :  { %1243 = vst.msk [vmem:[#allocation5 + $0x70] sm:$0xff] %vm1228_vm9, %v1209_v58  ;;  %v2942_v58 = vld [vmem:[#allocation2 + $0x94] ss:$2 sm:$0xff] }
 0x23a   :  { %v1211_v59 = vpop.permute.xlu1 %1210  ;;  %v1300_v60 = vpop.permute.xlu2 %1299 }
 0x23b   :  { %1244 = vst.msk [vmem:[#allocation5 + $0x78] sm:$0xff] %vm1228_vm9, %v1211_v59  ;;  %v1588_v59 = vld [vmem:[#allocation2 + $0x92] ss:$2 sm:$0xff]  ;;  %vm2809_vm9 = vcmask 753344  }
 0x23c   :  { %1345 = vst.msk [vmem:[#allocation5 + $0x18] sm:$0xff] %vm1341_vm10, %v1300_v60  ;;  %v2716_v60 = vld [vmem:[#allocation2 + $0x92] ss:$2 sm:$0xff] }
 0x23e   :  { %1540 = vrot.lane.b32.xlu0 %v1493_v61, %s8092_s13 }
 0x240   :  { %1542 = vrot.lane.b32.xlu1 %v1495_v62, %s8092_s13  ;;  %v1296_v1 = vpop.permute.xlu0 %1295  ;;  %1532 = vrot.lane.b32.xlu2 %v1485_v63, %s8092_s13 }
 0x241   :  { %1343 = vst.msk [vmem:[#allocation5 + $0x8] sm:$0xff] %vm1341_vm10, %v1296_v1  ;;  %v1701_v1 = vld [vmem:[#allocation2 + $0x93] ss:$2 sm:$0xff] }
 0x242   :  { %v1298_v2 = vpop.permute.xlu1 %1297  ;;  %v1306_v3 = vpop.permute.xlu2 %1305 }
 0x243   :  { %1344 = vst.msk [vmem:[#allocation5 + $0x10] sm:$0xff] %vm1341_vm10, %v1298_v2  ;;  %v1703_v2 = vld [vmem:[#allocation2 + $0xc3] ss:$2 sm:$0xff] }
 0x244   :  { %1348 = vst.msk [vmem:[#allocation5 + $0x30] sm:$0xff] %vm1341_vm10, %v1306_v3  ;;  %v2940_v3 = vld [vmem:[#allocation2 + $0x64] ss:$2 sm:$0xff] }
 0x246   :  { %1546 = vrot.lane.b32.xlu0 %v1499_v4, %s8092_s13 }
 0x248   :  { %1548 = vrot.lane.b32.xlu1 %v1501_v5, %s8092_s13  ;;  %v1302_v7 = vpop.permute.xlu0 %1301  ;;  %1538 = vrot.lane.b32.xlu2 %v1491_v6, %s8092_s13 }
 0x249   :  { %1346 = vst.msk [vmem:[#allocation5 + $0x20] sm:$0xff] %vm1341_vm10, %v1302_v7  ;;  %v1816_v7 = vld [vmem:[#allocation2 + $0xc4] ss:$2 sm:$0xff] }
 0x24a   :  { %v1304_v8 = vpop.permute.xlu1 %1303  ;;  %v1312_v9 = vpop.permute.xlu2 %1311 }
 0x24b   :  { %1347 = vst.msk [vmem:[#allocation5 + $0x28] sm:$0xff] %vm1341_vm10, %v1304_v8  ;;  %v1927_v8 = vld [vmem:[#allocation2 + $0xa8] ss:$2 sm:$0xff] }
 0x24c   :  { %1351 = vst.msk [vmem:[#allocation5 + $0x48] sm:$0xff] %vm1341_vm10, %v1312_v9  ;;  %v1590_v9 = vld [vmem:[#allocation2 + $0xc2] ss:$2 sm:$0xff] }
 0x24e   :  { %1633 = vrot.lane.b32.xlu0 %v1586_v10, %s8093_s14 }
 0x250   :  { %1744 = vrot.lane.b32.xlu1 %v1697_v11, %s8094_s15  ;;  %v1308_v13 = vpop.permute.xlu0 %1307  ;;  %1544 = vrot.lane.b32.xlu2 %v1497_v12, %s8092_s13 }
 0x251   :  { %1349 = vst.msk [vmem:[#allocation5 + $0x38] sm:$0xff] %vm1341_vm10, %v1308_v13  ;;  %v2040_v13 = vld [vmem:[#allocation2 + $0xa9] ss:$2 sm:$0xff] }
 0x252   :  { %v1310_v14 = vpop.permute.xlu1 %1309  ;;  %v1318_v15 = vpop.permute.xlu2 %1317 }
 0x253   :  { %1350 = vst.msk [vmem:[#allocation5 + $0x40] sm:$0xff] %vm1341_vm10, %v1310_v14  ;;  %v2042_v14 = vld [vmem:[#allocation2 + $0xd9] ss:$2 sm:$0xff] }
 0x254   :  { %1354 = vst.msk [vmem:[#allocation5 + $0x60] sm:$0xff] %vm1341_vm10, %v1318_v15  ;;  %v1814_v15 = vld [vmem:[#allocation2 + $0x94] ss:$2 sm:$0xff] }
 0x256   :  { %1857 = vrot.lane.b32.xlu0 %v1810_v16, %s8095_s16 }
 0x258   :  { %1859 = vrot.lane.b32.xlu1 %v1812_v17, %s8095_s16  ;;  %v1314_v19 = vpop.permute.xlu0 %1313  ;;  %1631 = vrot.lane.b32.xlu2 %v1584_v18, %s8093_s14 }
 0x259   :  { %1352 = vst.msk [vmem:[#allocation5 + $0x50] sm:$0xff] %vm1341_vm10, %v1314_v19  ;;  %v2155_v19 = vld [vmem:[#allocation2 + $0xda] ss:$2 sm:$0xff] }
 0x25a   :  { %v1316_v20 = vpop.permute.xlu1 %1315  ;;  %v1324_v21 = vpop.permute.xlu2 %1323 }
 0x25b   :  { %1353 = vst.msk [vmem:[#allocation5 + $0x58] sm:$0xff] %vm1341_vm10, %v1316_v20  ;;  %v2266_v20 = vld [vmem:[#allocation2 + $0xab] ss:$2 sm:$0xff] }
 0x25c   :  { %1357 = vst.msk [vmem:[#allocation5 + $0x78] sm:$0xff] %vm1341_vm10, %v1324_v21  ;;  %v1929_v21 = vld [vmem:[#allocation2 + $0xd8] ss:$2 sm:$0xff] }
 0x25e   :  { %1972 = vrot.lane.b32.xlu0 %v1925_v22, %s8096_s18 }
 0x260   :  { %2083 = vrot.lane.b32.xlu1 %v2036_v23, %s8097_s17  ;;  %v1320_v25 = vpop.permute.xlu0 %1319  ;;  %1746 = vrot.lane.b32.xlu2 %v1699_v24, %s8094_s15 }
 0x261   :  { %1355 = vst.msk [vmem:[#allocation5 + $0x68] sm:$0xff] %vm1341_vm10, %v1320_v25  ;;  %v2379_v25 = vld [vmem:[#allocation2 + $0xac] ss:$2 sm:$0xff] }
 0x262   :  { %v1322_v26 = vpop.permute.xlu1 %1321  ;;  %v1410_v27 = vpop.permute.xlu2 %1409 }
 0x263   :  { %1356 = vst.msk [vmem:[#allocation5 + $0x70] sm:$0xff] %vm1341_vm10, %v1322_v26  ;;  %v2381_v26 = vld [vmem:[#allocation2 + $0xdc] ss:$2 sm:$0xff]  ;;  %vm2922_vm10 = vcmask 786144  }
 0x264   :  { %1456 = vst.msk [vmem:[#allocation5 + $0x10] sm:$0xff] %vm1453_vm11, %v1410_v27  ;;  %v2153_v27 = vld [vmem:[#allocation2 + $0xaa] ss:$2 sm:$0xff] }
 0x266   :  { %2196 = vrot.lane.b32.xlu0 %v2149_v28, %s8098_s20 }
 0x268   :  { %2198 = vrot.lane.b32.xlu1 %v2151_v29, %s8098_s20  ;;  %v1406_v31 = vpop.permute.xlu0 %1405  ;;  %1970 = vrot.lane.b32.xlu2 %v1923_v30, %s8096_s18 }
 0x269   :  { %1454 = vst.msk [vmem:[#allocation5] sm:$0xff] %vm1453_vm11, %v1406_v31  ;;  %v2494_v31 = vld [vmem:[#allocation2 + $0xf0] ss:$2 sm:$0xff] }
 0x26a   :  { %v1408_v32 = vpop.permute.xlu1 %1407  ;;  %v1416_v33 = vpop.permute.xlu2 %1415 }
 0x26b   :  { %1455 = vst.msk [vmem:[#allocation5 + $0x8] sm:$0xff] %vm1453_vm11, %v1408_v32  ;;  %v2605_v32 = vld [vmem:[#allocation2 + $0xc1] ss:$2 sm:$0xff] }
 0x26c   :  { %1459 = vst.msk [vmem:[#allocation5 + $0x28] sm:$0xff] %vm1453_vm11, %v1416_v33  ;;  %v2268_v33 = vld [vmem:[#allocation2 + $0xdb] ss:$2 sm:$0xff] }
 0x26e   :  { %2311 = vrot.lane.b32.xlu0 %v2264_v34, %s8099_s22 }
 0x270   :  { %2422 = vrot.lane.b32.xlu1 %v2375_v35, %s8100_s23  ;;  %v1412_v37 = vpop.permute.xlu0 %1411  ;;  %2085 = vrot.lane.b32.xlu2 %v2038_v36, %s8097_s17 }
 0x271   :  { %1457 = vst.msk [vmem:[#allocation5 + $0x18] sm:$0xff] %vm1453_vm11, %v1412_v37  ;;  %v2718_v37 = vld [vmem:[#allocation2 + $0xc2] ss:$2 sm:$0xff] }
 0x272   :  { %v1414_v38 = vpop.permute.xlu1 %1413  ;;  %v1422_v39 = vpop.permute.xlu2 %1421 }
 0x273   :  { %1458 = vst.msk [vmem:[#allocation5 + $0x20] sm:$0xff] %vm1453_vm11, %v1414_v38  ;;  %v2720_v38 = vld [vmem:[#allocation2 + $0xf2] ss:$2 sm:$0xff] }
 0x274   :  { %1462 = vst.msk [vmem:[#allocation5 + $0x40] sm:$0xff] %vm1453_vm11, %v1422_v39  ;;  %v2492_v39 = vld [vmem:[#allocation2 + $0xc0] ss:$2 sm:$0xff] }
 0x276   :  { %2535 = vrot.lane.b32.xlu0 %v2488_v40, %s8101_s24 }
 0x278   :  { %2537 = vrot.lane.b32.xlu1 %v2490_v41, %s8101_s24  ;;  %v1418_v43 = vpop.permute.xlu0 %1417  ;;  %2309 = vrot.lane.b32.xlu2 %v2262_v42, %s8099_s22 }
 0x279   :  { %1460 = vst.msk [vmem:[#allocation5 + $0x30] sm:$0xff] %vm1453_vm11, %v1418_v43  ;;  %v2833_v43 = vld [vmem:[#allocation2 + $0xf3] ss:$2 sm:$0xff] }
 0x27a   :  { %v1420_v44 = vpop.permute.xlu1 %1419  ;;  %v1428_v45 = vpop.permute.xlu2 %1427 }
 0x27b   :  { %1461 = vst.msk [vmem:[#allocation5 + $0x38] sm:$0xff] %vm1453_vm11, %v1420_v44  ;;  %v3088_v44 = vld [vmem:[%s10928_s1 + $0x30] sm:$0x3] }
 0x27c   :  { %1465 = vst.msk [vmem:[#allocation5 + $0x58] sm:$0xff] %vm1453_vm11, %v1428_v45  ;;  %v3114_v45 = vunpack.c.l.b16 %v3088_v44  ;;  %v2835_v44 = vld [vmem:[#allocation2 + $0x123] ss:$2 sm:$0xff] }
 0x27e   :  { %2650 = vrot.lane.b32.xlu0 %v2603_v46, %s8102_s25  ;;  %v2944_v46 = vld [vmem:[#allocation2 + $0xc4] ss:$2 sm:$0xff] }
 0x280   :  { %2761 = vrot.lane.b32.xlu1 %v2714_v47, %s8103_s26  ;;  %v1424_v49 = vpop.permute.xlu0 %1423  ;;  %2424 = vrot.lane.b32.xlu2 %v2377_v48, %s8100_s23  ;;  %v2607_v47 = vld [vmem:[#allocation2 + $0xf1] ss:$2 sm:$0xff]  ;;  %v3121_v48 = vpack.c.b16 %v3114_v45, %v3114_v45  ;;  %v2498_v45 = vld [vmem:[#allocation2 + $0x150] ss:$2 sm:$0xff] }
 0x281   :  { %1463 = vst.msk [vmem:[#allocation5 + $0x48] sm:$0xff] %vm1453_vm11, %v1424_v49 }
 0x282   :  { %v1426_v50 = vpop.permute.xlu1 %1425  ;;  %v1434_v51 = vpop.permute.xlu2 %1433 }
 0x283   :  { %1464 = vst.msk [vmem:[#allocation5 + $0x50] sm:$0xff] %vm1453_vm11, %v1426_v50  ;;  %v3155_v50 = vsel %vm3153_vm3, %v3121_v48, 0  ;;  %vm3206_vm3 = vcmask 130048  }
 0x284   :  { %1468 = vst.msk [vmem:[#allocation5 + $0x70] sm:$0xff] %vm1453_vm11, %v1434_v51  ;;  %3158 = vmatpush.bf16.msra.mxu0 %v3155_v50  ;;  %v2950_v50 = vld [vmem:[#allocation2 + $0x154] ss:$2 sm:$0xff] }
 0x285   :  { %3398 = vst.msk [vmem:[#allocation3] sm:$0xff] %vm3206_vm3, %v8081_v0 }
 0x286   :  { %2874 = vrot.lane.b32.xlu0 %v2827_v52, %s8104_s27  ;;  %3399 = vst.msk [vmem:[#allocation3 + $0x8] sm:$0xff] %vm3206_vm3, %v8081_v0 }
 0x287   :  { %3402 = vst.msk [vmem:[#allocation3 + $0x18] sm:$0xff] %vm3206_vm3, %v8081_v0 }
 0x288   :  { %2876 = vrot.lane.b32.xlu1 %v2829_v53, %s8104_s27  ;;  %v1430_v55 = vpop.permute.xlu0 %1429  ;;  %2648 = vrot.lane.b32.xlu2 %v2601_v54, %s8102_s25  ;;  %v1592_v53 = vld [vmem:[#allocation2 + $0xf2] ss:$2 sm:$0xff]  ;;  %3403 = vst.msk [vmem:[#allocation3 + $0x20] sm:$0xff] %vm3206_vm3, %v8081_v0 }
 0x289   :  { %1466 = vst.msk [vmem:[#allocation5 + $0x60] sm:$0xff] %vm1453_vm11, %v1430_v55  ;;  %v7923_v54 = vld [vmem:[%s10928_s1 + $0x28] sm:$0xff] }
 0x28a   :  { %v1432_v56 = vpop.permute.xlu1 %1431  ;;  %v1521_v57 = vpop.permute.xlu2 %1520  ;;  %v1594_v55 = vld [vmem:[#allocation2 + $0x122] ss:$2 sm:$0xff]  ;;  %3159 = vmatpush.bf16.msra.mxu0 %v7923_v54  ;;  %3405 = vst.msk [vmem:[#allocation3 + $0x30] sm:$0xff] %vm3206_vm3, %v8081_v0 }
 0x28b   :  { %1467 = vst.msk [vmem:[#allocation5 + $0x68] sm:$0xff] %vm1453_vm11, %v1432_v56  ;;  %v2831_v56 = vld [vmem:[#allocation2 + $0xc3] ss:$2 sm:$0xff] }
 0x28c   :  { %1568 = vst.msk [vmem:[#allocation5 + $0x8] sm:$0xff] %vm1566_vm12, %v1521_v57  ;;  %v7922_v57 = vld [vmem:[%s10928_s1 + $0x20] sm:$0xff] }
 0x28d   :  { %3406 = vst.msk [vmem:[#allocation3 + $0x38] sm:$0xff] %vm3206_vm3, %v8081_v0 }
 0x28e   :  { %2989 = vrot.lane.b32.xlu0 %v2942_v58, %s8105_s21  ;;  %3160 = vmatpush.bf16.msra.mxu0 %v7922_v57  ;;  %v2837_v57 = vld [vmem:[#allocation2 + $0x153] ss:$2 sm:$0xff]  ;;  %3408 = vst.msk [vmem:[#allocation3 + $0x48] sm:$0xff] %vm3206_vm3, %v8081_v0 }
 0x28f   :  { %3409 = vst.msk [vmem:[#allocation3 + $0x50] sm:$0xff] %vm3206_vm3, %v8081_v0 }
 0x290   :  { %1635 = vrot.lane.b32.xlu1 %v1588_v59, %s8093_s14  ;;  %v1436_v61 = vpop.permute.xlu0 %1435  ;;  %2763 = vrot.lane.b32.xlu2 %v2716_v60, %s8103_s26  ;;  %3411 = vst.msk [vmem:[#allocation3 + $0x60] sm:$0xff] %vm3206_vm3, %v8081_v0 }
 0x291   :  { %1469 = vst.msk [vmem:[#allocation5 + $0x78] sm:$0xff] %vm1453_vm11, %v1436_v61  ;;  %v1707_v61 = vld [vmem:[#allocation2 + $0x123] ss:$2 sm:$0xff]  ;;  %vm3035_vm11 = vcmask 818944  }
 0x292   :  { %v1519_v62 = vpop.permute.xlu1 %1518  ;;  %v1527_v63 = vpop.permute.xlu2 %1526  ;;  %3412 = vst.msk [vmem:[#allocation3 + $0x68] sm:$0xff] %vm3206_vm3, %v8081_v0 }
 0x293   :  { %1567 = vst.msk [vmem:[#allocation5] sm:$0xff] %vm1566_vm12, %v1519_v62  ;;  %v7921_v62 = vld [vmem:[%s10928_s1 + $0x18] sm:$0xff] }
 0x294   :  { %1571 = vst.msk [vmem:[#allocation5 + $0x20] sm:$0xff] %vm1566_vm12, %v1527_v63  ;;  %v1818_v63 = vld [vmem:[#allocation2 + $0xf4] ss:$2 sm:$0xff]  ;;  %3161 = vmatpush.bf16.msra.mxu0 %v7921_v62  ;;  %v1824_v62 = vld [vmem:[#allocation2 + $0x184] ss:$2 sm:$0xff] }
 0x295   :  { %3414 = vst.msk [vmem:[#allocation3 + $0x78] sm:$0xff] %vm3206_vm3, %v8081_v0 }
 0x296   :  { %1748 = vrot.lane.b32.xlu0 %v1701_v1, %s8094_s15  ;;  %v2946_v1 = vld [vmem:[#allocation2 + $0xf4] ss:$2 sm:$0xff]  ;;  %3415 = vst.msk [vmem:[#allocation3 + $0x80] sm:$0xff] %vm3206_vm3, %v8081_v0 }
 0x297   :  { %3417 = vst.msk [vmem:[#allocation3 + $0x90] sm:$0xff] %vm3206_vm3, %v8081_v0 }
 0x298   :  { %1750 = vrot.lane.b32.xlu1 %v1703_v2, %s8094_s15  ;;  %v1523_v4 = vpop.permute.xlu0 %1522  ;;  %2987 = vrot.lane.b32.xlu2 %v2940_v3, %s8105_s21  ;;  %v7920_v2 = vld [vmem:[%s10928_s1 + $0x10] sm:$0xff]  ;;  %3418 = vst.msk [vmem:[#allocation3 + $0x98] sm:$0xff] %vm3206_vm3, %v8081_v0 }
 0x299   :  { %1569 = vst.msk [vmem:[#allocation5 + $0x10] sm:$0xff] %vm1566_vm12, %v1523_v4  ;;  %3162 = vmatpush.bf16.msra.mxu0 %v7920_v2 }
 0x29a   :  { %v1525_v5 = vpop.permute.xlu1 %1524  ;;  %v1533_v6 = vpop.permute.xlu2 %1532  ;;  %3420 = vst.msk [vmem:[#allocation3 + $0xa8] sm:$0xff] %vm3206_vm3, %v8081_v0 }
 0x29b   :  { %1570 = vst.msk [vmem:[#allocation5 + $0x18] sm:$0xff] %vm1566_vm12, %v1525_v5 }
 0x29c   :  { %1574 = vst.msk [vmem:[#allocation5 + $0x38] sm:$0xff] %vm1566_vm12, %v1533_v6  ;;  %v1931_v6 = vld [vmem:[#allocation2 + $0x108] ss:$2 sm:$0xff] }
 0x29d   :  { %3421 = vst.msk [vmem:[#allocation3 + $0xb0] sm:$0xff] %vm3206_vm3, %v8081_v0 }
 0x29e   :  { %1863 = vrot.lane.b32.xlu0 %v1816_v7, %s8095_s16  ;;  %v7919_v7 = vld [vmem:[%s10928_s1 + $0x8] sm:$0xff]  ;;  %3423 = vst.msk [vmem:[#allocation3 + $0xc0] sm:$0xff] %vm3206_vm3, %v8081_v0 }
 0x29f   :  { %3163 = vmatpush.bf16.msra.mxu0 %v7919_v7  ;;  %3424 = vst.msk [vmem:[#allocation3 + $0xc8] sm:$0xff] %vm3206_vm3, %v8081_v0 }
 0x2a0   :  { %1974 = vrot.lane.b32.xlu1 %v1927_v8, %s8096_s18  ;;  %v1529_v10 = vpop.permute.xlu0 %1528  ;;  %1637 = vrot.lane.b32.xlu2 %v1590_v9, %s8093_s14  ;;  %v1933_v8 = vld [vmem:[#allocation2 + $0x138] ss:$2 sm:$0xff]  ;;  %v1705_v9 = vld [vmem:[#allocation2 + $0xf3] ss:$2 sm:$0xff]  ;;  %3426 = vst.msk [vmem:[#allocation3 + $0xd8] sm:$0xff] %vm3206_vm3, %v8081_v0 }
 0x2a1   :  { %1572 = vst.msk [vmem:[#allocation5 + $0x28] sm:$0xff] %vm1566_vm12, %v1529_v10  ;;  %v7918_v10 = vld [vmem:[%s10928_s1] sm:$0xff] }
 0x2a2   :  { %v1531_v11 = vpop.permute.xlu1 %1530  ;;  %v1539_v12 = vpop.permute.xlu2 %1538  ;;  %3427 = vst.msk [vmem:[#allocation3 + $0xe0] sm:$0xff] %vm3206_vm3, %v8081_v0 }
 0x2a3   :  { %1573 = vst.msk [vmem:[#allocation5 + $0x30] sm:$0xff] %vm1566_vm12, %v1531_v11  ;;  %3164 = vmatpush.bf16.msra.mxu0 %v7918_v10  ;;  %v2161_v10 = vld [vmem:[#allocation2 + $0x16a] ss:$2 sm:$0xff] }
 0x2a4   :  { %1577 = vst.msk [vmem:[#allocation5 + $0x50] sm:$0xff] %vm1566_vm12, %v1539_v12 }
 0x2a5   :  { %3429 = vst.msk [vmem:[#allocation3 + $0xf0] sm:$0xff] %vm3206_vm3, %v8081_v0 }
 0x2a6   :  { %2087 = vrot.lane.b32.xlu0 %v2040_v13, %s8097_s17  ;;  %3430 = vst.msk [vmem:[#allocation3 + $0xf8] sm:$0xff] %vm3206_vm3, %v8081_v0 }
 0x2a7   :  { %3435 = vst.msk [vmem:[#allocation3 + $0x120] sm:$0xff] %vm3206_vm3, %v8081_v0 }
 0x2a8   :  { %2089 = vrot.lane.b32.xlu1 %v2042_v14, %s8097_s17  ;;  %v1535_v16 = vpop.permute.xlu0 %1534  ;;  %1861 = vrot.lane.b32.xlu2 %v1814_v15, %s8095_s16  ;;  %v2046_v14 = vld [vmem:[#allocation2 + $0x139] ss:$2 sm:$0xff]  ;;  %v2157_v15 = vld [vmem:[#allocation2 + $0x10a] ss:$2 sm:$0xff]  ;;  %3436 = vst.msk [vmem:[#allocation3 + $0x128] sm:$0xff] %vm3206_vm3, %v8081_v0 }
 0x2a9   :  { %1575 = vst.msk [vmem:[#allocation5 + $0x40] sm:$0xff] %vm1566_vm12, %v1535_v16  ;;  %v1820_v16 = vld [vmem:[#allocation2 + $0x124] ss:$2 sm:$0xff] }
 0x2aa   :  { %v1537_v17 = vpop.permute.xlu1 %1536  ;;  %v1545_v18 = vpop.permute.xlu2 %1544  ;;  %3438 = vst.msk [vmem:[#allocation3 + $0x138] sm:$0xff] %vm3206_vm3, %v8081_v0 }
 0x2ab   :  { %1576 = vst.msk [vmem:[#allocation5 + $0x48] sm:$0xff] %vm1566_vm12, %v1537_v17 }
 0x2ac   :  { %1580 = vst.msk [vmem:[#allocation5 + $0x68] sm:$0xff] %vm1566_vm12, %v1545_v18 }
 0x2ad   :  { %3439 = vst.msk [vmem:[#allocation3 + $0x140] sm:$0xff] %vm3206_vm3, %v8081_v0 }
 0x2ae   :  { %2202 = vrot.lane.b32.xlu0 %v2155_v19, %s8098_s20  ;;  %3441 = vst.msk [vmem:[#allocation3 + $0x150] sm:$0xff] %vm3206_vm3, %v8081_v0 }
 0x2af   :  { %3442 = vst.msk [vmem:[#allocation3 + $0x158] sm:$0xff] %vm3206_vm3, %v8081_v0 }
 0x2b0   :  { %2313 = vrot.lane.b32.xlu1 %v2266_v20, %s8099_s22  ;;  %v1541_v22 = vpop.permute.xlu0 %1540  ;;  %1976 = vrot.lane.b32.xlu2 %v1929_v21, %s8096_s18  ;;  %v2270_v20 = vld [vmem:[#allocation2 + $0x10b] ss:$2 sm:$0xff]  ;;  %v2272_v21 = vld [vmem:[#allocation2 + $0x13b] ss:$2 sm:$0xff]  ;;  %3444 = vst.msk [vmem:[#allocation3 + $0x168] sm:$0xff] %vm3206_vm3, %v8081_v0 }
 0x2b1   :  { %1578 = vst.msk [vmem:[#allocation5 + $0x58] sm:$0xff] %vm1566_vm12, %v1541_v22  ;;  %v2044_v22 = vld [vmem:[#allocation2 + $0x109] ss:$2 sm:$0xff] }
 0x2b2   :  { %v1543_v23 = vpop.permute.xlu1 %1542  ;;  %v1632_v24 = vpop.permute.xlu2 %1631  ;;  %3445 = vst.msk [vmem:[#allocation3 + $0x170] sm:$0xff] %vm3206_vm3, %v8081_v0 }
 0x2b3   :  { %1579 = vst.msk [vmem:[#allocation5 + $0x60] sm:$0xff] %vm1566_vm12, %v1543_v23 }
 0x2b4   :  { %1680 = vst.msk [vmem:[#allocation5] sm:$0xff] %vm1679_vm13, %v1632_v24 }
 0x2b5   :  { %3447 = vst.msk [vmem:[#allocation3 + $0x180] sm:$0xff] %vm3206_vm3, %v8081_v0 }
 0x2b6   :  { %2426 = vrot.lane.b32.xlu0 %v2379_v25, %s8100_s23  ;;  %3448 = vst.msk [vmem:[#allocation3 + $0x188] sm:$0xff] %vm3206_vm3, %v8081_v0 }
 0x2b7   :  { %3450 = vst.msk [vmem:[#allocation3 + $0x198] sm:$0xff] %vm3206_vm3, %v8081_v0 }
 0x2b8   :  { %2428 = vrot.lane.b32.xlu1 %v2381_v26, %s8100_s23  ;;  %v1547_v28 = vpop.permute.xlu0 %1546  ;;  %2200 = vrot.lane.b32.xlu2 %v2153_v27, %s8098_s20  ;;  %v2385_v26 = vld [vmem:[#allocation2 + $0x13c] ss:$2 sm:$0xff]  ;;  %3451 = vst.msk [vmem:[#allocation3 + $0x1a0] sm:$0xff] %vm3206_vm3, %v8081_v0 }
 0x2b9   :  { %1581 = vst.msk [vmem:[#allocation5 + $0x70] sm:$0xff] %vm1566_vm12, %v1547_v28  ;;  %v2496_v27 = vld [vmem:[#allocation2 + $0x120] ss:$2 sm:$0xff] }
 0x2ba   :  { %v1549_v29 = vpop.permute.xlu1 %1548  ;;  %v1747_v30 = vpop.permute.xlu2 %1746  ;;  %v2159_v28 = vld [vmem:[#allocation2 + $0x13a] ss:$2 sm:$0xff]  ;;  %3453 = vst.msk [vmem:[#allocation3 + $0x1b0] sm:$0xff] %vm3206_vm3, %v8081_v0 }
 0x2bb   :  { %1582 = vst.msk [vmem:[#allocation5 + $0x78] sm:$0xff] %vm1566_vm12, %v1549_v29  ;;  %vm3128_vm12 = vcmask 818176  }
 0x2bc   :  { %3454 = vst.msk [vmem:[#allocation3 + $0x1b8] sm:$0xff] %vm3206_vm3, %v8081_v0 }
 0x2bd   :  { %3456 = vst.msk [vmem:[#allocation3 + $0x1c8] sm:$0xff] %vm3206_vm3, %v8081_v0 }
 0x2be   :  { %2541 = vrot.lane.b32.xlu0 %v2494_v31, %s8101_s24  ;;  %3457 = vst.msk [vmem:[#allocation3 + $0x1d0] sm:$0xff] %vm3206_vm3, %v8081_v0 }
 0x2bf   :  { %3459 = vst.msk [vmem:[#allocation3 + $0x1e0] sm:$0xff] %vm3206_vm3, %v8081_v0 }
 0x2c0   :  { %2652 = vrot.lane.b32.xlu1 %v2605_v32, %s8102_s25  ;;  %v1634_v34 = vpop.permute.xlu0 %1633  ;;  %2315 = vrot.lane.b32.xlu2 %v2268_v33, %s8099_s22  ;;  %v2609_v32 = vld [vmem:[#allocation2 + $0x121] ss:$2 sm:$0xff]  ;;  %v2611_v33 = vld [vmem:[#allocation2 + $0x151] ss:$2 sm:$0xff]  ;;  %3460 = vst.msk [vmem:[#allocation3 + $0x1e8] sm:$0xff] %vm3206_vm3, %v8081_v0 }
 0x2c1   :  { %1681 = vst.msk [vmem:[#allocation5 + $0x8] sm:$0xff] %vm1679_vm13, %v1634_v34  ;;  %v2383_v34 = vld [vmem:[#allocation2 + $0x10c] ss:$2 sm:$0xff] }
 0x2c2   :  { %1794 = vst.msk [vmem:[#allocation5 + $0x8] sm:$0xff] %vm1792_vm14, %v1747_v30  ;;  %v1745_v35 = vpop.permute.xlu1 %1744  ;;  %v1971_v36 = vpop.permute.xlu2 %1970 }
 0x2c3   :  { %1793 = vst.msk [vmem:[#allocation5] sm:$0xff] %vm1792_vm14, %v1745_v35  ;;  %v195_v35 = vld [vmem:[%s10927_s0 + $0xf0] sm:$0xff] }
 0x2c4   :  { %260 = vst.msk [vmem:[#allocation2 + $0x19a] sm:$0xff] %vm43_vm0, %v195_v35 }
 0x2c5   :  { %3462 = vst.msk [vmem:[#allocation3 + $0x1f8] sm:$0xff] %vm3206_vm3, %v8081_v0 }
 0x2c6   :  { %2765 = vrot.lane.b32.xlu0 %v2718_v37, %s8103_s26  ;;  %3463 = vst.msk [vmem:[#allocation3 + $0x200] sm:$0xff] %vm3206_vm3, %v8081_v0 }
 0x2c7   :  { %3465 = vst.msk [vmem:[#allocation3 + $0x210] sm:$0xff] %vm3206_vm3, %v8081_v0 }
 0x2c8   :  { %2767 = vrot.lane.b32.xlu1 %v2720_v38, %s8103_s26  ;;  %v1858_v40 = vpop.permute.xlu0 %1857  ;;  %2539 = vrot.lane.b32.xlu2 %v2492_v39, %s8101_s24  ;;  %3466 = vst.msk [vmem:[#allocation3 + $0x218] sm:$0xff] %vm3206_vm3, %v8081_v0 }
 0x2c9   :  { %1906 = vst.msk [vmem:[#allocation5] sm:$0xff] %vm1905_vm15, %v1858_v40 }
 0x2ca   :  { %2019 = vst.msk [vmem:[#allocation5] sm:$0xff] %vm2018_vm1, %v1971_v36  ;;  %v1860_v41 = vpop.permute.xlu1 %1859  ;;  %v2086_v42 = vpop.permute.xlu2 %2085  ;;  %v196_v36 = vld [vmem:[%s10927_s0 + $0xf8] sm:$0xff] }
 0x2cb   :  { %1907 = vst.msk [vmem:[#allocation5 + $0x8] sm:$0xff] %vm1905_vm15, %v1860_v41 }
 0x2cc   :  { %261 = vst.msk [vmem:[#allocation2 + $0x1a2] sm:$0xff] %vm43_vm0, %v196_v36 }
 0x2ce   :  { %2880 = vrot.lane.b32.xlu0 %v2833_v43, %s8104_s27  ;;  %v2724_v43 = vld [vmem:[#allocation2 + $0x152] ss:$2 sm:$0xff] }
 0x2d0   :  { %2991 = vrot.lane.b32.xlu1 %v2944_v46, %s8105_s21  ;;  %v1973_v49 = vpop.permute.xlu0 %1972  ;;  %2654 = vrot.lane.b32.xlu2 %v2607_v47, %s8102_s25 }
 0x2d1   :  { %2020 = vst.msk [vmem:[#allocation5 + $0x8] sm:$0xff] %vm2018_vm1, %v1973_v49  ;;  %v2948_v49 = vld [vmem:[#allocation2 + $0x124] ss:$2 sm:$0xff] }
 0x2d2   :  { %2133 = vst.msk [vmem:[#allocation5 + $0x8] sm:$0xff] %vm2131_vm2, %v2086_v42  ;;  %v2084_v51 = vpop.permute.xlu1 %2083  ;;  %v2310_v52 = vpop.permute.xlu2 %2309 }
 0x2d3   :  { %2132 = vst.msk [vmem:[#allocation5] sm:$0xff] %vm2131_vm2, %v2084_v51  ;;  %v2722_v51 = vld [vmem:[#allocation2 + $0x122] ss:$2 sm:$0xff] }
 0x2d6   :  { %1639 = vrot.lane.b32.xlu0 %v1592_v53, %s8093_s14 }
 0x2d8   :  { %1641 = vrot.lane.b32.xlu1 %v1594_v55, %s8093_s14  ;;  %v2197_v58 = vpop.permute.xlu0 %2196  ;;  %2878 = vrot.lane.b32.xlu2 %v2831_v56, %s8104_s27  ;;  %v1598_v55 = vld [vmem:[#allocation2 + $0x182] ss:$2 sm:$0xff]  ;;  %v1709_v56 = vld [vmem:[#allocation2 + $0x153] ss:$2 sm:$0xff] }
 0x2d9   :  { %2245 = vst.msk [vmem:[#allocation5] sm:$0xff] %vm2244_vm4, %v2197_v58 }
 0x2da   :  { %2358 = vst.msk [vmem:[#allocation5] sm:$0xff] %vm2357_vm5, %v2310_v52  ;;  %v2199_v59 = vpop.permute.xlu1 %2198  ;;  %v2425_v60 = vpop.permute.xlu2 %2424 }
 0x2db   :  { %2246 = vst.msk [vmem:[#allocation5 + $0x8] sm:$0xff] %vm2244_vm4, %v2199_v59 }
 0x2de   :  { %1754 = vrot.lane.b32.xlu0 %v1707_v61, %s8094_s15  ;;  %v1822_v61 = vld [vmem:[#allocation2 + $0x154] ss:$2 sm:$0xff] }
 0x2e0   :  { %1865 = vrot.lane.b32.xlu1 %v1818_v63, %s8095_s16  ;;  %v2312_v3 = vpop.permute.xlu0 %2311  ;;  %2993 = vrot.lane.b32.xlu2 %v2946_v1, %s8105_s21  ;;  %v1596_v63 = vld [vmem:[#allocation2 + $0x152] ss:$2 sm:$0xff] }
 0x2e1   :  { %2359 = vst.msk [vmem:[#allocation5 + $0x8] sm:$0xff] %vm2357_vm5, %v2312_v3 }
 0x2e2   :  { %2472 = vst.msk [vmem:[#allocation5 + $0x8] sm:$0xff] %vm2470_vm6, %v2425_v60  ;;  %v2423_v4 = vpop.permute.xlu1 %2422  ;;  %v2649_v5 = vpop.permute.xlu2 %2648 }
 0x2e3   :  { %2471 = vst.msk [vmem:[#allocation5] sm:$0xff] %vm2470_vm6, %v2423_v4  ;;  %v1937_v4 = vld [vmem:[#allocation2 + $0x198] ss:$2 sm:$0xff] }
 0x2e6   :  { %1978 = vrot.lane.b32.xlu0 %v1931_v6, %s8096_s18  ;;  %v1711_v6 = vld [vmem:[#allocation2 + $0x183] ss:$2 sm:$0xff] }
 0x2e8   :  { %1980 = vrot.lane.b32.xlu1 %v1933_v8, %s8096_s18  ;;  %v2536_v11 = vpop.permute.xlu0 %2535  ;;  %1752 = vrot.lane.b32.xlu2 %v1705_v9, %s8094_s15 }
 0x2e9   :  { %2584 = vst.msk [vmem:[#allocation5] sm:$0xff] %vm2583_vm7, %v2536_v11  ;;  %v2163_v11 = vld [vmem:[#allocation2 + $0x19a] ss:$2 sm:$0xff] }
 0x2ea   :  { %2697 = vst.msk [vmem:[#allocation5] sm:$0xff] %vm2696_vm8, %v2649_v5  ;;  %v2538_v12 = vpop.permute.xlu1 %2537  ;;  %v2764_v13 = vpop.permute.xlu2 %2763  ;;  %v2048_v5 = vld [vmem:[#allocation2 + $0x169] ss:$2 sm:$0xff] }
 0x2eb   :  { %2585 = vst.msk [vmem:[#allocation5 + $0x8] sm:$0xff] %vm2583_vm7, %v2538_v12  ;;  %v1935_v12 = vld [vmem:[#allocation2 + $0x168] ss:$2 sm:$0xff] }
 0x2ee   :  { %2093 = vrot.lane.b32.xlu0 %v2046_v14, %s8097_s17 }
 0x2f0   :  { %2204 = vrot.lane.b32.xlu1 %v2157_v15, %s8098_s20  ;;  %v2651_v17 = vpop.permute.xlu0 %2650  ;;  %1867 = vrot.lane.b32.xlu2 %v1820_v16, %s8095_s16  ;;  %v2276_v16 = vld [vmem:[#allocation2 + $0x19b] ss:$2 sm:$0xff] }
 0x2f1   :  { %2698 = vst.msk [vmem:[#allocation5 + $0x8] sm:$0xff] %vm2696_vm8, %v2651_v17  ;;  %v2387_v17 = vld [vmem:[#allocation2 + $0x16c] ss:$2 sm:$0xff] }
 0x2f2   :  { %2811 = vst.msk [vmem:[#allocation5 + $0x8] sm:$0xff] %vm2809_vm9, %v2764_v13  ;;  %v2762_v18 = vpop.permute.xlu1 %2761  ;;  %v2988_v19 = vpop.permute.xlu2 %2987 }
 0x2f3   :  { %2810 = vst.msk [vmem:[#allocation5] sm:$0xff] %vm2809_vm9, %v2762_v18  ;;  %v2050_v18 = vld [vmem:[#allocation2 + $0x199] ss:$2 sm:$0xff] }
 0x2f6   :  { %2317 = vrot.lane.b32.xlu0 %v2270_v20, %s8099_s22 }
 0x2f8   :  { %2319 = vrot.lane.b32.xlu1 %v2272_v21, %s8099_s22  ;;  %v2875_v23 = vpop.permute.xlu0 %2874  ;;  %2091 = vrot.lane.b32.xlu2 %v2044_v22, %s8097_s17  ;;  %v2500_v22 = vld [vmem:[#allocation2 + $0x180] ss:$2 sm:$0xff] }
 0x2f9   :  { %2923 = vst.msk [vmem:[#allocation5] sm:$0xff] %vm2922_vm10, %v2875_v23  ;;  %v2502_v23 = vld [vmem:[#allocation2 + $0x1b0] ss:$2 sm:$0xff] }
 0x2fa   :  { %3036 = vst.msk [vmem:[#allocation5] sm:$0xff] %vm3035_vm11, %v2988_v19  ;;  %v2877_v24 = vpop.permute.xlu1 %2876  ;;  %v1638_v25 = vpop.permute.xlu2 %1637 }
 0x2fb   :  { %2924 = vst.msk [vmem:[#allocation5 + $0x8] sm:$0xff] %vm2922_vm10, %v2877_v24  ;;  %v2274_v24 = vld [vmem:[#allocation2 + $0x16b] ss:$2 sm:$0xff] }
 0x2fc   :  { %1683 = vst.msk [vmem:[#allocation5 + $0x18] sm:$0xff] %vm1679_vm13, %v1638_v25 }
 0x2fe   :  { %2432 = vrot.lane.b32.xlu0 %v2385_v26, %s8100_s23 }
 0x300   :  { %2543 = vrot.lane.b32.xlu1 %v2496_v27, %s8101_s24  ;;  %v2990_v29 = vpop.permute.xlu0 %2989  ;;  %2206 = vrot.lane.b32.xlu2 %v2159_v28, %s8098_s20 }
 0x301   :  { %3037 = vst.msk [vmem:[#allocation5 + $0x8] sm:$0xff] %vm3035_vm11, %v2990_v29  ;;  %v3052_v38 = vld [vmem:[#allocation5] sm:$0xff] }
 0x302   :  { %v1636_v30 = vpop.permute.xlu1 %1635  ;;  %v1862_v31 = vpop.permute.xlu2 %1861 }
 0x303   :  { %1682 = vst.msk [vmem:[#allocation5 + $0x10] sm:$0xff] %vm1679_vm13, %v1636_v30 }
 0x306   :  { %2656 = vrot.lane.b32.xlu0 %v2609_v32, %s8102_s25  ;;  %v2726_v32 = vld [vmem:[#allocation2 + $0x182] ss:$2 sm:$0xff] }
 0x308   :  { %2658 = vrot.lane.b32.xlu1 %v2611_v33, %s8102_s25  ;;  %v1749_v37 = vpop.permute.xlu0 %1748  ;;  %v3053_v39 = vld [vmem:[#allocation5 + $0x8] sm:$0xff]  ;;  %2430 = vrot.lane.b32.xlu2 %v2383_v34, %s8100_s23 }
 0x309   :  { %1795 = vst.msk [vmem:[#allocation5 + $0x10] sm:$0xff] %vm1792_vm14, %v1749_v37  ;;  %v3068_v40 = vpack.c.bf16 %v3053_v39, %v3052_v38  ;;  %v2389_v33 = vld [vmem:[#allocation2 + $0x19c] ss:$2 sm:$0xff]  ;;  %v2839_v37 = vld [vmem:[#allocation2 + $0x183] ss:$2 sm:$0xff] }
 0x30a   :  { %1908 = vst.msk [vmem:[#allocation5 + $0x10] sm:$0xff] %vm1905_vm15, %v1862_v31  ;;  %v1751_v41 = vpop.permute.xlu1 %1750  ;;  %v1977_v42 = vpop.permute.xlu2 %1976  ;;  %v2615_v31 = vld [vmem:[#allocation2 + $0x1b1] ss:$2 sm:$0xff]  ;;  %v2613_v39 = vld [vmem:[#allocation2 + $0x181] ss:$2 sm:$0xff] }
 0x30b   :  { %1796 = vst.msk [vmem:[#allocation5 + $0x18] sm:$0xff] %vm1792_vm14, %v1751_v41  ;;  %7528 = vmatmul.msk.bf16.vlgmr.msra.gmra.mxu0 %vm3128_vm12, %v3068_v40  ;;  %v2841_v38 = vld [vmem:[#allocation2 + $0x1b3] ss:$2 sm:$0xff] }
 0x30e   :  { %2771 = vrot.lane.b32.xlu0 %v2724_v43, %s8103_s26  ;;  %v2954_v43 = vld [vmem:[#allocation2 + $0x1b4] ss:$2 sm:$0xff] }
 0x310   :  { %2882 = vrot.lane.b32.xlu1 %v2835_v44, %s8104_s27  ;;  %v1864_v46 = vpop.permute.xlu0 %1863  ;;  %2545 = vrot.lane.b32.xlu2 %v2498_v45, %s8101_s24  ;;  %v1600_v44 = vld [vmem:[#allocation2 + $0x212] ss:$2 sm:$0xff] }
 0x311   :  { %1909 = vst.msk [vmem:[#allocation5 + $0x18] sm:$0xff] %vm1905_vm15, %v1864_v46  ;;  %v2728_v45 = vld [vmem:[#allocation2 + $0x1b2] ss:$2 sm:$0xff] }
 0x312   :  { %2022 = vst.msk [vmem:[#allocation5 + $0x18] sm:$0xff] %vm2018_vm1, %v1977_v42  ;;  %v1975_v47 = vpop.permute.xlu1 %1974  ;;  %v2201_v48 = vpop.permute.xlu2 %2200 }
 0x313   :  { %2021 = vst.msk [vmem:[#allocation5 + $0x10] sm:$0xff] %vm2018_vm1, %v1975_v47 }
 0x316   :  { %2995 = vrot.lane.b32.xlu0 %v2948_v49, %s8105_s21  ;;  %v1713_v49 = vld [vmem:[#allocation2 + $0x213] ss:$2 sm:$0xff] }
 0x318   :  { %2997 = vrot.lane.b32.xlu1 %v2950_v50, %s8105_s21  ;;  %v2088_v52 = vpop.permute.xlu0 %2087  ;;  %2769 = vrot.lane.b32.xlu2 %v2722_v51, %s8103_s26  ;;  %v1715_v50 = vld [vmem:[#allocation2 + $0x243] ss:$2 sm:$0xff]  ;;  %v2952_v51 = vld [vmem:[#allocation2 + $0x184] ss:$2 sm:$0xff] }
 0x319   :  { %2134 = vst.msk [vmem:[#allocation5 + $0x10] sm:$0xff] %vm2131_vm2, %v2088_v52 }
 0x31a   :  { %2247 = vst.msk [vmem:[#allocation5 + $0x10] sm:$0xff] %vm2244_vm4, %v2201_v48  ;;  %v2090_v53 = vpop.permute.xlu1 %2089  ;;  %v2316_v54 = vpop.permute.xlu2 %2315 }
 0x31b   :  { %2135 = vst.msk [vmem:[#allocation5 + $0x18] sm:$0xff] %vm2131_vm2, %v2090_v53 }
 0x31e   :  { %1645 = vrot.lane.b32.xlu0 %v1598_v55, %s8093_s14  ;;  %v1828_v55 = vld [vmem:[#allocation2 + $0x244] ss:$2 sm:$0xff] }
 0x320   :  { %1756 = vrot.lane.b32.xlu1 %v1709_v56, %s8094_s15  ;;  %v2203_v58 = vpop.permute.xlu0 %2202  ;;  %2884 = vrot.lane.b32.xlu2 %v2837_v57, %s8104_s27  ;;  %v1939_v56 = vld [vmem:[#allocation2 + $0x228] ss:$2 sm:$0xff] }
 0x321   :  { %2248 = vst.msk [vmem:[#allocation5 + $0x18] sm:$0xff] %vm2244_vm4, %v2203_v58  ;;  %v1602_v57 = vld [vmem:[#allocation2 + $0x242] ss:$2 sm:$0xff] }
 0x322   :  { %2361 = vst.msk [vmem:[#allocation5 + $0x18] sm:$0xff] %vm2357_vm5, %v2316_v54  ;;  %v2314_v59 = vpop.permute.xlu1 %2313  ;;  %v2540_v60 = vpop.permute.xlu2 %2539 }
 0x323   :  { %2360 = vst.msk [vmem:[#allocation5 + $0x10] sm:$0xff] %vm2357_vm5, %v2314_v59 }
 0x326   :  { %1869 = vrot.lane.b32.xlu0 %v1822_v61, %s8095_s16  ;;  %v2052_v61 = vld [vmem:[#allocation2 + $0x229] ss:$2 sm:$0xff] }
 0x328   :  { %1871 = vrot.lane.b32.xlu1 %v1824_v62, %s8095_s16  ;;  %v2427_v1 = vpop.permute.xlu0 %2426  ;;  %1643 = vrot.lane.b32.xlu2 %v1596_v63, %s8093_s14  ;;  %v2054_v62 = vld [vmem:[#allocation2 + $0x259] ss:$2 sm:$0xff]  ;;  %v1826_v63 = vld [vmem:[#allocation2 + $0x214] ss:$2 sm:$0xff] }
 0x329   :  { %2473 = vst.msk [vmem:[#allocation5 + $0x10] sm:$0xff] %vm2470_vm6, %v2427_v1 }
 0x32a   :  { %2586 = vst.msk [vmem:[#allocation5 + $0x10] sm:$0xff] %vm2583_vm7, %v2540_v60  ;;  %v2429_v2 = vpop.permute.xlu1 %2428  ;;  %v2655_v3 = vpop.permute.xlu2 %2654 }
 0x32b   :  { %2474 = vst.msk [vmem:[#allocation5 + $0x18] sm:$0xff] %vm2470_vm6, %v2429_v2 }
 0x32e   :  { %1984 = vrot.lane.b32.xlu0 %v1937_v4, %s8096_s18  ;;  %v2167_v4 = vld [vmem:[#allocation2 + $0x25a] ss:$2 sm:$0xff] }
 0x330   :  { %2095 = vrot.lane.b32.xlu1 %v2048_v5, %s8097_s17  ;;  %v2542_v7 = vpop.permute.xlu0 %2541  ;;  %1758 = vrot.lane.b32.xlu2 %v1711_v6, %s8094_s15  ;;  %v2278_v5 = vld [vmem:[#allocation2 + $0x22b] ss:$2 sm:$0xff]  ;;  %v1941_v6 = vld [vmem:[#allocation2 + $0x258] ss:$2 sm:$0xff] }
 0x331   :  { %2587 = vst.msk [vmem:[#allocation5 + $0x18] sm:$0xff] %vm2583_vm7, %v2542_v7 }
 0x332   :  { %2700 = vst.msk [vmem:[#allocation5 + $0x18] sm:$0xff] %vm2696_vm8, %v2655_v3  ;;  %v2653_v8 = vpop.permute.xlu1 %2652  ;;  %v2879_v9 = vpop.permute.xlu2 %2878 }
 0x333   :  { %2699 = vst.msk [vmem:[#allocation5 + $0x10] sm:$0xff] %vm2696_vm8, %v2653_v8 }
 0x336   :  { %2208 = vrot.lane.b32.xlu0 %v2161_v10, %s8098_s20  ;;  %v2391_v10 = vld [vmem:[#allocation2 + $0x22c] ss:$2 sm:$0xff] }
 0x338   :  { %2210 = vrot.lane.b32.xlu1 %v2163_v11, %s8098_s20  ;;  %v2766_v13 = vpop.permute.xlu0 %2765  ;;  %1982 = vrot.lane.b32.xlu2 %v1935_v12, %s8096_s18  ;;  %v2393_v11 = vld [vmem:[#allocation2 + $0x25c] ss:$2 sm:$0xff] }
 0x339   :  { %2812 = vst.msk [vmem:[#allocation5 + $0x10] sm:$0xff] %vm2809_vm9, %v2766_v13  ;;  %v2165_v12 = vld [vmem:[#allocation2 + $0x22a] ss:$2 sm:$0xff] }
 0x33a   :  { %2925 = vst.msk [vmem:[#allocation5 + $0x10] sm:$0xff] %vm2922_vm10, %v2879_v9  ;;  %v2768_v14 = vpop.permute.xlu1 %2767  ;;  %v2994_v15 = vpop.permute.xlu2 %2993 }
 0x33b   :  { %2813 = vst.msk [vmem:[#allocation5 + $0x18] sm:$0xff] %vm2809_vm9, %v2768_v14 }
 0x33e   :  { %2323 = vrot.lane.b32.xlu0 %v2276_v16, %s8099_s22  ;;  %v2506_v16 = vld [vmem:[#allocation2 + $0x270] ss:$2 sm:$0xff] }
 0x340   :  { %2434 = vrot.lane.b32.xlu1 %v2387_v17, %s8100_s23  ;;  %v2881_v19 = vpop.permute.xlu0 %2880  ;;  %2097 = vrot.lane.b32.xlu2 %v2050_v18, %s8097_s17  ;;  %v2617_v17 = vld [vmem:[#allocation2 + $0x241] ss:$2 sm:$0xff] }
 0x341   :  { %2926 = vst.msk [vmem:[#allocation5 + $0x18] sm:$0xff] %vm2922_vm10, %v2881_v19  ;;  %v2280_v19 = vld [vmem:[#allocation2 + $0x25b] ss:$2 sm:$0xff] }
 0x342   :  { %3039 = vst.msk [vmem:[#allocation5 + $0x18] sm:$0xff] %vm3035_vm11, %v2994_v15  ;;  %v2992_v20 = vpop.permute.xlu1 %2991  ;;  %v1753_v21 = vpop.permute.xlu2 %1752 }
 0x343   :  { %3038 = vst.msk [vmem:[#allocation5 + $0x10] sm:$0xff] %vm3035_vm11, %v2992_v20 }
 0x346   :  { %2547 = vrot.lane.b32.xlu0 %v2500_v22, %s8101_s24  ;;  %v2730_v22 = vld [vmem:[#allocation2 + $0x242] ss:$2 sm:$0xff] }
 0x348   :  { %2549 = vrot.lane.b32.xlu1 %v2502_v23, %s8101_s24  ;;  %v1640_v25 = vpop.permute.xlu0 %1639  ;;  %2321 = vrot.lane.b32.xlu2 %v2274_v24, %s8099_s22  ;;  %v2732_v23 = vld [vmem:[#allocation2 + $0x272] ss:$2 sm:$0xff] }
 0x349   :  { %1684 = vst.msk [vmem:[#allocation5 + $0x20] sm:$0xff] %vm1679_vm13, %v1640_v25  ;;  %v3055_v26 = vld [vmem:[#allocation5 + $0x18] sm:$0xff]  ;;  %v2504_v24 = vld [vmem:[#allocation2 + $0x240] ss:$2 sm:$0xff] }
 0x34a   :  { %1797 = vst.msk [vmem:[#allocation5 + $0x20] sm:$0xff] %vm1792_vm14, %v1753_v21  ;;  %v1642_v27 = vpop.permute.xlu1 %1641  ;;  %v3054_v28 = vld [vmem:[#allocation5 + $0x10] sm:$0xff]  ;;  %v1868_v29 = vpop.permute.xlu2 %1867 }
 0x34b   :  { %1685 = vst.msk [vmem:[#allocation5 + $0x28] sm:$0xff] %vm1679_vm13, %v1642_v27  ;;  %v3069_v30 = vpack.c.bf16 %v3055_v26, %v3054_v28  ;;  %v2845_v28 = vld [vmem:[#allocation2 + $0x273] ss:$2 sm:$0xff] }
 0x34d   :  { %7529 = vmatmul.msk.bf16.gmra.mxu0 %vm3128_vm12, %v3069_v30  ;;  %v2619_v30 = vld [vmem:[#allocation2 + $0x271] ss:$2 sm:$0xff] }
 0x34e   :  { %2662 = vrot.lane.b32.xlu0 %v2615_v31, %s8102_s25 }
 0x350   :  { %2773 = vrot.lane.b32.xlu1 %v2726_v32, %s8103_s26  ;;  %v1755_v34 = vpop.permute.xlu0 %1754  ;;  %2436 = vrot.lane.b32.xlu2 %v2389_v33, %s8100_s23 }
 0x351   :  { %1798 = vst.msk [vmem:[#allocation5 + $0x28] sm:$0xff] %vm1792_vm14, %v1755_v34  ;;  %v1604_v34 = vld [vmem:[#allocation2 + $0x272] ss:$2 sm:$0xff] }
 0x352   :  { %1911 = vst.msk [vmem:[#allocation5 + $0x28] sm:$0xff] %vm1905_vm15, %v1868_v29  ;;  %v1866_v35 = vpop.permute.xlu1 %1865  ;;  %v2092_v36 = vpop.permute.xlu2 %2091  ;;  %v2956_v29 = vld [vmem:[#allocation2 + $0x244] ss:$2 sm:$0xff] }
 0x353   :  { %1910 = vst.msk [vmem:[#allocation5 + $0x20] sm:$0xff] %vm1905_vm15, %v1866_v35  ;;  %v1606_v35 = vld [vmem:[#allocation2 + $0x2a2] ss:$2 sm:$0xff] }
 0x356   :  { %2886 = vrot.lane.b32.xlu0 %v2839_v37, %s8104_s27 }
 0x358   :  { %2888 = vrot.lane.b32.xlu1 %v2841_v38, %s8104_s27  ;;  %v1979_v40 = vpop.permute.xlu0 %1978  ;;  %2660 = vrot.lane.b32.xlu2 %v2613_v39, %s8102_s25 }
 0x359   :  { %2023 = vst.msk [vmem:[#allocation5 + $0x20] sm:$0xff] %vm2018_vm1, %v1979_v40  ;;  %v1719_v40 = vld [vmem:[#allocation2 + $0x2a3] ss:$2 sm:$0xff] }
 0x35a   :  { %2136 = vst.msk [vmem:[#allocation5 + $0x20] sm:$0xff] %vm2131_vm2, %v2092_v36  ;;  %v1981_v41 = vpop.permute.xlu1 %1980  ;;  %v2207_v42 = vpop.permute.xlu2 %2206  ;;  %v2843_v36 = vld [vmem:[#allocation2 + $0x243] ss:$2 sm:$0xff] }
 0x35b   :  { %2024 = vst.msk [vmem:[#allocation5 + $0x28] sm:$0xff] %vm2018_vm1, %v1981_v41 }
 0x35e   :  { %3001 = vrot.lane.b32.xlu0 %v2954_v43, %s8105_s21 }
 0x360   :  { %1647 = vrot.lane.b32.xlu1 %v1600_v44, %s8093_s14  ;;  %v2094_v46 = vpop.permute.xlu0 %2093  ;;  %2775 = vrot.lane.b32.xlu2 %v2728_v45, %s8103_s26  ;;  %v2958_v45 = vld [vmem:[#allocation2 + $0x274] ss:$2 sm:$0xff] }
 0x361   :  { %2137 = vst.msk [vmem:[#allocation5 + $0x28] sm:$0xff] %vm2131_vm2, %v2094_v46 }
 0x362   :  { %2250 = vst.msk [vmem:[#allocation5 + $0x28] sm:$0xff] %vm2244_vm4, %v2207_v42  ;;  %v2205_v47 = vpop.permute.xlu1 %2204  ;;  %v2431_v48 = vpop.permute.xlu2 %2430  ;;  %v1830_v42 = vld [vmem:[#allocation2 + $0x274] ss:$2 sm:$0xff] }
 0x363   :  { %2249 = vst.msk [vmem:[#allocation5 + $0x20] sm:$0xff] %vm2244_vm4, %v2205_v47 }
 0x366   :  { %1760 = vrot.lane.b32.xlu0 %v1713_v49, %s8094_s15  ;;  %v1943_v49 = vld [vmem:[#allocation2 + $0x288] ss:$2 sm:$0xff] }
 0x368   :  { %1762 = vrot.lane.b32.xlu1 %v1715_v50, %s8094_s15  ;;  %v2318_v52 = vpop.permute.xlu0 %2317  ;;  %2999 = vrot.lane.b32.xlu2 %v2952_v51, %s8105_s21  ;;  %v1945_v50 = vld [vmem:[#allocation2 + $0x2b8] ss:$2 sm:$0xff]  ;;  %v1717_v51 = vld [vmem:[#allocation2 + $0x273] ss:$2 sm:$0xff] }
 0x369   :  { %2362 = vst.msk [vmem:[#allocation5 + $0x20] sm:$0xff] %vm2357_vm5, %v2318_v52 }
 0x36a   :  { %2475 = vst.msk [vmem:[#allocation5 + $0x20] sm:$0xff] %vm2470_vm6, %v2431_v48  ;;  %v2320_v53 = vpop.permute.xlu1 %2319  ;;  %v2546_v54 = vpop.permute.xlu2 %2545 }
 0x36b   :  { %2363 = vst.msk [vmem:[#allocation5 + $0x28] sm:$0xff] %vm2357_vm5, %v2320_v53 }
 0x36e   :  { %1875 = vrot.lane.b32.xlu0 %v1828_v55, %s8095_s16  ;;  %v2058_v55 = vld [vmem:[#allocation2 + $0x2b9] ss:$2 sm:$0xff] }
 0x370   :  { %1986 = vrot.lane.b32.xlu1 %v1939_v56, %s8096_s18  ;;  %v2433_v58 = vpop.permute.xlu0 %2432  ;;  %1649 = vrot.lane.b32.xlu2 %v1602_v57, %s8093_s14  ;;  %v2169_v56 = vld [vmem:[#allocation2 + $0x28a] ss:$2 sm:$0xff] }
 0x371   :  { %2476 = vst.msk [vmem:[#allocation5 + $0x28] sm:$0xff] %vm2470_vm6, %v2433_v58  ;;  %v1832_v57 = vld [vmem:[#allocation2 + $0x2a4] ss:$2 sm:$0xff] }
 0x372   :  { %2589 = vst.msk [vmem:[#allocation5 + $0x28] sm:$0xff] %vm2583_vm7, %v2546_v54  ;;  %v2544_v59 = vpop.permute.xlu1 %2543  ;;  %v2770_v60 = vpop.permute.xlu2 %2769 }
 0x373   :  { %2588 = vst.msk [vmem:[#allocation5 + $0x20] sm:$0xff] %vm2583_vm7, %v2544_v59 }
 0x376   :  { %2099 = vrot.lane.b32.xlu0 %v2052_v61, %s8097_s17  ;;  %v2282_v61 = vld [vmem:[#allocation2 + $0x28b] ss:$2 sm:$0xff] }
 0x378   :  { %2101 = vrot.lane.b32.xlu1 %v2054_v62, %s8097_s17  ;;  %v2657_v1 = vpop.permute.xlu0 %2656  ;;  %1873 = vrot.lane.b32.xlu2 %v1826_v63, %s8095_s16  ;;  %v2284_v62 = vld [vmem:[#allocation2 + $0x2bb] ss:$2 sm:$0xff] }
 0x379   :  { %2701 = vst.msk [vmem:[#allocation5 + $0x20] sm:$0xff] %vm2696_vm8, %v2657_v1  ;;  %v2056_v63 = vld [vmem:[#allocation2 + $0x289] ss:$2 sm:$0xff] }
 0x37a   :  { %2814 = vst.msk [vmem:[#allocation5 + $0x20] sm:$0xff] %vm2809_vm9, %v2770_v60  ;;  %v2659_v2 = vpop.permute.xlu1 %2658  ;;  %v2885_v3 = vpop.permute.xlu2 %2884 }
 0x37b   :  { %2702 = vst.msk [vmem:[#allocation5 + $0x28] sm:$0xff] %vm2696_vm8, %v2659_v2 }
 0x37e   :  { %2214 = vrot.lane.b32.xlu0 %v2167_v4, %s8098_s20 }
 0x380   :  { %2325 = vrot.lane.b32.xlu1 %v2278_v5, %s8099_s22  ;;  %v2772_v7 = vpop.permute.xlu0 %2771  ;;  %1988 = vrot.lane.b32.xlu2 %v1941_v6, %s8096_s18  ;;  %v2508_v5 = vld [vmem:[#allocation2 + $0x2a0] ss:$2 sm:$0xff] }
 0x381   :  { %2815 = vst.msk [vmem:[#allocation5 + $0x28] sm:$0xff] %vm2809_vm9, %v2772_v7  ;;  %v2171_v6 = vld [vmem:[#allocation2 + $0x2ba] ss:$2 sm:$0xff] }
 0x382   :  { %2928 = vst.msk [vmem:[#allocation5 + $0x28] sm:$0xff] %vm2922_vm10, %v2885_v3  ;;  %v2883_v8 = vpop.permute.xlu1 %2882  ;;  %v9261_v9 = vpop.permute.xlu2 %1643  ;;  %v2397_v3 = vld [vmem:[#allocation2 + $0x2bc] ss:$2 sm:$0xff] }
 0x383   :  { %2927 = vst.msk [vmem:[#allocation5 + $0x20] sm:$0xff] %vm2922_vm10, %v2883_v8 }
 0x384   :  { %1686 = vst.msk [vmem:[#allocation5 + $0x30] sm:$0xff] %vm1679_vm13, %v9261_v9  ;;  %v2621_v9 = vld [vmem:[#allocation2 + $0x2a1] ss:$2 sm:$0xff] }
 0x386   :  { %2438 = vrot.lane.b32.xlu0 %v2391_v10, %s8100_s23 }
 0x388   :  { %2440 = vrot.lane.b32.xlu1 %v2393_v11, %s8100_s23  ;;  %v2996_v13 = vpop.permute.xlu0 %2995  ;;  %2212 = vrot.lane.b32.xlu2 %v2165_v12, %s8098_s20  ;;  %v2623_v11 = vld [vmem:[#allocation2 + $0x2d1] ss:$2 sm:$0xff]  ;;  %v2395_v12 = vld [vmem:[#allocation2 + $0x28c] ss:$2 sm:$0xff] }
 0x389   :  { %3040 = vst.msk [vmem:[#allocation5 + $0x20] sm:$0xff] %vm3035_vm11, %v2996_v13 }
 0x38a   :  { %v2998_v14 = vpop.permute.xlu1 %2997  ;;  %v1759_v15 = vpop.permute.xlu2 %1758 }
 0x38b   :  { %3041 = vst.msk [vmem:[#allocation5 + $0x28] sm:$0xff] %vm3035_vm11, %v2998_v14 }
 0x38e   :  { %2553 = vrot.lane.b32.xlu0 %v2506_v16, %s8101_s24 }
 0x390   :  { %2664 = vrot.lane.b32.xlu1 %v2617_v17, %s8102_s25  ;;  %v1646_v18 = vpop.permute.xlu0 %1645  ;;  %2327 = vrot.lane.b32.xlu2 %v2280_v19, %s8099_s22  ;;  %v3056_v41 = vld [vmem:[#allocation5 + $0x20] sm:$0xff] }
 0x391   :  { %1687 = vst.msk [vmem:[#allocation5 + $0x38] sm:$0xff] %vm1679_vm13, %v1646_v18  ;;  %v2736_v18 = vld [vmem:[#allocation2 + $0x2d2] ss:$2 sm:$0xff] }
 0x392   :  { %v1757_v20 = vpop.permute.xlu1 %1756  ;;  %v1983_v21 = vpop.permute.xlu2 %1982  ;;  %1800 = vst.msk [vmem:[#allocation5 + $0x38] sm:$0xff] %vm1792_vm14, %v1759_v15  ;;  %v3057_v43 = vld [vmem:[#allocation5 + $0x28] sm:$0xff] }
 0x393   :  { %1799 = vst.msk [vmem:[#allocation5 + $0x30] sm:$0xff] %vm1792_vm14, %v1757_v20  ;;  %v3070_v44 = vpack.c.bf16 %v3057_v43, %v3056_v41  ;;  %v2847_v20 = vld [vmem:[#allocation2 + $0x2a3] ss:$2 sm:$0xff] }
 0x395   :  { %7530 = vmatmul.msk.bf16.gmra.mxu0 %vm3128_vm12, %v3070_v44  ;;  %v2060_v44 = vld [vmem:[#allocation2 + $0x2e9] ss:$2 sm:$0xff] }
 0x396   :  { %2777 = vrot.lane.b32.xlu0 %v2730_v22, %s8103_s26 }
 0x398   :  { %2779 = vrot.lane.b32.xlu1 %v2732_v23, %s8103_s26  ;;  %v1870_v25 = vpop.permute.xlu0 %1869  ;;  %2551 = vrot.lane.b32.xlu2 %v2504_v24, %s8101_s24  ;;  %v2960_v24 = vld [vmem:[#allocation2 + $0x2a4] ss:$2 sm:$0xff] }
 0x399   :  { %1912 = vst.msk [vmem:[#allocation5 + $0x30] sm:$0xff] %vm1905_vm15, %v1870_v25 }
 0x39a   :  { %v1872_v26 = vpop.permute.xlu1 %1871  ;;  %v2098_v27 = vpop.permute.xlu2 %2097  ;;  %2025 = vst.msk [vmem:[#allocation5 + $0x30] sm:$0xff] %vm2018_vm1, %v1983_v21  ;;  %v2510_v21 = vld [vmem:[#allocation2 + $0x2d0] ss:$2 sm:$0xff] }
 0x39b   :  { %1913 = vst.msk [vmem:[#allocation5 + $0x38] sm:$0xff] %vm1905_vm15, %v1872_v26  ;;  %v2962_v26 = vld [vmem:[#allocation2 + $0x2d4] ss:$2 sm:$0xff] }
 0x39e   :  { %2892 = vrot.lane.b32.xlu0 %v2845_v28, %s8104_s27 }
 0x3a0   :  { %3003 = vrot.lane.b32.xlu1 %v2956_v29, %s8105_s21  ;;  %v1985_v31 = vpop.permute.xlu0 %1984  ;;  %2666 = vrot.lane.b32.xlu2 %v2619_v30, %s8102_s25  ;;  %v1610_v30 = vld [vmem:[#allocation2 + $0x302] ss:$2 sm:$0xff] }
 0x3a1   :  { %2026 = vst.msk [vmem:[#allocation5 + $0x38] sm:$0xff] %vm2018_vm1, %v1985_v31 }
 0x3a2   :  { %v2096_v32 = vpop.permute.xlu1 %2095  ;;  %v2322_v33 = vpop.permute.xlu2 %2321  ;;  %2139 = vst.msk [vmem:[#allocation5 + $0x38] sm:$0xff] %vm2131_vm2, %v2098_v27  ;;  %v2734_v27 = vld [vmem:[#allocation2 + $0x2a2] ss:$2 sm:$0xff] }
 0x3a3   :  { %2138 = vst.msk [vmem:[#allocation5 + $0x30] sm:$0xff] %vm2131_vm2, %v2096_v32  ;;  %v1721_v32 = vld [vmem:[#allocation2 + $0x2d3] ss:$2 sm:$0xff] }
 0x3a6   :  { %1651 = vrot.lane.b32.xlu0 %v1604_v34, %s8093_s14 }
 0x3a8   :  { %1653 = vrot.lane.b32.xlu1 %v1606_v35, %s8093_s14  ;;  %v2209_v37 = vpop.permute.xlu0 %2208  ;;  %2890 = vrot.lane.b32.xlu2 %v2843_v36, %s8104_s27  ;;  %v1834_v36 = vld [vmem:[#allocation2 + $0x2d4] ss:$2 sm:$0xff] }
 0x3a9   :  { %2251 = vst.msk [vmem:[#allocation5 + $0x30] sm:$0xff] %vm2244_vm4, %v2209_v37 }
 0x3aa   :  { %v2211_v38 = vpop.permute.xlu1 %2210  ;;  %v2437_v39 = vpop.permute.xlu2 %2436  ;;  %2364 = vst.msk [vmem:[#allocation5 + $0x30] sm:$0xff] %vm2357_vm5, %v2322_v33  ;;  %v2849_v33 = vld [vmem:[#allocation2 + $0x2d3] ss:$2 sm:$0xff] }
 0x3ab   :  { %2252 = vst.msk [vmem:[#allocation5 + $0x38] sm:$0xff] %vm2244_vm4, %v2211_v38  ;;  %v1836_v38 = vld [vmem:[#allocation2 + $0x304] ss:$2 sm:$0xff] }
 0x3ae   :  { %1766 = vrot.lane.b32.xlu0 %v1719_v40, %s8094_s15 }
 0x3b0   :  { %1877 = vrot.lane.b32.xlu1 %v1830_v42, %s8095_s16  ;;  %v2324_v46 = vpop.permute.xlu0 %2323  ;;  %3005 = vrot.lane.b32.xlu2 %v2958_v45, %s8105_s21  ;;  %v1949_v42 = vld [vmem:[#allocation2 + $0x318] ss:$2 sm:$0xff]  ;;  %v1723_v45 = vld [vmem:[#allocation2 + $0x303] ss:$2 sm:$0xff] }
 0x3b1   :  { %2365 = vst.msk [vmem:[#allocation5 + $0x38] sm:$0xff] %vm2357_vm5, %v2324_v46 }
 0x3b2   :  { %v2435_v47 = vpop.permute.xlu1 %2434  ;;  %v2661_v48 = vpop.permute.xlu2 %2660  ;;  %2478 = vst.msk [vmem:[#allocation5 + $0x38] sm:$0xff] %vm2470_vm6, %v2437_v39  ;;  %v1608_v39 = vld [vmem:[#allocation2 + $0x2d2] ss:$2 sm:$0xff] }
 0x3b3   :  { %2477 = vst.msk [vmem:[#allocation5 + $0x30] sm:$0xff] %vm2470_vm6, %v2435_v47 }
 0x3b6   :  { %1990 = vrot.lane.b32.xlu0 %v1943_v49, %s8096_s18 }
 0x3b8   :  { %1992 = vrot.lane.b32.xlu1 %v1945_v50, %s8096_s18  ;;  %v2548_v52 = vpop.permute.xlu0 %2547  ;;  %1764 = vrot.lane.b32.xlu2 %v1717_v51, %s8094_s15  ;;  %v2175_v50 = vld [vmem:[#allocation2 + $0x31a] ss:$2 sm:$0xff] }
 0x3b9   :  { %2590 = vst.msk [vmem:[#allocation5 + $0x30] sm:$0xff] %vm2583_vm7, %v2548_v52  ;;  %v1947_v51 = vld [vmem:[#allocation2 + $0x2e8] ss:$2 sm:$0xff] }
 0x3ba   :  { %2703 = vst.msk [vmem:[#allocation5 + $0x30] sm:$0xff] %vm2696_vm8, %v2661_v48  ;;  %v2550_v53 = vpop.permute.xlu1 %2549  ;;  %v2776_v54 = vpop.permute.xlu2 %2775  ;;  %v2173_v48 = vld [vmem:[#allocation2 + $0x2ea] ss:$2 sm:$0xff] }
 0x3bb   :  { %2591 = vst.msk [vmem:[#allocation5 + $0x38] sm:$0xff] %vm2583_vm7, %v2550_v53 }
 0x3be   :  { %2105 = vrot.lane.b32.xlu0 %v2058_v55, %s8097_s17 }
 0x3c0   :  { %2216 = vrot.lane.b32.xlu1 %v2169_v56, %s8098_s20  ;;  %v2663_v58 = vpop.permute.xlu0 %2662  ;;  %1879 = vrot.lane.b32.xlu2 %v1832_v57, %s8095_s16  ;;  %v2399_v56 = vld [vmem:[#allocation2 + $0x2ec] ss:$2 sm:$0xff] }
 0x3c1   :  { %2704 = vst.msk [vmem:[#allocation5 + $0x38] sm:$0xff] %vm2696_vm8, %v2663_v58  ;;  %v2062_v58 = vld [vmem:[#allocation2 + $0x319] ss:$2 sm:$0xff] }
 0x3c2   :  { %2817 = vst.msk [vmem:[#allocation5 + $0x38] sm:$0xff] %vm2809_vm9, %v2776_v54  ;;  %v2774_v59 = vpop.permute.xlu1 %2773  ;;  %v3000_v60 = vpop.permute.xlu2 %2999  ;;  %v2288_v54 = vld [vmem:[#allocation2 + $0x31b] ss:$2 sm:$0xff] }
 0x3c3   :  { %2816 = vst.msk [vmem:[#allocation5 + $0x30] sm:$0xff] %vm2809_vm9, %v2774_v59 }
 0x3c6   :  { %2329 = vrot.lane.b32.xlu0 %v2282_v61, %s8099_s22 }
 0x3c8   :  { %2331 = vrot.lane.b32.xlu1 %v2284_v62, %s8099_s22  ;;  %v2887_v1 = vpop.permute.xlu0 %2886  ;;  %2103 = vrot.lane.b32.xlu2 %v2056_v63, %s8097_s17  ;;  %v2514_v62 = vld [vmem:[#allocation2 + $0x330] ss:$2 sm:$0xff] }
 0x3c9   :  { %2929 = vst.msk [vmem:[#allocation5 + $0x30] sm:$0xff] %vm2922_vm10, %v2887_v1  ;;  %v2286_v1 = vld [vmem:[#allocation2 + $0x2eb] ss:$2 sm:$0xff] }
 0x3ca   :  { %3042 = vst.msk [vmem:[#allocation5 + $0x30] sm:$0xff] %vm3035_vm11, %v3000_v60  ;;  %v2889_v2 = vpop.permute.xlu1 %2888  ;;  %v1650_v4 = vpop.permute.xlu2 %1649  ;;  %v2512_v60 = vld [vmem:[#allocation2 + $0x300] ss:$2 sm:$0xff] }
 0x3cb   :  { %2930 = vst.msk [vmem:[#allocation5 + $0x38] sm:$0xff] %vm2922_vm10, %v2889_v2 }
 0x3cc   :  { %1689 = vst.msk [vmem:[#allocation5 + $0x48] sm:$0xff] %vm1679_vm13, %v1650_v4 }
 0x3ce   :  { %2444 = vrot.lane.b32.xlu0 %v2397_v3, %s8100_s23 }
 0x3d0   :  { %2555 = vrot.lane.b32.xlu1 %v2508_v5, %s8101_s24  ;;  %v3002_v7 = vpop.permute.xlu0 %3001  ;;  %2218 = vrot.lane.b32.xlu2 %v2171_v6, %s8098_s20  ;;  %v2627_v6 = vld [vmem:[#allocation2 + $0x331] ss:$2 sm:$0xff] }
 0x3d1   :  { %3043 = vst.msk [vmem:[#allocation5 + $0x38] sm:$0xff] %vm3035_vm11, %v3002_v7  ;;  %v3058_v14 = vld [vmem:[#allocation5 + $0x30] sm:$0xff] }
 0x3d2   :  { %v1648_v8 = vpop.permute.xlu1 %1647  ;;  %v1874_v10 = vpop.permute.xlu2 %1873 }
 0x3d3   :  { %1688 = vst.msk [vmem:[#allocation5 + $0x40] sm:$0xff] %vm1679_vm13, %v1648_v8  ;;  %v2738_v8 = vld [vmem:[#allocation2 + $0x302] ss:$2 sm:$0xff] }
 0x3d6   :  { %2668 = vrot.lane.b32.xlu0 %v2621_v9, %s8102_s25  ;;  %v2401_v9 = vld [vmem:[#allocation2 + $0x31c] ss:$2 sm:$0xff] }
 0x3d8   :  { %2670 = vrot.lane.b32.xlu1 %v2623_v11, %s8102_s25  ;;  %v1761_v13 = vpop.permute.xlu0 %1760  ;;  %v3059_v15 = vld [vmem:[#allocation5 + $0x38] sm:$0xff]  ;;  %2442 = vrot.lane.b32.xlu2 %v2395_v12, %s8100_s23  ;;  %v2851_v12 = vld [vmem:[#allocation2 + $0x303] ss:$2 sm:$0xff] }
 0x3d9   :  { %1801 = vst.msk [vmem:[#allocation5 + $0x40] sm:$0xff] %vm1792_vm14, %v1761_v13  ;;  %v3071_v16 = vpack.c.bf16 %v3059_v15, %v3058_v14  ;;  %v2853_v14 = vld [vmem:[#allocation2 + $0x333] ss:$2 sm:$0xff]  ;;  %v227_v15 = vld [vmem:[%s10927_s0 + $0x1f0] sm:$0xff] }
 0x3da   :  { %1914 = vst.msk [vmem:[#allocation5 + $0x40] sm:$0xff] %vm1905_vm15, %v1874_v10  ;;  %v1763_v17 = vpop.permute.xlu1 %1762  ;;  %v1989_v19 = vpop.permute.xlu2 %1988 }
 0x3db   :  { %1802 = vst.msk [vmem:[#allocation5 + $0x48] sm:$0xff] %vm1792_vm14, %v1763_v17  ;;  %7531 = vmatmul.msk.bf16.gmra.mxu0 %vm3128_vm12, %v3071_v16  ;;  %v228_v16 = vld [vmem:[%s10927_s0 + $0x1f8] sm:$0xff]  ;;  %v2625_v17 = vld [vmem:[#allocation2 + $0x301] ss:$2 sm:$0xff] }
 0x3dc   :  { %292 = vst.msk [vmem:[#allocation2 + $0x37a] sm:$0xff] %vm43_vm0, %v227_v15  ;;  %v2855_v15 = vld [vmem:[#allocation2 + $0x363] ss:$2 sm:$0xff] }
 0x3dd   :  { %293 = vst.msk [vmem:[#allocation2 + $0x382] sm:$0xff] %vm43_vm0, %v228_v16  ;;  %vm3400_vm0 = vcmask 124928  }
 0x3de   :  { %2783 = vrot.lane.b32.xlu0 %v2736_v18, %s8103_s26  ;;  %3401 = vst.msk [vmem:[#allocation3 + $0x10] sm:$0x7] %vm3400_vm0, %v8081_v0 }
 0x3df   :  { %3404 = vst.msk [vmem:[#allocation3 + $0x28] sm:$0x7] %vm3400_vm0, %v8081_v0 }
 0x3e0   :  { %2894 = vrot.lane.b32.xlu1 %v2847_v20, %s8104_s27  ;;  %v1876_v22 = vpop.permute.xlu0 %1875  ;;  %2557 = vrot.lane.b32.xlu2 %v2510_v21, %s8101_s24  ;;  %v2966_v20 = vld [vmem:[#allocation2 + $0x334] ss:$2 sm:$0xff]  ;;  %3407 = vst.msk [vmem:[#allocation3 + $0x40] sm:$0x7] %vm3400_vm0, %v8081_v0 }
 0x3e1   :  { %1915 = vst.msk [vmem:[#allocation5 + $0x48] sm:$0xff] %vm1905_vm15, %v1876_v22  ;;  %v1612_v22 = vld [vmem:[#allocation2 + $0x332] ss:$2 sm:$0xff] }
 0x3e2   :  { %2028 = vst.msk [vmem:[#allocation5 + $0x48] sm:$0xff] %vm2018_vm1, %v1989_v19  ;;  %v1987_v23 = vpop.permute.xlu1 %1986  ;;  %v2213_v25 = vpop.permute.xlu2 %2212 }
 0x3e3   :  { %2027 = vst.msk [vmem:[#allocation5 + $0x40] sm:$0xff] %vm2018_vm1, %v1987_v23  ;;  %v2740_v23 = vld [vmem:[#allocation2 + $0x332] ss:$2 sm:$0xff] }
 0x3e4   :  { %3410 = vst.msk [vmem:[#allocation3 + $0x58] sm:$0x7] %vm3400_vm0, %v8081_v0 }
 0x3e5   :  { %3413 = vst.msk [vmem:[#allocation3 + $0x70] sm:$0x7] %vm3400_vm0, %v8081_v0 }
 0x3e6   :  { %3007 = vrot.lane.b32.xlu0 %v2960_v24, %s8105_s21  ;;  %3416 = vst.msk [vmem:[#allocation3 + $0x88] sm:$0x7] %vm3400_vm0, %v8081_v0 }
 0x3e7   :  { %3419 = vst.msk [vmem:[#allocation3 + $0xa0] sm:$0x7] %vm3400_vm0, %v8081_v0 }
 0x3e8   :  { %3009 = vrot.lane.b32.xlu1 %v2962_v26, %s8105_s21  ;;  %v2100_v28 = vpop.permute.xlu0 %2099  ;;  %2781 = vrot.lane.b32.xlu2 %v2734_v27, %s8103_s26  ;;  %v1725_v26 = vld [vmem:[#allocation2 + $0x333] ss:$2 sm:$0xff]  ;;  %3422 = vst.msk [vmem:[#allocation3 + $0xb8] sm:$0x7] %vm3400_vm0, %v8081_v0 }
 0x3e9   :  { %2140 = vst.msk [vmem:[#allocation5 + $0x40] sm:$0xff] %vm2131_vm2, %v2100_v28  ;;  %v1727_v28 = vld [vmem:[#allocation2 + $0x363] ss:$2 sm:$0xff] }
 0x3ea   :  { %2253 = vst.msk [vmem:[#allocation5 + $0x40] sm:$0xff] %vm2244_vm4, %v2213_v25  ;;  %v2102_v29 = vpop.permute.xlu1 %2101  ;;  %v2328_v31 = vpop.permute.xlu2 %2327 }
 0x3eb   :  { %2141 = vst.msk [vmem:[#allocation5 + $0x48] sm:$0xff] %vm2131_vm2, %v2102_v29  ;;  %v2964_v29 = vld [vmem:[#allocation2 + $0x304] ss:$2 sm:$0xff] }
 0x3ec   :  { %3425 = vst.msk [vmem:[#allocation3 + $0xd0] sm:$0x7] %vm3400_vm0, %v8081_v0 }
 0x3ed   :  { %3428 = vst.msk [vmem:[#allocation3 + $0xe8] sm:$0x7] %vm3400_vm0, %v8081_v0 }
 0x3ee   :  { %1657 = vrot.lane.b32.xlu0 %v1610_v30, %s8093_s14  ;;  %3431 = vst.msk [vmem:[#allocation3 + $0x100] sm:$0x7] %vm3400_vm0, %v8081_v0 }
 0x3ef   :  { %3437 = vst.msk [vmem:[#allocation3 + $0x130] sm:$0x7] %vm3400_vm0, %v8081_v0 }
 0x3f0   :  { %1768 = vrot.lane.b32.xlu1 %v1721_v32, %s8094_s15  ;;  %v2215_v34 = vpop.permute.xlu0 %2214  ;;  %2896 = vrot.lane.b32.xlu2 %v2849_v33, %s8104_s27  ;;  %v1840_v32 = vld [vmem:[#allocation2 + $0x364] ss:$2 sm:$0xff]  ;;  %3440 = vst.msk [vmem:[#allocation3 + $0x148] sm:$0x7] %vm3400_vm0, %v8081_v0 }
 0x3f1   :  { %2254 = vst.msk [vmem:[#allocation5 + $0x48] sm:$0xff] %vm2244_vm4, %v2215_v34  ;;  %v1951_v34 = vld [vmem:[#allocation2 + $0x348] ss:$2 sm:$0xff] }
 0x3f2   :  { %2367 = vst.msk [vmem:[#allocation5 + $0x48] sm:$0xff] %vm2357_vm5, %v2328_v31  ;;  %v2326_v35 = vpop.permute.xlu1 %2325  ;;  %v2552_v37 = vpop.permute.xlu2 %2551 }
 0x3f3   :  { %2366 = vst.msk [vmem:[#allocation5 + $0x40] sm:$0xff] %vm2357_vm5, %v2326_v35  ;;  %v1614_v35 = vld [vmem:[#allocation2 + $0x362] ss:$2 sm:$0xff] }
 0x3f4   :  { %3443 = vst.msk [vmem:[#allocation3 + $0x160] sm:$0x7] %vm3400_vm0, %v8081_v0 }
 0x3f5   :  { %3446 = vst.msk [vmem:[#allocation3 + $0x178] sm:$0x7] %vm3400_vm0, %v8081_v0 }
 0x3f6   :  { %1881 = vrot.lane.b32.xlu0 %v1834_v36, %s8095_s16  ;;  %3449 = vst.msk [vmem:[#allocation3 + $0x190] sm:$0x7] %vm3400_vm0, %v8081_v0 }
 0x3f7   :  { %3452 = vst.msk [vmem:[#allocation3 + $0x1a8] sm:$0x7] %vm3400_vm0, %v8081_v0 }
 0x3f8   :  { %1883 = vrot.lane.b32.xlu1 %v1836_v38, %s8095_s16  ;;  %v2439_v40 = vpop.permute.xlu0 %2438  ;;  %1655 = vrot.lane.b32.xlu2 %v1608_v39, %s8093_s14  ;;  %v2064_v38 = vld [vmem:[#allocation2 + $0x349] ss:$2 sm:$0xff]  ;;  %3455 = vst.msk [vmem:[#allocation3 + $0x1c0] sm:$0x7] %vm3400_vm0, %v8081_v0 }
 0x3f9   :  { %2479 = vst.msk [vmem:[#allocation5 + $0x40] sm:$0xff] %vm2470_vm6, %v2439_v40  ;;  %v2066_v40 = vld [vmem:[#allocation2 + $0x379] ss:$2 sm:$0xff] }
 0x3fa   :  { %2592 = vst.msk [vmem:[#allocation5 + $0x40] sm:$0xff] %vm2583_vm7, %v2552_v37  ;;  %v2441_v41 = vpop.permute.xlu1 %2440  ;;  %v2667_v43 = vpop.permute.xlu2 %2666 }
 0x3fb   :  { %2480 = vst.msk [vmem:[#allocation5 + $0x48] sm:$0xff] %vm2470_vm6, %v2441_v41  ;;  %v1838_v41 = vld [vmem:[#allocation2 + $0x334] ss:$2 sm:$0xff] }
 0x3fc   :  { %3458 = vst.msk [vmem:[#allocation3 + $0x1d8] sm:$0x7] %vm3400_vm0, %v8081_v0 }
 0x3fd   :  { %3461 = vst.msk [vmem:[#allocation3 + $0x1f0] sm:$0x7] %vm3400_vm0, %v8081_v0 }
 0x3fe   :  { %1996 = vrot.lane.b32.xlu0 %v1949_v42, %s8096_s18  ;;  %3464 = vst.msk [vmem:[#allocation3 + $0x208] sm:$0x7] %vm3400_vm0, %v8081_v0 }
 0x3ff   :  { %3467 = vst.msk [vmem:[#allocation3 + $0x220] sm:$0x7] %vm3400_vm0, %v8081_v0 }
 0x400   :  { %2107 = vrot.lane.b32.xlu1 %v2060_v44, %s8097_s17  ;;  %v2554_v46 = vpop.permute.xlu0 %2553  ;;  %1770 = vrot.lane.b32.xlu2 %v1723_v45, %s8094_s15  ;;  %v2179_v44 = vld [vmem:[#allocation2 + $0x37a] ss:$2 sm:$0xff] }
 0x401   :  { %2593 = vst.msk [vmem:[#allocation5 + $0x48] sm:$0xff] %vm2583_vm7, %v2554_v46  ;;  %v2290_v46 = vld [vmem:[#allocation2 + $0x34b] ss:$2 sm:$0xff] }
 0x402   :  { %2706 = vst.msk [vmem:[#allocation5 + $0x48] sm:$0xff] %vm2696_vm8, %v2667_v43  ;;  %v2665_v47 = vpop.permute.xlu1 %2664  ;;  %v2891_v49 = vpop.permute.xlu2 %2890 }
 0x403   :  { %2705 = vst.msk [vmem:[#allocation5 + $0x40] sm:$0xff] %vm2696_vm8, %v2665_v47  ;;  %v1953_v47 = vld [vmem:[#allocation2 + $0x378] ss:$2 sm:$0xff] }
 0x406   :  { %2220 = vrot.lane.b32.xlu0 %v2173_v48, %s8098_s20 }
 0x408   :  { %2222 = vrot.lane.b32.xlu1 %v2175_v50, %s8098_s20  ;;  %v2778_v52 = vpop.permute.xlu0 %2777  ;;  %1994 = vrot.lane.b32.xlu2 %v1947_v51, %s8096_s18  ;;  %v2403_v50 = vld [vmem:[#allocation2 + $0x34c] ss:$2 sm:$0xff] }
 0x409   :  { %2818 = vst.msk [vmem:[#allocation5 + $0x40] sm:$0xff] %vm2809_vm9, %v2778_v52  ;;  %v2405_v52 = vld [vmem:[#allocation2 + $0x37c] ss:$2 sm:$0xff] }
 0x40a   :  { %2931 = vst.msk [vmem:[#allocation5 + $0x40] sm:$0xff] %vm2922_vm10, %v2891_v49  ;;  %v2780_v53 = vpop.permute.xlu1 %2779  ;;  %v3006_v55 = vpop.permute.xlu2 %3005 }
 0x40b   :  { %2819 = vst.msk [vmem:[#allocation5 + $0x48] sm:$0xff] %vm2809_vm9, %v2780_v53  ;;  %v2177_v53 = vld [vmem:[#allocation2 + $0x34a] ss:$2 sm:$0xff] }
 0x40e   :  { %2335 = vrot.lane.b32.xlu0 %v2288_v54, %s8099_s22 }
 0x410   :  { %2446 = vrot.lane.b32.xlu1 %v2399_v56, %s8100_s23  ;;  %v2893_v57 = vpop.permute.xlu0 %2892  ;;  %2109 = vrot.lane.b32.xlu2 %v2062_v58, %s8097_s17  ;;  %v2518_v56 = vld [vmem:[#allocation2 + $0x390] ss:$2 sm:$0xff]  ;;  %v2629_v58 = vld [vmem:[#allocation2 + $0x361] ss:$2 sm:$0xff] }
 0x411   :  { %2932 = vst.msk [vmem:[#allocation5 + $0x48] sm:$0xff] %vm2922_vm10, %v2893_v57 }
 0x412   :  { %3045 = vst.msk [vmem:[#allocation5 + $0x48] sm:$0xff] %vm3035_vm11, %v3006_v55  ;;  %v3004_v59 = vpop.permute.xlu1 %3003  ;;  %v1765_v61 = vpop.permute.xlu2 %1764 }
 0x413   :  { %3044 = vst.msk [vmem:[#allocation5 + $0x40] sm:$0xff] %vm3035_vm11, %v3004_v59  ;;  %v2292_v59 = vld [vmem:[#allocation2 + $0x37b] ss:$2 sm:$0xff] }
 0x416   :  { %2559 = vrot.lane.b32.xlu0 %v2512_v60, %s8101_s24 }
 0x418   :  { %2561 = vrot.lane.b32.xlu1 %v2514_v62, %s8101_s24  ;;  %v1652_v63 = vpop.permute.xlu0 %1651  ;;  %2333 = vrot.lane.b32.xlu2 %v2286_v1, %s8099_s22 }
 0x419   :  { %1690 = vst.msk [vmem:[#allocation5 + $0x50] sm:$0xff] %vm1679_vm13, %v1652_v63  ;;  %v3061_v2 = vld [vmem:[#allocation5 + $0x48] sm:$0xff] }
 0x41a   :  { %1803 = vst.msk [vmem:[#allocation5 + $0x50] sm:$0xff] %vm1792_vm14, %v1765_v61  ;;  %v1654_v3 = vpop.permute.xlu1 %1653  ;;  %v3060_v4 = vld [vmem:[#allocation5 + $0x40] sm:$0xff]  ;;  %v1880_v7 = vpop.permute.xlu2 %1879 }
 0x41b   :  { %1691 = vst.msk [vmem:[#allocation5 + $0x58] sm:$0xff] %vm1679_vm13, %v1654_v3  ;;  %v3072_v5 = vpack.c.bf16 %v3061_v2, %v3060_v4  ;;  %v2742_v2 = vld [vmem:[#allocation2 + $0x362] ss:$2 sm:$0xff]  ;;  %v2744_v4 = vld [vmem:[#allocation2 + $0x392] ss:$2 sm:$0xff] }
 0x41d   :  { %7532 = vmatmul.msk.bf16.gmra.mxu0 %vm3128_vm12, %v3072_v5  ;;  %v2516_v5 = vld [vmem:[#allocation2 + $0x360] ss:$2 sm:$0xff] }
 0x41e   :  { %2674 = vrot.lane.b32.xlu0 %v2627_v6, %s8102_s25 }
 0x420   :  { %2785 = vrot.lane.b32.xlu1 %v2738_v8, %s8103_s26  ;;  %v1767_v10 = vpop.permute.xlu0 %1766  ;;  %2448 = vrot.lane.b32.xlu2 %v2401_v9, %s8100_s23  ;;  %v2857_v8 = vld [vmem:[#allocation2 + $0x393] ss:$2 sm:$0xff] }
 0x421   :  { %1804 = vst.msk [vmem:[#allocation5 + $0x58] sm:$0xff] %vm1792_vm14, %v1767_v10  ;;  %v2968_v10 = vld [vmem:[#allocation2 + $0x364] ss:$2 sm:$0xff] }
 0x422   :  { %1917 = vst.msk [vmem:[#allocation5 + $0x58] sm:$0xff] %vm1905_vm15, %v1880_v7  ;;  %v1878_v11 = vpop.permute.xlu1 %1877  ;;  %v2104_v13 = vpop.permute.xlu2 %2103 }
 0x423   :  { %1916 = vst.msk [vmem:[#allocation5 + $0x50] sm:$0xff] %vm1905_vm15, %v1878_v11  ;;  %v2631_v11 = vld [vmem:[#allocation2 + $0x391] ss:$2 sm:$0xff] }
 0x426   :  { %2898 = vrot.lane.b32.xlu0 %v2851_v12, %s8104_s27 }
 0x428   :  { %2900 = vrot.lane.b32.xlu1 %v2853_v14, %s8104_s27  ;;  %v1991_v18 = vpop.permute.xlu0 %1990  ;;  %2672 = vrot.lane.b32.xlu2 %v2625_v17, %s8102_s25 }
 0x429   :  { %2029 = vst.msk [vmem:[#allocation5 + $0x50] sm:$0xff] %vm2018_vm1, %v1991_v18 }
 0x42a   :  { %2142 = vst.msk [vmem:[#allocation5 + $0x50] sm:$0xff] %vm2131_vm2, %v2104_v13  ;;  %v1993_v19 = vpop.permute.xlu1 %1992  ;;  %v2219_v21 = vpop.permute.xlu2 %2218 }
 0x42b   :  { %2030 = vst.msk [vmem:[#allocation5 + $0x58] sm:$0xff] %vm2018_vm1, %v1993_v19  ;;  %v2970_v19 = vld [vmem:[#allocation2 + $0x394] ss:$2 sm:$0xff] }
 0x42e   :  { %3013 = vrot.lane.b32.xlu0 %v2966_v20, %s8105_s21 }
 0x430   :  { %1659 = vrot.lane.b32.xlu1 %v1612_v22, %s8093_s14  ;;  %v2106_v24 = vpop.permute.xlu0 %2105  ;;  %2787 = vrot.lane.b32.xlu2 %v2740_v23, %s8103_s26 }
 0x431   :  { %2143 = vst.msk [vmem:[#allocation5 + $0x58] sm:$0xff] %vm2131_vm2, %v2106_v24 }
 0x432   :  { %2256 = vst.msk [vmem:[#allocation5 + $0x58] sm:$0xff] %vm2244_vm4, %v2219_v21  ;;  %v2217_v25 = vpop.permute.xlu1 %2216  ;;  %v2443_v27 = vpop.permute.xlu2 %2442 }
 0x433   :  { %2255 = vst.msk [vmem:[#allocation5 + $0x50] sm:$0xff] %vm2244_vm4, %v2217_v25 }
 0x436   :  { %1772 = vrot.lane.b32.xlu0 %v1725_v26, %s8094_s15 }
 0x438   :  { %1774 = vrot.lane.b32.xlu1 %v1727_v28, %s8094_s15  ;;  %v2330_v30 = vpop.permute.xlu0 %2329  ;;  %3011 = vrot.lane.b32.xlu2 %v2964_v29, %s8105_s21 }
 0x439   :  { %2368 = vst.msk [vmem:[#allocation5 + $0x50] sm:$0xff] %vm2357_vm5, %v2330_v30 }
 0x43a   :  { %2481 = vst.msk [vmem:[#allocation5 + $0x50] sm:$0xff] %vm2470_vm6, %v2443_v27  ;;  %v2332_v31 = vpop.permute.xlu1 %2331  ;;  %v2558_v33 = vpop.permute.xlu2 %2557 }
 0x43b   :  { %2369 = vst.msk [vmem:[#allocation5 + $0x58] sm:$0xff] %vm2357_vm5, %v2332_v31 }
 0x43e   :  { %1887 = vrot.lane.b32.xlu0 %v1840_v32, %s8095_s16 }
 0x440   :  { %1998 = vrot.lane.b32.xlu1 %v1951_v34, %s8096_s18  ;;  %v2445_v36 = vpop.permute.xlu0 %2444  ;;  %1661 = vrot.lane.b32.xlu2 %v1614_v35, %s8093_s14 }
 0x441   :  { %2482 = vst.msk [vmem:[#allocation5 + $0x58] sm:$0xff] %vm2470_vm6, %v2445_v36 }
 0x442   :  { %2595 = vst.msk [vmem:[#allocation5 + $0x58] sm:$0xff] %vm2583_vm7, %v2558_v33  ;;  %v2556_v37 = vpop.permute.xlu1 %2555  ;;  %v2782_v39 = vpop.permute.xlu2 %2781 }
 0x443   :  { %2594 = vst.msk [vmem:[#allocation5 + $0x50] sm:$0xff] %vm2583_vm7, %v2556_v37 }
 0x446   :  { %2111 = vrot.lane.b32.xlu0 %v2064_v38, %s8097_s17 }
 0x448   :  { %2113 = vrot.lane.b32.xlu1 %v2066_v40, %s8097_s17  ;;  %v2669_v42 = vpop.permute.xlu0 %2668  ;;  %1885 = vrot.lane.b32.xlu2 %v1838_v41, %s8095_s16  ;;  %s10942_s16 = smov 32  }
 0x449   :  { %2707 = vst.msk [vmem:[#allocation5 + $0x50] sm:$0xff] %vm2696_vm8, %v2669_v42 }
 0x44a   :  { %2820 = vst.msk [vmem:[#allocation5 + $0x50] sm:$0xff] %vm2809_vm9, %v2782_v39  ;;  %v2671_v43 = vpop.permute.xlu1 %2670  ;;  %v2897_v45 = vpop.permute.xlu2 %2896 }
 0x44b   :  { %2708 = vst.msk [vmem:[#allocation5 + $0x58] sm:$0xff] %vm2696_vm8, %v2671_v43 }
 0x44e   :  { %2226 = vrot.lane.b32.xlu0 %v2179_v44, %s8098_s20 }
 0x450   :  { %2337 = vrot.lane.b32.xlu1 %v2290_v46, %s8099_s22  ;;  %v2784_v48 = vpop.permute.xlu0 %2783  ;;  %2000 = vrot.lane.b32.xlu2 %v1953_v47, %s8096_s18 }
 0x451   :  { %2821 = vst.msk [vmem:[#allocation5 + $0x58] sm:$0xff] %vm2809_vm9, %v2784_v48 }
 0x452   :  { %2934 = vst.msk [vmem:[#allocation5 + $0x58] sm:$0xff] %vm2922_vm10, %v2897_v45  ;;  %v2895_v49 = vpop.permute.xlu1 %2894  ;;  %v1656_v51 = vpop.permute.xlu2 %1655 }
 0x453   :  { %2933 = vst.msk [vmem:[#allocation5 + $0x50] sm:$0xff] %vm2922_vm10, %v2895_v49 }
 0x454   :  { %1692 = vst.msk [vmem:[#allocation5 + $0x60] sm:$0xff] %vm1679_vm13, %v1656_v51 }
 0x456   :  { %2450 = vrot.lane.b32.xlu0 %v2403_v50, %s8100_s23 }
 0x458   :  { %2452 = vrot.lane.b32.xlu1 %v2405_v52, %s8100_s23  ;;  %v3008_v54 = vpop.permute.xlu0 %3007  ;;  %2224 = vrot.lane.b32.xlu2 %v2177_v53, %s8098_s20 }
 0x459   :  { %3046 = vst.msk [vmem:[#allocation5 + $0x50] sm:$0xff] %vm3035_vm11, %v3008_v54 }
 0x45a   :  { %v3010_v55 = vpop.permute.xlu1 %3009  ;;  %v1771_v57 = vpop.permute.xlu2 %1770 }
 0x45b   :  { %3047 = vst.msk [vmem:[#allocation5 + $0x58] sm:$0xff] %vm3035_vm11, %v3010_v55 }
 0x45e   :  { %2565 = vrot.lane.b32.xlu0 %v2518_v56, %s8101_s24 }
 0x460   :  { %2676 = vrot.lane.b32.xlu1 %v2629_v58, %s8102_s25  ;;  %v1658_v60 = vpop.permute.xlu0 %1657  ;;  %v3062_v61 = vld [vmem:[#allocation5 + $0x50] sm:$0xff]  ;;  %2339 = vrot.lane.b32.xlu2 %v2292_v59, %s8099_s22 }
 0x461   :  { %1693 = vst.msk [vmem:[#allocation5 + $0x68] sm:$0xff] %vm1679_vm13, %v1658_v60 }
 0x462   :  { %1806 = vst.msk [vmem:[#allocation5 + $0x68] sm:$0xff] %vm1792_vm14, %v1771_v57  ;;  %v1769_v62 = vpop.permute.xlu1 %1768  ;;  %v3063_v63 = vld [vmem:[#allocation5 + $0x58] sm:$0xff]  ;;  %v1995_v3 = vpop.permute.xlu2 %1994 }
 0x463   :  { %1805 = vst.msk [vmem:[#allocation5 + $0x60] sm:$0xff] %vm1792_vm14, %v1769_v62  ;;  %v3073_v1 = vpack.c.bf16 %v3063_v63, %v3062_v61 }
 0x465   :  { %7533 = vmatmul.msk.bf16.gmra.mxu0 %vm3128_vm12, %v3073_v1  ;;  %v3166_v1 = vpop.f32.mrf.mxu0 }
 0x466   :  { %2789 = vrot.lane.b32.xlu0 %v2742_v2, %s8103_s26 }
 0x468   :  { %2791 = vrot.lane.b32.xlu1 %v2744_v4, %s8103_s26  ;;  %v1882_v6 = vpop.permute.xlu0 %1881  ;;  %2563 = vrot.lane.b32.xlu2 %v2516_v5, %s8101_s24 }
 0x469   :  { %1918 = vst.msk [vmem:[#allocation5 + $0x60] sm:$0xff] %vm1905_vm15, %v1882_v6 }
 0x46a   :  { %2031 = vst.msk [vmem:[#allocation5 + $0x60] sm:$0xff] %vm2018_vm1, %v1995_v3  ;;  %v1884_v7 = vpop.permute.xlu1 %1883  ;;  %v2110_v9 = vpop.permute.xlu2 %2109 }
 0x46b   :  { %1919 = vst.msk [vmem:[#allocation5 + $0x68] sm:$0xff] %vm1905_vm15, %v1884_v7 }
 0x46d   :  { %v3168_v2 = vpop.f32.mrf.mxu0 }
 0x46e   :  { %2904 = vrot.lane.b32.xlu0 %v2857_v8, %s8104_s27 }
 0x470   :  { %3015 = vrot.lane.b32.xlu1 %v2968_v10, %s8105_s21  ;;  %v1997_v12 = vpop.permute.xlu0 %1996  ;;  %2678 = vrot.lane.b32.xlu2 %v2631_v11, %s8102_s25 }
 0x471   :  { %2032 = vst.msk [vmem:[#allocation5 + $0x68] sm:$0xff] %vm2018_vm1, %v1997_v12 }
 0x472   :  { %2145 = vst.msk [vmem:[#allocation5 + $0x68] sm:$0xff] %vm2131_vm2, %v2110_v9  ;;  %v2108_v13 = vpop.permute.xlu1 %2107  ;;  %v2334_v14 = vpop.permute.xlu2 %2333 }
 0x473   :  { %2144 = vst.msk [vmem:[#allocation5 + $0x60] sm:$0xff] %vm2131_vm2, %v2108_v13  ;;  %v3208_v13 = vsel %vm3206_vm3, %v3168_v2, 0.0 }
 0x475   :  { %v3171_v3 = vpop.f32.mrf.mxu0 }
 0x478   :  { %v2221_v16 = vpop.permute.xlu0 %2220  ;;  %2902 = vrot.lane.b32.xlu2 %v2855_v15, %s8104_s27  ;;  %v3210_v15 = vsel %vm3206_vm3, %v3171_v3, 0.0 }
 0x479   :  { %2257 = vst.msk [vmem:[#allocation5 + $0x60] sm:$0xff] %vm2244_vm4, %v2221_v16 }
 0x47a   :  { %2370 = vst.msk [vmem:[#allocation5 + $0x60] sm:$0xff] %vm2357_vm5, %v2334_v14  ;;  %v2223_v17 = vpop.permute.xlu1 %2222  ;;  %v2449_v18 = vpop.permute.xlu2 %2448  ;;  %v3207_v14 = vsel %vm3206_vm3, %v3166_v1, 0.0 }
 0x47b   :  { %2258 = vst.msk [vmem:[#allocation5 + $0x68] sm:$0xff] %vm2244_vm4, %v2223_v17  ;;  %v3209_v16 = vadd.f32 %v3208_v13, %v3207_v14 }
 0x47d   :  { %v3173_v4 = vpop.f32.mrf.mxu0 }
 0x480   :  { %v2336_v20 = vpop.permute.xlu0 %2335  ;;  %3017 = vrot.lane.b32.xlu2 %v2970_v19, %s8105_s21  ;;  %v3211_v19 = vadd.f32 %v3210_v15, %v3209_v16 }
 0x481   :  { %2371 = vst.msk [vmem:[#allocation5 + $0x68] sm:$0xff] %vm2357_vm5, %v2336_v20 }
 0x482   :  { %2484 = vst.msk [vmem:[#allocation5 + $0x68] sm:$0xff] %vm2470_vm6, %v2449_v18  ;;  %v2447_v21 = vpop.permute.xlu1 %2446  ;;  %v2673_v22 = vpop.permute.xlu2 %2672  ;;  %v3212_v18 = vsel %vm3206_vm3, %v3173_v4, 0.0 }
 0x483   :  { %2483 = vst.msk [vmem:[#allocation5 + $0x60] sm:$0xff] %vm2470_vm6, %v2447_v21  ;;  %v3213_v21 = vadd.f32 %v3212_v18, %v3211_v19 }
 0x485   :  { %v3176_v5 = vpop.f32.mrf.mxu0 }
 0x486   :  { %v3214_v20 = vsel %vm3206_vm3, %v3176_v5, 0.0 }
 0x488   :  { %v2560_v23 = vpop.permute.xlu0 %2559 }
 0x489   :  { %2596 = vst.msk [vmem:[#allocation5 + $0x60] sm:$0xff] %vm2583_vm7, %v2560_v23  ;;  %v3215_v23 = vadd.f32 %v3214_v20, %v3213_v21 }
 0x48a   :  { %2709 = vst.msk [vmem:[#allocation5 + $0x60] sm:$0xff] %vm2696_vm8, %v2673_v22  ;;  %v2562_v24 = vpop.permute.xlu1 %2561  ;;  %v2788_v25 = vpop.permute.xlu2 %2787 }
 0x48b   :  { %2597 = vst.msk [vmem:[#allocation5 + $0x68] sm:$0xff] %vm2583_vm7, %v2562_v24 }
 0x48d   :  { %v3178_v6 = vpop.f32.mrf.mxu0 }
 0x48e   :  { %v3216_v22 = vsel %vm3206_vm3, %v3178_v6, 0.0 }
 0x490   :  { %v2675_v26 = vpop.permute.xlu0 %2674 }
 0x491   :  { %2710 = vst.msk [vmem:[#allocation5 + $0x68] sm:$0xff] %vm2696_vm8, %v2675_v26 }
 0x492   :  { %2823 = vst.msk [vmem:[#allocation5 + $0x68] sm:$0xff] %vm2809_vm9, %v2788_v25  ;;  %v2786_v27 = vpop.permute.xlu1 %2785  ;;  %v3012_v28 = vpop.permute.xlu2 %3011  ;;  %v3217_v25 = vadd.f32 %v3216_v22, %v3215_v23 }
 0x493   :  { %2822 = vst.msk [vmem:[#allocation5 + $0x60] sm:$0xff] %vm2809_vm9, %v2786_v27 }
 0x495   :  { %v3181_v7 = vpop.f32.mrf.mxu0 }
 0x496   :  { %v3218_v24 = vsel %vm3206_vm3, %v3181_v7, 0.0 }
 0x497   :  { %v3219_v27 = vadd.f32 %v3218_v24, %v3217_v25 }
 0x498   :  { %v2899_v29 = vpop.permute.xlu0 %2898 }
 0x499   :  { %2935 = vst.msk [vmem:[#allocation5 + $0x60] sm:$0xff] %vm2922_vm10, %v2899_v29 }
 0x49a   :  { %3048 = vst.msk [vmem:[#allocation5 + $0x60] sm:$0xff] %vm3035_vm11, %v3012_v28  ;;  %v2901_v30 = vpop.permute.xlu1 %2900  ;;  %v1662_v31 = vpop.permute.xlu2 %1661 }
 0x49b   :  { %2936 = vst.msk [vmem:[#allocation5 + $0x68] sm:$0xff] %vm2922_vm10, %v2901_v30 }
 0x49c   :  { %1695 = vst.msk [vmem:[#allocation5 + $0x78] sm:$0xff] %vm1679_vm13, %v1662_v31 }
 0x49d   :  { %v9561_v8 = vpop.f32.mrf.mxu0 }
 0x49e   :  { %v3220_v26 = vsel %vm3206_vm3, %v9561_v8, 0.0 }
 0x49f   :  { %v3221_v30 = vadd.f32 %v3220_v26, %v3219_v27 }
 0x4a0   :  { %v3014_v32 = vpop.permute.xlu0 %3013 }
 0x4a1   :  { %3049 = vst.msk [vmem:[#allocation5 + $0x68] sm:$0xff] %vm3035_vm11, %v3014_v32  ;;  %v3064_v36 = vld [vmem:[#allocation5 + $0x60] sm:$0xff] }
 0x4a2   :  { %v1660_v33 = vpop.permute.xlu1 %1659  ;;  %v1886_v34 = vpop.permute.xlu2 %1885 }
 0x4a3   :  { %1694 = vst.msk [vmem:[#allocation5 + $0x70] sm:$0xff] %vm1679_vm13, %v1660_v33 }
 0x4a5   :  { %v9563_v9 = vpop.f32.mrf.mxu0 }
 0x4a6   :  { %v3222_v29 = vsel %vm3206_vm3, %v9563_v9, 0.0 }
 0x4a7   :  { %v3223_v32 = vadd.f32 %v3222_v29, %v3221_v30 }
 0x4a8   :  { %v1773_v35 = vpop.permute.xlu0 %1772  ;;  %v3065_v37 = vld [vmem:[#allocation5 + $0x68] sm:$0xff] }
 0x4a9   :  { %1807 = vst.msk [vmem:[#allocation5 + $0x70] sm:$0xff] %vm1792_vm14, %v1773_v35  ;;  %v3074_v38 = vpack.c.bf16 %v3065_v37, %v3064_v36 }
 0x4aa   :  { %1920 = vst.msk [vmem:[#allocation5 + $0x70] sm:$0xff] %vm1905_vm15, %v1886_v34  ;;  %v1775_v39 = vpop.permute.xlu1 %1774  ;;  %v2001_v40 = vpop.permute.xlu2 %2000 }
 0x4ab   :  { %1808 = vst.msk [vmem:[#allocation5 + $0x78] sm:$0xff] %vm1792_vm14, %v1775_v39  ;;  %7534 = vmatmul.msk.bf16.gmra.mxu0 %vm3128_vm12, %v3074_v38 }
 0x4ad   :  { %v9565_v10 = vpop.f32.mrf.mxu0 }
 0x4ae   :  { %v3224_v31 = vsel %vm3206_vm3, %v9565_v10, 0.0 }
 0x4af   :  { %v3225_v34 = vadd.f32 %v3224_v31, %v3223_v32 }
 0x4b0   :  { %v1888_v41 = vpop.permute.xlu0 %1887 }
 0x4b1   :  { %1921 = vst.msk [vmem:[#allocation5 + $0x78] sm:$0xff] %vm1905_vm15, %v1888_v41 }
 0x4b2   :  { %2034 = vst.msk [vmem:[#allocation5 + $0x78] sm:$0xff] %vm2018_vm1, %v2001_v40  ;;  %v1999_v42 = vpop.permute.xlu1 %1998  ;;  %v2225_v43 = vpop.permute.xlu2 %2224 }
 0x4b3   :  { %2033 = vst.msk [vmem:[#allocation5 + $0x70] sm:$0xff] %vm2018_vm1, %v1999_v42  ;;  %vm3559_vm1 = vcmask 261248  }
 0x4b8   :  { %v2112_v44 = vpop.permute.xlu0 %2111 }
 0x4b9   :  { %2146 = vst.msk [vmem:[#allocation5 + $0x70] sm:$0xff] %vm2131_vm2, %v2112_v44 }
 0x4ba   :  { %2259 = vst.msk [vmem:[#allocation5 + $0x70] sm:$0xff] %vm2244_vm4, %v2225_v43  ;;  %v2114_v45 = vpop.permute.xlu1 %2113  ;;  %v2340_v46 = vpop.permute.xlu2 %2339 }
 0x4bb   :  { %2147 = vst.msk [vmem:[#allocation5 + $0x78] sm:$0xff] %vm2131_vm2, %v2114_v45  ;;  %vm3616_vm2 = vcmask 392448  }
 0x4c0   :  { %v2227_v47 = vpop.permute.xlu0 %2226 }
 0x4c1   :  { %2260 = vst.msk [vmem:[#allocation5 + $0x78] sm:$0xff] %vm2244_vm4, %v2227_v47  ;;  %vm3673_vm4 = vcmask 523648  }
 0x4c2   :  { %2373 = vst.msk [vmem:[#allocation5 + $0x78] sm:$0xff] %vm2357_vm5, %v2340_v46  ;;  %v2338_v48 = vpop.permute.xlu1 %2337  ;;  %v2564_v49 = vpop.permute.xlu2 %2563 }
 0x4c3   :  { %2372 = vst.msk [vmem:[#allocation5 + $0x70] sm:$0xff] %vm2357_vm5, %v2338_v48  ;;  %vm3730_vm5 = vcmask 654848  }
 0x4c8   :  { %v2451_v50 = vpop.permute.xlu0 %2450 }
 0x4c9   :  { %2485 = vst.msk [vmem:[#allocation5 + $0x70] sm:$0xff] %vm2470_vm6, %v2451_v50 }
 0x4ca   :  { %2598 = vst.msk [vmem:[#allocation5 + $0x70] sm:$0xff] %vm2583_vm7, %v2564_v49  ;;  %v2453_v51 = vpop.permute.xlu1 %2452  ;;  %v2679_v52 = vpop.permute.xlu2 %2678 }
 0x4cb   :  { %2486 = vst.msk [vmem:[#allocation5 + $0x78] sm:$0xff] %vm2470_vm6, %v2453_v51  ;;  %vm3787_vm6 = vcmask 786048  }
 0x4d0   :  { %v2566_v53 = vpop.permute.xlu0 %2565 }
 0x4d1   :  { %2599 = vst.msk [vmem:[#allocation5 + $0x78] sm:$0xff] %vm2583_vm7, %v2566_v53  ;;  %vm3844_vm7 = vcmask 917248  }
 0x4d2   :  { %2712 = vst.msk [vmem:[#allocation5 + $0x78] sm:$0xff] %vm2696_vm8, %v2679_v52  ;;  %v2677_v54 = vpop.permute.xlu1 %2676  ;;  %v2903_v55 = vpop.permute.xlu2 %2902 }
 0x4d3   :  { %2711 = vst.msk [vmem:[#allocation5 + $0x70] sm:$0xff] %vm2696_vm8, %v2677_v54  ;;  %vm3901_vm8 = vcmask 1048448  }
 0x4d8   :  { %v2790_v56 = vpop.permute.xlu0 %2789 }
 0x4d9   :  { %2824 = vst.msk [vmem:[#allocation5 + $0x70] sm:$0xff] %vm2809_vm9, %v2790_v56 }
 0x4da   :  { %2937 = vst.msk [vmem:[#allocation5 + $0x70] sm:$0xff] %vm2922_vm10, %v2903_v55  ;;  %v2792_v57 = vpop.permute.xlu1 %2791  ;;  %v3018_v58 = vpop.permute.xlu2 %3017 }
 0x4db   :  { %2825 = vst.msk [vmem:[#allocation5 + $0x78] sm:$0xff] %vm2809_vm9, %v2792_v57  ;;  %vm5278_vm9 = vcmask 261120  }
 0x4dc   :  { %5398 = vst.msk [vmem:[#allocation4] sm:$0xff] %vm5278_vm9, %v8081_v0 }
 0x4dd   :  { %5399 = vst.msk [vmem:[#allocation4 + $0x8] sm:$0xff] %vm5278_vm9, %v8081_v0 }
 0x4de   :  { %5402 = vst.msk [vmem:[#allocation4 + $0x18] sm:$0xff] %vm5278_vm9, %v8081_v0 }
 0x4df   :  { %5403 = vst.msk [vmem:[#allocation4 + $0x20] sm:$0xff] %vm5278_vm9, %v8081_v0 }
 0x4e0   :  { %v2905_v59 = vpop.permute.xlu0 %2904  ;;  %5405 = vst.msk [vmem:[#allocation4 + $0x30] sm:$0xff] %vm5278_vm9, %v8081_v0 }
 0x4e1   :  { %2938 = vst.msk [vmem:[#allocation5 + $0x78] sm:$0xff] %vm2922_vm10, %v2905_v59 }
 0x4e2   :  { %3051 = vst.msk [vmem:[#allocation5 + $0x78] sm:$0xff] %vm3035_vm11, %v3018_v58  ;;  %v3016_v60 = vpop.permute.xlu1 %3015  ;;  %v9567_v11 = vpop.f32.mrf.mxu0 }
 0x4e3   :  { %3050 = vst.msk [vmem:[#allocation5 + $0x70] sm:$0xff] %vm3035_vm11, %v3016_v60  ;;  %v3226_v33 = vsel %vm3206_vm3, %v9567_v11, 0.0 }
 0x4e4   :  { %v3227_v36 = vadd.f32 %v3226_v33, %v3225_v34  ;;  %5406 = vst.msk [vmem:[#allocation4 + $0x38] sm:$0xff] %vm5278_vm9, %v8081_v0 }
 0x4e5   :  { %5408 = vst.msk [vmem:[#allocation4 + $0x48] sm:$0xff] %vm5278_vm9, %v8081_v0 }
 0x4e6   :  { %5409 = vst.msk [vmem:[#allocation4 + $0x50] sm:$0xff] %vm5278_vm9, %v8081_v0 }
 0x4e7   :  { %5411 = vst.msk [vmem:[#allocation4 + $0x60] sm:$0xff] %vm5278_vm9, %v8081_v0 }
 0x4e8   :  { %5412 = vst.msk [vmem:[#allocation4 + $0x68] sm:$0xff] %vm5278_vm9, %v8081_v0 }
 0x4e9   :  { %v3067_v61 = vld [vmem:[#allocation5 + $0x78] sm:$0xff]  ;;  %5414 = vst.msk [vmem:[#allocation4 + $0x78] sm:$0xff] %vm5278_vm9, %v8081_v0 }
 0x4ea   :  { %v3066_v62 = vld [vmem:[#allocation5 + $0x70] sm:$0xff]  ;;  %v9569_v12 = vpop.f32.mrf.mxu0  ;;  %5415 = vst.msk [vmem:[#allocation4 + $0x80] sm:$0xff] %vm5278_vm9, %v8081_v0 }
 0x4eb   :  { %v3075_v63 = vpack.c.bf16 %v3067_v61, %v3066_v62  ;;  %v3228_v35 = vsel %vm3206_vm3, %v9569_v12, 0.0  ;;  %5417 = vst.msk [vmem:[#allocation4 + $0x90] sm:$0xff] %vm5278_vm9, %v8081_v0 }
 0x4ec   :  { %v3229_v39 = vadd.f32 %v3228_v35, %v3227_v36  ;;  %5418 = vst.msk [vmem:[#allocation4 + $0x98] sm:$0xff] %vm5278_vm9, %v8081_v0 }
 0x4ed   :  { %7535 = vmatmul.msk.bf16.gmra.mxu0 %vm3128_vm12, %v3075_v63  ;;  %5423 = vst.msk [vmem:[#allocation4 + $0xc0] sm:$0xff] %vm5278_vm9, %v8081_v0 }
 0x4ee   :  { %5424 = vst.msk [vmem:[#allocation4 + $0xc8] sm:$0xff] %vm5278_vm9, %v8081_v0 }
 0x4ef   :  { %5426 = vst.msk [vmem:[#allocation4 + $0xd8] sm:$0xff] %vm5278_vm9, %v8081_v0 }
 0x4f0   :  { %5427 = vst.msk [vmem:[#allocation4 + $0xe0] sm:$0xff] %vm5278_vm9, %v8081_v0 }
 0x4f1   :  { %5429 = vst.msk [vmem:[#allocation4 + $0xf0] sm:$0xff] %vm5278_vm9, %v8081_v0 }
 0x4f2   :  { %5430 = vst.msk [vmem:[#allocation4 + $0xf8] sm:$0xff] %vm5278_vm9, %v8081_v0 }
 0x4f3   :  { %5432 = vst.msk [vmem:[#allocation4 + $0x108] sm:$0xff] %vm5278_vm9, %v8081_v0 }
 0x4f4   :  { %5433 = vst.msk [vmem:[#allocation4 + $0x110] sm:$0xff] %vm5278_vm9, %v8081_v0 }
 0x4f5   :  { %5435 = vst.msk [vmem:[#allocation4 + $0x120] sm:$0xff] %vm5278_vm9, %v8081_v0 }
 0x4f6   :  { %5436 = vst.msk [vmem:[#allocation4 + $0x128] sm:$0xff] %vm5278_vm9, %v8081_v0 }
 0x4f7   :  { %5438 = vst.msk [vmem:[#allocation4 + $0x138] sm:$0xff] %vm5278_vm9, %v8081_v0 }
 0x4f8   :  { %5439 = vst.msk [vmem:[#allocation4 + $0x140] sm:$0xff] %vm5278_vm9, %v8081_v0 }
 0x4f9   :  { %5441 = vst.msk [vmem:[#allocation4 + $0x150] sm:$0xff] %vm5278_vm9, %v8081_v0 }
 0x4fa   :  { %5442 = vst.msk [vmem:[#allocation4 + $0x158] sm:$0xff] %vm5278_vm9, %v8081_v0 }
 0x528   :  { %v9574_v17 = vpop.f32.mrf.mxu0 }
 0x529   :  { %v3230_v38 = vsel %vm3206_vm3, %v9574_v17, 0.0 }
 0x52a   :  { %v3231_v41 = vadd.f32 %v3230_v38, %v3229_v39 }
 0x530   :  { %v9582_v28 = vpop.f32.mrf.mxu0 }
 0x531   :  { %v3232_v40 = vsel %vm3206_vm3, %v9582_v28, 0.0 }
 0x532   :  { %v3233_v43 = vadd.f32 %v3232_v40, %v3231_v41 }
 0x56a   :  { %v9592_v37 = vpop.f32.mrf.mxu0 }
 0x56b   :  { %v3234_v42 = vsel %vm3206_vm3, %v9592_v37, 0.0 }
 0x56c   :  { %v3235_v44 = vadd.f32 %v3234_v42, %v3233_v43 }
 0x572   :  { %v3203_v45 = vpop.f32.mrf.mxu0 }
 0x573   :  { %v3236_v46 = vsel %vm3206_vm3, %v3203_v45, 0.0 }
 0x574   :  { %v3237_v47 = vadd.f32 %v3236_v46, %v3235_v44 }
 0x576   :  { %v3238_v48 = vrot.slane %v3237_v47, 4 }
 0x578   :  { %v3239_v49 = vadd.f32 %v3238_v48, %v3237_v47 }
 0x57a   :  { %v3240_v50 = vrot.slane %v3239_v49, 2 }
 0x57c   :  { %v3241_v51 = vadd.f32 %v3240_v50, %v3239_v49 }
 0x57e   :  { %v3242_v52 = vrot.slane %v3241_v51, 1 }
 0x580   :  { %v3243_v53 = vadd.f32 %v3242_v52, %v3241_v51 }
 0x582   :  { %v3244_v54 = vmul.f32 0.0078125, %v3243_v53 }
 0x584   :  { %v9601_v55 = vsub.f32 %v3166_v1, %v3244_v54  ;;  %v9603_v56 = vsub.f32 %v3168_v2, %v3244_v54  ;;  %v9605_v57 = vsub.f32 %v3171_v3, %v3244_v54  ;;  %v9607_v58 = vsub.f32 %v3173_v4, %v3244_v54 }
 0x585   :  { %v9613_v61 = vsub.f32 %v3176_v5, %v3244_v54  ;;  %v9617_v63 = vsub.f32 %v3178_v6, %v3244_v54  ;;  %v9623_v13 = vsub.f32 %v3181_v7, %v3244_v54  ;;  %v9629_v16 = vsub.f32 %v9561_v8, %v3244_v54 }
 0x586   :  { %v3261_v59 = vmul.f32 %v9601_v55, %v9601_v55  ;;  %v3262_v60 = vmul.f32 %v9603_v56, %v9603_v56  ;;  %v3263_v62 = vmul.f32 %v9605_v57, %v9605_v57  ;;  %v3264_v1 = vmul.f32 %v9607_v58, %v9607_v58 }
 0x587   :  { %v3265_v14 = vmul.f32 %v9613_v61, %v9613_v61  ;;  %v3266_v6 = vmul.f32 %v9617_v63, %v9617_v63  ;;  %v9635_v20 = vsub.f32 %v9563_v9, %v3244_v54  ;;  %v3267_v7 = vmul.f32 %v9623_v13, %v9623_v13 }
 0x588   :  { %v3277_v2 = vsel %vm3206_vm3, %v3261_v59, 0.0  ;;  %v3278_v3 = vsel %vm3206_vm3, %v3262_v60, 0.0  ;;  %v3280_v5 = vsel %vm3206_vm3, %v3263_v62, 0.0  ;;  %v3282_v18 = vsel %vm3206_vm3, %v3264_v1, 0.0 }
 0x589   :  { %v3279_v4 = vadd.f32 %v3278_v3, %v3277_v2  ;;  %v3284_v21 = vsel %vm3206_vm3, %v3265_v14, 0.0  ;;  %v9641_v23 = vsub.f32 %v9565_v10, %v3244_v54  ;;  %v3268_v8 = vmul.f32 %v9629_v16, %v9629_v16 }
 0x58a   :  { %v3286_v24 = vsel %vm3206_vm3, %v3266_v6, 0.0  ;;  %v9647_v26 = vsub.f32 %v9567_v11, %v3244_v54  ;;  %v3269_v9 = vmul.f32 %v9635_v20, %v9635_v20  ;;  %v3288_v27 = vsel %vm3206_vm3, %v3267_v7, 0.0 }
 0x58b   :  { %v3281_v15 = vadd.f32 %v3280_v5, %v3279_v4  ;;  %v9653_v30 = vsub.f32 %v9569_v12, %v3244_v54  ;;  %v3270_v10 = vmul.f32 %v9641_v23, %v9641_v23  ;;  %v3290_v31 = vsel %vm3206_vm3, %v3268_v8, 0.0  ;;  %v3569_v8 = vld [vmem:[#allocation3 + $0x2] ss:$2 sm:$0xff] }
 0x58c   :  { %v9659_v33 = vsub.f32 %v9574_v17, %v3244_v54  ;;  %v3271_v11 = vmul.f32 %v9647_v26, %v9647_v26  ;;  %v3292_v34 = vsel %vm3206_vm3, %v3269_v9, 0.0  ;;  %v3258_v36 = vsub.f32 %v9582_v28, %v3244_v54  ;;  %3592 = vrot.lane.b32.xlu2 %v3569_v8, %s10942_s16 }
 0x58d   :  { %v3283_v19 = vadd.f32 %v3282_v18, %v3281_v15  ;;  %v3272_v12 = vmul.f32 %v9653_v30, %v9653_v30  ;;  %v3294_v38 = vsel %vm3206_vm3, %v3270_v10, 0.0  ;;  %v3259_v40 = vsub.f32 %v9592_v37, %v3244_v54 }
 0x58e   :  { %v3273_v17 = vmul.f32 %v9659_v33, %v9659_v33  ;;  %v3296_v41 = vsel %vm3206_vm3, %v3271_v11, 0.0  ;;  %v3260_v43 = vsub.f32 %v3203_v45, %v3244_v54  ;;  %v3274_v44 = vmul.f32 %v3258_v36, %v3258_v36 }
 0x58f   :  { %v3285_v22 = vadd.f32 %v3284_v21, %v3283_v19  ;;  %v3298_v46 = vsel %vm3206_vm3, %v3272_v12, 0.0  ;;  %v3275_v28 = vmul.f32 %v3259_v40, %v3259_v40  ;;  %v3512_v21 = vld [vmem:[#allocation3 + $0x1] ss:$2 sm:$0xff] }
 0x590   :  { %v3300_v48 = vsel %vm3206_vm3, %v3273_v17, 0.0  ;;  %v3276_v50 = vmul.f32 %v3260_v43, %v3260_v43  ;;  %v3302_v51 = vsel %vm3206_vm3, %v3274_v44, 0.0  ;;  %3535 = vrot.lane.b32.xlu0 %v3512_v21, %s8085_s28 }
 0x591   :  { %v3287_v25 = vadd.f32 %v3286_v24, %v3285_v22  ;;  %v3304_v37 = vsel %vm3206_vm3, %v3275_v28, 0.0 }
 0x592   :  { %v3306_v59 = vsel %vm3206_vm3, %v3276_v50, 0.0 }
 0x593   :  { %v3289_v29 = vadd.f32 %v3288_v27, %v3287_v25  ;;  %v9697_v25 = vld [vmem:[%s10929_s2] ss:$0 sm:$0xff] }
 0x595   :  { %v3291_v32 = vadd.f32 %v3290_v31, %v3289_v29 }
 0x597   :  { %v3293_v35 = vadd.f32 %v3292_v34, %v3291_v32  ;;  %v9725_v32 = vld [vmem:[%s10930_s3] ss:$0 sm:$0xff]  ;;  %s8106_s3 = smov 112  }
 0x599   :  { %v3295_v39 = vadd.f32 %v3294_v38, %v3293_v35 }
 0x59b   :  { %v3297_v42 = vadd.f32 %v3296_v41, %v3295_v39 }
 0x59d   :  { %v3299_v47 = vadd.f32 %v3298_v46, %v3297_v42 }
 0x59f   :  { %v3301_v49 = vadd.f32 %v3300_v48, %v3299_v47 }
 0x5a1   :  { %v3303_v52 = vadd.f32 %v3302_v51, %v3301_v49 }
 0x5a3   :  { %v3305_v53 = vadd.f32 %v3304_v37, %v3303_v52 }
 0x5a5   :  { %v3307_v60 = vadd.f32 %v3306_v59, %v3305_v53 }
 0x5a7   :  { %v3308_v62 = vrot.slane %v3307_v60, 4 }
 0x5a9   :  { %v3309_v45 = vadd.f32 %v3308_v62, %v3307_v60 }
 0x5ab   :  { %v3310_v54 = vrot.slane %v3309_v45, 2 }
 0x5ad   :  { %v3311_v1 = vadd.f32 %v3310_v54, %v3309_v45 }
 0x5af   :  { %v3312_v2 = vrot.slane %v3311_v1, 1 }
 0x5b1   :  { %v3313_v3 = vadd.f32 %v3312_v2, %v3311_v1 }
 0x5b3   :  { %v3314_v4 = vmul.f32 0.0078125, %v3313_v3 }
 0x5b5   :  { %v3315_v14 = vadd.f32 1e-05, %v3314_v4 }
 0x5b7   :  { %8049 = vrsqrt.f32 %v3315_v14  ;;  %vm3322_vm14 = vweird.f32 %v3315_v14 }
 0x5bd   :  { %v8050_v5 = vpop.eup %8049 }
 0x5be   :  { %v3317_v15 = vmul.f32 %v8050_v5, %v3315_v14  ;;  %vm3323_vm13 = vweird.f32 %v8050_v5 }
 0x5bf   :  { %vm3324_vm15 = vmor %vm3322_vm14, %vm3323_vm13 }
 0x5c0   :  { %v3318_v6 = vmul.f32 %v8050_v5, %v3317_v15 }
 0x5c2   :  { %v3319_v18 = vmul.f32 0.5, %v3318_v6 }
 0x5c4   :  { %v3320_v19 = vsub.f32 1.5, %v3319_v18 }
 0x5c6   :  { %v3321_v7 = vmul.f32 %v8050_v5, %v3320_v19 }
 0x5c8   :  { %v9688_v22 = vsel %vm3324_vm15, %v8050_v5, %v3321_v7 }
 0x5c9   :  { %v3329_v24 = vmul.f32 %v9688_v22, %v9607_v58  ;;  %v3330_v9 = vmul.f32 %v9688_v22, %v9613_v61  ;;  %v3333_v27 = vmul.f32 %v9688_v22, %v9629_v16  ;;  %v3334_v29 = vmul.f32 %v9688_v22, %v9635_v20 }
 0x5ca   :  { %v3337_v58 = vmul.f32 %v9688_v22, %v9653_v30  ;;  %v3338_v10 = vmul.f32 %v9688_v22, %v9659_v33  ;;  %v3339_v61 = vmul.f32 %v9688_v22, %v3258_v36  ;;  %v3340_v31 = vmul.f32 %v9688_v22, %v3259_v40 }
 0x5cb   :  { %v3341_v16 = vmul.f32 %v9688_v22, %v3260_v43  ;;  %v3331_v20 = vmul.f32 %v9688_v22, %v9617_v63  ;;  %v3349_v30 = vmul.f32 %v9697_v25, %v3329_v24  ;;  %v3332_v33 = vmul.f32 %v9688_v22, %v9623_v13 }
 0x5cc   :  { %v3350_v11 = vmul.f32 %v9697_v25, %v3330_v9  ;;  %v3357_v63 = vmul.f32 %v9697_v25, %v3337_v58  ;;  %v3358_v34 = vmul.f32 %v9697_v25, %v3338_v10  ;;  %v3359_v35 = vmul.f32 %v9697_v25, %v3339_v61 }
 0x5cd   :  { %v3360_v36 = vmul.f32 %v9697_v25, %v3340_v31  ;;  %v3361_v12 = vmul.f32 %v9697_v25, %v3341_v16  ;;  %v3335_v13 = vmul.f32 %v9688_v22, %v9641_v23  ;;  %v3351_v38 = vmul.f32 %v9697_v25, %v3331_v20  ;;  %v3740_v20 = vld [vmem:[#allocation3 + $0x18] ss:$2 sm:$0xff] }
 0x5ce   :  { %v3369_v39 = vadd.f32 %v9725_v32, %v3349_v30  ;;  %v3370_v40 = vadd.f32 %v9725_v32, %v3350_v11  ;;  %v3336_v17 = vmul.f32 %v9688_v22, %v9647_v26  ;;  %v3352_v41 = vmul.f32 %v9697_v25, %v3332_v33  ;;  %v3683_v30 = vld [vmem:[#allocation3 + $0x4] ss:$2 sm:$0xff] }
 0x5cf   :  { %v3353_v42 = vmul.f32 %v9697_v25, %v3333_v27  ;;  %v3354_v23 = vmul.f32 %v9697_v25, %v3334_v29  ;;  %v3377_v43 = vadd.f32 %v9725_v32, %v3357_v63  ;;  %v3378_v44 = vadd.f32 %v9725_v32, %v3358_v34 }
 0x5d0   :  { %v3379_v46 = vadd.f32 %v9725_v32, %v3359_v35  ;;  %v3380_v26 = vadd.f32 %v9725_v32, %v3360_v36  ;;  %v3381_v47 = vadd.f32 %v9725_v32, %v3361_v12  ;;  %v3385_v28 = vmax.f32 %v3369_v39, 0.0 }
 0x5d1   :  { %v3386_v48 = vmax.f32 %v3370_v40, 0.0  ;;  %v3355_v49 = vmul.f32 %v9697_v25, %v3335_v13  ;;  %v3371_v50 = vadd.f32 %v9725_v32, %v3351_v38  ;;  %v3356_v51 = vmul.f32 %v9697_v25, %v3336_v17  ;;  %v3854_v13 = vld [vmem:[#allocation3 + $0x1a] ss:$2 sm:$0xff]  ;;  %v3797_v38 = vld [vmem:[#allocation3 + $0x19] ss:$2 sm:$0xff] }
 0x5d2   :  { %v3372_v52 = vadd.f32 %v9725_v32, %v3352_v41  ;;  %v3393_v37 = vmax.f32 %v3377_v43, 0.0  ;;  %v3394_v53 = vmax.f32 %v3378_v44, 0.0  ;;  %3475 = vst.msk [vmem:[#allocation3 + $0x7a] sm:$0xff] %vm3206_vm3, %v3385_v28  ;;  %v3326_v59 = vmul.f32 %v9688_v22, %v9601_v55 }
 0x5d3   :  { %v3373_v60 = vadd.f32 %v9725_v32, %v3353_v42  ;;  %v3395_v62 = vmax.f32 %v3379_v46, 0.0  ;;  %v3396_v45 = vmax.f32 %v3380_v26, 0.0  ;;  %3476 = vst.msk [vmem:[#allocation3 + $0x92] sm:$0xff] %vm3206_vm3, %v3386_v48  ;;  %v3327_v54 = vmul.f32 %v9688_v22, %v9603_v56 }
 0x5d4   :  { %v3374_v1 = vadd.f32 %v9725_v32, %v3354_v23  ;;  %v3397_v2 = vmax.f32 %v3381_v47, 0.0  ;;  %3483 = vst.msk [vmem:[#allocation3 + $0x19a] sm:$0xff] %vm3206_vm3, %v3393_v37  ;;  %v3328_v3 = vmul.f32 %v9688_v22, %v9605_v57  ;;  %v3375_v4 = vadd.f32 %v9725_v32, %v3355_v49  ;;  %v4748_v23 = vld [vmem:[#allocation3 + $0xf4] ss:$2 sm:$0xff] }
 0x5d5   :  { %v3387_v55 = vmax.f32 %v3371_v50, 0.0  ;;  %3484 = vst.msk [vmem:[#allocation3 + $0x1b2] sm:$0xff] %vm3206_vm3, %v3394_v53  ;;  %v3376_v14 = vadd.f32 %v9725_v32, %v3356_v51  ;;  %v3388_v5 = vmax.f32 %v3372_v52, 0.0  ;;  %v3346_v56 = vmul.f32 %v9697_v25, %v3326_v59  ;;  %v4756_v49 = vld [vmem:[#allocation3 + $0x214] ss:$2 sm:$0xff] }
 0x5d6   :  { %3485 = vst.msk [vmem:[#allocation3 + $0x1ca] sm:$0xff] %vm3206_vm3, %v3395_v62  ;;  %v3389_v15 = vmax.f32 %v3373_v60, 0.0  ;;  %v3347_v6 = vmul.f32 %v9697_v25, %v3327_v54  ;;  %v3390_v18 = vmax.f32 %v3374_v1, 0.0  ;;  %v3348_v57 = vmul.f32 %v9697_v25, %v3328_v3 }
 0x5d7   :  { %3486 = vst.msk [vmem:[#allocation3 + $0x1e2] sm:$0xff] %vm3206_vm3, %v3396_v45  ;;  %v3391_v19 = vmax.f32 %v3375_v4, 0.0  ;;  %v3392_v7 = vmax.f32 %v3376_v14, 0.0  ;;  %v3366_v21 = vadd.f32 %v9725_v32, %v3346_v56 }
 0x5d8   :  { %3487 = vst.msk [vmem:[#allocation3 + $0x1fa] sm:$0xff] %vm3206_vm3, %v3397_v2  ;;  %v3367_v22 = vadd.f32 %v9725_v32, %v3347_v6  ;;  %v3368_v8 = vadd.f32 %v9725_v32, %v3348_v57  ;;  %v3626_v32 = vld [vmem:[#allocation3 + $0x3] ss:$2 sm:$0xff] }
 0x5d9   :  { %3477 = vst.msk [vmem:[#allocation3 + $0xaa] sm:$0xff] %vm3206_vm3, %v3387_v55  ;;  %v3382_v24 = vmax.f32 %v3366_v21, 0.0  ;;  %v4328_v39 = vld [vmem:[#allocation3 + $0x79] ss:$2 sm:$0xff]  ;;  %v3858_v2 = vld [vmem:[#allocation3 + $0x7a] ss:$2 sm:$0xff] }
 0x5da   :  { %3478 = vst.msk [vmem:[#allocation3 + $0xc2] sm:$0xff] %vm3206_vm3, %v3388_v5  ;;  %v3383_v25 = vmax.f32 %v3367_v22, 0.0  ;;  %v3384_v9 = vmax.f32 %v3368_v8, 0.0  ;;  %v3494_v27 = vld [vmem:[#allocation3 + $0x90] ss:$2 sm:$0xff] }
 0x5db   :  { %3479 = vst.msk [vmem:[#allocation3 + $0xda] sm:$0xff] %vm3206_vm3, %v3389_v15  ;;  %v4744_v41 = vld [vmem:[#allocation3 + $0x94] ss:$2 sm:$0xff]  ;;  %v3518_v26 = vld [vmem:[#allocation3 + $0x91] ss:$2 sm:$0xff] }
 0x5dc   :  { %3480 = vst.msk [vmem:[#allocation3 + $0x152] sm:$0xff] %vm3206_vm3, %v3390_v18  ;;  %v3502_v34 = vld [vmem:[#allocation3 + $0x1b0] ss:$2 sm:$0xff]  ;;  %v3915_v28 = vld [vmem:[#allocation3 + $0x7b] ss:$2 sm:$0xff] }
 0x5dd   :  { %3481 = vst.msk [vmem:[#allocation3 + $0x16a] sm:$0xff] %vm3206_vm3, %v3391_v19  ;;  %v4752_v44 = vld [vmem:[#allocation3 + $0x1b4] ss:$2 sm:$0xff]  ;;  %v3632_v54 = vld [vmem:[#allocation3 + $0x93] ss:$2 sm:$0xff] }
 0x5de   :  { %3482 = vst.msk [vmem:[#allocation3 + $0x182] sm:$0xff] %vm3206_vm3, %v3392_v7  ;;  %v3575_v46 = vld [vmem:[#allocation3 + $0x92] ss:$2 sm:$0xff]  ;;  %v4336_v1 = vld [vmem:[#allocation3 + $0x199] ss:$2 sm:$0xff] }
 0x5df   :  { %3472 = vst.msk [vmem:[#allocation3 + $0x32] sm:$0xff] %vm3206_vm3, %v3382_v24  ;;  %v4754_v48 = vld [vmem:[#allocation3 + $0x1e4] ss:$2 sm:$0xff]  ;;  %v3689_v45 = vld [vmem:[#allocation3 + $0x94] ss:$2 sm:$0xff] }
 0x5e0   :  { %3473 = vst.msk [vmem:[#allocation3 + $0x4a] sm:$0xff] %vm3206_vm3, %v3383_v25  ;;  %v3917_v50 = vld [vmem:[#allocation3 + $0xab] ss:$2 sm:$0xff]  ;;  %v3746_v62 = vld [vmem:[#allocation3 + $0xa8] ss:$2 sm:$0xff] }
 0x5e1   :  { %3474 = vst.msk [vmem:[#allocation3 + $0x62] sm:$0xff] %vm3206_vm3, %v3384_v9  ;;  %v4746_v42 = vld [vmem:[#allocation3 + $0xc4] ss:$2 sm:$0xff]  ;;  %v4330_v37 = vld [vmem:[#allocation3 + $0xa9] ss:$2 sm:$0xff] }
 0x5e2   :  { %3506 = vst.msk [vmem:[#allocation6 + $0x60] sm:$0xff] %vm3206_vm3, %v3494_v27  ;;  %v4332_v59 = vld [vmem:[#allocation3 + $0xd9] ss:$2 sm:$0xff]  ;;  %v4338_v55 = vld [vmem:[#allocation3 + $0x1c9] ss:$2 sm:$0xff] }
 0x5e3   :  { %v3498_v31 = vld [vmem:[#allocation3 + $0x150] ss:$2 sm:$0xff]  ;;  %3510 = vst.msk [vmem:[#allocation6 + $0xe0] sm:$0xff] %vm3206_vm3, %v3502_v34  ;;  %v3923_v4 = vld [vmem:[#allocation3 + $0x19b] ss:$2 sm:$0xff] }
 0x5e4   :  { %3508 = vst.msk [vmem:[#allocation6 + $0xa0] sm:$0xff] %vm3206_vm3, %v3498_v31  ;;  %v3921_v60 = vld [vmem:[#allocation3 + $0x16b] ss:$2 sm:$0xff]  ;;  %v3744_v15 = vld [vmem:[#allocation3 + $0x78] ss:$2 sm:$0xff] }
 0x5e5   :  { %v3500_v33 = vld [vmem:[#allocation3 + $0x180] ss:$2 sm:$0xff]  ;;  %4342 = vst.msk [vmem:[#allocation6 + $0x30] sm:$0xff] %vm3206_vm3, %v4328_v39  ;;  %v4334_v3 = vld [vmem:[#allocation3 + $0x169] ss:$2 sm:$0xff] }
 0x5e6   :  { %v3628_v29 = vld [vmem:[#allocation3 + $0x33] ss:$2 sm:$0xff]  ;;  %v3571_v58 = vld [vmem:[#allocation3 + $0x32] ss:$2 sm:$0xff]  ;;  %3509 = vst.msk [vmem:[#allocation6 + $0xc0] sm:$0xff] %vm3206_vm3, %v3500_v33  ;;  %v3593_v27 = vpop.permute.xlu2 %3592 }
 0x5e7   :  { %v3514_v10 = vld [vmem:[#allocation3 + $0x31] ss:$2 sm:$0xff]  ;;  %3651 = vrot.lane.b32.xlu2 %v3628_v29, %s8093_s14  ;;  %3594 = vrot.lane.b32.xlu0 %v3571_v58, %s10942_s16  ;;  %v3490_v16 = vld [vmem:[#allocation3 + $0x30] ss:$2 sm:$0xff]  ;;  %4758 = vst.msk [vmem:[#allocation6 + $0x38] sm:$0xff] %vm3206_vm3, %v4744_v41 }
 0x5e8   :  { %3537 = vrot.lane.b32.xlu1 %v3514_v10, %s8085_s28  ;;  %v3492_v61 = vld [vmem:[#allocation3 + $0x60] ss:$2 sm:$0xff]  ;;  %3504 = vst.msk [vmem:[#allocation6 + $0x20] sm:$0xff] %vm3206_vm3, %v3490_v16  ;;  %v3799_v11 = vld [vmem:[#allocation3 + $0x49] ss:$2 sm:$0xff] }
 0x5e9   :  { %3505 = vst.msk [vmem:[#allocation6 + $0x40] sm:$0xff] %vm3206_vm3, %v3492_v61  ;;  %v3742_v63 = vld [vmem:[#allocation3 + $0x48] ss:$2 sm:$0xff]  ;;  %v4326_v36 = vld [vmem:[#allocation3 + $0x49] ss:$2 sm:$0xff] }
 0x5ea   :  { %v3685_v35 = vld [vmem:[#allocation3 + $0x34] ss:$2 sm:$0xff]  ;;  %4341 = vst.msk [vmem:[#allocation6 + $0x10] sm:$0xff] %vm3206_vm3, %v4326_v36  ;;  %v3913_v12 = vld [vmem:[#allocation3 + $0x4b] ss:$2 sm:$0xff] }
 0x5eb   :  { %3927 = vst.msk [vmem:[#allocation6 + $0x28] sm:$0xff] %vm3206_vm3, %v3913_v12  ;;  %v3516_v40 = vld [vmem:[#allocation3 + $0x61] ss:$2 sm:$0xff]  ;;  %v4742_v17 = vld [vmem:[#allocation3 + $0x64] ss:$2 sm:$0xff]  ;;  %v7928_v36 = vld [vmem:[%s10931_s4 + $0x20] sm:$0xff] }
 0x5ec   :  { %4757 = vst.msk [vmem:[#allocation6 + $0x18] sm:$0xff] %vm3206_vm3, %v4742_v17  ;;  %v4750_v43 = vld [vmem:[#allocation3 + $0x184] ss:$2 sm:$0xff]  ;;  %v3630_v52 = vld [vmem:[#allocation3 + $0x63] ss:$2 sm:$0xff] }
 0x5ed   :  { %4759 = vst.msk [vmem:[#allocation6 + $0x58] sm:$0xff] %vm3206_vm3, %v4746_v42  ;;  %v3856_v47 = vld [vmem:[#allocation3 + $0x4a] ss:$2 sm:$0xff]  ;;  %v3925_v14 = vld [vmem:[#allocation3 + $0x1cb] ss:$2 sm:$0xff] }
 0x5ee   :  { %4760 = vst.msk [vmem:[#allocation6 + $0x78] sm:$0xff] %vm3206_vm3, %v4748_v23  ;;  %v3687_v51 = vld [vmem:[#allocation3 + $0x64] ss:$2 sm:$0xff]  ;;  %v3801_v5 = vld [vmem:[#allocation3 + $0x79] ss:$2 sm:$0xff] }
 0x5ef   :  { %3763 = vrot.lane.b32.xlu2 %v3740_v20, %s8101_s24  ;;  %3706 = vrot.lane.b32.xlu0 %v3683_v30, %s8097_s17  ;;  %4761 = vst.msk [vmem:[#allocation6 + $0x98] sm:$0xff] %vm3206_vm3, %v4750_v43  ;;  %v3573_v53 = vld [vmem:[#allocation3 + $0x62] ss:$2 sm:$0xff]  ;;  %v4340_v56 = vld [vmem:[#allocation3 + $0x1f9] ss:$2 sm:$0xff] }
 0x5f0   :  { %3649 = vrot.lane.b32.xlu1 %v3626_v32, %s8093_s14  ;;  %4762 = vst.msk [vmem:[#allocation6 + $0xb8] sm:$0xff] %vm3206_vm3, %v4752_v44  ;;  %v3522_v6 = vld [vmem:[#allocation3 + $0x151] ss:$2 sm:$0xff]  ;;  %v3860_v18 = vld [vmem:[#allocation3 + $0xaa] ss:$2 sm:$0xff]  ;;  %v7925_v43 = vld [vmem:[%s10931_s4 + $0x8] sm:$0xff] }
 0x5f1   :  { %3928 = vst.msk [vmem:[#allocation6 + $0x48] sm:$0xff] %vm3206_vm3, %v3915_v28  ;;  %v3803_v57 = vld [vmem:[#allocation3 + $0xa9] ss:$2 sm:$0xff]  ;;  %v3577_v7 = vld [vmem:[#allocation3 + $0x122] ss:$2 sm:$0xff] }
 0x5f2   :  { %4763 = vst.msk [vmem:[#allocation6 + $0xd8] sm:$0xff] %vm3206_vm3, %v4754_v48  ;;  %v3634_v19 = vld [vmem:[#allocation3 + $0x123] ss:$2 sm:$0xff]  ;;  %v3488_v22 = vld [vmem:[#allocation3] ss:$2 sm:$0xff] }
 0x5f3   :  { %4764 = vst.msk [vmem:[#allocation6 + $0xf8] sm:$0xff] %vm3206_vm3, %v4756_v49  ;;  %v3520_v21 = vld [vmem:[#allocation3 + $0x121] ss:$2 sm:$0xff]  ;;  %v3693_v24 = vld [vmem:[#allocation3 + $0x154] ss:$2 sm:$0xff] }
 0x5f4   :  { %3929 = vst.msk [vmem:[#allocation6 + $0x68] sm:$0xff] %vm3206_vm3, %v3917_v50  ;;  %v3636_v25 = vld [vmem:[#allocation3 + $0x153] ss:$2 sm:$0xff]  ;;  %v3579_v9 = vld [vmem:[#allocation3 + $0x152] ss:$2 sm:$0xff]  ;;  %v7930_v32 = vld [vmem:[%s10931_s4 + $0x30] sm:$0xff] }
 0x5f5   :  { %4343 = vst.msk [vmem:[#allocation6 + $0x50] sm:$0xff] %vm3206_vm3, %v4330_v37  ;;  %v3805_v29 = vld [vmem:[#allocation3 + $0x139] ss:$2 sm:$0xff]  ;;  %v3748_v58 = vld [vmem:[#allocation3 + $0x138] ss:$2 sm:$0xff]  ;;  %v7931_v31 = vld [vmem:[%s10931_s4 + $0x38] sm:$0xff] }
 0x5f6   :  { %4344 = vst.msk [vmem:[#allocation6 + $0x70] sm:$0xff] %vm3206_vm3, %v4332_v59  ;;  %v3691_v10 = vld [vmem:[#allocation3 + $0x124] ss:$2 sm:$0xff]  ;;  %v3807_v20 = vld [vmem:[#allocation3 + $0x169] ss:$2 sm:$0xff]  ;;  %5025 = vmatpush.bf16.msra.mxu1 %v7931_v31 }
 0x5f7   :  { %3822 = vrot.lane.b32.xlu2 %v3799_v11, %s8105_s21  ;;  %3765 = vrot.lane.b32.xlu0 %v3742_v63, %s8101_s24  ;;  %3931 = vst.msk [vmem:[#allocation6 + $0xa8] sm:$0xff] %vm3206_vm3, %v3921_v60  ;;  %v3864_v16 = vld [vmem:[#allocation3 + $0x16a] ss:$2 sm:$0xff]  ;;  %v7929_v11 = vld [vmem:[%s10931_s4 + $0x28] sm:$0xff]  ;;  %v3811_v50 = vld [vmem:[#allocation3 + $0x1c9] ss:$2 sm:$0xff] }
 0x5f8   :  { %3708 = vrot.lane.b32.xlu1 %v3685_v35, %s8097_s17  ;;  %4346 = vst.msk [vmem:[#allocation6 + $0xb0] sm:$0xff] %vm3206_vm3, %v4336_v1  ;;  %v3750_v30 = vld [vmem:[#allocation3 + $0x168] ss:$2 sm:$0xff]  ;;  %v3524_v35 = vld [vmem:[#allocation3 + $0x181] ss:$2 sm:$0xff] }
 0x5f9   :  { %4345 = vst.msk [vmem:[#allocation6 + $0x90] sm:$0xff] %vm3206_vm3, %v4334_v3  ;;  %v3862_v63 = vld [vmem:[#allocation3 + $0x13a] ss:$2 sm:$0xff]  ;;  %v4406_v31 = vld [vmem:[#allocation3 + $0x4b] ss:$2 sm:$0xff] }
 0x5fa   :  { %3932 = vst.msk [vmem:[#allocation6 + $0xc8] sm:$0xff] %vm3206_vm3, %v3923_v4  ;;  %5026 = vmatpush.bf16.msra.mxu1 %v7930_v32  ;;  %v3581_v34 = vld [vmem:[#allocation3 + $0x182] ss:$2 sm:$0xff]  ;;  %v3583_v39 = vld [vmem:[#allocation3 + $0x1b2] ss:$2 sm:$0xff] }
 0x5fb   :  { %4347 = vst.msk [vmem:[#allocation6 + $0xd0] sm:$0xff] %vm3206_vm3, %v4338_v55  ;;  %v7926_v17 = vld [vmem:[%s10931_s4 + $0x10] sm:$0xff]  ;;  %v3752_v44 = vld [vmem:[#allocation3 + $0x198] ss:$2 sm:$0xff] }
 0x5fc   :  { %3933 = vst.msk [vmem:[#allocation6 + $0xe8] sm:$0xff] %vm3206_vm3, %v3925_v14  ;;  %v3935_v60 = vld [vmem:[#allocation3 + $0x1c] ss:$2 sm:$0xff]  ;;  %v3937_v4 = vld [vmem:[#allocation3 + $0x4c] ss:$2 sm:$0xff] }
 0x5fd   :  { %4348 = vst.msk [vmem:[#allocation6 + $0xf0] sm:$0xff] %vm3206_vm3, %v4340_v56  ;;  %v3992_v3 = vld [vmem:[#allocation3 + $0x60] ss:$2 sm:$0xff] }
 0x5fe   :  { %3503 = vst.msk [vmem:[#allocation6] sm:$0xff] %vm3206_vm3, %v3488_v22  ;;  %5027 = vmatpush.bf16.msra.mxu1 %v7929_v11  ;;  %v3868_v55 = vld [vmem:[#allocation3 + $0x1ca] ss:$2 sm:$0xff]  ;;  %v4160_v11 = vld [vmem:[#allocation3 + $0x63] ss:$2 sm:$0xff] }
 0x5ff   :  { %3539 = vrot.lane.b32.xlu2 %v3516_v40, %s8085_s28  ;;  %3877 = vrot.lane.b32.xlu0 %v3854_v13, %s8106_s3  ;;  %v7927_v13 = vld [vmem:[%s10931_s4 + $0x18] sm:$0xff] }
 0x600   :  { %3820 = vrot.lane.b32.xlu1 %v3797_v38, %s8105_s21  ;;  %v3640_v38 = vld [vmem:[#allocation3 + $0x1b3] ss:$2 sm:$0xff] }
 0x601   :  { %v3526_v40 = vld [vmem:[#allocation3 + $0x1b1] ss:$2 sm:$0xff] }
 0x602   :  { %v3536_v8 = vpop.permute.xlu0 %3535  ;;  %5028 = vmatpush.bf16.msra.mxu1 %v7928_v36 }
 0x603   :  { %3560 = vst.msk [vmem:[#allocation6] sm:$0xff] %vm3559_vm1, %v3536_v8  ;;  %v3496_v8 = vld [vmem:[#allocation3 + $0x120] ss:$2 sm:$0xff] }
 0x604   :  { %3617 = vst.msk [vmem:[#allocation6] sm:$0xff] %vm3616_vm2, %v3593_v27  ;;  %v4048_v27 = vld [vmem:[#allocation3 + $0x61] ss:$2 sm:$0xff] }
 0x605   :  { %3507 = vst.msk [vmem:[#allocation6 + $0x80] sm:$0xff] %vm3206_vm3, %v3496_v8  ;;  %v4106_v8 = vld [vmem:[#allocation3 + $0x92] ss:$2 sm:$0xff] }
 0x606   :  { %5029 = vmatpush.bf16.msra.mxu1 %v7927_v13  ;;  %v4214_v13 = vld [vmem:[#allocation3 + $0x34] ss:$2 sm:$0xff] }
 0x607   :  { %3598 = vrot.lane.b32.xlu2 %v3575_v46, %s10942_s16  ;;  %3541 = vrot.lane.b32.xlu0 %v3518_v26, %s8085_s28  ;;  %v3695_v46 = vld [vmem:[#allocation3 + $0x184] ss:$2 sm:$0xff]  ;;  %v3638_v26 = vld [vmem:[#allocation3 + $0x183] ss:$2 sm:$0xff] }
 0x608   :  { %3879 = vrot.lane.b32.xlu1 %v3856_v47, %s8106_s3  ;;  %v7924_v47 = vld [vmem:[%s10931_s4] sm:$0xff] }
 0x60a   :  { %5030 = vmatpush.bf16.msra.mxu1 %v7926_v17 }
 0x60e   :  { %5031 = vmatpush.bf16.msra.mxu1 %v7925_v43  ;;  %v4272_v43 = vld [vmem:[#allocation3 + $0x78] ss:$2 sm:$0xff] }
 0x60f   :  { %3710 = vrot.lane.b32.xlu2 %v3687_v51, %s8097_s17  ;;  %3653 = vrot.lane.b32.xlu0 %v3630_v52, %s8093_s14  ;;  %v3754_v51 = vld [vmem:[#allocation3 + $0x1c8] ss:$2 sm:$0xff] }
 0x610   :  { %3596 = vrot.lane.b32.xlu1 %v3573_v53, %s10942_s16  ;;  %v3697_v52 = vld [vmem:[#allocation3 + $0x1b4] ss:$2 sm:$0xff] }
 0x612   :  { %5032 = vmatpush.bf16.msra.mxu1 %v7924_v47 }
 0x617   :  { %3769 = vrot.lane.b32.xlu2 %v3746_v62, %s8101_s24  ;;  %3712 = vrot.lane.b32.xlu0 %v3689_v45, %s8097_s17  ;;  %v3866_v62 = vld [vmem:[#allocation3 + $0x19a] ss:$2 sm:$0xff]  ;;  %v3809_v45 = vld [vmem:[#allocation3 + $0x199] ss:$2 sm:$0xff] }
 0x618   :  { %3655 = vrot.lane.b32.xlu1 %v3632_v54, %s8093_s14 }
 0x61f   :  { %3881 = vrot.lane.b32.xlu2 %v3858_v2, %s8106_s3  ;;  %3824 = vrot.lane.b32.xlu0 %v3801_v5, %s8105_s21 }
 0x620   :  { %3767 = vrot.lane.b32.xlu1 %v3744_v15, %s8101_s24  ;;  %v4350_v15 = vld [vmem:[#allocation3 + $0x4a] ss:$2 sm:$0xff] }
 0x627   :  { %3545 = vrot.lane.b32.xlu2 %v3522_v6, %s8085_s28  ;;  %3883 = vrot.lane.b32.xlu0 %v3860_v18, %s8106_s3  ;;  %v4046_v6 = vld [vmem:[#allocation3 + $0x31] ss:$2 sm:$0xff]  ;;  %v3990_v18 = vld [vmem:[#allocation3 + $0x30] ss:$2 sm:$0xff] }
 0x628   :  { %3826 = vrot.lane.b32.xlu1 %v3803_v57, %s8105_s21 }
 0x62f   :  { %3657 = vrot.lane.b32.xlu2 %v3634_v19, %s8093_s14  ;;  %3600 = vrot.lane.b32.xlu0 %v3577_v7, %s10942_s16 }
 0x630   :  { %3543 = vrot.lane.b32.xlu1 %v3520_v21, %s8085_s28 }
 0x637   :  { %3716 = vrot.lane.b32.xlu2 %v3693_v24, %s8097_s17  ;;  %3659 = vrot.lane.b32.xlu0 %v3636_v25, %s8093_s14  ;;  %v4104_v25 = vld [vmem:[#allocation3 + $0x62] ss:$2 sm:$0xff] }
 0x638   :  { %3602 = vrot.lane.b32.xlu1 %v3579_v9, %s10942_s16  ;;  %v4352_v9 = vld [vmem:[#allocation3 + $0x7a] ss:$2 sm:$0xff] }
 0x63f   :  { %3828 = vrot.lane.b32.xlu2 %v3805_v29, %s8105_s21  ;;  %3771 = vrot.lane.b32.xlu0 %v3748_v58, %s8101_s24 }
 0x640   :  { %3714 = vrot.lane.b32.xlu1 %v3691_v10, %s8097_s17 }
 0x641   :  { %v3652_v61 = vpop.permute.xlu2 %3651 }
 0x647   :  { %3887 = vrot.lane.b32.xlu2 %v3864_v16, %s8106_s3  ;;  %3830 = vrot.lane.b32.xlu0 %v3807_v20, %s8105_s21  ;;  %v4102_v16 = vld [vmem:[#allocation3 + $0x32] ss:$2 sm:$0xff] }
 0x648   :  { %3773 = vrot.lane.b32.xlu1 %v3750_v30, %s8101_s24 }
 0x649   :  { %v3764_v33 = vpop.permute.xlu2 %3763 }
 0x64f   :  { %3604 = vrot.lane.b32.xlu2 %v3581_v34, %s10942_s16  ;;  %3547 = vrot.lane.b32.xlu0 %v3524_v35, %s8085_s28 }
 0x650   :  { %3885 = vrot.lane.b32.xlu1 %v3862_v63, %s8106_s3  ;;  %v4408_v63 = vld [vmem:[#allocation3 + $0x7b] ss:$2 sm:$0xff] }
 0x651   :  { %v3823_v12 = vpop.permute.xlu2 %3822 }
 0x657   :  { %3663 = vrot.lane.b32.xlu2 %v3640_v38, %s8093_s14  ;;  %3606 = vrot.lane.b32.xlu0 %v3583_v39, %s10942_s16  ;;  %v4462_v38 = vld [vmem:[#allocation3 + $0x4c] ss:$2 sm:$0xff] }
 0x658   :  { %3549 = vrot.lane.b32.xlu1 %v3526_v40, %s8085_s28 }
 0x659   :  { %v3540_v41 = vpop.permute.xlu2 %3539  ;;  %v3595_v42 = vpop.permute.xlu0 %3594 }
 0x65a   :  { %3562 = vst.msk [vmem:[#allocation6 + $0x40] sm:$0xff] %vm3559_vm1, %v3540_v41  ;;  %v3538_v23 = vpop.permute.xlu1 %3537 }
 0x65b   :  { %3561 = vst.msk [vmem:[#allocation6 + $0x20] sm:$0xff] %vm3559_vm1, %v3538_v23 }
 0x65c   :  { %3618 = vst.msk [vmem:[#allocation6 + $0x20] sm:$0xff] %vm3616_vm2, %v3595_v42 }
 0x65d   :  { %3675 = vst.msk [vmem:[#allocation6 + $0x20] sm:$0xff] %vm3673_vm4, %v3652_v61  ;;  %v4158_v61 = vld [vmem:[#allocation3 + $0x33] ss:$2 sm:$0xff] }
 0x65f   :  { %3775 = vrot.lane.b32.xlu2 %v3752_v44, %s8101_s24  ;;  %3718 = vrot.lane.b32.xlu0 %v3695_v46, %s8097_s17  ;;  %v4520_v44 = vld [vmem:[#allocation3 + $0x90] ss:$2 sm:$0xff] }
 0x660   :  { %3661 = vrot.lane.b32.xlu1 %v3638_v26, %s8093_s14  ;;  %v4216_v46 = vld [vmem:[#allocation3 + $0x64] ss:$2 sm:$0xff]  ;;  %v3911_v26 = vld [vmem:[#allocation3 + $0x1b] ss:$2 sm:$0xff] }
 0x661   :  { %v3599_v28 = vpop.permute.xlu2 %3598  ;;  %v3707_v48 = vpop.permute.xlu0 %3706  ;;  %3926 = vst.msk [vmem:[#allocation6 + $0x8] sm:$0xff] %vm3206_vm3, %v3911_v26 }
 0x662   :  { %v3650_v49 = vpop.permute.xlu1 %3649 }
 0x663   :  { %3674 = vst.msk [vmem:[#allocation6] sm:$0xff] %vm3673_vm4, %v3650_v49  ;;  %v4630_v49 = vld [vmem:[#allocation3 + $0x62] ss:$2 sm:$0xff] }
 0x664   :  { %3731 = vst.msk [vmem:[#allocation6] sm:$0xff] %vm3730_vm5, %v3707_v48 }
 0x665   :  { %3788 = vst.msk [vmem:[#allocation6] sm:$0xff] %vm3787_vm6, %v3764_v33  ;;  %v4464_v33 = vld [vmem:[#allocation3 + $0x7c] ss:$2 sm:$0xff] }
 0x667   :  { %3834 = vrot.lane.b32.xlu2 %v3811_v50, %s8105_s21  ;;  %3777 = vrot.lane.b32.xlu0 %v3754_v51, %s8101_s24  ;;  %v4574_v50 = vld [vmem:[#allocation3 + $0x61] ss:$2 sm:$0xff]  ;;  %v4270_v51 = vld [vmem:[#allocation3 + $0x48] ss:$2 sm:$0xff] }
 0x668   :  { %3720 = vrot.lane.b32.xlu1 %v3697_v52, %s8097_s17 }
 0x669   :  { %v3711_v37 = vpop.permute.xlu2 %3710  ;;  %v3766_v53 = vpop.permute.xlu0 %3765 }
 0x66a   :  { %v3709_v59 = vpop.permute.xlu1 %3708 }
 0x66b   :  { %3732 = vst.msk [vmem:[#allocation6 + $0x20] sm:$0xff] %vm3730_vm5, %v3709_v59  ;;  %v4688_v59 = vld [vmem:[#allocation3 + $0x93] ss:$2 sm:$0xff] }
 0x66c   :  { %3789 = vst.msk [vmem:[#allocation6 + $0x20] sm:$0xff] %vm3787_vm6, %v3766_v53 }
 0x66d   :  { %3846 = vst.msk [vmem:[#allocation6 + $0x20] sm:$0xff] %vm3844_vm7, %v3823_v12  ;;  %v4518_v12 = vld [vmem:[#allocation3 + $0x60] ss:$2 sm:$0xff] }
 0x66f   :  { %3958 = vrot.lane.b32.xlu2 %v3935_v60, %s8085_s28  ;;  %3889 = vrot.lane.b32.xlu0 %v3866_v62, %s8106_s3  ;;  %v4632_v60 = vld [vmem:[#allocation3 + $0x92] ss:$2 sm:$0xff]  ;;  %v4576_v62 = vld [vmem:[#allocation3 + $0x91] ss:$2 sm:$0xff] }
 0x670   :  { %3832 = vrot.lane.b32.xlu1 %v3809_v45, %s8105_s21 }
 0x671   :  { %v3770_v54 = vpop.permute.xlu2 %3769  ;;  %v3878_v1 = vpop.permute.xlu0 %3877 }
 0x672   :  { %v3821_v2 = vpop.permute.xlu1 %3820 }
 0x673   :  { %3845 = vst.msk [vmem:[#allocation6] sm:$0xff] %vm3844_vm7, %v3821_v2  ;;  %v3994_v2 = vld [vmem:[#allocation3 + $0x90] ss:$2 sm:$0xff] }
 0x674   :  { %3902 = vst.msk [vmem:[#allocation6] sm:$0xff] %vm3901_vm8, %v3878_v1 }
 0x677   :  { %4015 = vrot.lane.b32.xlu2 %v3992_v3, %s10942_s16  ;;  %3960 = vrot.lane.b32.xlu0 %v3937_v4, %s8085_s28  ;;  %v3939_v3 = vld [vmem:[#allocation3 + $0x7c] ss:$2 sm:$0xff]  ;;  %v4686_v4 = vld [vmem:[#allocation3 + $0x63] ss:$2 sm:$0xff] }
 0x678   :  { %3891 = vrot.lane.b32.xlu1 %v3868_v55, %s8106_s3 }
 0x679   :  { %v3882_v14 = vpop.permute.xlu2 %3881  ;;  %v3542_v5 = vpop.permute.xlu0 %3541 }
 0x67a   :  { %3563 = vst.msk [vmem:[#allocation6 + $0x60] sm:$0xff] %vm3559_vm1, %v3542_v5  ;;  %v3880_v56 = vpop.permute.xlu1 %3879 }
 0x67b   :  { %3620 = vst.msk [vmem:[#allocation6 + $0x60] sm:$0xff] %vm3616_vm2, %v3599_v28  ;;  %v4765_v7 = vld [vmem:[#allocation6] sm:$0xff] }
 0x67c   :  { %3903 = vst.msk [vmem:[#allocation6 + $0x20] sm:$0xff] %vm3901_vm8, %v3880_v56  ;;  %v4052_v56 = vld [vmem:[#allocation3 + $0xc1] ss:$2 sm:$0xff] }
 0x67f   :  { %4373 = vrot.lane.b32.xlu2 %v4350_v15, %s8085_s28  ;;  %4069 = vrot.lane.b32.xlu0 %v4046_v6, %s8093_s14  ;;  %v3996_v15 = vld [vmem:[#allocation3 + $0xc0] ss:$2 sm:$0xff] }
 0x680   :  { %4013 = vrot.lane.b32.xlu1 %v3990_v18, %s10942_s16  ;;  %v3941_v6 = vld [vmem:[#allocation3 + $0xac] ss:$2 sm:$0xff] }
 0x681   :  { %v3546_v57 = vpop.permute.xlu2 %3545  ;;  %v3654_v19 = vpop.permute.xlu0 %3653 }
 0x682   :  { %3565 = vst.msk [vmem:[#allocation6 + $0xa0] sm:$0xff] %vm3559_vm1, %v3546_v57  ;;  %v3597_v21 = vpop.permute.xlu1 %3596 }
 0x683   :  { %3619 = vst.msk [vmem:[#allocation6 + $0x40] sm:$0xff] %vm3616_vm2, %v3597_v21  ;;  %v4769_v22 = vld [vmem:[#allocation6 + $0x20] sm:$0xff] }
 0x684   :  { %3676 = vst.msk [vmem:[#allocation6 + $0x40] sm:$0xff] %vm3673_vm4, %v3654_v19  ;;  %v4797_v24 = vpack.c.bf16 %v4769_v22, %v4765_v7 }
 0x685   :  { %3733 = vst.msk [vmem:[#allocation6 + $0x40] sm:$0xff] %vm3730_vm5, %v3711_v37 }
 0x686   :  { %5033 = vmatmul.bf16.vlgmr.msra.gmra.mxu1 %v4797_v24  ;;  %v4354_v24 = vld [vmem:[#allocation3 + $0xaa] ss:$2 sm:$0xff] }
 0x687   :  { %4127 = vrot.lane.b32.xlu2 %v4104_v25, %s8097_s17  ;;  %4375 = vrot.lane.b32.xlu0 %v4352_v9, %s8085_s28  ;;  %v4050_v25 = vld [vmem:[#allocation3 + $0x91] ss:$2 sm:$0xff] }
 0x688   :  { %4071 = vrot.lane.b32.xlu1 %v4048_v27, %s8093_s14 }
 0x689   :  { %v3658_v29 = vpop.permute.xlu2 %3657  ;;  %v3713_v58 = vpop.permute.xlu0 %3712 }
 0x68a   :  { %v3656_v10 = vpop.permute.xlu1 %3655 }
 0x68b   :  { %3677 = vst.msk [vmem:[#allocation6 + $0x60] sm:$0xff] %vm3673_vm4, %v3656_v10  ;;  %v4108_v10 = vld [vmem:[#allocation3 + $0xc2] ss:$2 sm:$0xff] }
 0x68c   :  { %3734 = vst.msk [vmem:[#allocation6 + $0x60] sm:$0xff] %vm3730_vm5, %v3713_v58  ;;  %v4412_v58 = vld [vmem:[#allocation3 + $0xdb] ss:$2 sm:$0xff] }
 0x68d   :  { %3791 = vst.msk [vmem:[#allocation6 + $0x60] sm:$0xff] %vm3787_vm6, %v3770_v54 }
 0x68f   :  { %4181 = vrot.lane.b32.xlu2 %v4158_v61, %s8101_s24  ;;  %4429 = vrot.lane.b32.xlu0 %v4406_v31, %s10942_s16  ;;  %v4356_v61 = vld [vmem:[#allocation3 + $0xda] ss:$2 sm:$0xff] }
 0x690   :  { %4125 = vrot.lane.b32.xlu1 %v4102_v16, %s8097_s17 }
 0x691   :  { %v3717_v20 = vpop.permute.xlu2 %3716  ;;  %v3825_v30 = vpop.permute.xlu0 %3824 }
 0x692   :  { %v3768_v32 = vpop.permute.xlu1 %3767 }
 0x693   :  { %3790 = vst.msk [vmem:[#allocation6 + $0x40] sm:$0xff] %vm3787_vm6, %v3768_v32  ;;  %v4162_v32 = vld [vmem:[#allocation3 + $0x93] ss:$2 sm:$0xff] }
 0x694   :  { %3847 = vst.msk [vmem:[#allocation6 + $0x40] sm:$0xff] %vm3844_vm7, %v3825_v30  ;;  %v4466_v30 = vld [vmem:[#allocation3 + $0xac] ss:$2 sm:$0xff] }
 0x695   :  { %3904 = vst.msk [vmem:[#allocation6 + $0x40] sm:$0xff] %vm3901_vm8, %v3882_v14 }
 0x697   :  { %4487 = vrot.lane.b32.xlu2 %v4464_v33, %s8093_s14  ;;  %4183 = vrot.lane.b32.xlu0 %v4160_v11, %s8101_s24  ;;  %v4410_v33 = vld [vmem:[#allocation3 + $0xab] ss:$2 sm:$0xff] }
 0x698   :  { %4431 = vrot.lane.b32.xlu1 %v4408_v63, %s10942_s16  ;;  %v7948_v11 = vld [vmem:[%s10931_s4 + $0xc0] sm:$0xff] }
 0x699   :  { %v3829_v34 = vpop.permute.xlu2 %3828  ;;  %v3884_v35 = vpop.permute.xlu0 %3883  ;;  %5119 = vmatpush.bf16.msrb.mxu1 %v7948_v11  ;;  %v4360_v11 = vld [vmem:[#allocation3 + $0x19a] ss:$2 sm:$0xff] }
 0x69a   :  { %v3827_v36 = vpop.permute.xlu1 %3826 }
 0x69b   :  { %3848 = vst.msk [vmem:[#allocation6 + $0x60] sm:$0xff] %vm3844_vm7, %v3827_v36  ;;  %v4220_v36 = vld [vmem:[#allocation3 + $0xc4] ss:$2 sm:$0xff] }
 0x69c   :  { %3905 = vst.msk [vmem:[#allocation6 + $0x60] sm:$0xff] %vm3901_vm8, %v3884_v35  ;;  %v4773_v41 = vld [vmem:[#allocation6 + $0x40] sm:$0xff] }
 0x69f   :  { %4541 = vrot.lane.b32.xlu2 %v4518_v12, %s8097_s17  ;;  %4237 = vrot.lane.b32.xlu0 %v4214_v13, %s8105_s21  ;;  %v4468_v12 = vld [vmem:[#allocation3 + $0xdc] ss:$2 sm:$0xff]  ;;  %v4164_v13 = vld [vmem:[#allocation3 + $0xc3] ss:$2 sm:$0xff] }
 0x6a0   :  { %4485 = vrot.lane.b32.xlu1 %v4462_v38, %s8093_s14 }
 0x6a1   :  { %v3888_v39 = vpop.permute.xlu2 %3887  ;;  %v3601_v40 = vpop.permute.xlu0 %3600 }
 0x6a2   :  { %v3544_v17 = vpop.permute.xlu1 %3543 }
 0x6a3   :  { %3564 = vst.msk [vmem:[#allocation6 + $0x80] sm:$0xff] %vm3559_vm1, %v3544_v17  ;;  %v4777_v42 = vld [vmem:[#allocation6 + $0x60] sm:$0xff]  ;;  %v7939_v17 = vld [vmem:[%s10931_s4 + $0x78] sm:$0xff] }
 0x6a4   :  { %3621 = vst.msk [vmem:[#allocation6 + $0x80] sm:$0xff] %vm3616_vm2, %v3601_v40  ;;  %v4801_v23 = vpack.c.bf16 %v4777_v42, %v4773_v41  ;;  %v4274_v41 = vld [vmem:[#allocation3 + $0xa8] ss:$2 sm:$0xff]  ;;  %5054 = vmatpush.bf16.msra.mxu2 %v7939_v17 }
 0x6a5   :  { %3678 = vst.msk [vmem:[#allocation6 + $0x80] sm:$0xff] %vm3673_vm4, %v3658_v29  ;;  %v4522_v42 = vld [vmem:[#allocation3 + $0xc0] ss:$2 sm:$0xff] }
 0x6a6   :  { %5038 = vmatmul.bf16.gmra.mxu1 %v4801_v23  ;;  %v4218_v23 = vld [vmem:[#allocation3 + $0x94] ss:$2 sm:$0xff] }
 0x6a7   :  { %4295 = vrot.lane.b32.xlu2 %v4272_v43, %s8106_s3  ;;  %4543 = vrot.lane.b32.xlu0 %v4520_v44, %s8097_s17  ;;  %v7938_v43 = vld [vmem:[%s10931_s4 + $0x70] sm:$0xff] }
 0x6a8   :  { %4239 = vrot.lane.b32.xlu1 %v4216_v46, %s8105_s21  ;;  %5055 = vmatpush.bf16.msra.mxu2 %v7938_v43  ;;  %v4358_v17 = vld [vmem:[#allocation3 + $0x16a] ss:$2 sm:$0xff] }
 0x6a9   :  { %v3605_v47 = vpop.permute.xlu2 %3604  ;;  %v3660_v28 = vpop.permute.xlu0 %3659  ;;  %v4788_v43 = vld [vmem:[#allocation6 + $0xb8] sm:$0xff] }
 0x6aa   :  { %v3603_v48 = vpop.permute.xlu1 %3602 }
 0x6ab   :  { %3622 = vst.msk [vmem:[#allocation6 + $0xa0] sm:$0xff] %vm3616_vm2, %v3603_v48 }
 0x6ac   :  { %3679 = vst.msk [vmem:[#allocation6 + $0xa0] sm:$0xff] %vm3673_vm4, %v3660_v28 }
 0x6ad   :  { %3736 = vst.msk [vmem:[#allocation6 + $0xa0] sm:$0xff] %vm3730_vm5, %v3717_v20 }
 0x6af   :  { %4653 = vrot.lane.b32.xlu2 %v4630_v49, %s8105_s21  ;;  %4597 = vrot.lane.b32.xlu0 %v4574_v50, %s8101_s24  ;;  %v4580_v49 = vld [vmem:[#allocation3 + $0xf1] ss:$2 sm:$0xff]  ;;  %v4524_v50 = vld [vmem:[#allocation3 + $0xf0] ss:$2 sm:$0xff] }
 0x6b0   :  { %4293 = vrot.lane.b32.xlu1 %v4270_v51, %s8106_s3  ;;  %v4276_v51 = vld [vmem:[#allocation3 + $0xd8] ss:$2 sm:$0xff] }
 0x6b1   :  { %v3664_v52 = vpop.permute.xlu2 %3663  ;;  %v3772_v37 = vpop.permute.xlu0 %3771 }
 0x6b2   :  { %v3715_v53 = vpop.permute.xlu1 %3714 }
 0x6b3   :  { %3735 = vst.msk [vmem:[#allocation6 + $0x80] sm:$0xff] %vm3730_vm5, %v3715_v53 }
 0x6b4   :  { %3792 = vst.msk [vmem:[#allocation6 + $0x80] sm:$0xff] %vm3787_vm6, %v3772_v37  ;;  %v7936_v37 = vld [vmem:[%s10931_s4 + $0x60] sm:$0xff] }
 0x6b5   :  { %3849 = vst.msk [vmem:[#allocation6 + $0x80] sm:$0xff] %vm3844_vm7, %v3829_v34 }
 0x6b7   :  { %4711 = vrot.lane.b32.xlu2 %v4688_v59, %s8106_s3  ;;  %4655 = vrot.lane.b32.xlu0 %v4632_v60, %s8105_s21 }
 0x6b8   :  { %4599 = vrot.lane.b32.xlu1 %v4576_v62, %s8101_s24  ;;  %v7935_v62 = vld [vmem:[%s10931_s4 + $0x58] sm:$0xff] }
 0x6b9   :  { %v3776_v45 = vpop.permute.xlu2 %3775  ;;  %v3831_v54 = vpop.permute.xlu0 %3830 }
 0x6ba   :  { %v3774_v1 = vpop.permute.xlu1 %3773 }
 0x6bb   :  { %3793 = vst.msk [vmem:[#allocation6 + $0xa0] sm:$0xff] %vm3787_vm6, %v3774_v1  ;;  %v4634_v1 = vld [vmem:[#allocation3 + $0xc2] ss:$2 sm:$0xff] }
 0x6bc   :  { %3850 = vst.msk [vmem:[#allocation6 + $0xa0] sm:$0xff] %vm3844_vm7, %v3831_v54  ;;  %v4690_v54 = vld [vmem:[#allocation3 + $0xc3] ss:$2 sm:$0xff] }
 0x6bd   :  { %3907 = vst.msk [vmem:[#allocation6 + $0xa0] sm:$0xff] %vm3901_vm8, %v3888_v39 }
 0x6bf   :  { %4017 = vrot.lane.b32.xlu2 %v3994_v2, %s10942_s16  ;;  %3962 = vrot.lane.b32.xlu0 %v3939_v3, %s8085_s28  ;;  %v4578_v2 = vld [vmem:[#allocation3 + $0xc1] ss:$2 sm:$0xff] }
 0x6c0   :  { %4709 = vrot.lane.b32.xlu1 %v4686_v4, %s8106_s3  ;;  %v7934_v3 = vld [vmem:[%s10931_s4 + $0x50] sm:$0xff] }
 0x6c1   :  { %v3835_v55 = vpop.permute.xlu2 %3834  ;;  %v3548_v14 = vpop.permute.xlu0 %3547  ;;  %v7946_v4 = vld [vmem:[%s10931_s4 + $0xb0] sm:$0xff] }
 0x6c2   :  { %3566 = vst.msk [vmem:[#allocation6 + $0xc0] sm:$0xff] %vm3559_vm1, %v3548_v14  ;;  %v3886_v5 = vpop.permute.xlu1 %3885 }
 0x6c3   :  { %3623 = vst.msk [vmem:[#allocation6 + $0xc0] sm:$0xff] %vm3616_vm2, %v3605_v47 }
 0x6c4   :  { %3906 = vst.msk [vmem:[#allocation6 + $0x80] sm:$0xff] %vm3901_vm8, %v3886_v5  ;;  %v4785_v21 = vld [vmem:[#allocation6 + $0xa0] sm:$0xff]  ;;  %v4768_v5 = vld [vmem:[#allocation6 + $0x18] sm:$0xff] }
 0x6c7   :  { %4075 = vrot.lane.b32.xlu2 %v4052_v56, %s8093_s14  ;;  %4019 = vrot.lane.b32.xlu0 %v3996_v15, %s10942_s16  ;;  %v4772_v56 = vld [vmem:[#allocation6 + $0x38] sm:$0xff] }
 0x6c8   :  { %3964 = vrot.lane.b32.xlu1 %v3941_v6, %s8085_s28  ;;  %v4800_v6 = vpack.c.bf16 %v4772_v56, %v4768_v5 }
 0x6c9   :  { %v3959_v18 = vpop.permute.xlu2 %3958  ;;  %v3607_v57 = vpop.permute.xlu0 %3606 }
 0x6ca   :  { %3982 = vst.msk [vmem:[#allocation6 + $0x8] sm:$0xff] %vm3559_vm1, %v3959_v18  ;;  %v3550_v19 = vpop.permute.xlu1 %3549  ;;  %v4692_v18 = vld [vmem:[#allocation3 + $0xf3] ss:$2 sm:$0xff] }
 0x6cb   :  { %3567 = vst.msk [vmem:[#allocation6 + $0xe0] sm:$0xff] %vm3559_vm1, %v3550_v19  ;;  %v4781_v7 = vld [vmem:[#allocation6 + $0x80] sm:$0xff]  ;;  %v3945_v19 = vld [vmem:[#allocation3 + $0x16c] ss:$2 sm:$0xff] }
 0x6cc   :  { %3624 = vst.msk [vmem:[#allocation6 + $0xe0] sm:$0xff] %vm3616_vm2, %v3607_v57  ;;  %v4805_v22 = vpack.c.bf16 %v4785_v21, %v4781_v7  ;;  %v4636_v57 = vld [vmem:[#allocation3 + $0xf2] ss:$2 sm:$0xff] }
 0x6cd   :  { %3681 = vst.msk [vmem:[#allocation6 + $0xe0] sm:$0xff] %vm3673_vm4, %v3664_v52  ;;  %v7937_v52 = vld [vmem:[%s10931_s4 + $0x68] sm:$0xff] }
 0x6ce   :  { %5043 = vmatmul.bf16.gmra.mxu1 %v4805_v22  ;;  %5056 = vmatpush.bf16.msra.mxu2 %v7937_v52  ;;  %v7933_v7 = vld [vmem:[%s10931_s4 + $0x48] sm:$0xff]  ;;  %v7932_v22 = vld [vmem:[%s10931_s4 + $0x40] sm:$0xff] }
 0x6cf   :  { %4129 = vrot.lane.b32.xlu2 %v4106_v8, %s8097_s17  ;;  %4377 = vrot.lane.b32.xlu0 %v4354_v24, %s8085_s28  ;;  %v7945_v21 = vld [vmem:[%s10931_s4 + $0xa8] sm:$0xff] }
 0x6d0   :  { %4073 = vrot.lane.b32.xlu1 %v4050_v25, %s8093_s14  ;;  %v7944_v25 = vld [vmem:[%s10931_s4 + $0xa0] sm:$0xff] }
 0x6d1   :  { %v4016_v9 = vpop.permute.xlu2 %4015  ;;  %v3719_v27 = vpop.permute.xlu0 %3718 }
 0x6d2   :  { %v3662_v29 = vpop.permute.xlu1 %3661  ;;  %5057 = vmatpush.bf16.msra.mxu2 %v7936_v37 }
 0x6d3   :  { %3680 = vst.msk [vmem:[#allocation6 + $0xc0] sm:$0xff] %vm3673_vm4, %v3662_v29  ;;  %v4054_v29 = vld [vmem:[#allocation3 + $0x151] ss:$2 sm:$0xff] }
 0x6d4   :  { %3737 = vst.msk [vmem:[#allocation6 + $0xc0] sm:$0xff] %vm3730_vm5, %v3719_v27  ;;  %v3943_v27 = vld [vmem:[#allocation3 + $0x13c] ss:$2 sm:$0xff] }
 0x6d5   :  { %3794 = vst.msk [vmem:[#allocation6 + $0xc0] sm:$0xff] %vm3787_vm6, %v3776_v45  ;;  %v7947_v45 = vld [vmem:[%s10931_s4 + $0xb8] sm:$0xff] }
 0x6d6   :  { %5083 = vmatpush.bf16.msra.mxu3 %v7947_v45  ;;  %5058 = vmatpush.bf16.msra.mxu2 %v7935_v62 }
 0x6d7   :  { %4435 = vrot.lane.b32.xlu2 %v4412_v58, %s10942_s16  ;;  %4131 = vrot.lane.b32.xlu0 %v4108_v10, %s8097_s17  ;;  %v3998_v58 = vld [vmem:[#allocation3 + $0x150] ss:$2 sm:$0xff] }
 0x6d8   :  { %4379 = vrot.lane.b32.xlu1 %v4356_v61, %s8085_s28  ;;  %v7943_v10 = vld [vmem:[%s10931_s4 + $0x98] sm:$0xff] }
 0x6d9   :  { %v4374_v31 = vpop.permute.xlu2 %4373  ;;  %v3778_v16 = vpop.permute.xlu0 %3777 }
 0x6da   :  { %4397 = vst.msk [vmem:[#allocation6 + $0x10] sm:$0xff] %vm3559_vm1, %v4374_v31  ;;  %v3721_v20 = vpop.permute.xlu1 %3720  ;;  %5084 = vmatpush.bf16.msra.mxu3 %v7946_v4  ;;  %5059 = vmatpush.bf16.msra.mxu2 %v7934_v3  ;;  %v4528_v4 = vld [vmem:[#allocation3 + $0x1b0] ss:$2 sm:$0xff] }
 0x6db   :  { %3738 = vst.msk [vmem:[#allocation6 + $0xe0] sm:$0xff] %vm3730_vm5, %v3721_v20  ;;  %v4780_v20 = vld [vmem:[#allocation6 + $0x78] sm:$0xff] }
 0x6dc   :  { %3795 = vst.msk [vmem:[#allocation6 + $0xe0] sm:$0xff] %vm3787_vm6, %v3778_v16  ;;  %v4776_v16 = vld [vmem:[#allocation6 + $0x58] sm:$0xff] }
 0x6dd   :  { %3852 = vst.msk [vmem:[#allocation6 + $0xe0] sm:$0xff] %vm3844_vm7, %v3835_v55 }
 0x6de   :  { %5060 = vmatpush.bf16.msra.mxu2 %v7933_v7  ;;  %5085 = vmatpush.bf16.msra.mxu3 %v7945_v21  ;;  %v4278_v7 = vld [vmem:[#allocation3 + $0x168] ss:$2 sm:$0xff] }
 0x6df   :  { %4489 = vrot.lane.b32.xlu2 %v4466_v30, %s8093_s14  ;;  %4185 = vrot.lane.b32.xlu0 %v4162_v32, %s8101_s24  ;;  %v7942_v30 = vld [vmem:[%s10931_s4 + $0x90] sm:$0xff] }
 0x6e0   :  { %4433 = vrot.lane.b32.xlu1 %v4410_v33, %s10942_s16  ;;  %v4804_v33 = vpack.c.bf16 %v4780_v20, %v4776_v16  ;;  %v4526_v21 = vld [vmem:[#allocation3 + $0x180] ss:$2 sm:$0xff] }
 0x6e1   :  { %v4128_v63 = vpop.permute.xlu2 %4127  ;;  %v3890_v34 = vpop.permute.xlu0 %3889  ;;  %v4638_v16 = vld [vmem:[#allocation3 + $0x182] ss:$2 sm:$0xff] }
 0x6e2   :  { %v3833_v35 = vpop.permute.xlu1 %3832  ;;  %5061 = vmatpush.bf16.msra.mxu2 %v7932_v22  ;;  %5086 = vmatpush.bf16.msra.mxu3 %v7944_v25  ;;  %v4640_v25 = vld [vmem:[#allocation3 + $0x1b2] ss:$2 sm:$0xff] }
 0x6e3   :  { %3851 = vst.msk [vmem:[#allocation6 + $0xc0] sm:$0xff] %vm3844_vm7, %v3833_v35  ;;  %v4000_v35 = vld [vmem:[#allocation3 + $0x180] ss:$2 sm:$0xff] }
 0x6e4   :  { %3908 = vst.msk [vmem:[#allocation6 + $0xc0] sm:$0xff] %vm3901_vm8, %v3890_v34  ;;  %v7941_v34 = vld [vmem:[%s10931_s4 + $0x88] sm:$0xff] }
 0x6e6   :  { %5087 = vmatpush.bf16.msra.mxu3 %v7943_v10 }
 0x6e7   :  { %4243 = vrot.lane.b32.xlu2 %v4220_v36, %s8105_s21  ;;  %4491 = vrot.lane.b32.xlu0 %v4468_v12, %s8093_s14 }
 0x6e8   :  { %4187 = vrot.lane.b32.xlu1 %v4164_v13, %s8101_s24  ;;  %v7940_v13 = vld [vmem:[%s10931_s4 + $0x80] sm:$0xff] }
 0x6e9   :  { %v4182_v38 = vpop.permute.xlu2 %4181  ;;  %v3961_v39 = vpop.permute.xlu0 %3960 }
 0x6ea   :  { %3983 = vst.msk [vmem:[#allocation6 + $0x28] sm:$0xff] %vm3559_vm1, %v3961_v39  ;;  %v3892_v40 = vpop.permute.xlu1 %3891  ;;  %5088 = vmatpush.bf16.msra.mxu3 %v7942_v30  ;;  %v4414_v39 = vld [vmem:[#allocation3 + $0x16b] ss:$2 sm:$0xff] }
 0x6eb   :  { %4038 = vst.msk [vmem:[#allocation6 + $0x28] sm:$0xff] %vm3616_vm2, %v4016_v9  ;;  %v4789_v47 = vld [vmem:[#allocation6 + $0xc0] sm:$0xff] }
 0x6ec   :  { %3909 = vst.msk [vmem:[#allocation6 + $0xe0] sm:$0xff] %vm3901_vm8, %v3892_v40  ;;  %v4110_v40 = vld [vmem:[#allocation3 + $0x152] ss:$2 sm:$0xff] }
 0x6ee   :  { %5089 = vmatpush.bf16.msra.mxu3 %v7941_v34 }
 0x6ef   :  { %4297 = vrot.lane.b32.xlu2 %v4274_v41, %s8106_s3  ;;  %4545 = vrot.lane.b32.xlu0 %v4522_v42, %s8097_s17 }
 0x6f0   :  { %4241 = vrot.lane.b32.xlu1 %v4218_v23, %s8105_s21  ;;  %v4784_v23 = vld [vmem:[#allocation6 + $0x98] sm:$0xff] }
 0x6f1   :  { %v10038_v44 = vpop.permute.xlu2 %4487  ;;  %v4070_v46 = vpop.permute.xlu0 %4069 }
 0x6f2   :  { %v4014_v26 = vpop.permute.xlu1 %4013  ;;  %5090 = vmatpush.bf16.msra.mxu3 %v7940_v13  ;;  %v4058_v13 = vld [vmem:[#allocation3 + $0x1b1] ss:$2 sm:$0xff] }
 0x6f3   :  { %4037 = vst.msk [vmem:[#allocation6 + $0x8] sm:$0xff] %vm3616_vm2, %v4014_v26  ;;  %v4793_v28 = vld [vmem:[#allocation6 + $0xe0] sm:$0xff] }
 0x6f4   :  { %4093 = vst.msk [vmem:[#allocation6 + $0x8] sm:$0xff] %vm3673_vm4, %v4070_v46  ;;  %v4809_v48 = vpack.c.bf16 %v4793_v28, %v4789_v47  ;;  %v4808_v46 = vpack.c.bf16 %v4788_v43, %v4784_v23  ;;  %v4168_v26 = vld [vmem:[#allocation3 + $0x183] ss:$2 sm:$0xff]  ;;  %v4112_v28 = vld [vmem:[#allocation3 + $0x182] ss:$2 sm:$0xff] }
 0x6f5   :  { %v4416_v47 = vld [vmem:[#allocation3 + $0x19b] ss:$2 sm:$0xff]  ;;  %v4364_v23 = vld [vmem:[#allocation3 + $0x1fa] ss:$2 sm:$0xff] }
 0x6f6   :  { %5048 = vmatmul.bf16.gmra.mxu1 %v4809_v48  ;;  %v4060_v43 = vld [vmem:[#allocation3 + $0x1e1] ss:$2 sm:$0xff] }
 0x6f7   :  { %4603 = vrot.lane.b32.xlu2 %v4580_v49, %s8101_s24  ;;  %4299 = vrot.lane.b32.xlu0 %v4276_v51, %s8106_s3 }
 0x6f8   :  { %4547 = vrot.lane.b32.xlu1 %v4524_v50, %s8097_s17 }
 0x6f9   :  { %v10051_v53 = vpop.permute.xlu2 %4541  ;;  %v4376_v59 = vpop.permute.xlu0 %4375 }
 0x6fa   :  { %4398 = vst.msk [vmem:[#allocation6 + $0x30] sm:$0xff] %vm3559_vm1, %v4376_v59  ;;  %v4072_v60 = vpop.permute.xlu1 %4071  ;;  %v4470_v59 = vld [vmem:[#allocation3 + $0x16c] ss:$2 sm:$0xff] }
 0x6fb   :  { %4094 = vst.msk [vmem:[#allocation6 + $0x28] sm:$0xff] %vm3673_vm4, %v4072_v60  ;;  %v4166_v60 = vld [vmem:[#allocation3 + $0x153] ss:$2 sm:$0xff] }
 0x6fc   :  { %4150 = vst.msk [vmem:[#allocation6 + $0x28] sm:$0xff] %vm3730_vm5, %v4128_v63  ;;  %v4056_v63 = vld [vmem:[#allocation3 + $0x181] ss:$2 sm:$0xff] }
 0x6ff   :  { %4713 = vrot.lane.b32.xlu2 %v4690_v54, %s8106_s3  ;;  %4657 = vrot.lane.b32.xlu0 %v4634_v1, %s8105_s21  ;;  %v4792_v54 = vld [vmem:[#allocation6 + $0xd8] sm:$0xff] }
 0x700   :  { %4601 = vrot.lane.b32.xlu1 %v4578_v2, %s8101_s24  ;;  %v4796_v1 = vld [vmem:[#allocation6 + $0xf8] sm:$0xff] }
 0x701   :  { %v10071_v55 = vpop.permute.xlu2 %4295  ;;  %v4430_v14 = vpop.permute.xlu0 %4429  ;;  %v4812_v3 = vpack.c.bf16 %v4796_v1, %v4792_v54 }
 0x702   :  { %4453 = vst.msk [vmem:[#allocation6 + $0x10] sm:$0xff] %vm3616_vm2, %v4430_v14  ;;  %v4126_v15 = vpop.permute.xlu1 %4125  ;;  %v4472_v14 = vld [vmem:[#allocation3 + $0x19c] ss:$2 sm:$0xff] }
 0x703   :  { %4149 = vst.msk [vmem:[#allocation6 + $0x8] sm:$0xff] %vm3730_vm5, %v4126_v15 }
 0x704   :  { %4205 = vst.msk [vmem:[#allocation6 + $0x8] sm:$0xff] %vm3787_vm6, %v4182_v38 }
 0x706   :  { %7636 = vmatmul.msk.bf16.vlgmr.msrb.gmra.mxu1 %vm3206_vm3, %v4800_v6 }
 0x707   :  { %3968 = vrot.lane.b32.xlu2 %v3945_v19, %s8085_s28  ;;  %4715 = vrot.lane.b32.xlu0 %v4692_v18, %s8106_s3  ;;  %v4582_v19 = vld [vmem:[#allocation3 + $0x181] ss:$2 sm:$0xff] }
 0x708   :  { %4659 = vrot.lane.b32.xlu1 %v4636_v57, %s8105_s21 }
 0x709   :  { %v4654_v8 = vpop.permute.xlu2 %4653  ;;  %v4184_v24 = vpop.permute.xlu0 %4183 }
 0x70a   :  { %4206 = vst.msk [vmem:[#allocation6 + $0x28] sm:$0xff] %vm3787_vm6, %v4184_v24  ;;  %v4432_v9 = vpop.permute.xlu1 %4431 }
 0x70b   :  { %4454 = vst.msk [vmem:[#allocation6 + $0x30] sm:$0xff] %vm3616_vm2, %v4432_v9  ;;  %v4584_v9 = vld [vmem:[#allocation3 + $0x1b1] ss:$2 sm:$0xff] }
 0x70c   :  { %4510 = vst.msk [vmem:[#allocation6 + $0x30] sm:$0xff] %vm3673_vm4, %v10038_v44 }
 0x70f   :  { %4077 = vrot.lane.b32.xlu2 %v4054_v29, %s8093_s14  ;;  %4021 = vrot.lane.b32.xlu0 %v3998_v58, %s10942_s16 }
 0x710   :  { %3966 = vrot.lane.b32.xlu1 %v3943_v27, %s8085_s28  ;;  %v4280_v27 = vld [vmem:[#allocation3 + $0x198] ss:$2 sm:$0xff] }
 0x711   :  { %v4712_v61 = vpop.permute.xlu2 %4711  ;;  %v4238_v31 = vpop.permute.xlu0 %4237 }
 0x712   :  { %4261 = vst.msk [vmem:[#allocation6 + $0x8] sm:$0xff] %vm3844_vm7, %v4238_v31  ;;  %v4486_v32 = vpop.permute.xlu1 %4485  ;;  %v4694_v31 = vld [vmem:[#allocation3 + $0x183] ss:$2 sm:$0xff] }
 0x713   :  { %4509 = vst.msk [vmem:[#allocation6 + $0x10] sm:$0xff] %vm3673_vm4, %v4486_v32 }
 0x714   :  { %4565 = vst.msk [vmem:[#allocation6 + $0x10] sm:$0xff] %vm3730_vm5, %v10051_v53  ;;  %v4222_v53 = vld [vmem:[#allocation3 + $0x154] ss:$2 sm:$0xff] }
 0x716   :  { %7637 = vmatmul.msk.bf16.gmra.mxu1 %vm3206_vm3, %v4804_v33  ;;  %v4004_v33 = vld [vmem:[#allocation3 + $0x1e0] ss:$2 sm:$0xff] }
 0x717   :  { %4383 = vrot.lane.b32.xlu2 %v4360_v11, %s8085_s28  ;;  %4079 = vrot.lane.b32.xlu0 %v4056_v63, %s8093_s14  ;;  %v3949_v11 = vld [vmem:[#allocation3 + $0x1cc] ss:$2 sm:$0xff]  ;;  %v4696_v63 = vld [vmem:[#allocation3 + $0x1b3] ss:$2 sm:$0xff] }
 0x718   :  { %4023 = vrot.lane.b32.xlu1 %v4000_v35, %s10942_s16 }
 0x719   :  { %v4018_v36 = vpop.permute.xlu2 %4017  ;;  %v4544_v12 = vpop.permute.xlu0 %4543 }
 0x71a   :  { %4566 = vst.msk [vmem:[#allocation6 + $0x30] sm:$0xff] %vm3730_vm5, %v4544_v12  ;;  %v4240_v38 = vpop.permute.xlu1 %4239  ;;  %v4362_v12 = vld [vmem:[#allocation3 + $0x1ca] ss:$2 sm:$0xff] }
 0x71b   :  { %4262 = vst.msk [vmem:[#allocation6 + $0x28] sm:$0xff] %vm3844_vm7, %v4240_v38  ;;  %v4002_v38 = vld [vmem:[#allocation3 + $0x1b0] ss:$2 sm:$0xff] }
 0x71c   :  { %4318 = vst.msk [vmem:[#allocation6 + $0x28] sm:$0xff] %vm3901_vm8, %v10071_v55  ;;  %v4224_v55 = vld [vmem:[#allocation3 + $0x184] ss:$2 sm:$0xff] }
 0x71f   :  { %4437 = vrot.lane.b32.xlu2 %v4414_v39, %s10942_s16  ;;  %4133 = vrot.lane.b32.xlu0 %v4110_v40, %s8097_s17 }
 0x720   :  { %4381 = vrot.lane.b32.xlu1 %v4358_v17, %s8085_s28 }
 0x721   :  { %v4076_v41 = vpop.permute.xlu2 %4075  ;;  %v4598_v42 = vpop.permute.xlu0 %4597 }
 0x722   :  { %4621 = vst.msk [vmem:[#allocation6 + $0x10] sm:$0xff] %vm3787_vm6, %v4598_v42  ;;  %v4294_v44 = vpop.permute.xlu1 %4293  ;;  %v4116_v42 = vld [vmem:[#allocation3 + $0x1e2] ss:$2 sm:$0xff] }
 0x723   :  { %4677 = vst.msk [vmem:[#allocation6 + $0x10] sm:$0xff] %vm3844_vm7, %v4654_v8  ;;  %v4770_v52 = vld [vmem:[#allocation6 + $0x28] sm:$0xff] }
 0x724   :  { %4317 = vst.msk [vmem:[#allocation6 + $0x8] sm:$0xff] %vm3901_vm8, %v4294_v44 }
 0x726   :  { %7638 = vmatmul.msk.bf16.gmra.mxu1 %vm3206_vm3, %v4808_v46 }
 0x727   :  { %4191 = vrot.lane.b32.xlu2 %v4168_v26, %s8101_s24  ;;  %4439 = vrot.lane.b32.xlu0 %v4416_v47, %s10942_s16  ;;  %v4170_v47 = vld [vmem:[#allocation3 + $0x1b3] ss:$2 sm:$0xff] }
 0x728   :  { %4135 = vrot.lane.b32.xlu1 %v4112_v28, %s8097_s17  ;;  %v4418_v28 = vld [vmem:[#allocation3 + $0x1cb] ss:$2 sm:$0xff] }
 0x729   :  { %v4130_v48 = vpop.permute.xlu2 %4129  ;;  %v4656_v49 = vpop.permute.xlu0 %4655 }
 0x72a   :  { %v4600_v50 = vpop.permute.xlu1 %4599 }
 0x72b   :  { %4622 = vst.msk [vmem:[#allocation6 + $0x30] sm:$0xff] %vm3787_vm6, %v4600_v50  ;;  %v4766_v51 = vld [vmem:[#allocation6 + $0x8] sm:$0xff] }
 0x72c   :  { %4678 = vst.msk [vmem:[#allocation6 + $0x30] sm:$0xff] %vm3844_vm7, %v4656_v49  ;;  %v4798_v37 = vpack.c.bf16 %v4770_v52, %v4766_v51 }
 0x72d   :  { %4734 = vst.msk [vmem:[#allocation6 + $0x30] sm:$0xff] %vm3901_vm8, %v4712_v61  ;;  %v3947_v61 = vld [vmem:[#allocation3 + $0x19c] ss:$2 sm:$0xff] }
 0x72e   :  { %5062 = vmatmul.bf16.vlgmr.msra.gmra.mxu2 %v4798_v37 }
 0x72f   :  { %4245 = vrot.lane.b32.xlu2 %v4222_v53, %s8105_s21  ;;  %4493 = vrot.lane.b32.xlu0 %v4470_v59, %s8093_s14  ;;  %v4476_v59 = vld [vmem:[#allocation3 + $0x1fc] ss:$2 sm:$0xff] }
 0x730   :  { %4189 = vrot.lane.b32.xlu1 %v4166_v60, %s8101_s24  ;;  %v4172_v60 = vld [vmem:[#allocation3 + $0x1e3] ss:$2 sm:$0xff] }
 0x731   :  { %v4436_v62 = vpop.permute.xlu2 %4435  ;;  %v3963_v45 = vpop.permute.xlu0 %3962 }
 0x732   :  { %3984 = vst.msk [vmem:[#allocation6 + $0x48] sm:$0xff] %vm3559_vm1, %v3963_v45  ;;  %v4710_v2 = vpop.permute.xlu1 %4709 }
 0x733   :  { %4039 = vst.msk [vmem:[#allocation6 + $0x48] sm:$0xff] %vm3616_vm2, %v4018_v36 }
 0x734   :  { %4733 = vst.msk [vmem:[#allocation6 + $0x10] sm:$0xff] %vm3901_vm8, %v4710_v2  ;;  %v4771_v18 = vld [vmem:[#allocation6 + $0x30] sm:$0xff]  ;;  %v4530_v2 = vld [vmem:[#allocation3 + $0x1e0] ss:$2 sm:$0xff] }
 0x736   :  { %7639 = vmatmul.msk.bf16.gmra.mxu1 %vm3206_vm3, %v4812_v3  ;;  %v4226_v3 = vld [vmem:[#allocation3 + $0x1b4] ss:$2 sm:$0xff] }
 0x737   :  { %4551 = vrot.lane.b32.xlu2 %v4528_v4, %s8097_s17  ;;  %4247 = vrot.lane.b32.xlu0 %v4224_v55, %s8105_s21  ;;  %v4474_v4 = vld [vmem:[#allocation3 + $0x1cc] ss:$2 sm:$0xff] }
 0x738   :  { %4495 = vrot.lane.b32.xlu1 %v4472_v14, %s8093_s14 }
 0x739   :  { %v4490_v5 = vpop.permute.xlu2 %4489  ;;  %v4020_v56 = vpop.permute.xlu0 %4019 }
 0x73a   :  { %v3965_v15 = vpop.permute.xlu1 %3964 }
 0x73b   :  { %3985 = vst.msk [vmem:[#allocation6 + $0x68] sm:$0xff] %vm3559_vm1, %v3965_v15  ;;  %v4767_v6 = vld [vmem:[#allocation6 + $0x10] sm:$0xff] }
 0x73c   :  { %4040 = vst.msk [vmem:[#allocation6 + $0x68] sm:$0xff] %vm3616_vm2, %v4020_v56  ;;  %v4799_v57 = vpack.c.bf16 %v4771_v18, %v4767_v6  ;;  %v4532_v18 = vld [vmem:[#allocation3 + $0x210] ss:$2 sm:$0xff] }
 0x73d   :  { %4096 = vst.msk [vmem:[#allocation6 + $0x68] sm:$0xff] %vm3673_vm4, %v4076_v41  ;;  %v3919_v41 = vld [vmem:[#allocation3 + $0x13b] ss:$2 sm:$0xff] }
 0x73e   :  { %5091 = vmatmul.bf16.vlgmr.msra.gmra.mxu3 %v4799_v57  ;;  %3930 = vst.msk [vmem:[#allocation6 + $0x88] sm:$0xff] %vm3206_vm3, %v3919_v41  ;;  %v4284_v57 = vld [vmem:[#allocation3 + $0x1f8] ss:$2 sm:$0xff] }
 0x73f   :  { %4605 = vrot.lane.b32.xlu2 %v4582_v19, %s8101_s24  ;;  %4301 = vrot.lane.b32.xlu0 %v4278_v7, %s8106_s3  ;;  %v4228_v19 = vld [vmem:[#allocation3 + $0x1e4] ss:$2 sm:$0xff] }
 0x740   :  { %4549 = vrot.lane.b32.xlu1 %v4526_v21, %s8097_s17 }
 0x741   :  { %v4244_v22 = vpop.permute.xlu2 %4243  ;;  %v4378_v8 = vpop.permute.xlu0 %4377 }
 0x742   :  { %4399 = vst.msk [vmem:[#allocation6 + $0x50] sm:$0xff] %vm3559_vm1, %v4378_v8  ;;  %v4074_v24 = vpop.permute.xlu1 %4073  ;;  %v4642_v8 = vld [vmem:[#allocation3 + $0x1e2] ss:$2 sm:$0xff] }
 0x743   :  { %4095 = vst.msk [vmem:[#allocation6 + $0x48] sm:$0xff] %vm3673_vm4, %v4074_v24  ;;  %v4586_v24 = vld [vmem:[#allocation3 + $0x1e1] ss:$2 sm:$0xff] }
 0x744   :  { %4151 = vst.msk [vmem:[#allocation6 + $0x48] sm:$0xff] %vm3730_vm5, %v4130_v48  ;;  %v4114_v48 = vld [vmem:[#allocation3 + $0x1b2] ss:$2 sm:$0xff] }
 0x747   :  { %4663 = vrot.lane.b32.xlu2 %v4640_v25, %s8105_s21  ;;  %4607 = vrot.lane.b32.xlu0 %v4584_v9, %s8101_s24  ;;  %v4282_v25 = vld [vmem:[#allocation3 + $0x1c8] ss:$2 sm:$0xff] }
 0x748   :  { %4303 = vrot.lane.b32.xlu1 %v4280_v27, %s8106_s3 }
 0x749   :  { %v4298_v29 = vpop.permute.xlu2 %4297  ;;  %v4132_v58 = vpop.permute.xlu0 %4131 }
 0x74a   :  { %4152 = vst.msk [vmem:[#allocation6 + $0x68] sm:$0xff] %vm3730_vm5, %v4132_v58  ;;  %v4380_v10 = vpop.permute.xlu1 %4379  ;;  %v4644_v58 = vld [vmem:[#allocation3 + $0x212] ss:$2 sm:$0xff] }
 0x74b   :  { %4400 = vst.msk [vmem:[#allocation6 + $0x70] sm:$0xff] %vm3559_vm1, %v4380_v10  ;;  %v4588_v10 = vld [vmem:[#allocation3 + $0x211] ss:$2 sm:$0xff] }
 0x74c   :  { %4456 = vst.msk [vmem:[#allocation6 + $0x70] sm:$0xff] %vm3616_vm2, %v4436_v62  ;;  %v4420_v62 = vld [vmem:[#allocation3 + $0x1fb] ss:$2 sm:$0xff] }
 0x74f   :  { %3970 = vrot.lane.b32.xlu2 %v3947_v61, %s8085_s28  ;;  %4717 = vrot.lane.b32.xlu0 %v4694_v31, %s8106_s3  ;;  %v4700_v61 = vld [vmem:[#allocation3 + $0x213] ss:$2 sm:$0xff] }
 0x750   :  { %4661 = vrot.lane.b32.xlu1 %v4638_v16, %s8105_s21 }
 0x751   :  { %v4604_v20 = vpop.permute.xlu2 %4603  ;;  %v4186_v30 = vpop.permute.xlu0 %4185 }
 0x752   :  { %4207 = vst.msk [vmem:[#allocation6 + $0x48] sm:$0xff] %vm3787_vm6, %v4186_v30  ;;  %v4434_v32 = vpop.permute.xlu1 %4433  ;;  %v4698_v30 = vld [vmem:[#allocation3 + $0x1e3] ss:$2 sm:$0xff] }
 0x753   :  { %4455 = vst.msk [vmem:[#allocation6 + $0x50] sm:$0xff] %vm3616_vm2, %v4434_v32 }
 0x754   :  { %4511 = vst.msk [vmem:[#allocation6 + $0x50] sm:$0xff] %vm3673_vm4, %v4490_v5 }
 0x757   :  { %4027 = vrot.lane.b32.xlu2 %v4004_v33, %s10942_s16  ;;  %3972 = vrot.lane.b32.xlu0 %v3949_v11, %s8085_s28 }
 0x758   :  { %4719 = vrot.lane.b32.xlu1 %v4696_v63, %s8106_s3 }
 0x759   :  { %v4714_v34 = vpop.permute.xlu2 %4713  ;;  %v4492_v35 = vpop.permute.xlu0 %4491 }
 0x75a   :  { %4512 = vst.msk [vmem:[#allocation6 + $0x70] sm:$0xff] %vm3673_vm4, %v4492_v35  ;;  %v4188_v36 = vpop.permute.xlu1 %4187 }
 0x75b   :  { %4208 = vst.msk [vmem:[#allocation6 + $0x68] sm:$0xff] %vm3787_vm6, %v4188_v36 }
 0x75c   :  { %4264 = vst.msk [vmem:[#allocation6 + $0x68] sm:$0xff] %vm3844_vm7, %v4244_v22 }
 0x75f   :  { %4385 = vrot.lane.b32.xlu2 %v4362_v12, %s8085_s28  ;;  %4081 = vrot.lane.b32.xlu0 %v4058_v13, %s8093_s14 }
 0x760   :  { %4025 = vrot.lane.b32.xlu1 %v4002_v38, %s10942_s16 }
 0x761   :  { %v3969_v39 = vpop.permute.xlu2 %3968  ;;  %v4546_v40 = vpop.permute.xlu0 %4545 }
 0x762   :  { %3987 = vst.msk [vmem:[#allocation6 + $0xa8] sm:$0xff] %vm3559_vm1, %v3969_v39  ;;  %v4242_v17 = vpop.permute.xlu1 %4241 }
 0x763   :  { %4567 = vst.msk [vmem:[#allocation6 + $0x50] sm:$0xff] %vm3730_vm5, %v4546_v40 }
 0x764   :  { %4263 = vst.msk [vmem:[#allocation6 + $0x48] sm:$0xff] %vm3844_vm7, %v4242_v17 }
 0x765   :  { %4319 = vst.msk [vmem:[#allocation6 + $0x48] sm:$0xff] %vm3901_vm8, %v4298_v29 }
 0x767   :  { %4139 = vrot.lane.b32.xlu2 %v4116_v42, %s8097_s17  ;;  %4387 = vrot.lane.b32.xlu0 %v4364_v23, %s8085_s28 }
 0x768   :  { %4083 = vrot.lane.b32.xlu1 %v4060_v43, %s8093_s14 }
 0x769   :  { %v4078_v44 = vpop.permute.xlu2 %4077  ;;  %v4300_v46 = vpop.permute.xlu0 %4299 }
 0x76a   :  { %4320 = vst.msk [vmem:[#allocation6 + $0x68] sm:$0xff] %vm3901_vm8, %v4300_v46  ;;  %v4548_v26 = vpop.permute.xlu1 %4547 }
 0x76b   :  { %4568 = vst.msk [vmem:[#allocation6 + $0x70] sm:$0xff] %vm3730_vm5, %v4548_v26 }
 0x76c   :  { %4624 = vst.msk [vmem:[#allocation6 + $0x70] sm:$0xff] %vm3787_vm6, %v4604_v20  ;;  %v4774_v51 = vld [vmem:[#allocation6 + $0x48] sm:$0xff] }
 0x76f   :  { %4193 = vrot.lane.b32.xlu2 %v4170_v47, %s8101_s24  ;;  %4441 = vrot.lane.b32.xlu0 %v4418_v28, %s10942_s16 }
 0x770   :  { %4137 = vrot.lane.b32.xlu1 %v4114_v48, %s8097_s17 }
 0x771   :  { %v4384_v49 = vpop.permute.xlu2 %4383  ;;  %v4658_v50 = vpop.permute.xlu0 %4657  ;;  %v4778_v52 = vld [vmem:[#allocation6 + $0x68] sm:$0xff] }
 0x772   :  { %4402 = vst.msk [vmem:[#allocation6 + $0xb0] sm:$0xff] %vm3559_vm1, %v4384_v49  ;;  %v4602_v37 = vpop.permute.xlu1 %4601  ;;  %v4802_v53 = vpack.c.bf16 %v4778_v52, %v4774_v51 }
 0x773   :  { %4623 = vst.msk [vmem:[#allocation6 + $0x50] sm:$0xff] %vm3787_vm6, %v4602_v37 }
 0x774   :  { %4679 = vst.msk [vmem:[#allocation6 + $0x50] sm:$0xff] %vm3844_vm7, %v4658_v50  ;;  %5067 = vmatmul.bf16.gmra.mxu2 %v4802_v53 }
 0x775   :  { %4735 = vst.msk [vmem:[#allocation6 + $0x50] sm:$0xff] %vm3901_vm8, %v4714_v34 }
 0x777   :  { %4499 = vrot.lane.b32.xlu2 %v4476_v59, %s8093_s14  ;;  %4195 = vrot.lane.b32.xlu0 %v4172_v60, %s8101_s24 }
 0x778   :  { %4443 = vrot.lane.b32.xlu1 %v4420_v62, %s10942_s16 }
 0x779   :  { %v4438_v45 = vpop.permute.xlu2 %4437  ;;  %v4716_v54 = vpop.permute.xlu0 %4715 }
 0x77a   :  { %v4660_v1 = vpop.permute.xlu1 %4659 }
 0x77b   :  { %4680 = vst.msk [vmem:[#allocation6 + $0x70] sm:$0xff] %vm3844_vm7, %v4660_v1 }
 0x77c   :  { %4736 = vst.msk [vmem:[#allocation6 + $0x70] sm:$0xff] %vm3901_vm8, %v4716_v54  ;;  %v4775_v56 = vld [vmem:[#allocation6 + $0x50] sm:$0xff] }
 0x77f   :  { %4553 = vrot.lane.b32.xlu2 %v4530_v2, %s8097_s17  ;;  %4249 = vrot.lane.b32.xlu0 %v4226_v3, %s8105_s21 }
 0x780   :  { %4497 = vrot.lane.b32.xlu1 %v4474_v4, %s8093_s14 }
 0x781   :  { %v4192_v55 = vpop.permute.xlu2 %4191  ;;  %v4022_v14 = vpop.permute.xlu0 %4021 }
 0x782   :  { %v3967_v5 = vpop.permute.xlu1 %3966 }
 0x783   :  { %3986 = vst.msk [vmem:[#allocation6 + $0x88] sm:$0xff] %vm3559_vm1, %v3967_v5  ;;  %v4779_v15 = vld [vmem:[#allocation6 + $0x70] sm:$0xff] }
 0x784   :  { %4041 = vst.msk [vmem:[#allocation6 + $0x88] sm:$0xff] %vm3616_vm2, %v4022_v14  ;;  %v4803_v6 = vpack.c.bf16 %v4779_v15, %v4775_v56 }
 0x785   :  { %4097 = vst.msk [vmem:[#allocation6 + $0x88] sm:$0xff] %vm3673_vm4, %v4078_v44 }
 0x786   :  { %5096 = vmatmul.bf16.gmra.mxu3 %v4803_v6 }
 0x787   :  { %4307 = vrot.lane.b32.xlu2 %v4284_v57, %s8106_s3  ;;  %4555 = vrot.lane.b32.xlu0 %v4532_v18, %s8097_s17 }
 0x788   :  { %4251 = vrot.lane.b32.xlu1 %v4228_v19, %s8105_s21 }
 0x789   :  { %v4246_v7 = vpop.permute.xlu2 %4245  ;;  %v4080_v21 = vpop.permute.xlu0 %4079 }
 0x78a   :  { %v4024_v22 = vpop.permute.xlu1 %4023 }
 0x78b   :  { %4042 = vst.msk [vmem:[#allocation6 + $0xa8] sm:$0xff] %vm3616_vm2, %v4024_v22 }
 0x78c   :  { %4098 = vst.msk [vmem:[#allocation6 + $0xa8] sm:$0xff] %vm3673_vm4, %v4080_v21 }
 0x78f   :  { %4665 = vrot.lane.b32.xlu2 %v4642_v8, %s8105_s21  ;;  %4609 = vrot.lane.b32.xlu0 %v4586_v24, %s8101_s24  ;;  %v5034_v8 = vpop.f32.mrf.mxu1 }
 0x790   :  { %4305 = vrot.lane.b32.xlu1 %v4282_v25, %s8106_s3 }
 0x791   :  { %v4552_v9 = vpop.permute.xlu2 %4551  ;;  %v4134_v27 = vpop.permute.xlu0 %4133 }
 0x792   :  { %4153 = vst.msk [vmem:[#allocation6 + $0x88] sm:$0xff] %vm3730_vm5, %v4134_v27  ;;  %v4382_v29 = vpop.permute.xlu1 %4381 }
 0x793   :  { %4401 = vst.msk [vmem:[#allocation6 + $0x90] sm:$0xff] %vm3559_vm1, %v4382_v29 }
 0x794   :  { %4457 = vst.msk [vmem:[#allocation6 + $0x90] sm:$0xff] %vm3616_vm2, %v4438_v45 }
 0x797   :  { %4667 = vrot.lane.b32.xlu0 %v4644_v58, %s8105_s21  ;;  %4723 = vrot.lane.b32.xlu2 %v4700_v61, %s8106_s3 }
 0x798   :  { %4611 = vrot.lane.b32.xlu1 %v4588_v10, %s8101_s24 }
 0x799   :  { %v4606_v31 = vpop.permute.xlu2 %4605  ;;  %v4440_v16 = vpop.permute.xlu0 %4439 }
 0x79a   :  { %4458 = vst.msk [vmem:[#allocation6 + $0xb0] sm:$0xff] %vm3616_vm2, %v4440_v16  ;;  %v4136_v20 = vpop.permute.xlu1 %4135 }
 0x79b   :  { %4154 = vst.msk [vmem:[#allocation6 + $0xa8] sm:$0xff] %vm3730_vm5, %v4136_v20 }
 0x79c   :  { %4210 = vst.msk [vmem:[#allocation6 + $0xa8] sm:$0xff] %vm3787_vm6, %v4192_v55 }
 0x7a0   :  { %4721 = vrot.lane.b32.xlu1 %v4698_v30, %s8106_s3 }
 0x7a1   :  { %v4664_v32 = vpop.permute.xlu2 %4663  ;;  %v4494_v33 = vpop.permute.xlu0 %4493 }
 0x7a2   :  { %4513 = vst.msk [vmem:[#allocation6 + $0x90] sm:$0xff] %vm3673_vm4, %v4494_v33  ;;  %v4190_v11 = vpop.permute.xlu1 %4189 }
 0x7a3   :  { %4209 = vst.msk [vmem:[#allocation6 + $0x88] sm:$0xff] %vm3787_vm6, %v4190_v11 }
 0x7a4   :  { %4265 = vst.msk [vmem:[#allocation6 + $0x88] sm:$0xff] %vm3844_vm7, %v4246_v7 }
 0x7a9   :  { %v3971_v63 = vpop.permute.xlu2 %3970  ;;  %v4248_v34 = vpop.permute.xlu0 %4247 }
 0x7aa   :  { %3988 = vst.msk [vmem:[#allocation6 + $0xc8] sm:$0xff] %vm3559_vm1, %v3971_v63  ;;  %v4496_v35 = vpop.permute.xlu1 %4495 }
 0x7ab   :  { %4266 = vst.msk [vmem:[#allocation6 + $0xa8] sm:$0xff] %vm3844_vm7, %v4248_v34 }
 0x7ac   :  { %4514 = vst.msk [vmem:[#allocation6 + $0xb0] sm:$0xff] %vm3673_vm4, %v4496_v35 }
 0x7ad   :  { %4570 = vst.msk [vmem:[#allocation6 + $0xb0] sm:$0xff] %vm3730_vm5, %v4552_v9  ;;  %v5036_v9 = vpop.f32.mrf.mxu1 }
 0x7b1   :  { %v4028_v36 = vpop.permute.xlu2 %4027  ;;  %v4302_v12 = vpop.permute.xlu0 %4301 }
 0x7b2   :  { %v4550_v13 = vpop.permute.xlu1 %4549  ;;  %4321 = vst.msk [vmem:[#allocation6 + $0x88] sm:$0xff] %vm3901_vm8, %v4302_v12  ;;  %v5063_v20 = vpop.f32.mrf.mxu2 }
 0x7b3   :  { %4569 = vst.msk [vmem:[#allocation6 + $0x90] sm:$0xff] %vm3730_vm5, %v4550_v13 }
 0x7b4   :  { %4625 = vst.msk [vmem:[#allocation6 + $0x90] sm:$0xff] %vm3787_vm6, %v4606_v31 }
 0x7b5   :  { %v5039_v27 = vpop.f32.mrf.mxu1 }
 0x7b9   :  { %v4386_v38 = vpop.permute.xlu2 %4385  ;;  %v4608_v39 = vpop.permute.xlu0 %4607  ;;  %v4782_v42 = vld [vmem:[#allocation6 + $0x88] sm:$0xff] }
 0x7ba   :  { %4403 = vst.msk [vmem:[#allocation6 + $0xd0] sm:$0xff] %vm3559_vm1, %v4386_v38  ;;  %v4304_v40 = vpop.permute.xlu1 %4303  ;;  %v5065_v33 = vpop.f32.mrf.mxu2  ;;  %v5141_v38 = vlaneseq }
 0x7bb   :  { %4626 = vst.msk [vmem:[#allocation6 + $0xb0] sm:$0xff] %vm3787_vm6, %v4608_v39 }
 0x7bc   :  { %4682 = vst.msk [vmem:[#allocation6 + $0xb0] sm:$0xff] %vm3844_vm7, %v4664_v32 }
 0x7bd   :  { %4322 = vst.msk [vmem:[#allocation6 + $0xa8] sm:$0xff] %vm3901_vm8, %v4304_v40  ;;  %v5041_v29 = vpop.f32.mrf.mxu1  ;;  %v10326_v40 = vshrl.u32 %v5141_v38, 7 }
 0x7c1   :  { %v4718_v17 = vpop.permute.xlu0 %4717  ;;  %v4140_v26 = vpop.permute.xlu2 %4139 }
 0x7c2   :  { %v4662_v41 = vpop.permute.xlu1 %4661  ;;  %v5092_v30 = vpop.f32.mrf.mxu3 }
 0x7c3   :  { %4681 = vst.msk [vmem:[#allocation6 + $0x90] sm:$0xff] %vm3844_vm7, %v4662_v41  ;;  %v10329_v41 = vadd.s32 8, %v10326_v40 }
 0x7c4   :  { %v4786_v23 = vld [vmem:[#allocation6 + $0xa8] sm:$0xff]  ;;  %4737 = vst.msk [vmem:[#allocation6 + $0x90] sm:$0xff] %vm3901_vm8, %v4718_v17 }
 0x7c5   :  { %v4806_v43 = vpack.c.bf16 %v4786_v23, %v4782_v42  ;;  %v5044_v58 = vpop.f32.mrf.mxu1  ;;  %v10332_v23 = vadd.s32 16, %v10326_v40 }
 0x7c7   :  { %5072 = vmatmul.bf16.gmra.mxu2 %v4806_v43  ;;  %v5161_v43 = vand.u32 7, %v10329_v41 }
 0x7c9   :  { %v3973_v44 = vpop.permute.xlu0 %3972  ;;  %v4194_v48 = vpop.permute.xlu2 %4193  ;;  %vm5247_vm10 = vcmp.lt.s32.totalorder %v5161_v43, 4 }
 0x7ca   :  { %v4720_v46 = vpop.permute.xlu1 %4719  ;;  %3989 = vst.msk [vmem:[#allocation6 + $0xe8] sm:$0xff] %vm3559_vm1, %v3973_v44  ;;  %v5094_v11 = vpop.f32.mrf.mxu3  ;;  %v5066_v44 = vadd.f32 %v5065_v33, %v5036_v9 }
 0x7cb   :  { %4044 = vst.msk [vmem:[#allocation6 + $0xe8] sm:$0xff] %vm3616_vm2, %v4028_v36  ;;  %v4783_v51 = vld [vmem:[#allocation6 + $0x90] sm:$0xff] }
 0x7cc   :  { %4738 = vst.msk [vmem:[#allocation6 + $0xb0] sm:$0xff] %vm3901_vm8, %v4720_v46  ;;  %v5154_v46 = vand.u32 7, %v10326_v40 }
 0x7cd   :  { %v5046_v10 = vpop.f32.mrf.mxu1 }
 0x7ce   :  { %vm5246_vm11 = vcmp.lt.s32.totalorder %v5154_v46, 4 }
 0x7d1   :  { %v4082_v47 = vpop.permute.xlu0 %4081  ;;  %v4500_v60 = vpop.permute.xlu2 %4499 }
 0x7d2   :  { %v4026_v28 = vpop.permute.xlu1 %4025 }
 0x7d3   :  { %4043 = vst.msk [vmem:[#allocation6 + $0xc8] sm:$0xff] %vm3616_vm2, %v4026_v28  ;;  %v4787_v52 = vld [vmem:[#allocation6 + $0xb0] sm:$0xff]  ;;  %v10338_v28 = vadd.s32 24, %v10326_v40 }
 0x7d4   :  { %4099 = vst.msk [vmem:[#allocation6 + $0xc8] sm:$0xff] %vm3673_vm4, %v4082_v47  ;;  %v4807_v37 = vpack.c.bf16 %v4787_v52, %v4783_v51  ;;  %v5168_v47 = vand.u32 7, %v10332_v23  ;;  %v5146_v51 = vadd.s32 32, %v10326_v40 }
 0x7d5   :  { %v10322_v61 = vpop.f32.mrf.mxu1 }
 0x7d6   :  { %5101 = vmatmul.bf16.gmra.mxu3 %v4807_v37  ;;  %vm5248_vm12 = vcmp.lt.s32.totalorder %v5168_v47, 4 }
 0x7d9   :  { %v4388_v49 = vpop.permute.xlu0 %4387  ;;  %v4554_v54 = vpop.permute.xlu2 %4553 }
 0x7da   :  { %v4084_v50 = vpop.permute.xlu1 %4083  ;;  %4404 = vst.msk [vmem:[#allocation6 + $0xf0] sm:$0xff] %vm3559_vm1, %v4388_v49  ;;  %v5095_v49 = vadd.f32 %v5094_v11, %v5066_v44  ;;  %vm5400_vm1 = vcmask 256000  }
 0x7db   :  { %4100 = vst.msk [vmem:[#allocation6 + $0xe8] sm:$0xff] %vm3673_vm4, %v4084_v50 }
 0x7dc   :  { %4156 = vst.msk [vmem:[#allocation6 + $0xe8] sm:$0xff] %vm3730_vm5, %v4140_v26 }
 0x7dd   :  { %v10324_v31 = vpop.f32.mrf.mxu1  ;;  %5401 = vst.msk [vmem:[#allocation4 + $0x10] sm:$0x7] %vm5400_vm1, %v8081_v0 }
 0x7de   :  { %5404 = vst.msk [vmem:[#allocation4 + $0x28] sm:$0x7] %vm5400_vm1, %v8081_v0 }
 0x7df   :  { %5407 = vst.msk [vmem:[#allocation4 + $0x40] sm:$0x7] %vm5400_vm1, %v8081_v0 }
 0x7e0   :  { %5410 = vst.msk [vmem:[#allocation4 + $0x58] sm:$0x7] %vm5400_vm1, %v8081_v0 }
 0x7e1   :  { %v4442_v53 = vpop.permute.xlu0 %4441  ;;  %v4308_v3 = vpop.permute.xlu2 %4307  ;;  %5413 = vst.msk [vmem:[#allocation4 + $0x70] sm:$0x7] %vm5400_vm1, %v8081_v0 }
 0x7e2   :  { %v4138_v59 = vpop.permute.xlu1 %4137  ;;  %4459 = vst.msk [vmem:[#allocation6 + $0xd0] sm:$0xff] %vm3616_vm2, %v4442_v53 }
 0x7e3   :  { %4155 = vst.msk [vmem:[#allocation6 + $0xc8] sm:$0xff] %vm3730_vm5, %v4138_v59 }
 0x7e4   :  { %4211 = vst.msk [vmem:[#allocation6 + $0xc8] sm:$0xff] %vm3787_vm6, %v4194_v48  ;;  %v5064_v48 = vadd.f32 %v5063_v20, %v5034_v8 }
 0x7e5   :  { %v5121_v16 = vpop.f32.mrf.mxu1  ;;  %5416 = vst.msk [vmem:[#allocation4 + $0x88] sm:$0x7] %vm5400_vm1, %v8081_v0 }
 0x7e6   :  { %v5093_v37 = vadd.f32 %v5092_v30, %v5064_v48  ;;  %5419 = vst.msk [vmem:[#allocation4 + $0xa0] sm:$0x7] %vm5400_vm1, %v8081_v0 }
 0x7e7   :  { %5425 = vst.msk [vmem:[#allocation4 + $0xd0] sm:$0x7] %vm5400_vm1, %v8081_v0 }
 0x7e8   :  { %5428 = vst.msk [vmem:[#allocation4 + $0xe8] sm:$0x7] %vm5400_vm1, %v8081_v0 }
 0x7e9   :  { %v4196_v62 = vpop.permute.xlu0 %4195  ;;  %v4666_v14 = vpop.permute.xlu2 %4665  ;;  %5431 = vst.msk [vmem:[#allocation4 + $0x100] sm:$0x7] %vm5400_vm1, %v8081_v0 }
 0x7ea   :  { %v4444_v45 = vpop.permute.xlu1 %4443  ;;  %4212 = vst.msk [vmem:[#allocation6 + $0xe8] sm:$0xff] %vm3787_vm6, %v4196_v62  ;;  %v5147_v62 = vadd.s32 40, %v10326_v40 }
 0x7eb   :  { %4460 = vst.msk [vmem:[#allocation6 + $0xf0] sm:$0xff] %vm3616_vm2, %v4444_v45 }
 0x7ec   :  { %4516 = vst.msk [vmem:[#allocation6 + $0xf0] sm:$0xff] %vm3673_vm4, %v4500_v60  ;;  %v5175_v60 = vand.u32 7, %v10338_v28 }
 0x7ed   :  { %v5123_v32 = vpop.f32.mrf.mxu1  ;;  %5434 = vst.msk [vmem:[#allocation4 + $0x118] sm:$0x7] %vm5400_vm1, %v8081_v0 }
 0x7ee   :  { %v10349_v45 = vadd.f32 %v5123_v32, %v5095_v49  ;;  %vm5249_vm3 = vcmp.lt.s32.totalorder %v5175_v60, 4  ;;  %5437 = vst.msk [vmem:[#allocation4 + $0x130] sm:$0x7] %vm5400_vm1, %v8081_v0 }
 0x7ef   :  { %v10374_v9 = vsel %vm5249_vm3, 1.0, %v8081_v0  ;;  %5440 = vst.msk [vmem:[#allocation4 + $0x148] sm:$0x7] %vm5400_vm1, %v8081_v0  ;;  %vm6629_vm3 = vcmp.lt.s32.totalorder %v5168_v47, 2 }
 0x7f0   :  { %5443 = vst.msk [vmem:[#allocation4 + $0x160] sm:$0x7] %vm5400_vm1, %v8081_v0  ;;  %vm6726_vm1 = vcmask 1041409  }
 0x7f1   :  { %v4250_v1 = vpop.permute.xlu0 %4249  ;;  %v4724_v15 = vpop.permute.xlu2 %4723 }
 0x7f2   :  { %v4498_v2 = vpop.permute.xlu1 %4497  ;;  %4267 = vst.msk [vmem:[#allocation6 + $0xc8] sm:$0xff] %vm3844_vm7, %v4250_v1 }
 0x7f3   :  { %4515 = vst.msk [vmem:[#allocation6 + $0xd0] sm:$0xff] %vm3673_vm4, %v4498_v2 }
 0x7f4   :  { %4571 = vst.msk [vmem:[#allocation6 + $0xd0] sm:$0xff] %vm3730_vm5, %v4554_v54  ;;  %v10352_v54 = vsel %vm5247_vm10, 1.0, %v8081_v0  ;;  %vm5550_vm10 = vcmask 1048320  }
 0x7f5   :  { %v5126_v34 = vpop.f32.mrf.mxu1 }
 0x7f7   :  { %v5068_v63 = vpop.f32.mrf.mxu2 }
 0x7f8   :  { %v5069_v50 = vadd.f32 %v5068_v63, %v5039_v27 }
 0x7f9   :  { %v4556_v4 = vpop.permute.xlu0 %4555 }
 0x7fa   :  { %v4252_v55 = vpop.permute.xlu1 %4251  ;;  %4572 = vst.msk [vmem:[#allocation6 + $0xf0] sm:$0xff] %vm3730_vm5, %v4556_v4  ;;  %v5182_v4 = vand.u32 7, %v5146_v51 }
 0x7fb   :  { %4268 = vst.msk [vmem:[#allocation6 + $0xe8] sm:$0xff] %vm3844_vm7, %v4252_v55  ;;  %v5148_v55 = vadd.s32 48, %v10326_v40 }
 0x7fc   :  { %4324 = vst.msk [vmem:[#allocation6 + $0xe8] sm:$0xff] %vm3901_vm8, %v4308_v3  ;;  %vm5250_vm0 = vcmp.lt.s32.totalorder %v5182_v4, 4 }
 0x7fd   :  { %v5128_v12 = vpop.f32.mrf.mxu1  ;;  %v5196_v8 = vand.u32 7, %v5148_v55  ;;  %v10380_v20 = vsel %vm5250_vm0, 1.0, %v8081_v0  ;;  %vm6630_vm0 = vcmp.lt.s32.totalorder %v5175_v60, 2 }
 0x7ff   :  { %v5070_v36 = vpop.f32.mrf.mxu2  ;;  %vm5252_vm14 = vcmp.lt.s32.totalorder %v5196_v8, 4 }
 0x800   :  { %v5071_v59 = vadd.f32 %v5070_v36, %v5041_v29 }
 0x801   :  { %v4610_v5 = vpop.permute.xlu0 %4609 }
 0x802   :  { %v4306_v56 = vpop.permute.xlu1 %4305  ;;  %4627 = vst.msk [vmem:[#allocation6 + $0xd0] sm:$0xff] %vm3787_vm6, %v4610_v5  ;;  %v10358_v5 = vsel %vm5246_vm11, 1.0, %v8081_v0  ;;  %vm6628_vm11 = vcmp.lt.s32.totalorder %v5161_v43, 2 }
 0x803   :  { %4683 = vst.msk [vmem:[#allocation6 + $0xd0] sm:$0xff] %vm3844_vm7, %v4666_v14  ;;  %v4794_v19 = vld [vmem:[#allocation6 + $0xe8] sm:$0xff]  ;;  %v10355_v14 = vadd.f32 %v5121_v16, %v5093_v37 }
 0x804   :  { %4323 = vst.msk [vmem:[#allocation6 + $0xc8] sm:$0xff] %vm3901_vm8, %v4306_v56 }
 0x805   :  { %v5131_v17 = vpop.f32.mrf.mxu1 }
 0x809   :  { %v4668_v18 = vpop.permute.xlu0 %4667  ;;  %v5097_v35 = vpop.f32.mrf.mxu3 }
 0x80a   :  { %v4612_v6 = vpop.permute.xlu1 %4611  ;;  %v5098_v53 = vadd.f32 %v5097_v35, %v5069_v50 }
 0x80b   :  { %4628 = vst.msk [vmem:[#allocation6 + $0xf0] sm:$0xff] %vm3787_vm6, %v4612_v6  ;;  %v4790_v57 = vld [vmem:[#allocation6 + $0xc8] sm:$0xff]  ;;  %vm5448_vm6 = vcmask 257024  }
 0x80c   :  { %4684 = vst.msk [vmem:[#allocation6 + $0xf0] sm:$0xff] %vm3844_vm7, %v4668_v18  ;;  %v4810_v7 = vpack.c.bf16 %v4794_v19, %v4790_v57  ;;  %v10360_v56 = vadd.f32 %v5126_v34, %v5098_v53  ;;  %v5189_v19 = vand.u32 7, %v5147_v62  ;;  %vm5492_vm7 = vcmask 523520  }
 0x80d   :  { %4740 = vst.msk [vmem:[#allocation6 + $0xf0] sm:$0xff] %vm3901_vm8, %v4724_v15  ;;  %v5133_v52 = vpop.f32.mrf.mxu1  ;;  %v10363_v15 = vsel %vm5248_vm12, 1.0, %v8081_v0  ;;  %vm6643_vm12 = vcmask 523264  }
 0x80e   :  { %5077 = vmatmul.bf16.gmra.mxu2 %v4810_v7  ;;  %v5271_v7 = vmul.f32 %v10352_v54, %v10349_v45  ;;  %vm5251_vm13 = vcmp.lt.s32.totalorder %v5189_v19, 4 }
 0x80f   :  { %v7645_v34 = vsel %vm5251_vm13, 1.0, %v8081_v0 }
 0x810   :  { %v5280_v16 = vsel %vm5278_vm9, %v5271_v7, 0.0 }
 0x811   :  { %v5099_v13 = vpop.f32.mrf.mxu3 }
 0x812   :  { %v4722_v21 = vpop.permute.xlu1 %4721  ;;  %v5100_v2 = vadd.f32 %v5099_v13, %v5071_v59 }
 0x813   :  { %4739 = vst.msk [vmem:[#allocation6 + $0xd0] sm:$0xff] %vm3901_vm8, %v4722_v21  ;;  %vm5521_vm8 = vcmask 785920  }
 0x814   :  { %v4795_v22 = vld [vmem:[#allocation6 + $0xf0] sm:$0xff]  ;;  %v5129_v21 = vadd.f32 %v5128_v12, %v5100_v2 }
 0x816   :  { %v5273_v32 = vmul.f32 %v10374_v9, %v5129_v21 }
 0x81a   :  { %v4791_v24 = vld [vmem:[#allocation6 + $0xd0] sm:$0xff] }
 0x81b   :  { %v4811_v25 = vpack.c.bf16 %v4795_v22, %v4791_v24  ;;  %v5270_v24 = vmul.f32 %v10358_v5, %v10355_v14 }
 0x81d   :  { %5106 = vmatmul.bf16.gmra.mxu3 %v4811_v25  ;;  %v5272_v25 = vmul.f32 %v10363_v15, %v10360_v56  ;;  %v5279_v63 = vsel %vm5278_vm9, %v5270_v24, 0.0 }
 0x81e   :  { %v5281_v13 = vadd.f32 %v5280_v16, %v5279_v63 }
 0x84a   :  { %v5073_v39 = vpop.f32.mrf.mxu2 }
 0x84b   :  { %v5074_v3 = vadd.f32 %v5073_v39, %v5044_v58  ;;  %v5149_v58 = vadd.s32 56, %v10326_v40  ;;  %v7646_v39 = vsel %vm5252_vm14, 1.0, %v8081_v0 }
 0x84d   :  { %v5203_v12 = vand.u32 7, %v5149_v58 }
 0x84f   :  { %vm5253_vm15 = vcmp.lt.s32.totalorder %v5203_v12, 4 }
 0x850   :  { %v7647_v62 = vsel %vm5253_vm15, 1.0, %v8081_v0 }
 0x852   :  { %v5075_v26 = vpop.f32.mrf.mxu2 }
 0x853   :  { %v5076_v18 = vadd.f32 %v5075_v26, %v5046_v10  ;;  %v5136_v10 = vpop.f32.mrf.mxu1 }
 0x859   :  { %v5102_v42 = vpop.f32.mrf.mxu3 }
 0x85a   :  { %v5103_v57 = vadd.f32 %v5102_v42, %v5074_v3 }
 0x85b   :  { %v5138_v53 = vpop.f32.mrf.mxu1 }
 0x85c   :  { %v5132_v27 = vadd.f32 %v5131_v17, %v5103_v57  ;;  %v5284_v17 = vsel %vm5278_vm9, %v5273_v32, 0.0 }
 0x85e   :  { %v5274_v35 = vmul.f32 %v10380_v20, %v5132_v27 }
 0x860   :  { %v5286_v26 = vsel %vm5278_vm9, %v5274_v35, 0.0 }
 0x861   :  { %v5104_v1 = vpop.f32.mrf.mxu3 }
 0x862   :  { %v5105_v22 = vadd.f32 %v5104_v1, %v5076_v18 }
 0x864   :  { %v5134_v33 = vadd.f32 %v5133_v52, %v5105_v22 }
 0x866   :  { %v5275_v42 = vmul.f32 %v7645_v34, %v5134_v33 }
 0x868   :  { %v5288_v52 = vsel %vm5278_vm9, %v5275_v42, 0.0 }
 0x891   :  { %v5078_v6 = vpop.f32.mrf.mxu2 }
 0x892   :  { %v5079_v29 = vadd.f32 %v5078_v6, %v10322_v61  ;;  %v5282_v61 = vsel %vm5278_vm9, %v5272_v25, 0.0 }
 0x893   :  { %v5283_v44 = vadd.f32 %v5282_v61, %v5281_v13 }
 0x895   :  { %v5285_v50 = vadd.f32 %v5284_v17, %v5283_v44 }
 0x897   :  { %v5287_v59 = vadd.f32 %v5286_v26, %v5285_v50 }
 0x899   :  { %v5080_v38 = vpop.f32.mrf.mxu2  ;;  %v5289_v3 = vadd.f32 %v5288_v52, %v5287_v59 }
 0x89a   :  { %v5081_v48 = vadd.f32 %v5080_v38, %v10324_v31 }
 0x8a0   :  { %v5107_v30 = vpop.f32.mrf.mxu3 }
 0x8a1   :  { %v5108_v11 = vadd.f32 %v5107_v30, %v5079_v29 }
 0x8a3   :  { %v5137_v36 = vadd.f32 %v5136_v10, %v5108_v11 }
 0x8a5   :  { %v5276_v49 = vmul.f32 %v7646_v39, %v5137_v36 }
 0x8a7   :  { %v5290_v1 = vsel %vm5278_vm9, %v5276_v49, 0.0 }
 0x8a8   :  { %v5109_v51 = vpop.f32.mrf.mxu3  ;;  %v5291_v55 = vadd.f32 %v5290_v1, %v5289_v3 }
 0x8a9   :  { %v5110_v37 = vadd.f32 %v5109_v51, %v5081_v48 }
 0x8ab   :  { %v5139_v2 = vadd.f32 %v5138_v53, %v5110_v37 }
 0x8ad   :  { %v5277_v4 = vmul.f32 %v7647_v62, %v5139_v2 }
 0x8af   :  { %v5292_v6 = vsel %vm5278_vm9, %v5277_v4, 0.0 }
 0x8b0   :  { %v5293_v31 = vadd.f32 %v5292_v6, %v5291_v55 }
 0x8b2   :  { %v5294_v18 = vrot.slane %v5293_v31, 4 }
 0x8b4   :  { %v5295_v57 = vadd.f32 %v5294_v18, %v5293_v31 }
 0x8b6   :  { %v5296_v19 = vrot.slane %v5295_v57, 2 }
 0x8b8   :  { %v5297_v7 = vadd.f32 %v5296_v19, %v5295_v57 }
 0x8ba   :  { %v5298_v22 = vrot.slane %v5297_v7, 1 }
 0x8bc   :  { %v5299_v8 = vadd.f32 %v5298_v22, %v5297_v7  ;;  %v5498_v7 = vld [vmem:[#allocation4 + $0x2] ss:$2 sm:$0xff] }
 0x8bd   :  { %5509 = vrot.lane.b32.xlu2 %v5498_v7, %s8097_s17 }
 0x8be   :  { %v5300_v24 = vmul.f32 0.03125, %v5299_v8 }
 0x8c0   :  { %v10396_v25 = vsub.f32 %v10355_v14, %v5300_v24  ;;  %v10399_v29 = vsub.f32 %v10349_v45, %v5300_v24  ;;  %v10402_v58 = vsub.f32 %v10360_v56, %v5300_v24  ;;  %v10404_v10 = vsub.f32 %v5129_v21, %v5300_v24 }
 0x8c1   :  { %v10406_v16 = vsub.f32 %v5132_v27, %v5300_v24  ;;  %v10408_v30 = vsub.f32 %v5134_v33, %v5300_v24  ;;  %v10418_v56 = vsub.f32 %v5137_v36, %v5300_v24  ;;  %v10425_v61 = vsub.f32 %v5139_v2, %v5300_v24 }
 0x8c2   :  { %v5309_v32 = vmul.f32 %v10396_v25, %v10396_v25  ;;  %v5310_v11 = vmul.f32 %v10399_v29, %v10399_v29  ;;  %v5311_v14 = vmul.f32 %v10402_v58, %v10402_v58  ;;  %v5312_v45 = vmul.f32 %v10404_v10, %v10404_v10 }
 0x8c3   :  { %v5313_v21 = vmul.f32 %v10406_v16, %v10406_v16  ;;  %v5314_v35 = vmul.f32 %v10408_v30, %v10408_v30  ;;  %v5315_v17 = vmul.f32 %v10418_v56, %v10418_v56  ;;  %v5316_v42 = vmul.f32 %v10425_v61, %v10425_v61 }
 0x8c4   :  { %v5317_v27 = vmul.f32 %v10358_v5, %v5309_v32  ;;  %v5318_v33 = vmul.f32 %v10352_v54, %v5310_v11  ;;  %v5319_v63 = vmul.f32 %v10363_v15, %v5311_v14  ;;  %v5320_v12 = vmul.f32 %v10374_v9, %v5312_v45  ;;  %v8044_v32 = vld [vmem:[%s10932_s5] ss:$0 sm:$0xff] }
 0x8c5   :  { %v5321_v5 = vmul.f32 %v10380_v20, %v5313_v21  ;;  %v5322_v44 = vmul.f32 %v7645_v34, %v5314_v35  ;;  %v5323_v48 = vmul.f32 %v7646_v39, %v5315_v17  ;;  %v5324_v51 = vmul.f32 %v7647_v62, %v5316_v42  ;;  %v5469_v62 = vld [vmem:[#allocation4 + $0x1] ss:$2 sm:$0xff] }
 0x8c6   :  { %v5325_v13 = vsel %vm5278_vm9, %v5317_v27, 0.0  ;;  %v5326_v36 = vsel %vm5278_vm9, %v5318_v33, 0.0  ;;  %v5328_v54 = vsel %vm5278_vm9, %v5319_v63, 0.0  ;;  %v5330_v26 = vsel %vm5278_vm9, %v5320_v12, 0.0  ;;  %5480 = vrot.lane.b32.xlu0 %v5469_v62, %s10942_s16  ;;  %v8045_v33 = vld [vmem:[%s10933_s6] ss:$0 sm:$0xff] }
 0x8c7   :  { %v5327_v38 = vadd.f32 %v5326_v36, %v5325_v13  ;;  %v5332_v49 = vsel %vm5278_vm9, %v5321_v5, 0.0  ;;  %v5334_v52 = vsel %vm5278_vm9, %v5322_v44, 0.0  ;;  %v5336_v20 = vsel %vm5278_vm9, %v5323_v48, 0.0 }
 0x8c8   :  { %v5338_v59 = vsel %vm5278_vm9, %v5324_v51, 0.0 }
 0x8c9   :  { %v5329_v15 = vadd.f32 %v5328_v54, %v5327_v38 }
 0x8cb   :  { %v5331_v9 = vadd.f32 %v5330_v26, %v5329_v15 }
 0x8cd   :  { %v5333_v50 = vadd.f32 %v5332_v49, %v5331_v9 }
 0x8cf   :  { %v5335_v37 = vadd.f32 %v5334_v52, %v5333_v50 }
 0x8d1   :  { %v5337_v53 = vadd.f32 %v5336_v20, %v5335_v37 }
 0x8d3   :  { %v5339_v1 = vadd.f32 %v5338_v59, %v5337_v53 }
 0x8d5   :  { %v5340_v2 = vrot.slane %v5339_v1, 4 }
 0x8d7   :  { %v5341_v3 = vadd.f32 %v5340_v2, %v5339_v1  ;;  %v5502_v1 = vld [vmem:[#allocation4 + $0xc2] ss:$2 sm:$0xff]  ;;  %v5473_v2 = vld [vmem:[#allocation4 + $0xc1] ss:$2 sm:$0xff] }
 0x8d9   :  { %v5342_v34 = vrot.slane %v5341_v3, 2 }
 0x8db   :  { %v5343_v4 = vadd.f32 %v5342_v34, %v5341_v3  ;;  %v5527_v3 = vld [vmem:[#allocation4 + $0x3] ss:$2 sm:$0xff] }
 0x8dd   :  { %v5344_v55 = vrot.slane %v5343_v4, 1 }
 0x8df   :  { %v5345_v6 = vadd.f32 %v5344_v55, %v5343_v4 }
 0x8e1   :  { %v5346_v39 = vmul.f32 0.03125, %v5345_v6  ;;  %v5596_v6 = vld [vmem:[#allocation4 + $0x19] ss:$2 sm:$0xff] }
 0x8e3   :  { %v5347_v31 = vadd.f32 1e-05, %v5346_v39  ;;  %v5568_v39 = vld [vmem:[#allocation4 + $0x18] ss:$2 sm:$0xff] }
 0x8e5   :  { %8051 = vrsqrt.f32 %v5347_v31  ;;  %vm5354_vm4 = vweird.f32 %v5347_v31 }
 0x8eb   :  { %v8052_v18 = vpop.eup %8051 }
 0x8ec   :  { %v5349_v57 = vmul.f32 %v8052_v18, %v5347_v31  ;;  %vm5355_vm2 = vweird.f32 %v8052_v18  ;;  %v5531_v31 = vld [vmem:[#allocation4 + $0xc3] ss:$2 sm:$0xff] }
 0x8ed   :  { %vm5356_vm5 = vmor %vm5354_vm4, %vm5355_vm2  ;;  %vm6728_vm2 = vcmask 1043459   ;;  %vm6730_vm4 = vcmask 1045509  }
 0x8ee   :  { %v5350_v19 = vmul.f32 %v8052_v18, %v5349_v57 }
 0x8f0   :  { %v5351_v22 = vmul.f32 0.5, %v5350_v19 }
 0x8f2   :  { %v5352_v8 = vsub.f32 1.5, %v5351_v22 }
 0x8f4   :  { %v5353_v24 = vmul.f32 %v8052_v18, %v5352_v8  ;;  %v5664_v8 = vld [vmem:[#allocation4 + $0x1c] ss:$2 sm:$0xff] }
 0x8f6   :  { %v5357_v11 = vsel %vm5356_vm5, %v8052_v18, %v5353_v24  ;;  %v5624_v24 = vld [vmem:[#allocation4 + $0x1a] ss:$2 sm:$0xff]  ;;  %vm6732_vm5 = vcmask 1047559  }
 0x8f7   :  { %v5358_v14 = vmul.f32 %v5357_v11, %v10396_v25  ;;  %v5359_v45 = vmul.f32 %v5357_v11, %v10399_v29  ;;  %v5360_v21 = vmul.f32 %v5357_v11, %v10402_v58  ;;  %v5361_v27 = vmul.f32 %v5357_v11, %v10404_v10 }
 0x8f8   :  { %v5362_v63 = vmul.f32 %v5357_v11, %v10406_v16  ;;  %v5363_v35 = vmul.f32 %v5357_v11, %v10408_v30  ;;  %v5364_v12 = vmul.f32 %v5357_v11, %v10418_v56  ;;  %v5365_v13 = vmul.f32 %v5357_v11, %v10425_v61 }
 0x8f9   :  { %v5370_v36 = vmul.f32 %v8044_v32, %v5358_v14  ;;  %v5371_v25 = vmul.f32 %v8044_v32, %v5359_v45  ;;  %v5372_v38 = vmul.f32 %v8044_v32, %v5360_v21  ;;  %v5373_v29 = vmul.f32 %v8044_v32, %v5361_v27 }
 0x8fa   :  { %v5374_v17 = vmul.f32 %v8044_v32, %v5362_v63  ;;  %v5375_v58 = vmul.f32 %v8044_v32, %v5363_v35  ;;  %v5376_v5 = vmul.f32 %v8044_v32, %v5364_v12  ;;  %v5377_v10 = vmul.f32 %v8044_v32, %v5365_v13  ;;  %v6037_v12 = vld [vmem:[#allocation4 + $0x94] ss:$2 sm:$0xff] }
 0x8fb   :  { %v5382_v54 = vadd.f32 %v8045_v33, %v5370_v36  ;;  %v5383_v15 = vadd.f32 %v8045_v33, %v5371_v25  ;;  %v5384_v30 = vadd.f32 %v8045_v33, %v5372_v38  ;;  %v5385_v56 = vadd.f32 %v8045_v33, %v5373_v29  ;;  %6043 = vst.msk [vmem:[#allocation7 + $0x68] sm:$0xff] %vm5278_vm9, %v6037_v12  ;;  %v7961_v12 = vld [vmem:[%s10934_s7 + $0x60] sm:$0xff] }
 0x8fc   :  { %v5386_v42 = vadd.f32 %v8045_v33, %v5374_v17  ;;  %v5387_v44 = vadd.f32 %v8045_v33, %v5375_v58  ;;  %v5388_v16 = vadd.f32 %v8045_v33, %v5376_v5  ;;  %v5389_v26 = vadd.f32 %v8045_v33, %v5377_v10  ;;  %v6041_v17 = vld [vmem:[#allocation4 + $0x154] ss:$2 sm:$0xff] }
 0x8fd   :  { %v5390_v9 = vmax.f32 %v5382_v54, 0.0  ;;  %v5391_v51 = vmax.f32 %v5383_v15, 0.0  ;;  %v5392_v52 = vmax.f32 %v5384_v30, 0.0  ;;  %v5393_v37 = vmax.f32 %v5385_v56, 0.0  ;;  %6045 = vst.msk [vmem:[#allocation7 + $0xd8] sm:$0xff] %vm5278_vm9, %v6041_v17  ;;  %v7956_v56 = vld [vmem:[%s10934_s7 + $0x38] sm:$0xff] }
 0x8fe   :  { %v5394_v48 = vmax.f32 %v5386_v42, 0.0  ;;  %v5395_v61 = vmax.f32 %v5387_v44, 0.0  ;;  %v5396_v49 = vmax.f32 %v5388_v16, 0.0  ;;  %v5397_v50 = vmax.f32 %v5389_v26, 0.0  ;;  %v5600_v54 = vld [vmem:[#allocation4 + $0xd9] ss:$2 sm:$0xff]  ;;  %6494 = vmatpush.bf16.msrb.mxu2 %v7956_v56 }
 0x8ff   :  { %5449 = vst.msk [vmem:[#allocation4 + $0x32] sm:$0xf] %vm5448_vm6, %v5390_v9  ;;  %v5572_v42 = vld [vmem:[#allocation4 + $0xd8] ss:$2 sm:$0xff]  ;;  %v7960_v17 = vld [vmem:[%s10934_s7 + $0x58] sm:$0xff] }
 0x900   :  { %5453 = vst.msk [vmem:[#allocation4 + $0xf2] sm:$0xf] %vm5448_vm6, %v5394_v48  ;;  %v5668_v48 = vld [vmem:[#allocation4 + $0xdc] ss:$2 sm:$0xff]  ;;  %v5953_v56 = vld [vmem:[#allocation4 + $0x91] ss:$2 sm:$0xff] }
 0x901   :  { %5454 = vst.msk [vmem:[#allocation4 + $0x10a] sm:$0xf] %vm5448_vm6, %v5395_v61  ;;  %v5628_v61 = vld [vmem:[#allocation4 + $0xda] ss:$2 sm:$0xff] }
 0x902   :  { %5455 = vst.msk [vmem:[#allocation4 + $0x122] sm:$0xf] %vm5448_vm6, %v5396_v49 }
 0x903   :  { %5456 = vst.msk [vmem:[#allocation4 + $0x13a] sm:$0xf] %vm5448_vm6, %v5397_v50  ;;  %v7955_v50 = vld [vmem:[%s10934_s7 + $0x30] sm:$0xff] }
 0x904   :  { %5450 = vst.msk [vmem:[#allocation4 + $0x4a] sm:$0xf] %vm5448_vm6, %v5391_v51  ;;  %v5457_v51 = vld [vmem:[#allocation4] ss:$2 sm:$0xff]  ;;  %6495 = vmatpush.bf16.msrb.mxu2 %v7955_v50 }
 0x905   :  { %5451 = vst.msk [vmem:[#allocation4 + $0x62] sm:$0xf] %vm5448_vm6, %v5392_v52  ;;  %v7954_v52 = vld [vmem:[%s10934_s7 + $0x28] sm:$0xff] }
 0x906   :  { %5452 = vst.msk [vmem:[#allocation4 + $0x7a] sm:$0xf] %vm5448_vm6, %v5393_v37  ;;  %v5529_v20 = vld [vmem:[#allocation4 + $0x33] ss:$2 sm:$0xff]  ;;  %v5500_v53 = vld [vmem:[#allocation4 + $0x32] ss:$2 sm:$0xff] }
 0x907   :  { %5540 = vrot.lane.b32.xlu2 %v5529_v20, %s8105_s21  ;;  %5511 = vrot.lane.b32.xlu0 %v5500_v53, %s8097_s17  ;;  %v5471_v59 = vld [vmem:[#allocation4 + $0x31] ss:$2 sm:$0xff]  ;;  %v5504_v4 = vld [vmem:[#allocation4 + $0xf2] ss:$2 sm:$0xff]  ;;  %5464 = vst.msk [vmem:[#allocation7] sm:$0xff] %vm5278_vm9, %v5457_v51  ;;  %vm6735_vm6 = vcmask 517120  }
 0x908   :  { %5482 = vrot.lane.b32.xlu1 %v5471_v59, %s10942_s16  ;;  %v5533_v34 = vld [vmem:[#allocation4 + $0xf3] ss:$2 sm:$0xff]  ;;  %v5459_v57 = vld [vmem:[#allocation4 + $0x30] ss:$2 sm:$0xff]  ;;  %6496 = vmatpush.bf16.msrb.mxu2 %v7954_v52 }
 0x909   :  { %v5475_v55 = vld [vmem:[#allocation4 + $0xf1] ss:$2 sm:$0xff]  ;;  %5465 = vst.msk [vmem:[#allocation7 + $0x38] sm:$0xff] %vm5278_vm9, %v5459_v57  ;;  %v5463_v7 = vld [vmem:[#allocation4 + $0xf0] ss:$2 sm:$0xff] }
 0x90a   :  { %5467 = vst.msk [vmem:[#allocation7 + $0xa8] sm:$0xff] %vm5278_vm9, %v5463_v7  ;;  %v5558_v22 = vld [vmem:[#allocation4 + $0x34] ss:$2 sm:$0xff]  ;;  %v5658_v45 = vld [vmem:[#allocation4 + $0x10b] ss:$2 sm:$0xff] }
 0x90b   :  { %v5626_v62 = vld [vmem:[#allocation4 + $0x4a] ss:$2 sm:$0xff]  ;;  %v5598_v18 = vld [vmem:[#allocation4 + $0x49] ss:$2 sm:$0xff]  ;;  %5564 = vst.msk [vmem:[#allocation7 + $0x40] sm:$0xff] %vm5278_vm9, %v5558_v22 }
 0x90c   :  { %v5570_v19 = vld [vmem:[#allocation4 + $0x48] ss:$2 sm:$0xff]  ;;  %v5654_v32 = vld [vmem:[#allocation4 + $0x4b] ss:$2 sm:$0xff]  ;;  %5662 = vst.msk [vmem:[#allocation7 + $0xb8] sm:$0xff] %vm5278_vm9, %v5658_v45 }
 0x90d   :  { %v5691_v11 = vld [vmem:[#allocation4 + $0x30] ss:$2 sm:$0xff]  ;;  %5660 = vst.msk [vmem:[#allocation7 + $0x48] sm:$0xff] %vm5278_vm9, %v5654_v32  ;;  %v5843_v33 = vld [vmem:[#allocation4 + $0x49] ss:$2 sm:$0xff] }
 0x90e   :  { %v5562_v14 = vld [vmem:[#allocation4 + $0xf4] ss:$2 sm:$0xff]  ;;  %v5845_v63 = vld [vmem:[#allocation4 + $0x79] ss:$2 sm:$0xff]  ;;  %v6035_v35 = vld [vmem:[#allocation4 + $0x64] ss:$2 sm:$0xff] }
 0x90f   :  { %5513 = vrot.lane.b32.xlu2 %v5502_v1, %s8097_s17  ;;  %5484 = vrot.lane.b32.xlu0 %v5473_v2, %s10942_s16  ;;  %5566 = vst.msk [vmem:[#allocation7 + $0xb0] sm:$0xff] %vm5278_vm9, %v5562_v14  ;;  %v5747_v21 = vld [vmem:[#allocation4 + $0x32] ss:$2 sm:$0xff]  ;;  %v5749_v27 = vld [vmem:[#allocation4 + $0x62] ss:$2 sm:$0xff] }
 0x910   :  { %5538 = vrot.lane.b32.xlu1 %v5527_v3, %s8105_s21  ;;  %5754 = vst.msk [vmem:[#allocation7 + $0x18] sm:$0xff] %vm5278_vm9, %v5747_v21  ;;  %v5721_v13 = vld [vmem:[#allocation4 + $0x61] ss:$2 sm:$0xff]  ;;  %v5939_v36 = vld [vmem:[#allocation4 + $0x60] ss:$2 sm:$0xff]  ;;  %v7953_v1 = vld [vmem:[%s10934_s7 + $0x20] sm:$0xff] }
 0x911   :  { %5755 = vst.msk [vmem:[#allocation7 + $0x50] sm:$0xff] %vm5278_vm9, %v5749_v27  ;;  %v5693_v25 = vld [vmem:[#allocation4 + $0x60] ss:$2 sm:$0xff]  ;;  %v5847_v10 = vld [vmem:[#allocation4 + $0x109] ss:$2 sm:$0xff]  ;;  %6497 = vmatpush.bf16.msrb.mxu2 %v7953_v1  ;;  %v7949_v7 = vld [vmem:[%s10934_s7] sm:$0xff] }
 0x912   :  { %5850 = vst.msk [vmem:[#allocation7 + $0x20] sm:$0xff] %vm5278_vm9, %v5843_v33  ;;  %v6039_v38 = vld [vmem:[#allocation4 + $0x124] ss:$2 sm:$0xff]  ;;  %v5849_v15 = vld [vmem:[#allocation4 + $0x139] ss:$2 sm:$0xff] }
 0x913   :  { %5851 = vst.msk [vmem:[#allocation7 + $0x58] sm:$0xff] %vm5278_vm9, %v5845_v63  ;;  %v5666_v29 = vld [vmem:[#allocation4 + $0x4c] ss:$2 sm:$0xff]  ;;  %v5719_v16 = vld [vmem:[#allocation4 + $0x31] ss:$2 sm:$0xff]  ;;  %v7962_v27 = vld [vmem:[%s10934_s7 + $0x68] sm:$0xff] }
 0x914   :  { %6042 = vst.msk [vmem:[#allocation7 + $0x30] sm:$0xff] %vm5278_vm9, %v6035_v35  ;;  %v5751_v58 = vld [vmem:[#allocation4 + $0xf2] ss:$2 sm:$0xff]  ;;  %v5753_v5 = vld [vmem:[#allocation4 + $0x122] ss:$2 sm:$0xff] }
 0x915   :  { %5946 = vst.msk [vmem:[#allocation7 + $0x28] sm:$0xff] %vm5278_vm9, %v5939_v36  ;;  %v5943_v44 = vld [vmem:[#allocation4 + $0x120] ss:$2 sm:$0xff]  ;;  %v5602_v30 = vld [vmem:[#allocation4 + $0x109] ss:$2 sm:$0xff]  ;;  %v7969_v51 = vld [vmem:[%s10934_s7 + $0xa0] sm:$0xff] }
 0x916   :  { %6044 = vst.msk [vmem:[#allocation7 + $0xa0] sm:$0xff] %vm5278_vm9, %v6039_v38  ;;  %v5630_v26 = vld [vmem:[#allocation4 + $0x10a] ss:$2 sm:$0xff]  ;;  %v5725_v37 = vld [vmem:[#allocation4 + $0x121] ss:$2 sm:$0xff] }
 0x917   :  { %5544 = vrot.lane.b32.xlu2 %v5533_v34, %s8105_s21  ;;  %5515 = vrot.lane.b32.xlu0 %v5504_v4, %s8097_s17  ;;  %5756 = vst.msk [vmem:[#allocation7 + $0x88] sm:$0xff] %vm5278_vm9, %v5751_v58  ;;  %v5574_v9 = vld [vmem:[#allocation4 + $0x108] ss:$2 sm:$0xff]  ;;  %v5510_v59 = vpop.permute.xlu2 %5509  ;;  %v5759_v4 = vld [vmem:[#allocation4 + $0x33] ss:$2 sm:$0xff] }
 0x918   :  { %5486 = vrot.lane.b32.xlu1 %v5475_v55, %s10942_s16  ;;  %5757 = vst.msk [vmem:[#allocation7 + $0xc0] sm:$0xff] %vm5278_vm9, %v5753_v5  ;;  %v5695_v49 = vld [vmem:[#allocation4 + $0xf0] ss:$2 sm:$0xff]  ;;  %v5697_v20 = vld [vmem:[#allocation4 + $0x120] ss:$2 sm:$0xff] }
 0x919   :  { %5852 = vst.msk [vmem:[#allocation7 + $0x90] sm:$0xff] %vm5278_vm9, %v5847_v10  ;;  %v5670_v53 = vld [vmem:[#allocation4 + $0x10c] ss:$2 sm:$0xff]  ;;  %v5723_v55 = vld [vmem:[#allocation4 + $0xf1] ss:$2 sm:$0xff] }
 0x91a   :  { %5853 = vst.msk [vmem:[#allocation7 + $0xc8] sm:$0xff] %vm5278_vm9, %v5849_v15  ;;  %v7952_v3 = vld [vmem:[%s10934_s7 + $0x18] sm:$0xff]  ;;  %v7963_v14 = vld [vmem:[%s10934_s7 + $0x70] sm:$0xff] }
 0x91b   :  { %5948 = vst.msk [vmem:[#allocation7 + $0x98] sm:$0xff] %vm5278_vm9, %v5943_v44  ;;  %v5787_v34 = vld [vmem:[#allocation4 + $0x34] ss:$2 sm:$0xff]  ;;  %6498 = vmatpush.bf16.msrb.mxu2 %v7952_v3  ;;  %v5789_v57 = vld [vmem:[#allocation4 + $0x64] ss:$2 sm:$0xff] }
 0x91c   :  { %v7964_v32 = vld [vmem:[%s10934_s7 + $0x78] sm:$0xff]  ;;  %v5913_v33 = vld [vmem:[#allocation4 + $0x7c] ss:$2 sm:$0xff]  ;;  %v5885_v63 = vld [vmem:[#allocation4 + $0x7b] ss:$2 sm:$0xff] }
 0x91d   :  { %6513 = vmatpush.bf16.msrb.mxu3 %v7964_v32  ;;  %v5556_v21 = vld [vmem:[#allocation4 + $0x4] ss:$2 sm:$0xff]  ;;  %v5791_v1 = vld [vmem:[#allocation4 + $0xf4] ss:$2 sm:$0xff] }
 0x91e   :  { %5563 = vst.msk [vmem:[#allocation7 + $0x8] sm:$0xff] %vm5278_vm9, %v5556_v21  ;;  %v5857_v35 = vld [vmem:[#allocation4 + $0x7a] ss:$2 sm:$0xff]  ;;  %v7972_v58 = vld [vmem:[%s10934_s7 + $0xb8] sm:$0xff] }
 0x91f   :  { %5607 = vrot.lane.b32.xlu2 %v5596_v6, %s8097_s17  ;;  %5579 = vrot.lane.b32.xlu0 %v5568_v39, %s10942_s16  ;;  %v7951_v6 = vld [vmem:[%s10934_s7 + $0x10] sm:$0xff]  ;;  %v7968_v3 = vld [vmem:[%s10934_s7 + $0x98] sm:$0xff] }
 0x920   :  { %5542 = vrot.lane.b32.xlu1 %v5531_v31, %s8105_s21  ;;  %v5461_v31 = vld [vmem:[#allocation4 + $0xc0] ss:$2 sm:$0xff]  ;;  %6499 = vmatpush.bf16.msrb.mxu2 %v7951_v6  ;;  %v5887_v21 = vld [vmem:[#allocation4 + $0x10b] ss:$2 sm:$0xff] }
 0x921   :  { %5466 = vst.msk [vmem:[#allocation7 + $0x70] sm:$0xff] %vm5278_vm9, %v5461_v31  ;;  %6514 = vmatpush.bf16.msrb.mxu3 %v7963_v14  ;;  %v5979_v38 = vld [vmem:[#allocation4 + $0x62] ss:$2 sm:$0xff] }
 0x922   :  { %v5911_v5 = vld [vmem:[#allocation4 + $0x4c] ss:$2 sm:$0xff] }
 0x923   :  { %v7959_v10 = vld [vmem:[%s10934_s7 + $0x50] sm:$0xff] }
 0x924   :  { %v7967_v6 = vld [vmem:[%s10934_s7 + $0x90] sm:$0xff] }
 0x925   :  { %6515 = vmatpush.bf16.msrb.mxu3 %v7962_v27  ;;  %v5560_v31 = vld [vmem:[#allocation4 + $0xc4] ss:$2 sm:$0xff] }
 0x926   :  { %5565 = vst.msk [vmem:[#allocation7 + $0x78] sm:$0xff] %vm5278_vm9, %v5560_v31  ;;  %v5859_v27 = vld [vmem:[#allocation4 + $0x10a] ss:$2 sm:$0xff]  ;;  %v7998_v31 = vld [vmem:[%s10934_s7 + $0x188] sm:$0xff] }
 0x927   :  { %5637 = vrot.lane.b32.xlu2 %v5626_v62, %s8105_s21  ;;  %5609 = vrot.lane.b32.xlu0 %v5598_v18, %s8097_s17  ;;  %v7950_v62 = vld [vmem:[%s10934_s7 + $0x8] sm:$0xff] }
 0x928   :  { %5581 = vrot.lane.b32.xlu1 %v5570_v19, %s10942_s16  ;;  %v5817_v18 = vld [vmem:[#allocation4 + $0x78] ss:$2 sm:$0xff]  ;;  %v5761_v19 = vld [vmem:[#allocation4 + $0x63] ss:$2 sm:$0xff]  ;;  %6500 = vmatpush.bf16.msrb.mxu2 %v7950_v62 }
 0x929   :  { %6516 = vmatpush.bf16.msrb.mxu3 %v7961_v12  ;;  %v7966_v62 = vld [vmem:[%s10934_s7 + $0x88] sm:$0xff] }
 0x92c   :  { %6501 = vmatpush.bf16.msrb.mxu2 %v7949_v7 }
 0x92d   :  { %6517 = vmatpush.bf16.msrb.mxu3 %v7960_v17 }
 0x92f   :  { %5702 = vrot.lane.b32.xlu2 %v5691_v11, %s8097_s17  ;;  %5675 = vrot.lane.b32.xlu0 %v5664_v8, %s10942_s16  ;;  %v5883_v8 = vld [vmem:[#allocation4 + $0x4b] ss:$2 sm:$0xff]  ;;  %v5815_v11 = vld [vmem:[#allocation4 + $0x48] ss:$2 sm:$0xff] }
 0x930   :  { %5635 = vrot.lane.b32.xlu1 %v5624_v24, %s8105_s21  ;;  %v5855_v24 = vld [vmem:[#allocation4 + $0x4a] ss:$2 sm:$0xff]  ;;  %6532 = vmatpush.bf16.msra.mxu2 %v7972_v58 }
 0x931   :  { %6518 = vmatpush.bf16.msrb.mxu3 %v7959_v10 }
 0x937   :  { %5732 = vrot.lane.b32.xlu2 %v5721_v13, %s8105_s21  ;;  %5704 = vrot.lane.b32.xlu0 %v5693_v25, %s8097_s17 }
 0x938   :  { %5677 = vrot.lane.b32.xlu1 %v5666_v29, %s10942_s16  ;;  %v5481_v2 = vpop.permute.xlu0 %5480  ;;  %v5951_v29 = vld [vmem:[#allocation4 + $0x61] ss:$2 sm:$0xff] }
 0x939   :  { %5493 = vst.msk [vmem:[#allocation7] sm:$0xff] %vm5492_vm7, %v5481_v2  ;;  %v5763_v2 = vld [vmem:[#allocation4 + $0xf3] ss:$2 sm:$0xff] }
 0x93a   :  { %5522 = vst.msk [vmem:[#allocation7] sm:$0xff] %vm5521_vm8, %v5510_v59  ;;  %v7988_v59 = vld [vmem:[%s10934_s7 + $0x138] sm:$0xff] }
 0x93b   :  { %6570 = vmatpush.bf16.msrb.mxu0 %v7988_v59 }
 0x93f   :  { %5611 = vrot.lane.b32.xlu2 %v5600_v54, %s8097_s17  ;;  %5583 = vrot.lane.b32.xlu0 %v5572_v42, %s10942_s16  ;;  %v7971_v42 = vld [vmem:[%s10934_s7 + $0xb0] sm:$0xff] }
 0x940   :  { %5730 = vrot.lane.b32.xlu1 %v5719_v16, %s8105_s21  ;;  %v5652_v16 = vld [vmem:[#allocation4 + $0x1b] ss:$2 sm:$0xff]  ;;  %6533 = vmatpush.bf16.msra.mxu2 %v7971_v42  ;;  %v5983_v42 = vld [vmem:[#allocation4 + $0x122] ss:$2 sm:$0xff] }
 0x941   :  { %5659 = vst.msk [vmem:[#allocation7 + $0x10] sm:$0xff] %vm5278_vm9, %v5652_v16  ;;  %v7980_v16 = vld [vmem:[%s10934_s7 + $0xf8] sm:$0xff] }
 0x947   :  { %5641 = vrot.lane.b32.xlu2 %v5630_v26, %s8105_s21  ;;  %5613 = vrot.lane.b32.xlu0 %v5602_v30, %s8097_s17  ;;  %v6009_v26 = vld [vmem:[#allocation4 + $0x93] ss:$2 sm:$0xff]  ;;  %v5981_v30 = vld [vmem:[#allocation4 + $0x92] ss:$2 sm:$0xff] }
 0x948   :  { %5585 = vrot.lane.b32.xlu1 %v5574_v9, %s10942_s16  ;;  %v7958_v9 = vld [vmem:[%s10934_s7 + $0x48] sm:$0xff] }
 0x949   :  { %6519 = vmatpush.bf16.msrb.mxu3 %v7958_v9  ;;  %v7979_v9 = vld [vmem:[%s10934_s7 + $0xf0] sm:$0xff] }
 0x94f   :  { %5706 = vrot.lane.b32.xlu2 %v5695_v49, %s8097_s17  ;;  %5679 = vrot.lane.b32.xlu0 %v5668_v48, %s10942_s16  ;;  %v7970_v48 = vld [vmem:[%s10934_s7 + $0xa8] sm:$0xff] }
 0x950   :  { %5639 = vrot.lane.b32.xlu1 %v5628_v61, %s8105_s21  ;;  %v7957_v61 = vld [vmem:[%s10934_s7 + $0x40] sm:$0xff]  ;;  %6534 = vmatpush.bf16.msra.mxu2 %v7970_v48 }
 0x951   :  { %6520 = vmatpush.bf16.msrb.mxu3 %v7957_v61  ;;  %v5985_v61 = vld [vmem:[#allocation4 + $0x152] ss:$2 sm:$0xff] }
 0x954   :  { %6535 = vmatpush.bf16.msra.mxu2 %v7969_v51  ;;  %v7978_v51 = vld [vmem:[%s10934_s7 + $0xe8] sm:$0xff] }
 0x955   :  { %6551 = vmatpush.bf16.msra.mxu3 %v7980_v16  ;;  %v7990_v16 = vld [vmem:[%s10934_s7 + $0x148] sm:$0xff] }
 0x957   :  { %5736 = vrot.lane.b32.xlu2 %v5725_v37, %s8105_s21  ;;  %5708 = vrot.lane.b32.xlu0 %v5697_v20, %s8097_s17 }
 0x958   :  { %5681 = vrot.lane.b32.xlu1 %v5670_v53, %s10942_s16  ;;  %6536 = vmatpush.bf16.msra.mxu2 %v7968_v3 }
 0x959   :  { %6552 = vmatpush.bf16.msra.mxu3 %v7979_v9 }
 0x95c   :  { %6537 = vmatpush.bf16.msra.mxu2 %v7967_v6  ;;  %v7975_v6 = vld [vmem:[%s10934_s7 + $0xd0] sm:$0xff] }
 0x95d   :  { %6553 = vmatpush.bf16.msra.mxu3 %v7978_v51 }
 0x95f   :  { %5798 = vrot.lane.b32.xlu2 %v5787_v34, %s8097_s17  ;;  %5770 = vrot.lane.b32.xlu0 %v5759_v4, %s10942_s16  ;;  %v6007_v34 = vld [vmem:[#allocation4 + $0x63] ss:$2 sm:$0xff] }
 0x960   :  { %5734 = vrot.lane.b32.xlu1 %v5723_v55, %s8105_s21  ;;  %6538 = vmatpush.bf16.msra.mxu2 %v7966_v62  ;;  %v7974_v62 = vld [vmem:[%s10934_s7 + $0xc8] sm:$0xff] }
 0x961   :  { %v5541_v39 = vpop.permute.xlu2 %5540 }
 0x967   :  { %5828 = vrot.lane.b32.xlu2 %v5817_v18, %s8105_s21  ;;  %5800 = vrot.lane.b32.xlu0 %v5789_v57, %s8097_s17  ;;  %v5821_v18 = vld [vmem:[#allocation4 + $0x138] ss:$2 sm:$0xff] }
 0x968   :  { %5772 = vrot.lane.b32.xlu1 %v5761_v19, %s10942_s16  ;;  %v5793_v57 = vld [vmem:[#allocation4 + $0x124] ss:$2 sm:$0xff]  ;;  %v5765_v19 = vld [vmem:[#allocation4 + $0x123] ss:$2 sm:$0xff] }
 0x969   :  { %v5514_v22 = vpop.permute.xlu2 %5513 }
 0x96f   :  { %5894 = vrot.lane.b32.xlu2 %v5883_v8, %s8097_s17  ;;  %5866 = vrot.lane.b32.xlu0 %v5855_v24, %s10942_s16  ;;  %v7965_v8 = vld [vmem:[%s10934_s7 + $0x80] sm:$0xff] }
 0x970   :  { %5826 = vrot.lane.b32.xlu1 %v5815_v11, %s8105_s21  ;;  %6539 = vmatpush.bf16.msra.mxu2 %v7965_v8 }
 0x971   :  { %v10591_v45 = vpop.permute.xlu2 %5544 }
 0x977   :  { %5924 = vrot.lane.b32.xlu2 %v5913_v33, %s8105_s21  ;;  %5896 = vrot.lane.b32.xlu0 %v5885_v63, %s8097_s17  ;;  %v5819_v33 = vld [vmem:[#allocation4 + $0x108] ss:$2 sm:$0xff] }
 0x978   :  { %5868 = vrot.lane.b32.xlu1 %v5857_v35, %s10942_s16 }
 0x979   :  { %v10603_v13 = vpop.permute.xlu2 %5607  ;;  %v5512_v36 = vpop.permute.xlu0 %5511 }
 0x97a   :  { %v5483_v25 = vpop.permute.xlu1 %5482 }
 0x97b   :  { %5494 = vst.msk [vmem:[#allocation7 + $0x38] sm:$0xff] %vm5492_vm7, %v5483_v25  ;;  %v5889_v25 = vld [vmem:[#allocation4 + $0x13b] ss:$2 sm:$0xff] }
 0x97c   :  { %5523 = vst.msk [vmem:[#allocation7 + $0x38] sm:$0xff] %vm5521_vm8, %v5512_v36  ;;  %v5917_v36 = vld [vmem:[#allocation4 + $0x13c] ss:$2 sm:$0xff] }
 0x97d   :  { %5552 = vst.msk [vmem:[#allocation7 + $0x38] sm:$0xff] %vm5550_vm10, %v5541_v39 }
 0x97f   :  { %5990 = vrot.lane.b32.xlu2 %v5979_v38, %s8097_s17  ;;  %5962 = vrot.lane.b32.xlu0 %v5951_v29, %s10942_s16  ;;  %v5861_v38 = vld [vmem:[#allocation4 + $0x13a] ss:$2 sm:$0xff] }
 0x980   :  { %5922 = vrot.lane.b32.xlu1 %v5911_v5, %s8105_s21 }
 0x981   :  { %v10620_v54 = vpop.permute.xlu2 %5637  ;;  %v5485_v15 = vpop.permute.xlu0 %5484 }
 0x982   :  { %5495 = vst.msk [vmem:[#allocation7 + $0x70] sm:$0xff] %vm5492_vm7, %v5485_v15  ;;  %v5539_v44 = vpop.permute.xlu1 %5538  ;;  %v7986_v15 = vld [vmem:[%s10934_s7 + $0x128] sm:$0xff] }
 0x983   :  { %5524 = vst.msk [vmem:[#allocation7 + $0x70] sm:$0xff] %vm5521_vm8, %v5514_v22 }
 0x984   :  { %5551 = vst.msk [vmem:[#allocation7] sm:$0xff] %vm5550_vm10, %v5539_v44  ;;  %v6053_v20 = vld [vmem:[#allocation7 + $0x38] sm:$0xff]  ;;  %v5955_v44 = vld [vmem:[#allocation4 + $0x121] ss:$2 sm:$0xff] }
 0x987   :  { %6020 = vrot.lane.b32.xlu2 %v6009_v26, %s8105_s21  ;;  %5992 = vrot.lane.b32.xlu0 %v5981_v30, %s8097_s17  ;;  %v5915_v26 = vld [vmem:[#allocation4 + $0x10c] ss:$2 sm:$0xff] }
 0x988   :  { %5964 = vrot.lane.b32.xlu1 %v5953_v56, %s10942_s16 }
 0x989   :  { %v10641_v49 = vpop.permute.xlu2 %5702  ;;  %v5516_v50 = vpop.permute.xlu0 %5515 }
 0x98a   :  { %v5487_v52 = vpop.permute.xlu1 %5486 }
 0x98b   :  { %5496 = vst.msk [vmem:[#allocation7 + $0xa8] sm:$0xff] %vm5492_vm7, %v5487_v52  ;;  %v6046_v37 = vld [vmem:[#allocation7] sm:$0xff] }
 0x98c   :  { %5525 = vst.msk [vmem:[#allocation7 + $0xa8] sm:$0xff] %vm5521_vm8, %v5516_v50  ;;  %v6074_v53 = vpack.c.bf16 %v6053_v20, %v6046_v37  ;;  %v5957_v50 = vld [vmem:[#allocation4 + $0x151] ss:$2 sm:$0xff] }
 0x98d   :  { %5554 = vst.msk [vmem:[#allocation7 + $0xa8] sm:$0xff] %vm5550_vm10, %v10591_v45  ;;  %v7987_v45 = vld [vmem:[%s10934_s7 + $0x130] sm:$0xff]  ;;  %v7977_v37 = vld [vmem:[%s10934_s7 + $0xe0] sm:$0xff] }
 0x98e   :  { %6502 = vmatmul.bf16.vlgmr.msrb.gmra.mxu2 %v6074_v53  ;;  %6571 = vmatpush.bf16.msrb.mxu0 %v7987_v45  ;;  %v7983_v45 = vld [vmem:[%s10934_s7 + $0x110] sm:$0xff] }
 0x98f   :  { %5802 = vrot.lane.b32.xlu2 %v5791_v1, %s8097_s17  ;;  %5774 = vrot.lane.b32.xlu0 %v5763_v2, %s10942_s16  ;;  %v7985_v2 = vld [vmem:[%s10934_s7 + $0x120] sm:$0xff] }
 0x990   :  { %6018 = vrot.lane.b32.xlu1 %v6007_v34, %s8105_s21  ;;  %6554 = vmatpush.bf16.msra.mxu3 %v7977_v37  ;;  %v7976_v34 = vld [vmem:[%s10934_s7 + $0xd8] sm:$0xff] }
 0x991   :  { %v5733_v4 = vpop.permute.xlu2 %5732  ;;  %v5580_v55 = vpop.permute.xlu0 %5579  ;;  %6614 = vmatpush.bf16.msrb.mxu2 %v7998_v31 }
 0x992   :  { %5591 = vst.msk [vmem:[#allocation7 + $0x8] sm:$0xff] %vm5492_vm7, %v5580_v55  ;;  %v5543_v39 = vpop.permute.xlu1 %5542  ;;  %6572 = vmatpush.bf16.msrb.mxu0 %v7986_v15  ;;  %v7991_v15 = vld [vmem:[%s10934_s7 + $0x150] sm:$0xff] }
 0x993   :  { %5619 = vst.msk [vmem:[#allocation7 + $0x8] sm:$0xff] %vm5521_vm8, %v10603_v13  ;;  %v5656_v13 = vld [vmem:[#allocation4 + $0xdb] ss:$2 sm:$0xff] }
 0x994   :  { %5553 = vst.msk [vmem:[#allocation7 + $0x70] sm:$0xff] %vm5550_vm10, %v5543_v39  ;;  %v6067_v11 = vld [vmem:[#allocation7 + $0xa8] sm:$0xff]  ;;  %6555 = vmatpush.bf16.msra.mxu3 %v7976_v34 }
 0x995   :  { %5661 = vst.msk [vmem:[#allocation7 + $0x80] sm:$0xff] %vm5278_vm9, %v5656_v13  ;;  %v7981_v13 = vld [vmem:[%s10934_s7 + $0x100] sm:$0xff] }
 0x996   :  { %6573 = vmatpush.bf16.msrb.mxu0 %v7985_v2  ;;  %v6073_v2 = vld [vmem:[#allocation7 + $0xd8] sm:$0xff] }
 0x997   :  { %5832 = vrot.lane.b32.xlu2 %v5821_v18, %s8105_s21  ;;  %5804 = vrot.lane.b32.xlu0 %v5793_v57, %s8097_s17 }
 0x998   :  { %5776 = vrot.lane.b32.xlu1 %v5765_v19, %s10942_s16  ;;  %6556 = vmatpush.bf16.msra.mxu3 %v7975_v6  ;;  %v7973_v19 = vld [vmem:[%s10934_s7 + $0xc0] sm:$0xff] }
 0x999   :  { %v5612_v7 = vpop.permute.xlu2 %5611  ;;  %v5610_v22 = vpop.permute.xlu0 %5609 }
 0x99a   :  { %v5582_v24 = vpop.permute.xlu1 %5581 }
 0x99b   :  { %5592 = vst.msk [vmem:[#allocation7 + $0x40] sm:$0xff] %vm5492_vm7, %v5582_v24  ;;  %v6060_v32 = vld [vmem:[#allocation7 + $0x70] sm:$0xff] }
 0x99c   :  { %5620 = vst.msk [vmem:[#allocation7 + $0x40] sm:$0xff] %vm5521_vm8, %v5610_v22  ;;  %v6081_v14 = vpack.c.bf16 %v6067_v11, %v6060_v32  ;;  %6557 = vmatpush.bf16.msra.mxu3 %v7974_v62  ;;  %v7997_v32 = vld [vmem:[%s10934_s7 + $0x180] sm:$0xff]  ;;  %v7984_v11 = vld [vmem:[%s10934_s7 + $0x118] sm:$0xff] }
 0x99d   :  { %5648 = vst.msk [vmem:[#allocation7 + $0x40] sm:$0xff] %vm5550_vm10, %v10620_v54  ;;  %6615 = vmatpush.bf16.msrb.mxu2 %v7997_v32  ;;  %6574 = vmatpush.bf16.msrb.mxu0 %v7984_v11 }
 0x99e   :  { %6507 = vmatmul.bf16.gmra.mxu2 %v6081_v14  ;;  %v7996_v14 = vld [vmem:[%s10934_s7 + $0x178] sm:$0xff] }
 0x99f   :  { %5898 = vrot.lane.b32.xlu2 %v5887_v21, %s8097_s17  ;;  %5870 = vrot.lane.b32.xlu0 %v5859_v27, %s10942_s16  ;;  %v7995_v21 = vld [vmem:[%s10934_s7 + $0x170] sm:$0xff] }
 0x9a0   :  { %5830 = vrot.lane.b32.xlu1 %v5819_v33, %s8105_s21  ;;  %6558 = vmatpush.bf16.msra.mxu3 %v7973_v19 }
 0x9a1   :  { %v5642_v63 = vpop.permute.xlu2 %5641  ;;  %v5676_v35 = vpop.permute.xlu0 %5675  ;;  %6589 = vmatpush.bf16.msra.mxu1 %v7996_v14  ;;  %6575 = vmatpush.bf16.msrb.mxu0 %v7983_v45 }
 0x9a2   :  { %5687 = vst.msk [vmem:[#allocation7 + $0x10] sm:$0xff] %vm5492_vm7, %v5676_v35  ;;  %v5636_v12 = vpop.permute.xlu1 %5635  ;;  %v7982_v35 = vld [vmem:[%s10934_s7 + $0x108] sm:$0xff] }
 0x9a3   :  { %5714 = vst.msk [vmem:[#allocation7 + $0x10] sm:$0xff] %vm5521_vm8, %v10641_v49  ;;  %v6013_v49 = vld [vmem:[#allocation4 + $0x153] ss:$2 sm:$0xff] }
 0x9a4   :  { %5647 = vst.msk [vmem:[#allocation7 + $0x8] sm:$0xff] %vm5550_vm10, %v5636_v12  ;;  %v6054_v10 = vld [vmem:[#allocation7 + $0x40] sm:$0xff] }
 0x9a5   :  { %6590 = vmatpush.bf16.msra.mxu1 %v7995_v21  ;;  %v7994_v12 = vld [vmem:[%s10934_s7 + $0x168] sm:$0xff]  ;;  %6576 = vmatpush.bf16.msrb.mxu0 %v7982_v35 }
 0x9a7   :  { %5928 = vrot.lane.b32.xlu2 %v5917_v36, %s8105_s21  ;;  %5900 = vrot.lane.b32.xlu0 %v5889_v25, %s8097_s17  ;;  %v7993_v36 = vld [vmem:[%s10934_s7 + $0x160] sm:$0xff] }
 0x9a8   :  { %5872 = vrot.lane.b32.xlu1 %v5861_v38, %s10942_s16  ;;  %v5941_v38 = vld [vmem:[#allocation4 + $0x90] ss:$2 sm:$0xff] }
 0x9a9   :  { %v5705_v29 = vpop.permute.xlu0 %5704  ;;  %v5707_v17 = vpop.permute.xlu2 %5706  ;;  %6591 = vmatpush.bf16.msra.mxu1 %v7994_v12  ;;  %5947 = vst.msk [vmem:[#allocation7 + $0x60] sm:$0xff] %vm5278_vm9, %v5941_v38  ;;  %6577 = vmatpush.bf16.msrb.mxu0 %v7981_v13 }
 0x9aa   :  { %v5678_v58 = vpop.permute.xlu1 %5677 }
 0x9ab   :  { %5688 = vst.msk [vmem:[#allocation7 + $0x48] sm:$0xff] %vm5492_vm7, %v5678_v58  ;;  %v6047_v5 = vld [vmem:[#allocation7 + $0x8] sm:$0xff] }
 0x9ac   :  { %5715 = vst.msk [vmem:[#allocation7 + $0x48] sm:$0xff] %vm5521_vm8, %v5705_v29  ;;  %v6075_v54 = vpack.c.bf16 %v6054_v10, %v6047_v5 }
 0x9ad   :  { %5743 = vst.msk [vmem:[#allocation7 + $0x48] sm:$0xff] %vm5550_vm10, %v5733_v4  ;;  %v6011_v4 = vld [vmem:[#allocation4 + $0x123] ss:$2 sm:$0xff]  ;;  %6592 = vmatpush.bf16.msra.mxu1 %v7993_v36 }
 0x9ae   :  { %6521 = vmatmul.bf16.vlgmr.msrb.gmra.mxu3 %v6075_v54  ;;  %v7992_v54 = vld [vmem:[%s10934_s7 + $0x158] sm:$0xff] }
 0x9af   :  { %5994 = vrot.lane.b32.xlu2 %v5983_v42, %s8097_s17  ;;  %5966 = vrot.lane.b32.xlu0 %v5955_v44, %s10942_s16 }
 0x9b0   :  { %5926 = vrot.lane.b32.xlu1 %v5915_v26, %s8105_s21 }
 0x9b1   :  { %v5584_v30 = vpop.permute.xlu0 %5583  ;;  %v5737_v48 = vpop.permute.xlu2 %5736  ;;  %6593 = vmatpush.bf16.msra.mxu1 %v7992_v54 }
 0x9b2   :  { %5593 = vst.msk [vmem:[#allocation7 + $0x78] sm:$0xff] %vm5492_vm7, %v5584_v30  ;;  %v5731_v56 = vpop.permute.xlu1 %5730  ;;  %v7989_v30 = vld [vmem:[%s10934_s7 + $0x140] sm:$0xff] }
 0x9b3   :  { %5621 = vst.msk [vmem:[#allocation7 + $0x78] sm:$0xff] %vm5521_vm8, %v5612_v7 }
 0x9b4   :  { %5742 = vst.msk [vmem:[#allocation7 + $0x10] sm:$0xff] %vm5550_vm10, %v5731_v56  ;;  %v6055_v59 = vld [vmem:[#allocation7 + $0x48] sm:$0xff]  ;;  %v6052_v56 = vld [vmem:[#allocation7 + $0x30] sm:$0xff] }
 0x9b5   :  { %6594 = vmatpush.bf16.msra.mxu1 %v7991_v15 }
 0x9b7   :  { %5996 = vrot.lane.b32.xlu0 %v5985_v61, %s8097_s17  ;;  %6024 = vrot.lane.b32.xlu2 %v6013_v49, %s8105_s21 }
 0x9b8   :  { %5968 = vrot.lane.b32.xlu1 %v5957_v50, %s10942_s16  ;;  %s6947_s16 = sshll.u32 %s10939_s12, 4  ;;  %s6948_s16 = int_to_ptr.hbm [resolvable:$true] %s6947_s16 }
 0x9b9   :  { %v5614_v52 = vpop.permute.xlu0 %5613  ;;  %v5799_v3 = vpop.permute.xlu2 %5798  ;;  %6595 = vmatpush.bf16.msra.mxu1 %v7990_v16 }
 0x9ba   :  { %v5586_v20 = vpop.permute.xlu1 %5585 }
 0x9bb   :  { %5594 = vst.msk [vmem:[#allocation7 + $0xb0] sm:$0xff] %vm5492_vm7, %v5586_v20  ;;  %v6048_v53 = vld [vmem:[#allocation7 + $0x10] sm:$0xff] }
 0x9bc   :  { %5622 = vst.msk [vmem:[#allocation7 + $0xb0] sm:$0xff] %vm5521_vm8, %v5614_v52  ;;  %v6076_v1 = vpack.c.bf16 %v6055_v59, %v6048_v53 }
 0x9bd   :  { %5650 = vst.msk [vmem:[#allocation7 + $0xb0] sm:$0xff] %vm5550_vm10, %v5642_v63  ;;  %6596 = vmatpush.bf16.msra.mxu1 %v7989_v30 }
 0x9be   :  { %6540 = vmatmul.bf16.vlgmr.msra.gmra.mxu2 %v6076_v1  ;;  %v6066_v1 = vld [vmem:[#allocation7 + $0xa0] sm:$0xff] }
 0x9c0   :  { %6022 = vrot.lane.b32.xlu1 %v6011_v4, %s8105_s21 }
 0x9c1   :  { %v5680_v55 = vpop.permute.xlu0 %5679  ;;  %v5829_v18 = vpop.permute.xlu2 %5828 }
 0x9c2   :  { %5689 = vst.msk [vmem:[#allocation7 + $0x80] sm:$0xff] %vm5492_vm7, %v5680_v55  ;;  %v5640_v39 = vpop.permute.xlu1 %5639 }
 0x9c3   :  { %5716 = vst.msk [vmem:[#allocation7 + $0x80] sm:$0xff] %vm5521_vm8, %v5707_v17 }
 0x9c4   :  { %5649 = vst.msk [vmem:[#allocation7 + $0x78] sm:$0xff] %vm5550_vm10, %v5640_v39  ;;  %v6068_v8 = vld [vmem:[#allocation7 + $0xb0] sm:$0xff]  ;;  %v6087_v39 = vpack.c.bf16 %v6073_v2, %v6066_v1 }
 0x9c9   :  { %v5709_v57 = vpop.permute.xlu0 %5708  ;;  %v5895_v33 = vpop.permute.xlu2 %5894 }
 0x9ca   :  { %v5682_v7 = vpop.permute.xlu1 %5681 }
 0x9cb   :  { %5690 = vst.msk [vmem:[#allocation7 + $0xb8] sm:$0xff] %vm5492_vm7, %v5682_v7  ;;  %v6061_v22 = vld [vmem:[#allocation7 + $0x78] sm:$0xff] }
 0x9cc   :  { %5717 = vst.msk [vmem:[#allocation7 + $0xb8] sm:$0xff] %vm5521_vm8, %v5709_v57  ;;  %v6082_v24 = vpack.c.bf16 %v6068_v8, %v6061_v22  ;;  %v5945_v7 = vld [vmem:[#allocation4 + $0x150] ss:$2 sm:$0xff] }
 0x9cd   :  { %5745 = vst.msk [vmem:[#allocation7 + $0xb8] sm:$0xff] %vm5550_vm10, %v5737_v48  ;;  %v6059_v48 = vld [vmem:[#allocation7 + $0x68] sm:$0xff] }
 0x9ce   :  { %6526 = vmatmul.bf16.gmra.mxu3 %v6082_v24  ;;  %v6080_v52 = vpack.c.bf16 %v6059_v48, %v6052_v56  ;;  %5949 = vst.msk [vmem:[#allocation7 + $0xd0] sm:$0xff] %vm5278_vm9, %v5945_v7 }
 0x9d1   :  { %v5771_v27 = vpop.permute.xlu0 %5770  ;;  %v5925_v5 = vpop.permute.xlu2 %5924 }
 0x9d2   :  { %5782 = vst.msk [vmem:[#allocation7 + $0x18] sm:$0xff] %vm5492_vm7, %v5771_v27  ;;  %v5735_v63 = vpop.permute.xlu1 %5734 }
 0x9d3   :  { %5810 = vst.msk [vmem:[#allocation7 + $0x18] sm:$0xff] %vm5521_vm8, %v5799_v3 }
 0x9d4   :  { %5744 = vst.msk [vmem:[#allocation7 + $0x80] sm:$0xff] %vm5550_vm10, %v5735_v63  ;;  %v6069_v58 = vld [vmem:[#allocation7 + $0xb8] sm:$0xff] }
 0x9d9   :  { %v5801_v25 = vpop.permute.xlu0 %5800  ;;  %v5991_v26 = vpop.permute.xlu2 %5990 }
 0x9da   :  { %v5773_v29 = vpop.permute.xlu1 %5772 }
 0x9db   :  { %5783 = vst.msk [vmem:[#allocation7 + $0x50] sm:$0xff] %vm5492_vm7, %v5773_v29  ;;  %v6062_v17 = vld [vmem:[#allocation7 + $0x80] sm:$0xff] }
 0x9dc   :  { %5811 = vst.msk [vmem:[#allocation7 + $0x50] sm:$0xff] %vm5521_vm8, %v5801_v25  ;;  %v6083_v10 = vpack.c.bf16 %v6069_v58, %v6062_v17 }
 0x9dd   :  { %5839 = vst.msk [vmem:[#allocation7 + $0x50] sm:$0xff] %vm5550_vm10, %v5829_v18 }
 0x9de   :  { %6545 = vmatmul.bf16.gmra.mxu2 %v6083_v10 }
 0x9e1   :  { %v5867_v42 = vpop.permute.xlu0 %5866  ;;  %v6021_v37 = vpop.permute.xlu2 %6020 }
 0x9e2   :  { %5878 = vst.msk [vmem:[#allocation7 + $0x20] sm:$0xff] %vm5492_vm7, %v5867_v42  ;;  %v5827_v44 = vpop.permute.xlu1 %5826 }
 0x9e3   :  { %5906 = vst.msk [vmem:[#allocation7 + $0x20] sm:$0xff] %vm5521_vm8, %v5895_v33 }
 0x9e4   :  { %5838 = vst.msk [vmem:[#allocation7 + $0x18] sm:$0xff] %vm5550_vm10, %v5827_v44  ;;  %v6056_v50 = vld [vmem:[#allocation7 + $0x50] sm:$0xff] }
 0x9e9   :  { %v5897_v9 = vpop.permute.xlu0 %5896  ;;  %v5803_v3 = vpop.permute.xlu2 %5802 }
 0x9ea   :  { %v5869_v61 = vpop.permute.xlu1 %5868 }
 0x9eb   :  { %5879 = vst.msk [vmem:[#allocation7 + $0x58] sm:$0xff] %vm5492_vm7, %v5869_v61  ;;  %v6049_v49 = vld [vmem:[#allocation7 + $0x18] sm:$0xff] }
 0x9ec   :  { %5907 = vst.msk [vmem:[#allocation7 + $0x58] sm:$0xff] %vm5521_vm8, %v5897_v9  ;;  %v6077_v51 = vpack.c.bf16 %v6056_v50, %v6049_v49 }
 0x9ed   :  { %5935 = vst.msk [vmem:[#allocation7 + $0x58] sm:$0xff] %vm5550_vm10, %v5925_v5 }
 0x9ee   :  { %6559 = vmatmul.bf16.vlgmr.msra.gmra.mxu3 %v6077_v51  ;;  %7848 = vmatmul.msk.bf16.vlgmr.msrb.gmra.mxu2 %vm5278_vm9, %v6080_v52 }
 0x9f1   :  { %v5963_v20 = vpop.permute.xlu0 %5962  ;;  %v5833_v18 = vpop.permute.xlu2 %5832 }
 0x9f2   :  { %5974 = vst.msk [vmem:[#allocation7 + $0x28] sm:$0xff] %vm5492_vm7, %v5963_v20  ;;  %v5923_v53 = vpop.permute.xlu1 %5922 }
 0x9f3   :  { %6002 = vst.msk [vmem:[#allocation7 + $0x28] sm:$0xff] %vm5521_vm8, %v5991_v26 }
 0x9f4   :  { %5934 = vst.msk [vmem:[#allocation7 + $0x20] sm:$0xff] %vm5550_vm10, %v5923_v53  ;;  %v6057_v55 = vld [vmem:[#allocation7 + $0x58] sm:$0xff] }
 0x9f9   :  { %v5993_v59 = vpop.permute.xlu0 %5992  ;;  %v5899_v32 = vpop.permute.xlu2 %5898 }
 0x9fa   :  { %v5965_v34 = vpop.permute.xlu1 %5964 }
 0x9fb   :  { %5975 = vst.msk [vmem:[#allocation7 + $0x60] sm:$0xff] %vm5492_vm7, %v5965_v34  ;;  %v6050_v4 = vld [vmem:[#allocation7 + $0x20] sm:$0xff] }
 0x9fc   :  { %6003 = vst.msk [vmem:[#allocation7 + $0x60] sm:$0xff] %vm5521_vm8, %v5993_v59  ;;  %v6078_v6 = vpack.c.bf16 %v6057_v55, %v6050_v4 }
 0x9fd   :  { %6031 = vst.msk [vmem:[#allocation7 + $0x60] sm:$0xff] %vm5550_vm10, %v6021_v37 }
 0x9fe   :  { %6578 = vmatmul.bf16.vlgmr.msrb.gmra.mxu0 %v6078_v6  ;;  %7849 = vmatmul.msk.bf16.gmra.mxu2 %vm5278_vm9, %v6087_v39  ;;  %vm6627_vm9 = vcmp.lt.s32.totalorder %v5154_v46, 2 }
 0xa01   :  { %v5775_v31 = vpop.permute.xlu0 %5774  ;;  %v5929_v45 = vpop.permute.xlu2 %5928 }
 0xa02   :  { %5784 = vst.msk [vmem:[#allocation7 + $0x88] sm:$0xff] %vm5492_vm7, %v5775_v31  ;;  %v6019_v62 = vpop.permute.xlu1 %6018 }
 0xa03   :  { %5812 = vst.msk [vmem:[#allocation7 + $0x88] sm:$0xff] %vm5521_vm8, %v5803_v3 }
 0xa04   :  { %6030 = vst.msk [vmem:[#allocation7 + $0x28] sm:$0xff] %vm5550_vm10, %v6019_v62  ;;  %v6058_v19 = vld [vmem:[#allocation7 + $0x60] sm:$0xff] }
 0xa09   :  { %v5805_v57 = vpop.permute.xlu0 %5804  ;;  %v5995_v13 = vpop.permute.xlu2 %5994 }
 0xa0a   :  { %v5777_v22 = vpop.permute.xlu1 %5776 }
 0xa0b   :  { %5785 = vst.msk [vmem:[#allocation7 + $0xc0] sm:$0xff] %vm5492_vm7, %v5777_v22  ;;  %v6051_v8 = vld [vmem:[#allocation7 + $0x28] sm:$0xff] }
 0xa0c   :  { %5813 = vst.msk [vmem:[#allocation7 + $0xc0] sm:$0xff] %vm5521_vm8, %v5805_v57  ;;  %v6079_v24 = vpack.c.bf16 %v6058_v19, %v6051_v8  ;;  %v7850_v19 = vsel %vm6627_vm9, 1.0, %v8081_v0 }
 0xa0d   :  { %5841 = vst.msk [vmem:[#allocation7 + $0xc0] sm:$0xff] %vm5550_vm10, %v5833_v18 }
 0xa0e   :  { %6597 = vmatmul.bf16.vlgmr.msra.gmra.mxu1 %v6079_v24  ;;  %v7851_v24 = vsel %vm6628_vm11, 1.0, %v8081_v0 }
 0xa11   :  { %v5871_v11 = vpop.permute.xlu0 %5870  ;;  %v6025_v29 = vpop.permute.xlu2 %6024 }
 0xa12   :  { %5880 = vst.msk [vmem:[#allocation7 + $0x90] sm:$0xff] %vm5492_vm7, %v5871_v11  ;;  %v5831_v14 = vpop.permute.xlu1 %5830  ;;  %v6503_v44 = vpop.f32.mrf.mxu2 }
 0xa13   :  { %5908 = vst.msk [vmem:[#allocation7 + $0x90] sm:$0xff] %vm5521_vm8, %v5899_v32 }
 0xa14   :  { %5840 = vst.msk [vmem:[#allocation7 + $0x88] sm:$0xff] %vm5550_vm10, %v5831_v14  ;;  %v6070_v63 = vld [vmem:[#allocation7 + $0xc0] sm:$0xff] }
 0xa19   :  { %v5901_v21 = vpop.permute.xlu0 %5900 }
 0xa1a   :  { %v5873_v27 = vpop.permute.xlu1 %5872  ;;  %v6505_v16 = vpop.f32.mrf.mxu2 }
 0xa1b   :  { %5881 = vst.msk [vmem:[#allocation7 + $0xc8] sm:$0xff] %vm5492_vm7, %v5873_v27  ;;  %v6063_v33 = vld [vmem:[#allocation7 + $0x88] sm:$0xff] }
 0xa1c   :  { %5909 = vst.msk [vmem:[#allocation7 + $0xc8] sm:$0xff] %vm5521_vm8, %v5901_v21  ;;  %v6084_v35 = vpack.c.bf16 %v6070_v63, %v6063_v33 }
 0xa1d   :  { %5937 = vst.msk [vmem:[#allocation7 + $0xc8] sm:$0xff] %vm5550_vm10, %v5929_v45 }
 0xa1e   :  { %6564 = vmatmul.bf16.gmra.mxu3 %v6084_v35 }
 0xa21   :  { %v5967_v12 = vpop.permute.xlu0 %5966 }
 0xa22   :  { %5976 = vst.msk [vmem:[#allocation7 + $0x98] sm:$0xff] %vm5492_vm7, %v5967_v12  ;;  %v5927_v36 = vpop.permute.xlu1 %5926  ;;  %v6508_v26 = vpop.f32.mrf.mxu2 }
 0xa23   :  { %6004 = vst.msk [vmem:[#allocation7 + $0x98] sm:$0xff] %vm5521_vm8, %v5995_v13 }
 0xa24   :  { %5936 = vst.msk [vmem:[#allocation7 + $0x90] sm:$0xff] %vm5550_vm10, %v5927_v36  ;;  %v6071_v58 = vld [vmem:[#allocation7 + $0xc8] sm:$0xff] }
 0xa29   :  { %v5997_v25 = vpop.permute.xlu0 %5996 }
 0xa2a   :  { %v5969_v38 = vpop.permute.xlu1 %5968  ;;  %v6510_v30 = vpop.f32.mrf.mxu2 }
 0xa2b   :  { %5977 = vst.msk [vmem:[#allocation7 + $0xd0] sm:$0xff] %vm5492_vm7, %v5969_v38  ;;  %v6064_v17 = vld [vmem:[#allocation7 + $0x90] sm:$0xff]  ;;  %vm6747_vm7 = vcmask 1041920  }
 0xa2c   :  { %v6085_v5 = vpack.c.bf16 %v6071_v58, %v6064_v17  ;;  %6005 = vst.msk [vmem:[#allocation7 + $0xd0] sm:$0xff] %vm5521_vm8, %v5997_v25  ;;  %v7852_v58 = vsel %vm6629_vm3, 1.0, %v8081_v0  ;;  %vm6938_vm8 = vcmask 41984  }
 0xa2d   :  { %6033 = vst.msk [vmem:[#allocation7 + $0xd0] sm:$0xff] %vm5550_vm10, %v6025_v29 }
 0xa2e   :  { %6583 = vmatmul.bf16.gmra.mxu0 %v6085_v5 }
 0xa31   :  { %v6522_v9 = vpop.f32.mrf.mxu3 }
 0xa32   :  { %v6023_v10 = vpop.permute.xlu1 %6022  ;;  %v6523_v53 = vadd.f32 %v6522_v9, %v6503_v44 }
 0xa33   :  { %6032 = vst.msk [vmem:[#allocation7 + $0x98] sm:$0xff] %vm5550_vm10, %v6023_v10 }
 0xa34   :  { %v6072_v54 = vld [vmem:[#allocation7 + $0xd0] sm:$0xff] }
 0xa39   :  { %v6524_v48 = vpop.f32.mrf.mxu3 }
 0xa3a   :  { %v6065_v15 = vld [vmem:[#allocation7 + $0x98] sm:$0xff]  ;;  %v6525_v34 = vadd.f32 %v6524_v48, %v6505_v16  ;;  %v7853_v16 = vsel %vm6630_vm0, 1.0, %v8081_v0 }
 0xa3b   :  { %v6086_v42 = vpack.c.bf16 %v6072_v54, %v6065_v15 }
 0xa3d   :  { %6602 = vmatmul.bf16.gmra.mxu1 %v6086_v42 }
 0xa41   :  { %v6541_v56 = vpop.f32.mrf.mxu2 }
 0xa42   :  { %v6542_v59 = vadd.f32 %v6541_v56, %v6523_v53 }
 0xa49   :  { %v6543_v61 = vpop.f32.mrf.mxu2 }
 0xa4a   :  { %v6544_v6 = vadd.f32 %v6543_v61, %v6525_v34 }
 0xa51   :  { %v6527_v49 = vpop.f32.mrf.mxu3 }
 0xa52   :  { %v6528_v27 = vadd.f32 %v6527_v49, %v6508_v26 }
 0xa59   :  { %v6529_v51 = vpop.f32.mrf.mxu3 }
 0xa5a   :  { %v6530_v13 = vadd.f32 %v6529_v51, %v6510_v30 }
 0xa61   :  { %v6546_v50 = vpop.f32.mrf.mxu2 }
 0xa62   :  { %v6547_v43 = vadd.f32 %v6546_v50, %v6528_v27  ;;  %v8013_v27 = vld [vmem:[%s10937_s10 + $0x70] sm:$0xff] }
 0xa69   :  { %v6548_v52 = vpop.f32.mrf.mxu2 }
 0xa6a   :  { %v6549_v38 = vadd.f32 %v6548_v52, %v6530_v13  ;;  %v8011_v13 = vld [vmem:[%s10937_s10 + $0x60] sm:$0xff] }
 0xa71   :  { %v6560_v37 = vpop.f32.mrf.mxu3  ;;  %v6617_v2 = vpop.f32.mrf.mxu2 }
 0xa72   :  { %v6561_v1 = vadd.f32 %v6560_v37, %v6542_v59 }
 0xa79   :  { %v6562_v55 = vpop.f32.mrf.mxu3  ;;  %v6619_v8 = vpop.f32.mrf.mxu2 }
 0xa7a   :  { %v6563_v62 = vadd.f32 %v6562_v55, %v6544_v6 }
 0xa7b   :  { %v6579_v20 = vpop.f32.mrf.mxu0 }
 0xa7c   :  { %v6580_v4 = vadd.f32 %v6579_v20, %v6561_v1 }
 0xa81   :  { %v6622_v35 = vpop.f32.mrf.mxu2 }
 0xa83   :  { %v6581_v31 = vpop.f32.mrf.mxu0 }
 0xa84   :  { %v6582_v18 = vadd.f32 %v6581_v31, %v6563_v62 }
 0xa89   :  { %v6624_v44 = vpop.f32.mrf.mxu2 }
 0xa8b   :  { %v6598_v3 = vpop.f32.mrf.mxu1 }
 0xa8c   :  { %v6599_v39 = vadd.f32 %v6598_v3, %v6580_v4 }
 0xa8e   :  { %v6618_v57 = vadd.f32 %v6617_v2, %v6599_v39 }
 0xa90   :  { %v6639_v32 = vmul.f32 %v7850_v19, %v6618_v57 }
 0xa92   :  { %v6644_v45 = vsel %vm6643_vm12, %v6639_v32, 0.0 }
 0xa93   :  { %v6600_v7 = vpop.f32.mrf.mxu1 }
 0xa94   :  { %v6601_v22 = vadd.f32 %v6600_v7, %v6582_v18 }
 0xa96   :  { %v6620_v11 = vadd.f32 %v6619_v8, %v6601_v22 }
 0xa98   :  { %v6640_v14 = vmul.f32 %v7851_v24, %v6620_v11 }
 0xa9a   :  { %v6645_v40 = vsel %vm6643_vm12, %v6640_v14, 0.0 }
 0xa9b   :  { %v6646_v46 = vadd.f32 %v6645_v40, %v6644_v45  ;;  %v8006_v40 = vld [vmem:[%s10937_s10 + $0x38] sm:$0xff] }
 0xa9c   :  { %6912 = vmatpush.bf16.msrb.mxu3 %v8006_v40 }
 0xaa1   :  { %v6565_v21 = vpop.f32.mrf.mxu3 }
 0xaa2   :  { %v6566_v33 = vadd.f32 %v6565_v21, %v6547_v43  ;;  %v8005_v21 = vld [vmem:[%s10937_s10 + $0x30] sm:$0xff]  ;;  %v8004_v43 = vld [vmem:[%s10937_s10 + $0x28] sm:$0xff] }
 0xaa3   :  { %6913 = vmatpush.bf16.msrb.mxu3 %v8005_v21 }
 0xaa7   :  { %6914 = vmatpush.bf16.msrb.mxu3 %v8004_v43  ;;  %v8048_v43 = vld [vmem:[%s10938_s11] ss:$0 sm:$0xff] }
 0xaa9   :  { %v6567_v25 = vpop.f32.mrf.mxu3 }
 0xaaa   :  { %v6568_v5 = vadd.f32 %v6567_v25, %v6549_v38 }
 0xaab   :  { %v6584_v41 = vpop.f32.mrf.mxu0 }
 0xaac   :  { %v6585_v63 = vadd.f32 %v6584_v41, %v6566_v33  ;;  %v8012_v33 = vld [vmem:[%s10937_s10 + $0x68] sm:$0xff] }
 0xab3   :  { %v6586_v17 = vpop.f32.mrf.mxu0 }
 0xab4   :  { %v6587_v10 = vadd.f32 %v6586_v17, %v6568_v5 }
 0xaba   :  { %v6603_v12 = vpop.f32.mrf.mxu1 }
 0xabb   :  { %v6604_v36 = vadd.f32 %v6603_v12, %v6585_v63  ;;  %v8003_v12 = vld [vmem:[%s10937_s10 + $0x20] sm:$0xff] }
 0xabc   :  { %6915 = vmatpush.bf16.msrb.mxu3 %v8003_v12 }
 0xabd   :  { %v6623_v29 = vadd.f32 %v6622_v35, %v6604_v36 }
 0xabf   :  { %v6641_v54 = vmul.f32 %v7852_v58, %v6623_v29 }
 0xac1   :  { %v6647_v23 = vsel %vm6643_vm12, %v6641_v54, 0.0 }
 0xac2   :  { %v6605_v15 = vpop.f32.mrf.mxu1  ;;  %v6648_v30 = vadd.f32 %v6647_v23, %v6646_v46  ;;  %v8014_v46 = vld [vmem:[%s10937_s10 + $0x78] sm:$0xff] }
 0xac3   :  { %v6606_v42 = vadd.f32 %v6605_v15, %v6587_v10  ;;  %6925 = vmatpush.bf16.msra.mxu0 %v8014_v46  ;;  %v8047_v15 = vld [vmem:[%s10936_s9] ss:$0 sm:$0xff] }
 0xac5   :  { %v6625_v47 = vadd.f32 %v6624_v44, %v6606_v42 }
 0xac7   :  { %v6642_v26 = vmul.f32 %v7853_v16, %v6625_v47  ;;  %6926 = vmatpush.bf16.msra.mxu0 %v8013_v27 }
 0xac9   :  { %v6649_v9 = vsel %vm6643_vm12, %v6642_v26, 0.0 }
 0xaca   :  { %v6650_v56 = vadd.f32 %v6649_v9, %v6648_v30 }
 0xacb   :  { %6927 = vmatpush.bf16.msra.mxu0 %v8012_v33 }
 0xacc   :  { %v6651_v48 = vrot.slane %v6650_v56, 4 }
 0xace   :  { %v6652_v61 = vadd.f32 %v6651_v48, %v6650_v56 }
 0xacf   :  { %6928 = vmatpush.bf16.msra.mxu0 %v8011_v13 }
 0xad0   :  { %v6653_v49 = vrot.slane %v6652_v61, 2 }
 0xad2   :  { %v6654_v50 = vadd.f32 %v6653_v49, %v6652_v61 }
 0xad4   :  { %v6655_v51 = vrot.slane %v6654_v50, 1 }
 0xad6   :  { %v6656_v28 = vadd.f32 %v6655_v51, %v6654_v50 }
 0xad8   :  { %v6657_v60 = vmul.f32 0.125, %v6656_v28 }
 0xada   :  { %v6658_v52 = vsub.f32 %v6618_v57, %v6657_v60  ;;  %v6659_v37 = vsub.f32 %v6620_v11, %v6657_v60  ;;  %v6660_v20 = vsub.f32 %v6623_v29, %v6657_v60  ;;  %v6661_v53 = vsub.f32 %v6625_v47, %v6657_v60  ;;  %v8046_v29 = vld [vmem:[%s10935_s8] ss:$0 sm:$0xff] }
 0xadc   :  { %v6662_v0 = vmul.f32 %v6658_v52, %v6658_v52  ;;  %v6663_v59 = vmul.f32 %v6659_v37, %v6659_v37  ;;  %v6664_v1 = vmul.f32 %v6660_v20, %v6660_v20  ;;  %v6665_v2 = vmul.f32 %v6661_v53, %v6661_v53 }
 0xade   :  { %v6666_v3 = vmul.f32 %v7850_v19, %v6662_v0  ;;  %v6667_v34 = vmul.f32 %v7851_v24, %v6663_v59  ;;  %v6668_v4 = vmul.f32 %v7852_v58, %v6664_v1  ;;  %v6669_v55 = vmul.f32 %v7853_v16, %v6665_v2 }
 0xae0   :  { %v6670_v6 = vsel %vm6643_vm12, %v6666_v3, 0.0  ;;  %v6671_v39 = vsel %vm6643_vm12, %v6667_v34, 0.0  ;;  %v6673_v62 = vsel %vm6643_vm12, %v6668_v4, 0.0  ;;  %v6675_v57 = vsel %vm6643_vm12, %v6669_v55, 0.0 }
 0xae1   :  { %v6672_v31 = vadd.f32 %v6671_v39, %v6670_v6 }
 0xae3   :  { %v6674_v18 = vadd.f32 %v6673_v62, %v6672_v31 }
 0xae5   :  { %v6676_v7 = vadd.f32 %v6675_v57, %v6674_v18  ;;  %v8002_v18 = vld [vmem:[%s10937_s10 + $0x18] sm:$0xff] }
 0xae6   :  { %v8010_v57 = vld [vmem:[%s10937_s10 + $0x58] sm:$0xff]  ;;  %6916 = vmatpush.bf16.msrb.mxu3 %v8002_v18 }
 0xae7   :  { %v6677_v22 = vrot.slane %v6676_v7, 4  ;;  %6929 = vmatpush.bf16.msra.mxu0 %v8010_v57 }
 0xae9   :  { %v6678_v8 = vadd.f32 %v6677_v22, %v6676_v7  ;;  %v8001_v7 = vld [vmem:[%s10937_s10 + $0x10] sm:$0xff] }
 0xaea   :  { %v8009_v22 = vld [vmem:[%s10937_s10 + $0x50] sm:$0xff]  ;;  %6917 = vmatpush.bf16.msrb.mxu3 %v8001_v7 }
 0xaeb   :  { %v6679_v32 = vrot.slane %v6678_v8, 2  ;;  %6930 = vmatpush.bf16.msra.mxu0 %v8009_v22 }
 0xaed   :  { %v6680_v11 = vadd.f32 %v6679_v32, %v6678_v8  ;;  %v8000_v8 = vld [vmem:[%s10937_s10 + $0x8] sm:$0xff] }
 0xaee   :  { %v8008_v32 = vld [vmem:[%s10937_s10 + $0x48] sm:$0xff]  ;;  %6918 = vmatpush.bf16.msrb.mxu3 %v8000_v8 }
 0xaef   :  { %v6681_v14 = vrot.slane %v6680_v11, 1  ;;  %6931 = vmatpush.bf16.msra.mxu0 %v8008_v32 }
 0xaf1   :  { %v6682_v19 = vadd.f32 %v6681_v14, %v6680_v11  ;;  %v7999_v11 = vld [vmem:[%s10937_s10] sm:$0xff] }
 0xaf2   :  { %v8007_v14 = vld [vmem:[%s10937_s10 + $0x40] sm:$0xff]  ;;  %6919 = vmatpush.bf16.msrb.mxu3 %v7999_v11  ;;  %s8107_s10 = smov [#allocation9]  }
 0xaf3   :  { %v6683_v24 = vmul.f32 0.125, %v6682_v19  ;;  %6932 = vmatpush.bf16.msra.mxu0 %v8007_v14  ;;  %s6945_s26 = sshll.u32 %s8107_s10, 4  ;;  %s6946_s26 = int_to_ptr.vmem [resolvable:$true] %s6945_s26 }
 0xaf5   :  { %v6684_v45 = vadd.f32 1e-05, %v6683_v24 }
 0xaf7   :  { %8053 = vrsqrt.f32 %v6684_v45  ;;  %vm6691_vm14 = vweird.f32 %v6684_v45 }
 0xafd   :  { %v8054_v41 = vpop.eup %8053 }
 0xafe   :  { %v6686_v63 = vmul.f32 %v8054_v41, %v6684_v45  ;;  %vm6692_vm13 = vweird.f32 %v8054_v41 }
 0xaff   :  { %vm6693_vm15 = vmor %vm6691_vm14, %vm6692_vm13 }
 0xb00   :  { %v6687_v35 = vmul.f32 %v8054_v41, %v6686_v63 }
 0xb02   :  { %v6688_v36 = vmul.f32 0.5, %v6687_v35 }
 0xb04   :  { %v6689_v25 = vsub.f32 1.5, %v6688_v36 }
 0xb06   :  { %v6690_v38 = vmul.f32 %v8054_v41, %v6689_v25 }
 0xb08   :  { %v6694_v17 = vsel %vm6693_vm15, %v8054_v41, %v6690_v38 }
 0xb09   :  { %v6695_v58 = vmul.f32 %v6694_v17, %v6658_v52  ;;  %v6696_v5 = vmul.f32 %v6694_v17, %v6659_v37  ;;  %v6697_v10 = vmul.f32 %v6694_v17, %v6660_v20  ;;  %v6698_v54 = vmul.f32 %v6694_v17, %v6661_v53 }
 0xb0b   :  { %v6703_v42 = vmul.f32 %v8046_v29, %v6695_v58  ;;  %v6704_v44 = vmul.f32 %v8046_v29, %v6696_v5  ;;  %v6705_v16 = vmul.f32 %v8046_v29, %v6697_v10  ;;  %v6706_v23 = vmul.f32 %v8046_v29, %v6698_v54 }
 0xb0d   :  { %v6714_v47 = vadd.f32 %v8047_v15, %v6706_v23  ;;  %v6712_v26 = vadd.f32 %v8047_v15, %v6704_v44  ;;  %v6711_v30 = vadd.f32 %v8047_v15, %v6703_v42  ;;  %v6713_v9 = vadd.f32 %v8047_v15, %v6705_v16 }
 0xb0f   :  { %v6716_v56 = vmax.f32 %v6712_v26, 0.0  ;;  %v6715_v48 = vmax.f32 %v6711_v30, 0.0  ;;  %v6718_v61 = vmax.f32 %v6714_v47, 0.0  ;;  %v6717_v50 = vmax.f32 %v6713_v9, 0.0 }
 0xb11   :  { %v6760_v49 = vrot.slane %v6716_v56, 1  ;;  %v6737_v51 = vrot.slane %v6715_v48, 1  ;;  %v6753_v1 = vrot.slane %v6718_v61, 7  ;;  %v6725_v2 = vrot.slane %v6717_v50, 7 }
 0xb13   :  { %v6763_v28 = vsel %vm6726_vm1, %v6718_v61, %v6760_v49  ;;  %v6740_v60 = vsel %vm6726_vm1, %v6717_v50, %v6737_v51  ;;  %v6754_v3 = vsel %vm6726_vm1, %v6753_v1, %v6716_v56  ;;  %v6727_v34 = vsel %vm6726_vm1, %v6725_v2, %v6715_v48 }
 0xb14   :  { %v6764_v52 = vsel %vm6728_vm2, %v6718_v61, %v6763_v28  ;;  %v6741_v37 = vsel %vm6728_vm2, %v6717_v50, %v6740_v60  ;;  %v6755_v4 = vsel %vm6728_vm2, %v6753_v1, %v6754_v3  ;;  %v6729_v55 = vsel %vm6728_vm2, %v6725_v2, %v6727_v34 }
 0xb15   :  { %v6765_v20 = vsel %vm6730_vm4, %v6718_v61, %v6764_v52  ;;  %v6742_v53 = vsel %vm6730_vm4, %v6717_v50, %v6741_v37  ;;  %v6756_v6 = vsel %vm6730_vm4, %v6753_v1, %v6755_v4  ;;  %v6731_v39 = vsel %vm6730_vm4, %v6725_v2, %v6729_v55 }
 0xb16   :  { %v6766_v0 = vsel %vm6732_vm5, %v6718_v61, %v6765_v20  ;;  %v6743_v59 = vsel %vm6732_vm5, %v6717_v50, %v6742_v53  ;;  %v6757_v31 = vsel %vm6732_vm5, %v6753_v1, %v6756_v6  ;;  %v6733_v62 = vsel %vm6732_vm5, %v6725_v2, %v6731_v39 }
 0xb17   :  { %6767 = vrot.lane.b32.xlu1 %v6766_v0, %s8097_s17  ;;  %6744 = vrot.lane.b32.xlu0 %v6743_v59, %s8097_s17  ;;  %6759 = vst.msk [vmem:[#allocation8 + $0x2] sm:$0x3] %vm6735_vm6, %v6757_v31 }
 0xb18   :  { %6736 = vst.msk [vmem:[#allocation8] sm:$0x3] %vm6735_vm6, %v6733_v62 }
 0xb89   :  { %v6768_v19 = vpop.permute.xlu1 %6767  ;;  %v6745_v24 = vpop.permute.xlu0 %6744 }
 0xb8a   :  { %6770 = vst.msk [vmem:[#allocation8 + $0x2] sm:$0x3] %vm6747_vm7, %v6768_v19 }
 0xb8b   :  { %6748 = vst.msk [vmem:[#allocation8] sm:$0x3] %vm6747_vm7, %v6745_v24 }
 0xb92   :  { %v6771_v45 = vld [vmem:[#allocation8] sm:$0xf] }
 0xb93   :  { %6773 = vst [vmem:[#allocation1] ss:$4 sm:$0xff] %v6771_v45 }
 0xb9a   :  { %v6774_v40 = vld.sshfl [vmem:[#allocation1] sm:$0xff pattern:$0x73625140]  ;;  %v6775_v46 = vld.sshfl [vmem:[#allocation1 + $0x8] sm:$0xff pattern:$0x73625140] }
 0xb9b   :  { %v6778_v21 = vpack.c.bf16 %v6774_v40, %v6774_v40  ;;  %v6779_v27 = vpack.c.bf16 %v6775_v46, %v6775_v46 }
 0xb9d   :  { %6920 = vmatmul.bf16.vlgmr.msrb.gmra.mxu3 %v6778_v21  ;;  %6933 = vmatmul.bf16.vlgmr.msra.gmra.mxu0 %v6779_v27 }
 0xc1a   :  { %v6934_v41 = vpop.f32.mrf.mxu0 }
 0xc20   :  { %v6921_v33 = vpop.f32.mrf.mxu3 }
 0xc21   :  { %v6922_v63 = vadd.f32 %v8048_v43, %v6921_v33 }
 0xc22   :  { %v6936_v35 = vpop.f32.mrf.mxu0 }
 0xc23   :  { %v6935_v12 = vadd.f32 %v6934_v41, %v6922_v63 }
 0xc25   :  { %6939 = vst.msk [vmem:[#allocation9] sm:$0x3] %vm6938_vm8, %v6935_v12 }
 0xc26   :  { %6950 = dma.vmem_to_hbm [thread:$0]  %s6946_s26, 32, %s6948_s16, [#allocation10]  }
 0xc28   :  { %v6923_v13 = vpop.f32.mrf.mxu3 }
 0xc29   :  { %8079 = dma.done.wait [#allocation10], 32  }
 0xc2a   :  { %8080 = vsyncadd [#allocation10], 4294967264 }
 0xc2b   :  { %6955 = vsyncpa [#allocation10], 1 }

</bundles_post_ra>
